<compile_context>
chip_gen: v7x
topology: tpu7x:2x2x1
jax: 0.10.0
libtpu: 0.0.40
codegen_flags: <defaults>
</compile_context>

<pallas_src>
import functools

import jax
import jax.numpy as jnp
from jax.experimental import pallas as pl
from jax.experimental.pallas import tpu as pltpu

LANE = 128


def _round_up(x, m):
    return (x + m - 1) // m * m


def _cp(c):
    """Pad a channel count up to a multiple of 128 (lane-dense)."""
    return _round_up(c, LANE)


def _choose_tk(K, max_tk=1536):
    """Largest K-tile that is a multiple of 128, divides K and is <= max_tk."""
    if K <= max_tk:
        return K
    best = None
    t = 128
    while t <= max_tk:
        if K % t == 0:
            best = t
        t += 128
    return best if best is not None else K


def _row_tile(M):
    """Row tile for elementwise/pooling kernels (multiple of 8 dividing M, else full)."""
    for t in (512, 256, 128, 64, 32, 16, 8):
        if M % t == 0:
            return t
    return M


# ----------------------------- Pallas kernels -----------------------------

def _matmul_fused_kernel(*refs, apply_relu, has_residual):
    """K-tiled matmul with f32 accumulator and fused BN scale/bias (+residual)(+ReLU)."""
    if has_residual:
        a_ref, b_ref, s_ref, c_ref, r_ref, o_ref, acc_ref = refs
    else:
        a_ref, b_ref, s_ref, c_ref, o_ref, acc_ref = refs
        r_ref = None
    k = pl.program_id(1)

    @pl.when(k == 0)
    def _():
        acc_ref[...] = jnp.zeros_like(acc_ref)

    acc_ref[...] += jnp.dot(a_ref[...], b_ref[...],
                            preferred_element_type=jnp.float32)

    @pl.when(k == pl.num_programs(1) - 1)
    def _():
        out = acc_ref[...] * s_ref[...] + c_ref[...]
        if has_residual:
            out = out + r_ref[...].astype(jnp.float32)
        if apply_relu:
            out = jnp.maximum(out, 0.0)
        o_ref[...] = out.astype(o_ref.dtype)


def matmul_scale_bias(a, b, scale, bias, *, apply_relu=False, residual=None,
                      out_dtype=jnp.bfloat16):
    """maybe_relu((a @ b) * scale + bias [+ residual]); bf16 operands, f32 accumulate."""
    M, K = a.shape
    Kb, N = b.shape
    assert K == Kb, (K, Kb)

    tm = 128 if M >= 128 else _round_up(M, 8)
    Mp = _round_up(M, tm)
    tk = _choose_tk(K)

    a = a.astype(jnp.bfloat16)
    if Mp != M:
        a = jnp.pad(a, ((0, Mp - M), (0, 0)))
    b = b.astype(jnp.bfloat16)
    s2 = scale.reshape(1, N).astype(jnp.float32)
    c2 = bias.reshape(1, N).astype(jnp.float32)

    has_res = residual is not None
    operands = [a, b, s2, c2]
    in_specs = [
        pl.BlockSpec((tm, tk), lambda i, k: (i, k)),
        pl.BlockSpec((tk, N), lambda i, k: (k, 0)),
        pl.BlockSpec((1, N), lambda i, k: (0, 0)),
        pl.BlockSpec((1, N), lambda i, k: (0, 0)),
    ]
    if has_res:
        r = residual.astype(jnp.bfloat16)
        if Mp != M:
            r = jnp.pad(r, ((0, Mp - M), (0, 0)))
        operands.append(r)
        in_specs.append(pl.BlockSpec((tm, N), lambda i, k: (i, 0)))

    kernel = functools.partial(_matmul_fused_kernel,
                               apply_relu=apply_relu, has_residual=has_res)
    out = pl.pallas_call(
        kernel,
        out_shape=jax.ShapeDtypeStruct((Mp, N), out_dtype),
        grid=(Mp // tm, K // tk),
        in_specs=in_specs,
        out_specs=pl.BlockSpec((tm, N), lambda i, k: (i, 0)),
        scratch_shapes=[pltpu.VMEM((tm, N), jnp.float32)],
        compiler_params=pltpu.CompilerParams(
            dimension_semantics=("parallel", "arbitrary")),
    )(*operands)
    return out if Mp == M else out[:M]


def _maxpool_taps_kernel(*refs):
    out_ref = refs[-1]
    m = refs[0][...]
    for r in refs[1:-1]:
        m = jnp.maximum(m, r[...])
    out_ref[...] = m


def maxpool2d_3x3_s2_p1(x):
    """PyTorch MaxPool2d(kernel_size=3, stride=2, padding=1) on NHWC input (bf16)."""
    N, H, W, C = x.shape
    k, s, p = 3, 2, 1
    Ho = (H + 2 * p - k) // s + 1
    Wo = (W + 2 * p - k) // s + 1
    xp = jnp.pad(x, ((0, 0), (p, p), (p, p), (0, 0)), constant_values=-jnp.inf)
    taps = [
        xp[:, i:i + (Ho - 1) * s + 1:s, j:j + (Wo - 1) * s + 1:s, :]
        .reshape(N * Ho * Wo, C)
        for i in range(k) for j in range(k)
    ]
    M = N * Ho * Wo
    tr = _row_tile(M)
    out = pl.pallas_call(
        _maxpool_taps_kernel,
        out_shape=jax.ShapeDtypeStruct((M, C), x.dtype),
        grid=(M // tr,),
        in_specs=[pl.BlockSpec((tr, C), lambda i: (i, 0)) for _ in taps],
        out_specs=pl.BlockSpec((tr, C), lambda i: (i, 0)),
        compiler_params=pltpu.CompilerParams(dimension_semantics=("parallel",)),
    )(*taps)
    return out.reshape(N, Ho, Wo, C)


def _gap_kernel(x_ref, o_ref, acc_ref, *, inv_hw):
    t = pl.program_id(0)

    @pl.when(t == 0)
    def _():
        acc_ref[...] = jnp.zeros_like(acc_ref)

    acc_ref[...] += jnp.sum(x_ref[...].astype(jnp.float32), axis=1)

    @pl.when(t == pl.num_programs(0) - 1)
    def _():
        o_ref[...] = acc_ref[...] * inv_hw


def global_avg_pool(x):
    """AdaptiveAvgPool2d((1,1)) on NHWC -> (N, C) float32, tiled over H*W."""
    N, H, W, C = x.shape
    HW = H * W
    x3 = x.reshape(N, HW, C)
    thw = _row_tile(HW)
    kernel = functools.partial(_gap_kernel, inv_hw=1.0 / HW)
    return pl.pallas_call(
        kernel,
        out_shape=jax.ShapeDtypeStruct((N, C), jnp.float32),
        grid=(HW // thw,),
        in_specs=[pl.BlockSpec((N, thw, C), lambda t: (0, t, 0))],
        out_specs=pl.BlockSpec((N, C), lambda t: (0, 0)),
        scratch_shapes=[pltpu.VMEM((N, C), jnp.float32)],
        compiler_params=pltpu.CompilerParams(dimension_semantics=("arbitrary",)),
    )(x3)


# ----------------------------- glue: conv via im2col -----------------------------

def conv_bn(x, cp, *, stride, padding, relu, residual=None):
    """Conv2d(bias=False) + folded BN (+ReLU) (+fused residual). x is NHWC bf16."""
    N, H, W, C = x.shape
    kh, kw = cp['kh'], cp['kw']
    assert kh * kw * C == cp['wmat'].shape[0]
    Ho = (H + 2 * padding - kh) // stride + 1
    Wo = (W + 2 * padding - kw) // stride + 1
    xp = (jnp.pad(x, ((0, 0), (padding, padding), (padding, padding), (0, 0)))
          if padding else x)
    cols = [
        xp[:, i:i + (Ho - 1) * stride + 1:stride,
              j:j + (Wo - 1) * stride + 1:stride, :]
        for i in range(kh) for j in range(kw)
    ]
    patches = cols[0] if len(cols) == 1 else jnp.concatenate(cols, axis=-1)
    a = patches.reshape(N * Ho * Wo, kh * kw * C)
    res = None if residual is None else residual.reshape(N * Ho * Wo,
                                                         residual.shape[-1])
    out = matmul_scale_bias(a, cp['wmat'], cp['scale'], cp['bias'],
                            apply_relu=relu, residual=res,
                            out_dtype=jnp.bfloat16)
    return out.reshape(N, Ho, Wo, cp['wmat'].shape[1])


# ----------------------------- ResNet10 forward -----------------------------

def basic_block_forward(x, p, stride):
    out1 = conv_bn(x, p['conv1'], stride=stride, padding=1, relu=True)
    if 'down' in p:
        identity = conv_bn(x, p['down'], stride=stride, padding=0, relu=False)
    else:
        identity = x
    # Second conv + BN with the residual add and final ReLU fused into its epilogue.
    return conv_bn(out1, p['conv2'], stride=1, padding=1, relu=True,
                   residual=identity)


def audio_classifier_forward(kparams, x_nchw):
    x = jnp.transpose(x_nchw, (0, 2, 3, 1)).astype(jnp.bfloat16)  # NCHW -> NHWC
    x = conv_bn(x, kparams['conv1'], stride=2, padding=3, relu=True)
    x = maxpool2d_3x3_s2_p1(x)
    x = basic_block_forward(x, kparams['layer1'], 1)
    x = basic_block_forward(x, kparams['layer2'], 2)
    x = basic_block_forward(x, kparams['layer3'], 2)
    x = basic_block_forward(x, kparams['layer4'], 2)
    pooled = global_avg_pool(x)                                   # (N, 512) f32
    logits = matmul_scale_bias(pooled, kparams['fc_w'],
                               kparams['fc_scale'], kparams['fc_b'],
                               apply_relu=False, out_dtype=jnp.float32)
    return logits


# ----------------------------- parameter preparation -----------------------------

def prepare_kernel_params(params):
    """Fold/pad/transpose/cast all weights once (hoisted out of the forward pass)."""

    def conv_entry(w_oihw, bn, in_pad):
        o, i, kh, kw = w_oihw.shape
        out_pad = _cp(o)
        w = jnp.pad(w_oihw.astype(jnp.float32),
                    ((0, out_pad - o), (0, in_pad - i), (0, 0), (0, 0)))
        wmat = jnp.transpose(w, (2, 3, 1, 0)).reshape(kh * kw * in_pad, out_pad)
        scale, bias = bn
        scale = jnp.pad(scale.astype(jnp.float32), (0, out_pad - o))
        bias = jnp.pad(bias.astype(jnp.float32), (0, out_pad - o))
        return {'wmat': wmat.astype(jnp.bfloat16), 'kh': kh, 'kw': kw,
                'scale': scale, 'bias': bias}

    def block_entry(p, in_c):
        in_pad = _cp(in_c)
        d = {'conv1': conv_entry(p['conv1_w'], p['bn1'], in_pad),
             'conv2': conv_entry(p['conv2_w'], p['bn2'],
                                 _cp(p['conv1_w'].shape[0]))}
        if 'down_w' in p:
            d['down'] = conv_entry(p['down_w'], p['dbn'], in_pad)
        return d

    kp = {'conv1': conv_entry(params['conv1_w'], params['bn1'],
                              in_pad=params['conv1_w'].shape[1])}
    kp['layer1'] = block_entry(params['layer1'], 64)
    kp['layer2'] = block_entry(params['layer2'], 64)
    kp['layer3'] = block_entry(params['layer3'], 128)
    kp['layer4'] = block_entry(params['layer4'], 256)
    nc = params['fc_w'].shape[0]
    kp['fc_w'] = params['fc_w'].T.astype(jnp.bfloat16)            # (512, nc)
    kp['fc_scale'] = jnp.ones((nc,), jnp.float32)
    kp['fc_b'] = params['fc_b'].astype(jnp.float32)
    return kp


# ----------------------------- deterministic params -----------------------------

def init_params(key, num_classes=10):
    keys = iter(jax.random.split(key, 64))

    def conv_w(o, i, kh, kw):
        fan_in = i * kh * kw
        return (jax.random.normal(next(keys), (o, i, kh, kw), jnp.float32)
                * jnp.sqrt(2.0 / fan_in))

    def bn(c):
        k1, k2, k3, k4 = jax.random.split(next(keys), 4)
        gamma = jax.random.uniform(k1, (c,), jnp.float32, 0.5, 1.5)
        beta = jax.random.normal(k2, (c,), jnp.float32) * 0.1
        mean = jax.random.normal(k3, (c,), jnp.float32) * 0.1
        var = jax.random.uniform(k4, (c,), jnp.float32, 0.5, 1.5)
        scale = gamma / jnp.sqrt(var + 1e-5)
        bias = beta - mean * scale
        return scale, bias

    params = {'conv1_w': conv_w(64, 3, 7, 7), 'bn1': bn(64)}

    def block(cin, cout, stride):
        p = {'conv1_w': conv_w(cout, cin, 3, 3), 'bn1': bn(cout),
             'conv2_w': conv_w(cout, cout, 3, 3), 'bn2': bn(cout)}
        if stride != 1 or cin != cout:
            p['down_w'] = conv_w(cout, cin, 1, 1)
            p['dbn'] = bn(cout)
        return p

    params['layer1'] = block(64, 64, 1)
    params['layer2'] = block(64, 128, 2)
    params['layer3'] = block(128, 256, 2)
    params['layer4'] = block(256, 512, 2)
    kf1, kf2 = jax.random.split(next(keys))
    params['fc_w'] = jax.random.normal(kf1, (num_classes, 512), jnp.float32) * 0.02
    params['fc_b'] = jax.random.normal(kf2, (num_classes,), jnp.float32) * 0.02
    return params


if __name__ == "__main__":
    key = jax.random.PRNGKey(0)
    kp, kx = jax.random.split(key)
    num_classes = 10
    raw_params = init_params(kp, num_classes)
    kparams = prepare_kernel_params(raw_params)   # one-time weight prep (bf16/padded)
    x = jax.random.normal(kx, (2, 3, 32, 32), jnp.float32)  # NCHW, like PyTorch

    fwd = jax.jit(lambda inp: audio_classifier_forward(kparams, inp))
    logits = fwd(x)
    jax.block_until_ready(logits)
    assert logits.shape == (2, num_classes)
    assert bool(jnp.all(jnp.isfinite(logits)))
    print("KERNEL_OK")
</pallas_src>

<mosaic_0001>
module attributes {stable_mosaic.version = 11 : i64} {
  func.func @_matmul_fused_kernel(%arg0: i32, %arg1: i32, %arg2: memref<128x147xbf16, #tpu.memory_space<vmem>>, %arg3: memref<147x128xbf16, #tpu.memory_space<vmem>>, %arg4: memref<1x128xf32, #tpu.memory_space<vmem>>, %arg5: memref<1x128xf32, #tpu.memory_space<vmem>>, %arg6: memref<128x128xbf16, #tpu.memory_space<vmem>>, %arg7: memref<128x128xf32, #tpu.memory_space<vmem>>) attributes {dimension_semantics = [#tpu.dimension_semantics<parallel>, #tpu.dimension_semantics<arbitrary>], iteration_bounds = array<i64: 4, 1>, scalar_prefetch = 0 : i64, scratch_operands = 1 : i64, tpu.core_type = #tpu.core_type<tc>, window_params = [{transform_indices = @transform_0, window_bounds = array<i64: 128, 147>}, {transform_indices = @transform_1, window_bounds = array<i64: 147, 128>}, {pipeline_mode = #tpu.pipeline_mode<synchronous>, transform_indices = @transform_2, window_bounds = array<i64: 1, 128>}, {pipeline_mode = #tpu.pipeline_mode<synchronous>, transform_indices = @transform_3, window_bounds = array<i64: 1, 128>}, {transform_indices = @transform_4, window_bounds = array<i64: 128, 128>}]} {
    %c0_i32 = arith.constant 0 : i32
    %0 = arith.cmpi eq, %arg1, %c0_i32 : i32
    %1 = arith.extui %0 : i1 to i32
    %c0_i32_0 = arith.constant 0 : i32
    %2 = arith.cmpi ne, %1, %c0_i32_0 : i32
    scf.if %2 {
      %cst_10 = arith.constant 0.000000e+00 : f32
      %12 = vector.broadcast %cst_10 : f32 to vector<128x128xf32>
      %c0_11 = arith.constant 0 : index
      %c0_12 = arith.constant 0 : index
      %13 = vector.load %arg7[%c0_11, %c0_12] : memref<128x128xf32, #tpu.memory_space<vmem>>, vector<128x128xf32>
      tpu.vector_store %arg7[%c0_11, %c0_12], %12 {strides = array<i32>} : memref<128x128xf32, #tpu.memory_space<vmem>>, vector<128x128xf32>,
    } else {
    }
    %c0 = arith.constant 0 : index
    %c0_1 = arith.constant 0 : index
    %3 = vector.load %arg7[%c0, %c0_1] : memref<128x128xf32, #tpu.memory_space<vmem>>, vector<128x128xf32>
    %c0_2 = arith.constant 0 : index
    %c0_3 = arith.constant 0 : index
    %4 = vector.load %arg2[%c0_2, %c0_3] : memref<128x147xbf16, #tpu.memory_space<vmem>>, vector<128x147xbf16>
    %c0_4 = arith.constant 0 : index
    %c0_5 = arith.constant 0 : index
    %5 = vector.load %arg3[%c0_4, %c0_5] : memref<147x128xbf16, #tpu.memory_space<vmem>>, vector<147x128xbf16>
    %cst = arith.constant dense<0.000000e+00> : vector<128x128xf32>
    %6 = tpu.matmul %4, %5, %cst {dimension_numbers = #tpu.dot_dimension_numbers<[1], [0], [0], [1], [0, 0, 1, 1], [], []>} : vector<128x147xbf16>, vector<147x128xbf16>, vector<128x128xf32> -> vector<128x128xf32>
    %7 = arith.addf %3, %6 : vector<128x128xf32>
    %c0_6 = arith.constant 0 : index
    %c0_7 = arith.constant 0 : index
    %8 = vector.load %arg7[%c0_6, %c0_7] : memref<128x128xf32, #tpu.memory_space<vmem>>, vector<128x128xf32>
    tpu.vector_store %arg7[%c0_6, %c0_7], %7 {strides = array<i32>} : memref<128x128xf32, #tpu.memory_space<vmem>>, vector<128x128xf32>,
    %c0_i32_8 = arith.constant 0 : i32
    %9 = arith.cmpi eq, %arg1, %c0_i32_8 : i32
    %10 = arith.extui %9 : i1 to i32
    %c0_i32_9 = arith.constant 0 : i32
    %11 = arith.cmpi ne, %10, %c0_i32_9 : i32
    scf.if %11 {
      %c0_10 = arith.constant 0 : index
      %c0_11 = arith.constant 0 : index
      %12 = vector.load %arg7[%c0_10, %c0_11] : memref<128x128xf32, #tpu.memory_space<vmem>>, vector<128x128xf32>
      %c0_12 = arith.constant 0 : index
      %c0_13 = arith.constant 0 : index
      %13 = vector.load %arg4[%c0_12, %c0_13] : memref<1x128xf32, #tpu.memory_space<vmem>>, vector<1x128xf32>
      %14 = vector.broadcast %13 : vector<1x128xf32> to vector<128x128xf32>
      %15 = arith.mulf %12, %14 : vector<128x128xf32>
      %c0_14 = arith.constant 0 : index
      %c0_15 = arith.constant 0 : index
      %16 = vector.load %arg5[%c0_14, %c0_15] : memref<1x128xf32, #tpu.memory_space<vmem>>, vector<1x128xf32>
      %17 = vector.broadcast %16 : vector<1x128xf32> to vector<128x128xf32>
      %18 = arith.addf %15, %17 : vector<128x128xf32>
      %cst_16 = arith.constant 0.000000e+00 : f32
      %19 = vector.broadcast %cst_16 : f32 to vector<128x128xf32>
      %20 = arith.maximumf %18, %19 : vector<128x128xf32>
      %21 = arith.truncf %20 : vector<128x128xf32> to vector<128x128xbf16>
      %c0_17 = arith.constant 0 : index
      %c0_18 = arith.constant 0 : index
      %22 = vector.load %arg6[%c0_17, %c0_18] : memref<128x128xbf16, #tpu.memory_space<vmem>>, vector<128x128xbf16>
      tpu.vector_store %arg6[%c0_17, %c0_18], %21 {strides = array<i32>} : memref<128x128xbf16, #tpu.memory_space<vmem>>, vector<128x128xbf16>,
    } else {
    }
    return
  }
  func.func @transform_0(%arg0: i32, %arg1: i32) -> (i32, i32) {
    %c0_i32 = arith.constant 0 : i32
    return %arg0, %arg1 : i32, i32
  }
  func.func @transform_1(%arg0: i32, %arg1: i32) -> (i32, i32) {
    %c0_i32 = arith.constant 0 : i32
    %c0_i32_0 = arith.constant 0 : i32
    return %arg1, %c0_i32 : i32, i32
  }
  func.func @transform_2(%arg0: i32, %arg1: i32) -> (i32, i32) {
    %c0_i32 = arith.constant 0 : i32
    %c0_i32_0 = arith.constant 0 : i32
    %c0_i32_1 = arith.constant 0 : i32
    return %c0_i32, %c0_i32_0 : i32, i32
  }
  func.func @transform_3(%arg0: i32, %arg1: i32) -> (i32, i32) {
    %c0_i32 = arith.constant 0 : i32
    %c0_i32_0 = arith.constant 0 : i32
    %c0_i32_1 = arith.constant 0 : i32
    return %c0_i32, %c0_i32_0 : i32, i32
  }
  func.func @transform_4(%arg0: i32, %arg1: i32) -> (i32, i32) {
    %c0_i32 = arith.constant 0 : i32
    %c0_i32_0 = arith.constant 0 : i32
    return %arg0, %c0_i32 : i32, i32
  }
}

module attributes {stable_mosaic.version = 11 : i64} {
  func.func @_maxpool_taps_kernel(%arg0: i32, %arg1: memref<128x128xbf16, #tpu.memory_space<vmem>>, %arg2: memref<128x128xbf16, #tpu.memory_space<vmem>>, %arg3: memref<128x128xbf16, #tpu.memory_space<vmem>>, %arg4: memref<128x128xbf16, #tpu.memory_space<vmem>>, %arg5: memref<128x128xbf16, #tpu.memory_space<vmem>>, %arg6: memref<128x128xbf16, #tpu.memory_space<vmem>>, %arg7: memref<128x128xbf16, #tpu.memory_space<vmem>>, %arg8: memref<128x128xbf16, #tpu.memory_space<vmem>>, %arg9: memref<128x128xbf16, #tpu.memory_space<vmem>>, %arg10: memref<128x128xbf16, #tpu.memory_space<vmem>>) attributes {dimension_semantics = [#tpu.dimension_semantics<parallel>], iteration_bounds = array<i64: 1>, scalar_prefetch = 0 : i64, scratch_operands = 0 : i64, tpu.core_type = #tpu.core_type<tc>, window_params = [{transform_indices = @transform_0, window_bounds = array<i64: 128, 128>}, {transform_indices = @transform_1, window_bounds = array<i64: 128, 128>}, {transform_indices = @transform_2, window_bounds = array<i64: 128, 128>}, {transform_indices = @transform_3, window_bounds = array<i64: 128, 128>}, {transform_indices = @transform_4, window_bounds = array<i64: 128, 128>}, {transform_indices = @transform_5, window_bounds = array<i64: 128, 128>}, {transform_indices = @transform_6, window_bounds = array<i64: 128, 128>}, {transform_indices = @transform_7, window_bounds = array<i64: 128, 128>}, {transform_indices = @transform_8, window_bounds = array<i64: 128, 128>}, {transform_indices = @transform_9, window_bounds = array<i64: 128, 128>}]} {
    %c0 = arith.constant 0 : index
    %c0_0 = arith.constant 0 : index
    %0 = vector.load %arg1[%c0, %c0_0] : memref<128x128xbf16, #tpu.memory_space<vmem>>, vector<128x128xbf16>
    %c0_1 = arith.constant 0 : index
    %c0_2 = arith.constant 0 : index
    %1 = vector.load %arg2[%c0_1, %c0_2] : memref<128x128xbf16, #tpu.memory_space<vmem>>, vector<128x128xbf16>
    %2 = arith.maximumf %0, %1 : vector<128x128xbf16>
    %c0_3 = arith.constant 0 : index
    %c0_4 = arith.constant 0 : index
    %3 = vector.load %arg3[%c0_3, %c0_4] : memref<128x128xbf16, #tpu.memory_space<vmem>>, vector<128x128xbf16>
    %4 = arith.maximumf %2, %3 : vector<128x128xbf16>
    %c0_5 = arith.constant 0 : index
    %c0_6 = arith.constant 0 : index
    %5 = vector.load %arg4[%c0_5, %c0_6] : memref<128x128xbf16, #tpu.memory_space<vmem>>, vector<128x128xbf16>
    %6 = arith.maximumf %4, %5 : vector<128x128xbf16>
    %c0_7 = arith.constant 0 : index
    %c0_8 = arith.constant 0 : index
    %7 = vector.load %arg5[%c0_7, %c0_8] : memref<128x128xbf16, #tpu.memory_space<vmem>>, vector<128x128xbf16>
    %8 = arith.maximumf %6, %7 : vector<128x128xbf16>
    %c0_9 = arith.constant 0 : index
    %c0_10 = arith.constant 0 : index
    %9 = vector.load %arg6[%c0_9, %c0_10] : memref<128x128xbf16, #tpu.memory_space<vmem>>, vector<128x128xbf16>
    %10 = arith.maximumf %8, %9 : vector<128x128xbf16>
    %c0_11 = arith.constant 0 : index
    %c0_12 = arith.constant 0 : index
    %11 = vector.load %arg7[%c0_11, %c0_12] : memref<128x128xbf16, #tpu.memory_space<vmem>>, vector<128x128xbf16>
    %12 = arith.maximumf %10, %11 : vector<128x128xbf16>
    %c0_13 = arith.constant 0 : index
    %c0_14 = arith.constant 0 : index
    %13 = vector.load %arg8[%c0_13, %c0_14] : memref<128x128xbf16, #tpu.memory_space<vmem>>, vector<128x128xbf16>
    %14 = arith.maximumf %12, %13 : vector<128x128xbf16>
    %c0_15 = arith.constant 0 : index
    %c0_16 = arith.constant 0 : index
    %15 = vector.load %arg9[%c0_15, %c0_16] : memref<128x128xbf16, #tpu.memory_space<vmem>>, vector<128x128xbf16>
    %16 = arith.maximumf %14, %15 : vector<128x128xbf16>
    %c0_17 = arith.constant 0 : index
    %c0_18 = arith.constant 0 : index
    %17 = vector.load %arg10[%c0_17, %c0_18] : memref<128x128xbf16, #tpu.memory_space<vmem>>, vector<128x128xbf16>
    tpu.vector_store %arg10[%c0_17, %c0_18], %16 {strides = array<i32>} : memref<128x128xbf16, #tpu.memory_space<vmem>>, vector<128x128xbf16>,
    return
  }
  func.func @transform_0(%arg0: i32) -> (i32, i32) {
    %c0_i32 = arith.constant 0 : i32
    %c0_i32_0 = arith.constant 0 : i32
    return %arg0, %c0_i32 : i32, i32
  }
  func.func @transform_1(%arg0: i32) -> (i32, i32) {
    %c0_i32 = arith.constant 0 : i32
    %c0_i32_0 = arith.constant 0 : i32
    return %arg0, %c0_i32 : i32, i32
  }
  func.func @transform_2(%arg0: i32) -> (i32, i32) {
    %c0_i32 = arith.constant 0 : i32
    %c0_i32_0 = arith.constant 0 : i32
    return %arg0, %c0_i32 : i32, i32
  }
  func.func @transform_3(%arg0: i32) -> (i32, i32) {
    %c0_i32 = arith.constant 0 : i32
    %c0_i32_0 = arith.constant 0 : i32
    return %arg0, %c0_i32 : i32, i32
  }
  func.func @transform_4(%arg0: i32) -> (i32, i32) {
    %c0_i32 = arith.constant 0 : i32
    %c0_i32_0 = arith.constant 0 : i32
    return %arg0, %c0_i32 : i32, i32
  }
  func.func @transform_5(%arg0: i32) -> (i32, i32) {
    %c0_i32 = arith.constant 0 : i32
    %c0_i32_0 = arith.constant 0 : i32
    return %arg0, %c0_i32 : i32, i32
  }
  func.func @transform_6(%arg0: i32) -> (i32, i32) {
    %c0_i32 = arith.constant 0 : i32
    %c0_i32_0 = arith.constant 0 : i32
    return %arg0, %c0_i32 : i32, i32
  }
  func.func @transform_7(%arg0: i32) -> (i32, i32) {
    %c0_i32 = arith.constant 0 : i32
    %c0_i32_0 = arith.constant 0 : i32
    return %arg0, %c0_i32 : i32, i32
  }
  func.func @transform_8(%arg0: i32) -> (i32, i32) {
    %c0_i32 = arith.constant 0 : i32
    %c0_i32_0 = arith.constant 0 : i32
    return %arg0, %c0_i32 : i32, i32
  }
  func.func @transform_9(%arg0: i32) -> (i32, i32) {
    %c0_i32 = arith.constant 0 : i32
    %c0_i32_0 = arith.constant 0 : i32
    return %arg0, %c0_i32 : i32, i32
  }
}

module attributes {stable_mosaic.version = 11 : i64} {
  func.func @_matmul_fused_kernel(%arg0: i32, %arg1: i32, %arg2: memref<128x1152xbf16, #tpu.memory_space<vmem>>, %arg3: memref<1152x128xbf16, #tpu.memory_space<vmem>>, %arg4: memref<1x128xf32, #tpu.memory_space<vmem>>, %arg5: memref<1x128xf32, #tpu.memory_space<vmem>>, %arg6: memref<128x128xbf16, #tpu.memory_space<vmem>>, %arg7: memref<128x128xf32, #tpu.memory_space<vmem>>) attributes {dimension_semantics = [#tpu.dimension_semantics<parallel>, #tpu.dimension_semantics<arbitrary>], iteration_bounds = array<i64: 1, 1>, scalar_prefetch = 0 : i64, scratch_operands = 1 : i64, tpu.core_type = #tpu.core_type<tc>, window_params = [{transform_indices = @transform_0, window_bounds = array<i64: 128, 1152>}, {transform_indices = @transform_1, window_bounds = array<i64: 1152, 128>}, {pipeline_mode = #tpu.pipeline_mode<synchronous>, transform_indices = @transform_2, window_bounds = array<i64: 1, 128>}, {pipeline_mode = #tpu.pipeline_mode<synchronous>, transform_indices = @transform_3, window_bounds = array<i64: 1, 128>}, {transform_indices = @transform_4, window_bounds = array<i64: 128, 128>}]} {
    %c0_i32 = arith.constant 0 : i32
    %0 = arith.cmpi eq, %arg1, %c0_i32 : i32
    %1 = arith.extui %0 : i1 to i32
    %c0_i32_0 = arith.constant 0 : i32
    %2 = arith.cmpi ne, %1, %c0_i32_0 : i32
    scf.if %2 {
      %cst_10 = arith.constant 0.000000e+00 : f32
      %12 = vector.broadcast %cst_10 : f32 to vector<128x128xf32>
      %c0_11 = arith.constant 0 : index
      %c0_12 = arith.constant 0 : index
      %13 = vector.load %arg7[%c0_11, %c0_12] : memref<128x128xf32, #tpu.memory_space<vmem>>, vector<128x128xf32>
      tpu.vector_store %arg7[%c0_11, %c0_12], %12 {strides = array<i32>} : memref<128x128xf32, #tpu.memory_space<vmem>>, vector<128x128xf32>,
    } else {
    }
    %c0 = arith.constant 0 : index
    %c0_1 = arith.constant 0 : index
    %3 = vector.load %arg7[%c0, %c0_1] : memref<128x128xf32, #tpu.memory_space<vmem>>, vector<128x128xf32>
    %c0_2 = arith.constant 0 : index
    %c0_3 = arith.constant 0 : index
    %4 = vector.load %arg2[%c0_2, %c0_3] : memref<128x1152xbf16, #tpu.memory_space<vmem>>, vector<128x1152xbf16>
    %c0_4 = arith.constant 0 : index
    %c0_5 = arith.constant 0 : index
    %5 = vector.load %arg3[%c0_4, %c0_5] : memref<1152x128xbf16, #tpu.memory_space<vmem>>, vector<1152x128xbf16>
    %cst = arith.constant dense<0.000000e+00> : vector<128x128xf32>
    %6 = tpu.matmul %4, %5, %cst {dimension_numbers = #tpu.dot_dimension_numbers<[1], [0], [0], [1], [0, 0, 1, 1], [], []>} : vector<128x1152xbf16>, vector<1152x128xbf16>, vector<128x128xf32> -> vector<128x128xf32>
    %7 = arith.addf %3, %6 : vector<128x128xf32>
    %c0_6 = arith.constant 0 : index
    %c0_7 = arith.constant 0 : index
    %8 = vector.load %arg7[%c0_6, %c0_7] : memref<128x128xf32, #tpu.memory_space<vmem>>, vector<128x128xf32>
    tpu.vector_store %arg7[%c0_6, %c0_7], %7 {strides = array<i32>} : memref<128x128xf32, #tpu.memory_space<vmem>>, vector<128x128xf32>,
    %c0_i32_8 = arith.constant 0 : i32
    %9 = arith.cmpi eq, %arg1, %c0_i32_8 : i32
    %10 = arith.extui %9 : i1 to i32
    %c0_i32_9 = arith.constant 0 : i32
    %11 = arith.cmpi ne, %10, %c0_i32_9 : i32
    scf.if %11 {
      %c0_10 = arith.constant 0 : index
      %c0_11 = arith.constant 0 : index
      %12 = vector.load %arg7[%c0_10, %c0_11] : memref<128x128xf32, #tpu.memory_space<vmem>>, vector<128x128xf32>
      %c0_12 = arith.constant 0 : index
      %c0_13 = arith.constant 0 : index
      %13 = vector.load %arg4[%c0_12, %c0_13] : memref<1x128xf32, #tpu.memory_space<vmem>>, vector<1x128xf32>
      %14 = vector.broadcast %13 : vector<1x128xf32> to vector<128x128xf32>
      %15 = arith.mulf %12, %14 : vector<128x128xf32>
      %c0_14 = arith.constant 0 : index
      %c0_15 = arith.constant 0 : index
      %16 = vector.load %arg5[%c0_14, %c0_15] : memref<1x128xf32, #tpu.memory_space<vmem>>, vector<1x128xf32>
      %17 = vector.broadcast %16 : vector<1x128xf32> to vector<128x128xf32>
      %18 = arith.addf %15, %17 : vector<128x128xf32>
      %cst_16 = arith.constant 0.000000e+00 : f32
      %19 = vector.broadcast %cst_16 : f32 to vector<128x128xf32>
      %20 = arith.maximumf %18, %19 : vector<128x128xf32>
      %21 = arith.truncf %20 : vector<128x128xf32> to vector<128x128xbf16>
      %c0_17 = arith.constant 0 : index
      %c0_18 = arith.constant 0 : index
      %22 = vector.load %arg6[%c0_17, %c0_18] : memref<128x128xbf16, #tpu.memory_space<vmem>>, vector<128x128xbf16>
      tpu.vector_store %arg6[%c0_17, %c0_18], %21 {strides = array<i32>} : memref<128x128xbf16, #tpu.memory_space<vmem>>, vector<128x128xbf16>,
    } else {
    }
    return
  }
  func.func @transform_0(%arg0: i32, %arg1: i32) -> (i32, i32) {
    %c0_i32 = arith.constant 0 : i32
    return %arg0, %arg1 : i32, i32
  }
  func.func @transform_1(%arg0: i32, %arg1: i32) -> (i32, i32) {
    %c0_i32 = arith.constant 0 : i32
    %c0_i32_0 = arith.constant 0 : i32
    return %arg1, %c0_i32 : i32, i32
  }
  func.func @transform_2(%arg0: i32, %arg1: i32) -> (i32, i32) {
    %c0_i32 = arith.constant 0 : i32
    %c0_i32_0 = arith.constant 0 : i32
    %c0_i32_1 = arith.constant 0 : i32
    return %c0_i32, %c0_i32_0 : i32, i32
  }
  func.func @transform_3(%arg0: i32, %arg1: i32) -> (i32, i32) {
    %c0_i32 = arith.constant 0 : i32
    %c0_i32_0 = arith.constant 0 : i32
    %c0_i32_1 = arith.constant 0 : i32
    return %c0_i32, %c0_i32_0 : i32, i32
  }
  func.func @transform_4(%arg0: i32, %arg1: i32) -> (i32, i32) {
    %c0_i32 = arith.constant 0 : i32
    %c0_i32_0 = arith.constant 0 : i32
    return %arg0, %c0_i32 : i32, i32
  }
}

module attributes {stable_mosaic.version = 11 : i64} {
  func.func @_matmul_fused_kernel(%arg0: i32, %arg1: i32, %arg2: memref<128x1152xbf16, #tpu.memory_space<vmem>>, %arg3: memref<1152x128xbf16, #tpu.memory_space<vmem>>, %arg4: memref<1x128xf32, #tpu.memory_space<vmem>>, %arg5: memref<1x128xf32, #tpu.memory_space<vmem>>, %arg6: memref<128x128xbf16, #tpu.memory_space<vmem>>, %arg7: memref<128x128xbf16, #tpu.memory_space<vmem>>, %arg8: memref<128x128xf32, #tpu.memory_space<vmem>>) attributes {dimension_semantics = [#tpu.dimension_semantics<parallel>, #tpu.dimension_semantics<arbitrary>], iteration_bounds = array<i64: 1, 1>, scalar_prefetch = 0 : i64, scratch_operands = 1 : i64, tpu.core_type = #tpu.core_type<tc>, window_params = [{transform_indices = @transform_0, window_bounds = array<i64: 128, 1152>}, {transform_indices = @transform_1, window_bounds = array<i64: 1152, 128>}, {pipeline_mode = #tpu.pipeline_mode<synchronous>, transform_indices = @transform_2, window_bounds = array<i64: 1, 128>}, {pipeline_mode = #tpu.pipeline_mode<synchronous>, transform_indices = @transform_3, window_bounds = array<i64: 1, 128>}, {transform_indices = @transform_4, window_bounds = array<i64: 128, 128>}, {transform_indices = @transform_5, window_bounds = array<i64: 128, 128>}]} {
    %c0_i32 = arith.constant 0 : i32
    %0 = arith.cmpi eq, %arg1, %c0_i32 : i32
    %1 = arith.extui %0 : i1 to i32
    %c0_i32_0 = arith.constant 0 : i32
    %2 = arith.cmpi ne, %1, %c0_i32_0 : i32
    scf.if %2 {
      %cst_10 = arith.constant 0.000000e+00 : f32
      %12 = vector.broadcast %cst_10 : f32 to vector<128x128xf32>
      %c0_11 = arith.constant 0 : index
      %c0_12 = arith.constant 0 : index
      %13 = vector.load %arg8[%c0_11, %c0_12] : memref<128x128xf32, #tpu.memory_space<vmem>>, vector<128x128xf32>
      tpu.vector_store %arg8[%c0_11, %c0_12], %12 {strides = array<i32>} : memref<128x128xf32, #tpu.memory_space<vmem>>, vector<128x128xf32>,
    } else {
    }
    %c0 = arith.constant 0 : index
    %c0_1 = arith.constant 0 : index
    %3 = vector.load %arg8[%c0, %c0_1] : memref<128x128xf32, #tpu.memory_space<vmem>>, vector<128x128xf32>
    %c0_2 = arith.constant 0 : index
    %c0_3 = arith.constant 0 : index
    %4 = vector.load %arg2[%c0_2, %c0_3] : memref<128x1152xbf16, #tpu.memory_space<vmem>>, vector<128x1152xbf16>
    %c0_4 = arith.constant 0 : index
    %c0_5 = arith.constant 0 : index
    %5 = vector.load %arg3[%c0_4, %c0_5] : memref<1152x128xbf16, #tpu.memory_space<vmem>>, vector<1152x128xbf16>
    %cst = arith.constant dense<0.000000e+00> : vector<128x128xf32>
    %6 = tpu.matmul %4, %5, %cst {dimension_numbers = #tpu.dot_dimension_numbers<[1], [0], [0], [1], [0, 0, 1, 1], [], []>} : vector<128x1152xbf16>, vector<1152x128xbf16>, vector<128x128xf32> -> vector<128x128xf32>
    %7 = arith.addf %3, %6 : vector<128x128xf32>
    %c0_6 = arith.constant 0 : index
    %c0_7 = arith.constant 0 : index
    %8 = vector.load %arg8[%c0_6, %c0_7] : memref<128x128xf32, #tpu.memory_space<vmem>>, vector<128x128xf32>
    tpu.vector_store %arg8[%c0_6, %c0_7], %7 {strides = array<i32>} : memref<128x128xf32, #tpu.memory_space<vmem>>, vector<128x128xf32>,
    %c0_i32_8 = arith.constant 0 : i32
    %9 = arith.cmpi eq, %arg1, %c0_i32_8 : i32
    %10 = arith.extui %9 : i1 to i32
    %c0_i32_9 = arith.constant 0 : i32
    %11 = arith.cmpi ne, %10, %c0_i32_9 : i32
    scf.if %11 {
      %c0_10 = arith.constant 0 : index
      %c0_11 = arith.constant 0 : index
      %12 = vector.load %arg8[%c0_10, %c0_11] : memref<128x128xf32, #tpu.memory_space<vmem>>, vector<128x128xf32>
      %c0_12 = arith.constant 0 : index
      %c0_13 = arith.constant 0 : index
      %13 = vector.load %arg4[%c0_12, %c0_13] : memref<1x128xf32, #tpu.memory_space<vmem>>, vector<1x128xf32>
      %14 = vector.broadcast %13 : vector<1x128xf32> to vector<128x128xf32>
      %15 = arith.mulf %12, %14 : vector<128x128xf32>
      %c0_14 = arith.constant 0 : index
      %c0_15 = arith.constant 0 : index
      %16 = vector.load %arg5[%c0_14, %c0_15] : memref<1x128xf32, #tpu.memory_space<vmem>>, vector<1x128xf32>
      %17 = vector.broadcast %16 : vector<1x128xf32> to vector<128x128xf32>
      %18 = arith.addf %15, %17 : vector<128x128xf32>
      %c0_16 = arith.constant 0 : index
      %c0_17 = arith.constant 0 : index
      %19 = vector.load %arg6[%c0_16, %c0_17] : memref<128x128xbf16, #tpu.memory_space<vmem>>, vector<128x128xbf16>
      %20 = arith.extf %19 : vector<128x128xbf16> to vector<128x128xf32>
      %21 = arith.addf %18, %20 : vector<128x128xf32>
      %cst_18 = arith.constant 0.000000e+00 : f32
      %22 = vector.broadcast %cst_18 : f32 to vector<128x128xf32>
      %23 = arith.maximumf %21, %22 : vector<128x128xf32>
      %24 = arith.truncf %23 : vector<128x128xf32> to vector<128x128xbf16>
      %c0_19 = arith.constant 0 : index
      %c0_20 = arith.constant 0 : index
      %25 = vector.load %arg7[%c0_19, %c0_20] : memref<128x128xbf16, #tpu.memory_space<vmem>>, vector<128x128xbf16>
      tpu.vector_store %arg7[%c0_19, %c0_20], %24 {strides = array<i32>} : memref<128x128xbf16, #tpu.memory_space<vmem>>, vector<128x128xbf16>,
    } else {
    }
    return
  }
  func.func @transform_0(%arg0: i32, %arg1: i32) -> (i32, i32) {
    %c0_i32 = arith.constant 0 : i32
    return %arg0, %arg1 : i32, i32
  }
  func.func @transform_1(%arg0: i32, %arg1: i32) -> (i32, i32) {
    %c0_i32 = arith.constant 0 : i32
    %c0_i32_0 = arith.constant 0 : i32
    return %arg1, %c0_i32 : i32, i32
  }
  func.func @transform_2(%arg0: i32, %arg1: i32) -> (i32, i32) {
    %c0_i32 = arith.constant 0 : i32
    %c0_i32_0 = arith.constant 0 : i32
    %c0_i32_1 = arith.constant 0 : i32
    return %c0_i32, %c0_i32_0 : i32, i32
  }
  func.func @transform_3(%arg0: i32, %arg1: i32) -> (i32, i32) {
    %c0_i32 = arith.constant 0 : i32
    %c0_i32_0 = arith.constant 0 : i32
    %c0_i32_1 = arith.constant 0 : i32
    return %c0_i32, %c0_i32_0 : i32, i32
  }
  func.func @transform_4(%arg0: i32, %arg1: i32) -> (i32, i32) {
    %c0_i32 = arith.constant 0 : i32
    %c0_i32_0 = arith.constant 0 : i32
    return %arg0, %c0_i32 : i32, i32
  }
  func.func @transform_5(%arg0: i32, %arg1: i32) -> (i32, i32) {
    %c0_i32 = arith.constant 0 : i32
    %c0_i32_0 = arith.constant 0 : i32
    return %arg0, %c0_i32 : i32, i32
  }
}

module attributes {stable_mosaic.version = 11 : i64} {
  func.func @_matmul_fused_kernel(%arg0: i32, %arg1: i32, %arg2: memref<32x1152xbf16, #tpu.memory_space<vmem>>, %arg3: memref<1152x128xbf16, #tpu.memory_space<vmem>>, %arg4: memref<1x128xf32, #tpu.memory_space<vmem>>, %arg5: memref<1x128xf32, #tpu.memory_space<vmem>>, %arg6: memref<32x128xbf16, #tpu.memory_space<vmem>>, %arg7: memref<32x128xf32, #tpu.memory_space<vmem>>) attributes {dimension_semantics = [#tpu.dimension_semantics<parallel>, #tpu.dimension_semantics<arbitrary>], iteration_bounds = array<i64: 1, 1>, scalar_prefetch = 0 : i64, scratch_operands = 1 : i64, tpu.core_type = #tpu.core_type<tc>, window_params = [{transform_indices = @transform_0, window_bounds = array<i64: 32, 1152>}, {transform_indices = @transform_1, window_bounds = array<i64: 1152, 128>}, {pipeline_mode = #tpu.pipeline_mode<synchronous>, transform_indices = @transform_2, window_bounds = array<i64: 1, 128>}, {pipeline_mode = #tpu.pipeline_mode<synchronous>, transform_indices = @transform_3, window_bounds = array<i64: 1, 128>}, {transform_indices = @transform_4, window_bounds = array<i64: 32, 128>}]} {
    %c0_i32 = arith.constant 0 : i32
    %0 = arith.cmpi eq, %arg1, %c0_i32 : i32
    %1 = arith.extui %0 : i1 to i32
    %c0_i32_0 = arith.constant 0 : i32
    %2 = arith.cmpi ne, %1, %c0_i32_0 : i32
    scf.if %2 {
      %cst_10 = arith.constant 0.000000e+00 : f32
      %12 = vector.broadcast %cst_10 : f32 to vector<32x128xf32>
      %c0_11 = arith.constant 0 : index
      %c0_12 = arith.constant 0 : index
      %13 = vector.load %arg7[%c0_11, %c0_12] : memref<32x128xf32, #tpu.memory_space<vmem>>, vector<32x128xf32>
      tpu.vector_store %arg7[%c0_11, %c0_12], %12 {strides = array<i32>} : memref<32x128xf32, #tpu.memory_space<vmem>>, vector<32x128xf32>,
    } else {
    }
    %c0 = arith.constant 0 : index
    %c0_1 = arith.constant 0 : index
    %3 = vector.load %arg7[%c0, %c0_1] : memref<32x128xf32, #tpu.memory_space<vmem>>, vector<32x128xf32>
    %c0_2 = arith.constant 0 : index
    %c0_3 = arith.constant 0 : index
    %4 = vector.load %arg2[%c0_2, %c0_3] : memref<32x1152xbf16, #tpu.memory_space<vmem>>, vector<32x1152xbf16>
    %c0_4 = arith.constant 0 : index
    %c0_5 = arith.constant 0 : index
    %5 = vector.load %arg3[%c0_4, %c0_5] : memref<1152x128xbf16, #tpu.memory_space<vmem>>, vector<1152x128xbf16>
    %cst = arith.constant dense<0.000000e+00> : vector<32x128xf32>
    %6 = tpu.matmul %4, %5, %cst {dimension_numbers = #tpu.dot_dimension_numbers<[1], [0], [0], [1], [0, 0, 1, 1], [], []>} : vector<32x1152xbf16>, vector<1152x128xbf16>, vector<32x128xf32> -> vector<32x128xf32>
    %7 = arith.addf %3, %6 : vector<32x128xf32>
    %c0_6 = arith.constant 0 : index
    %c0_7 = arith.constant 0 : index
    %8 = vector.load %arg7[%c0_6, %c0_7] : memref<32x128xf32, #tpu.memory_space<vmem>>, vector<32x128xf32>
    tpu.vector_store %arg7[%c0_6, %c0_7], %7 {strides = array<i32>} : memref<32x128xf32, #tpu.memory_space<vmem>>, vector<32x128xf32>,
    %c0_i32_8 = arith.constant 0 : i32
    %9 = arith.cmpi eq, %arg1, %c0_i32_8 : i32
    %10 = arith.extui %9 : i1 to i32
    %c0_i32_9 = arith.constant 0 : i32
    %11 = arith.cmpi ne, %10, %c0_i32_9 : i32
    scf.if %11 {
      %c0_10 = arith.constant 0 : index
      %c0_11 = arith.constant 0 : index
      %12 = vector.load %arg7[%c0_10, %c0_11] : memref<32x128xf32, #tpu.memory_space<vmem>>, vector<32x128xf32>
      %c0_12 = arith.constant 0 : index
      %c0_13 = arith.constant 0 : index
      %13 = vector.load %arg4[%c0_12, %c0_13] : memref<1x128xf32, #tpu.memory_space<vmem>>, vector<1x128xf32>
      %14 = vector.broadcast %13 : vector<1x128xf32> to vector<32x128xf32>
      %15 = arith.mulf %12, %14 : vector<32x128xf32>
      %c0_14 = arith.constant 0 : index
      %c0_15 = arith.constant 0 : index
      %16 = vector.load %arg5[%c0_14, %c0_15] : memref<1x128xf32, #tpu.memory_space<vmem>>, vector<1x128xf32>
      %17 = vector.broadcast %16 : vector<1x128xf32> to vector<32x128xf32>
      %18 = arith.addf %15, %17 : vector<32x128xf32>
      %cst_16 = arith.constant 0.000000e+00 : f32
      %19 = vector.broadcast %cst_16 : f32 to vector<32x128xf32>
      %20 = arith.maximumf %18, %19 : vector<32x128xf32>
      %21 = arith.truncf %20 : vector<32x128xf32> to vector<32x128xbf16>
      %c0_17 = arith.constant 0 : index
      %c0_18 = arith.constant 0 : index
      %22 = vector.load %arg6[%c0_17, %c0_18] : memref<32x128xbf16, #tpu.memory_space<vmem>>, vector<32x128xbf16>
      tpu.vector_store %arg6[%c0_17, %c0_18], %21 {strides = array<i32>} : memref<32x128xbf16, #tpu.memory_space<vmem>>, vector<32x128xbf16>,
    } else {
    }
    return
  }
  func.func @transform_0(%arg0: i32, %arg1: i32) -> (i32, i32) {
    %c0_i32 = arith.constant 0 : i32
    return %arg0, %arg1 : i32, i32
  }
  func.func @transform_1(%arg0: i32, %arg1: i32) -> (i32, i32) {
    %c0_i32 = arith.constant 0 : i32
    %c0_i32_0 = arith.constant 0 : i32
    return %arg1, %c0_i32 : i32, i32
  }
  func.func @transform_2(%arg0: i32, %arg1: i32) -> (i32, i32) {
    %c0_i32 = arith.constant 0 : i32
    %c0_i32_0 = arith.constant 0 : i32
    %c0_i32_1 = arith.constant 0 : i32
    return %c0_i32, %c0_i32_0 : i32, i32
  }
  func.func @transform_3(%arg0: i32, %arg1: i32) -> (i32, i32) {
    %c0_i32 = arith.constant 0 : i32
    %c0_i32_0 = arith.constant 0 : i32
    %c0_i32_1 = arith.constant 0 : i32
    return %c0_i32, %c0_i32_0 : i32, i32
  }
  func.func @transform_4(%arg0: i32, %arg1: i32) -> (i32, i32) {
    %c0_i32 = arith.constant 0 : i32
    %c0_i32_0 = arith.constant 0 : i32
    return %arg0, %c0_i32 : i32, i32
  }
}

module attributes {stable_mosaic.version = 11 : i64} {
  func.func @_matmul_fused_kernel(%arg0: i32, %arg1: i32, %arg2: memref<32x1152xbf16, #tpu.memory_space<vmem>>, %arg3: memref<1152x128xbf16, #tpu.memory_space<vmem>>, %arg4: memref<1x128xf32, #tpu.memory_space<vmem>>, %arg5: memref<1x128xf32, #tpu.memory_space<vmem>>, %arg6: memref<32x128xbf16, #tpu.memory_space<vmem>>, %arg7: memref<32x128xbf16, #tpu.memory_space<vmem>>, %arg8: memref<32x128xf32, #tpu.memory_space<vmem>>) attributes {dimension_semantics = [#tpu.dimension_semantics<parallel>, #tpu.dimension_semantics<arbitrary>], iteration_bounds = array<i64: 1, 1>, scalar_prefetch = 0 : i64, scratch_operands = 1 : i64, tpu.core_type = #tpu.core_type<tc>, window_params = [{transform_indices = @transform_0, window_bounds = array<i64: 32, 1152>}, {transform_indices = @transform_1, window_bounds = array<i64: 1152, 128>}, {pipeline_mode = #tpu.pipeline_mode<synchronous>, transform_indices = @transform_2, window_bounds = array<i64: 1, 128>}, {pipeline_mode = #tpu.pipeline_mode<synchronous>, transform_indices = @transform_3, window_bounds = array<i64: 1, 128>}, {transform_indices = @transform_4, window_bounds = array<i64: 32, 128>}, {transform_indices = @transform_5, window_bounds = array<i64: 32, 128>}]} {
    %c0_i32 = arith.constant 0 : i32
    %0 = arith.cmpi eq, %arg1, %c0_i32 : i32
    %1 = arith.extui %0 : i1 to i32
    %c0_i32_0 = arith.constant 0 : i32
    %2 = arith.cmpi ne, %1, %c0_i32_0 : i32
    scf.if %2 {
      %cst_10 = arith.constant 0.000000e+00 : f32
      %12 = vector.broadcast %cst_10 : f32 to vector<32x128xf32>
      %c0_11 = arith.constant 0 : index
      %c0_12 = arith.constant 0 : index
      %13 = vector.load %arg8[%c0_11, %c0_12] : memref<32x128xf32, #tpu.memory_space<vmem>>, vector<32x128xf32>
      tpu.vector_store %arg8[%c0_11, %c0_12], %12 {strides = array<i32>} : memref<32x128xf32, #tpu.memory_space<vmem>>, vector<32x128xf32>,
    } else {
    }
    %c0 = arith.constant 0 : index
    %c0_1 = arith.constant 0 : index
    %3 = vector.load %arg8[%c0, %c0_1] : memref<32x128xf32, #tpu.memory_space<vmem>>, vector<32x128xf32>
    %c0_2 = arith.constant 0 : index
    %c0_3 = arith.constant 0 : index
    %4 = vector.load %arg2[%c0_2, %c0_3] : memref<32x1152xbf16, #tpu.memory_space<vmem>>, vector<32x1152xbf16>
    %c0_4 = arith.constant 0 : index
    %c0_5 = arith.constant 0 : index
    %5 = vector.load %arg3[%c0_4, %c0_5] : memref<1152x128xbf16, #tpu.memory_space<vmem>>, vector<1152x128xbf16>
    %cst = arith.constant dense<0.000000e+00> : vector<32x128xf32>
    %6 = tpu.matmul %4, %5, %cst {dimension_numbers = #tpu.dot_dimension_numbers<[1], [0], [0], [1], [0, 0, 1, 1], [], []>} : vector<32x1152xbf16>, vector<1152x128xbf16>, vector<32x128xf32> -> vector<32x128xf32>
    %7 = arith.addf %3, %6 : vector<32x128xf32>
    %c0_6 = arith.constant 0 : index
    %c0_7 = arith.constant 0 : index
    %8 = vector.load %arg8[%c0_6, %c0_7] : memref<32x128xf32, #tpu.memory_space<vmem>>, vector<32x128xf32>
    tpu.vector_store %arg8[%c0_6, %c0_7], %7 {strides = array<i32>} : memref<32x128xf32, #tpu.memory_space<vmem>>, vector<32x128xf32>,
    %c0_i32_8 = arith.constant 0 : i32
    %9 = arith.cmpi eq, %arg1, %c0_i32_8 : i32
    %10 = arith.extui %9 : i1 to i32
    %c0_i32_9 = arith.constant 0 : i32
    %11 = arith.cmpi ne, %10, %c0_i32_9 : i32
    scf.if %11 {
      %c0_10 = arith.constant 0 : index
      %c0_11 = arith.constant 0 : index
      %12 = vector.load %arg8[%c0_10, %c0_11] : memref<32x128xf32, #tpu.memory_space<vmem>>, vector<32x128xf32>
      %c0_12 = arith.constant 0 : index
      %c0_13 = arith.constant 0 : index
      %13 = vector.load %arg4[%c0_12, %c0_13] : memref<1x128xf32, #tpu.memory_space<vmem>>, vector<1x128xf32>
      %14 = vector.broadcast %13 : vector<1x128xf32> to vector<32x128xf32>
      %15 = arith.mulf %12, %14 : vector<32x128xf32>
      %c0_14 = arith.constant 0 : index
      %c0_15 = arith.constant 0 : index
      %16 = vector.load %arg5[%c0_14, %c0_15] : memref<1x128xf32, #tpu.memory_space<vmem>>, vector<1x128xf32>
      %17 = vector.broadcast %16 : vector<1x128xf32> to vector<32x128xf32>
      %18 = arith.addf %15, %17 : vector<32x128xf32>
      %c0_16 = arith.constant 0 : index
      %c0_17 = arith.constant 0 : index
      %19 = vector.load %arg6[%c0_16, %c0_17] : memref<32x128xbf16, #tpu.memory_space<vmem>>, vector<32x128xbf16>
      %20 = arith.extf %19 : vector<32x128xbf16> to vector<32x128xf32>
      %21 = arith.addf %18, %20 : vector<32x128xf32>
      %cst_18 = arith.constant 0.000000e+00 : f32
      %22 = vector.broadcast %cst_18 : f32 to vector<32x128xf32>
      %23 = arith.maximumf %21, %22 : vector<32x128xf32>
      %24 = arith.truncf %23 : vector<32x128xf32> to vector<32x128xbf16>
      %c0_19 = arith.constant 0 : index
      %c0_20 = arith.constant 0 : index
      %25 = vector.load %arg7[%c0_19, %c0_20] : memref<32x128xbf16, #tpu.memory_space<vmem>>, vector<32x128xbf16>
      tpu.vector_store %arg7[%c0_19, %c0_20], %24 {strides = array<i32>} : memref<32x128xbf16, #tpu.memory_space<vmem>>, vector<32x128xbf16>,
    } else {
    }
    return
  }
  func.func @transform_0(%arg0: i32, %arg1: i32) -> (i32, i32) {
    %c0_i32 = arith.constant 0 : i32
    return %arg0, %arg1 : i32, i32
  }
  func.func @transform_1(%arg0: i32, %arg1: i32) -> (i32, i32) {
    %c0_i32 = arith.constant 0 : i32
    %c0_i32_0 = arith.constant 0 : i32
    return %arg1, %c0_i32 : i32, i32
  }
  func.func @transform_2(%arg0: i32, %arg1: i32) -> (i32, i32) {
    %c0_i32 = arith.constant 0 : i32
    %c0_i32_0 = arith.constant 0 : i32
    %c0_i32_1 = arith.constant 0 : i32
    return %c0_i32, %c0_i32_0 : i32, i32
  }
  func.func @transform_3(%arg0: i32, %arg1: i32) -> (i32, i32) {
    %c0_i32 = arith.constant 0 : i32
    %c0_i32_0 = arith.constant 0 : i32
    %c0_i32_1 = arith.constant 0 : i32
    return %c0_i32, %c0_i32_0 : i32, i32
  }
  func.func @transform_4(%arg0: i32, %arg1: i32) -> (i32, i32) {
    %c0_i32 = arith.constant 0 : i32
    %c0_i32_0 = arith.constant 0 : i32
    return %arg0, %c0_i32 : i32, i32
  }
  func.func @transform_5(%arg0: i32, %arg1: i32) -> (i32, i32) {
    %c0_i32 = arith.constant 0 : i32
    %c0_i32_0 = arith.constant 0 : i32
    return %arg0, %c0_i32 : i32, i32
  }
}

module attributes {stable_mosaic.version = 11 : i64} {
  func.func @_matmul_fused_kernel(%arg0: i32, %arg1: i32, %arg2: memref<32x128xbf16, #tpu.memory_space<vmem>>, %arg3: memref<128x128xbf16, #tpu.memory_space<vmem>>, %arg4: memref<1x128xf32, #tpu.memory_space<vmem>>, %arg5: memref<1x128xf32, #tpu.memory_space<vmem>>, %arg6: memref<32x128xbf16, #tpu.memory_space<vmem>>, %arg7: memref<32x128xf32, #tpu.memory_space<vmem>>) attributes {dimension_semantics = [#tpu.dimension_semantics<parallel>, #tpu.dimension_semantics<arbitrary>], iteration_bounds = array<i64: 1, 1>, scalar_prefetch = 0 : i64, scratch_operands = 1 : i64, tpu.core_type = #tpu.core_type<tc>, window_params = [{transform_indices = @transform_0, window_bounds = array<i64: 32, 128>}, {transform_indices = @transform_1, window_bounds = array<i64: 128, 128>}, {pipeline_mode = #tpu.pipeline_mode<synchronous>, transform_indices = @transform_2, window_bounds = array<i64: 1, 128>}, {pipeline_mode = #tpu.pipeline_mode<synchronous>, transform_indices = @transform_3, window_bounds = array<i64: 1, 128>}, {transform_indices = @transform_4, window_bounds = array<i64: 32, 128>}]} {
    %c0_i32 = arith.constant 0 : i32
    %0 = arith.cmpi eq, %arg1, %c0_i32 : i32
    %1 = arith.extui %0 : i1 to i32
    %c0_i32_0 = arith.constant 0 : i32
    %2 = arith.cmpi ne, %1, %c0_i32_0 : i32
    scf.if %2 {
      %cst_10 = arith.constant 0.000000e+00 : f32
      %12 = vector.broadcast %cst_10 : f32 to vector<32x128xf32>
      %c0_11 = arith.constant 0 : index
      %c0_12 = arith.constant 0 : index
      %13 = vector.load %arg7[%c0_11, %c0_12] : memref<32x128xf32, #tpu.memory_space<vmem>>, vector<32x128xf32>
      tpu.vector_store %arg7[%c0_11, %c0_12], %12 {strides = array<i32>} : memref<32x128xf32, #tpu.memory_space<vmem>>, vector<32x128xf32>,
    } else {
    }
    %c0 = arith.constant 0 : index
    %c0_1 = arith.constant 0 : index
    %3 = vector.load %arg7[%c0, %c0_1] : memref<32x128xf32, #tpu.memory_space<vmem>>, vector<32x128xf32>
    %c0_2 = arith.constant 0 : index
    %c0_3 = arith.constant 0 : index
    %4 = vector.load %arg2[%c0_2, %c0_3] : memref<32x128xbf16, #tpu.memory_space<vmem>>, vector<32x128xbf16>
    %c0_4 = arith.constant 0 : index
    %c0_5 = arith.constant 0 : index
    %5 = vector.load %arg3[%c0_4, %c0_5] : memref<128x128xbf16, #tpu.memory_space<vmem>>, vector<128x128xbf16>
    %cst = arith.constant dense<0.000000e+00> : vector<32x128xf32>
    %6 = tpu.matmul %4, %5, %cst {dimension_numbers = #tpu.dot_dimension_numbers<[1], [0], [0], [1], [0, 0, 1, 1], [], []>} : vector<32x128xbf16>, vector<128x128xbf16>, vector<32x128xf32> -> vector<32x128xf32>
    %7 = arith.addf %3, %6 : vector<32x128xf32>
    %c0_6 = arith.constant 0 : index
    %c0_7 = arith.constant 0 : index
    %8 = vector.load %arg7[%c0_6, %c0_7] : memref<32x128xf32, #tpu.memory_space<vmem>>, vector<32x128xf32>
    tpu.vector_store %arg7[%c0_6, %c0_7], %7 {strides = array<i32>} : memref<32x128xf32, #tpu.memory_space<vmem>>, vector<32x128xf32>,
    %c0_i32_8 = arith.constant 0 : i32
    %9 = arith.cmpi eq, %arg1, %c0_i32_8 : i32
    %10 = arith.extui %9 : i1 to i32
    %c0_i32_9 = arith.constant 0 : i32
    %11 = arith.cmpi ne, %10, %c0_i32_9 : i32
    scf.if %11 {
      %c0_10 = arith.constant 0 : index
      %c0_11 = arith.constant 0 : index
      %12 = vector.load %arg7[%c0_10, %c0_11] : memref<32x128xf32, #tpu.memory_space<vmem>>, vector<32x128xf32>
      %c0_12 = arith.constant 0 : index
      %c0_13 = arith.constant 0 : index
      %13 = vector.load %arg4[%c0_12, %c0_13] : memref<1x128xf32, #tpu.memory_space<vmem>>, vector<1x128xf32>
      %14 = vector.broadcast %13 : vector<1x128xf32> to vector<32x128xf32>
      %15 = arith.mulf %12, %14 : vector<32x128xf32>
      %c0_14 = arith.constant 0 : index
      %c0_15 = arith.constant 0 : index
      %16 = vector.load %arg5[%c0_14, %c0_15] : memref<1x128xf32, #tpu.memory_space<vmem>>, vector<1x128xf32>
      %17 = vector.broadcast %16 : vector<1x128xf32> to vector<32x128xf32>
      %18 = arith.addf %15, %17 : vector<32x128xf32>
      %19 = arith.truncf %18 : vector<32x128xf32> to vector<32x128xbf16>
      %c0_16 = arith.constant 0 : index
      %c0_17 = arith.constant 0 : index
      %20 = vector.load %arg6[%c0_16, %c0_17] : memref<32x128xbf16, #tpu.memory_space<vmem>>, vector<32x128xbf16>
      tpu.vector_store %arg6[%c0_16, %c0_17], %19 {strides = array<i32>} : memref<32x128xbf16, #tpu.memory_space<vmem>>, vector<32x128xbf16>,
    } else {
    }
    return
  }
  func.func @transform_0(%arg0: i32, %arg1: i32) -> (i32, i32) {
    %c0_i32 = arith.constant 0 : i32
    return %arg0, %arg1 : i32, i32
  }
  func.func @transform_1(%arg0: i32, %arg1: i32) -> (i32, i32) {
    %c0_i32 = arith.constant 0 : i32
    %c0_i32_0 = arith.constant 0 : i32
    return %arg1, %c0_i32 : i32, i32
  }
  func.func @transform_2(%arg0: i32, %arg1: i32) -> (i32, i32) {
    %c0_i32 = arith.constant 0 : i32
    %c0_i32_0 = arith.constant 0 : i32
    %c0_i32_1 = arith.constant 0 : i32
    return %c0_i32, %c0_i32_0 : i32, i32
  }
  func.func @transform_3(%arg0: i32, %arg1: i32) -> (i32, i32) {
    %c0_i32 = arith.constant 0 : i32
    %c0_i32_0 = arith.constant 0 : i32
    %c0_i32_1 = arith.constant 0 : i32
    return %c0_i32, %c0_i32_0 : i32, i32
  }
  func.func @transform_4(%arg0: i32, %arg1: i32) -> (i32, i32) {
    %c0_i32 = arith.constant 0 : i32
    %c0_i32_0 = arith.constant 0 : i32
    return %arg0, %c0_i32 : i32, i32
  }
}

module attributes {stable_mosaic.version = 11 : i64} {
  func.func @_matmul_fused_kernel(%arg0: i32, %arg1: i32, %arg2: memref<8x1152xbf16, #tpu.memory_space<vmem>>, %arg3: memref<1152x256xbf16, #tpu.memory_space<vmem>>, %arg4: memref<1x256xf32, #tpu.memory_space<vmem>>, %arg5: memref<1x256xf32, #tpu.memory_space<vmem>>, %arg6: memref<8x256xbf16, #tpu.memory_space<vmem>>, %arg7: memref<8x256xf32, #tpu.memory_space<vmem>>) attributes {dimension_semantics = [#tpu.dimension_semantics<parallel>, #tpu.dimension_semantics<arbitrary>], iteration_bounds = array<i64: 1, 1>, scalar_prefetch = 0 : i64, scratch_operands = 1 : i64, tpu.core_type = #tpu.core_type<tc>, window_params = [{transform_indices = @transform_0, window_bounds = array<i64: 8, 1152>}, {transform_indices = @transform_1, window_bounds = array<i64: 1152, 256>}, {pipeline_mode = #tpu.pipeline_mode<synchronous>, transform_indices = @transform_2, window_bounds = array<i64: 1, 256>}, {pipeline_mode = #tpu.pipeline_mode<synchronous>, transform_indices = @transform_3, window_bounds = array<i64: 1, 256>}, {transform_indices = @transform_4, window_bounds = array<i64: 8, 256>}]} {
    %c0_i32 = arith.constant 0 : i32
    %0 = arith.cmpi eq, %arg1, %c0_i32 : i32
    %1 = arith.extui %0 : i1 to i32
    %c0_i32_0 = arith.constant 0 : i32
    %2 = arith.cmpi ne, %1, %c0_i32_0 : i32
    scf.if %2 {
      %cst_10 = arith.constant 0.000000e+00 : f32
      %12 = vector.broadcast %cst_10 : f32 to vector<8x256xf32>
      %c0_11 = arith.constant 0 : index
      %c0_12 = arith.constant 0 : index
      %13 = vector.load %arg7[%c0_11, %c0_12] : memref<8x256xf32, #tpu.memory_space<vmem>>, vector<8x256xf32>
      tpu.vector_store %arg7[%c0_11, %c0_12], %12 {strides = array<i32>} : memref<8x256xf32, #tpu.memory_space<vmem>>, vector<8x256xf32>,
    } else {
    }
    %c0 = arith.constant 0 : index
    %c0_1 = arith.constant 0 : index
    %3 = vector.load %arg7[%c0, %c0_1] : memref<8x256xf32, #tpu.memory_space<vmem>>, vector<8x256xf32>
    %c0_2 = arith.constant 0 : index
    %c0_3 = arith.constant 0 : index
    %4 = vector.load %arg2[%c0_2, %c0_3] : memref<8x1152xbf16, #tpu.memory_space<vmem>>, vector<8x1152xbf16>
    %c0_4 = arith.constant 0 : index
    %c0_5 = arith.constant 0 : index
    %5 = vector.load %arg3[%c0_4, %c0_5] : memref<1152x256xbf16, #tpu.memory_space<vmem>>, vector<1152x256xbf16>
    %cst = arith.constant dense<0.000000e+00> : vector<8x256xf32>
    %6 = tpu.matmul %4, %5, %cst {dimension_numbers = #tpu.dot_dimension_numbers<[1], [0], [0], [1], [0, 0, 1, 1], [], []>} : vector<8x1152xbf16>, vector<1152x256xbf16>, vector<8x256xf32> -> vector<8x256xf32>
    %7 = arith.addf %3, %6 : vector<8x256xf32>
    %c0_6 = arith.constant 0 : index
    %c0_7 = arith.constant 0 : index
    %8 = vector.load %arg7[%c0_6, %c0_7] : memref<8x256xf32, #tpu.memory_space<vmem>>, vector<8x256xf32>
    tpu.vector_store %arg7[%c0_6, %c0_7], %7 {strides = array<i32>} : memref<8x256xf32, #tpu.memory_space<vmem>>, vector<8x256xf32>,
    %c0_i32_8 = arith.constant 0 : i32
    %9 = arith.cmpi eq, %arg1, %c0_i32_8 : i32
    %10 = arith.extui %9 : i1 to i32
    %c0_i32_9 = arith.constant 0 : i32
    %11 = arith.cmpi ne, %10, %c0_i32_9 : i32
    scf.if %11 {
      %c0_10 = arith.constant 0 : index
      %c0_11 = arith.constant 0 : index
      %12 = vector.load %arg7[%c0_10, %c0_11] : memref<8x256xf32, #tpu.memory_space<vmem>>, vector<8x256xf32>
      %c0_12 = arith.constant 0 : index
      %c0_13 = arith.constant 0 : index
      %13 = vector.load %arg4[%c0_12, %c0_13] : memref<1x256xf32, #tpu.memory_space<vmem>>, vector<1x256xf32>
      %14 = vector.broadcast %13 : vector<1x256xf32> to vector<8x256xf32>
      %15 = arith.mulf %12, %14 : vector<8x256xf32>
      %c0_14 = arith.constant 0 : index
      %c0_15 = arith.constant 0 : index
      %16 = vector.load %arg5[%c0_14, %c0_15] : memref<1x256xf32, #tpu.memory_space<vmem>>, vector<1x256xf32>
      %17 = vector.broadcast %16 : vector<1x256xf32> to vector<8x256xf32>
      %18 = arith.addf %15, %17 : vector<8x256xf32>
      %cst_16 = arith.constant 0.000000e+00 : f32
      %19 = vector.broadcast %cst_16 : f32 to vector<8x256xf32>
      %20 = arith.maximumf %18, %19 : vector<8x256xf32>
      %21 = arith.truncf %20 : vector<8x256xf32> to vector<8x256xbf16>
      %c0_17 = arith.constant 0 : index
      %c0_18 = arith.constant 0 : index
      %22 = vector.load %arg6[%c0_17, %c0_18] : memref<8x256xbf16, #tpu.memory_space<vmem>>, vector<8x256xbf16>
      tpu.vector_store %arg6[%c0_17, %c0_18], %21 {strides = array<i32>} : memref<8x256xbf16, #tpu.memory_space<vmem>>, vector<8x256xbf16>,
    } else {
    }
    return
  }
  func.func @transform_0(%arg0: i32, %arg1: i32) -> (i32, i32) {
    %c0_i32 = arith.constant 0 : i32
    return %arg0, %arg1 : i32, i32
  }
  func.func @transform_1(%arg0: i32, %arg1: i32) -> (i32, i32) {
    %c0_i32 = arith.constant 0 : i32
    %c0_i32_0 = arith.constant 0 : i32
    return %arg1, %c0_i32 : i32, i32
  }
  func.func @transform_2(%arg0: i32, %arg1: i32) -> (i32, i32) {
    %c0_i32 = arith.constant 0 : i32
    %c0_i32_0 = arith.constant 0 : i32
    %c0_i32_1 = arith.constant 0 : i32
    return %c0_i32, %c0_i32_0 : i32, i32
  }
  func.func @transform_3(%arg0: i32, %arg1: i32) -> (i32, i32) {
    %c0_i32 = arith.constant 0 : i32
    %c0_i32_0 = arith.constant 0 : i32
    %c0_i32_1 = arith.constant 0 : i32
    return %c0_i32, %c0_i32_0 : i32, i32
  }
  func.func @transform_4(%arg0: i32, %arg1: i32) -> (i32, i32) {
    %c0_i32 = arith.constant 0 : i32
    %c0_i32_0 = arith.constant 0 : i32
    return %arg0, %c0_i32 : i32, i32
  }
}

module attributes {stable_mosaic.version = 11 : i64} {
  func.func @_matmul_fused_kernel(%arg0: i32, %arg1: i32, %arg2: memref<8x128xbf16, #tpu.memory_space<vmem>>, %arg3: memref<128x256xbf16, #tpu.memory_space<vmem>>, %arg4: memref<1x256xf32, #tpu.memory_space<vmem>>, %arg5: memref<1x256xf32, #tpu.memory_space<vmem>>, %arg6: memref<8x256xbf16, #tpu.memory_space<vmem>>, %arg7: memref<8x256xf32, #tpu.memory_space<vmem>>) attributes {dimension_semantics = [#tpu.dimension_semantics<parallel>, #tpu.dimension_semantics<arbitrary>], iteration_bounds = array<i64: 1, 1>, scalar_prefetch = 0 : i64, scratch_operands = 1 : i64, tpu.core_type = #tpu.core_type<tc>, window_params = [{transform_indices = @transform_0, window_bounds = array<i64: 8, 128>}, {transform_indices = @transform_1, window_bounds = array<i64: 128, 256>}, {pipeline_mode = #tpu.pipeline_mode<synchronous>, transform_indices = @transform_2, window_bounds = array<i64: 1, 256>}, {pipeline_mode = #tpu.pipeline_mode<synchronous>, transform_indices = @transform_3, window_bounds = array<i64: 1, 256>}, {transform_indices = @transform_4, window_bounds = array<i64: 8, 256>}]} {
    %c0_i32 = arith.constant 0 : i32
    %0 = arith.cmpi eq, %arg1, %c0_i32 : i32
    %1 = arith.extui %0 : i1 to i32
    %c0_i32_0 = arith.constant 0 : i32
    %2 = arith.cmpi ne, %1, %c0_i32_0 : i32
    scf.if %2 {
      %cst_10 = arith.constant 0.000000e+00 : f32
      %12 = vector.broadcast %cst_10 : f32 to vector<8x256xf32>
      %c0_11 = arith.constant 0 : index
      %c0_12 = arith.constant 0 : index
      %13 = vector.load %arg7[%c0_11, %c0_12] : memref<8x256xf32, #tpu.memory_space<vmem>>, vector<8x256xf32>
      tpu.vector_store %arg7[%c0_11, %c0_12], %12 {strides = array<i32>} : memref<8x256xf32, #tpu.memory_space<vmem>>, vector<8x256xf32>,
    } else {
    }
    %c0 = arith.constant 0 : index
    %c0_1 = arith.constant 0 : index
    %3 = vector.load %arg7[%c0, %c0_1] : memref<8x256xf32, #tpu.memory_space<vmem>>, vector<8x256xf32>
    %c0_2 = arith.constant 0 : index
    %c0_3 = arith.constant 0 : index
    %4 = vector.load %arg2[%c0_2, %c0_3] : memref<8x128xbf16, #tpu.memory_space<vmem>>, vector<8x128xbf16>
    %c0_4 = arith.constant 0 : index
    %c0_5 = arith.constant 0 : index
    %5 = vector.load %arg3[%c0_4, %c0_5] : memref<128x256xbf16, #tpu.memory_space<vmem>>, vector<128x256xbf16>
    %cst = arith.constant dense<0.000000e+00> : vector<8x256xf32>
    %6 = tpu.matmul %4, %5, %cst {dimension_numbers = #tpu.dot_dimension_numbers<[1], [0], [0], [1], [0, 0, 1, 1], [], []>} : vector<8x128xbf16>, vector<128x256xbf16>, vector<8x256xf32> -> vector<8x256xf32>
    %7 = arith.addf %3, %6 : vector<8x256xf32>
    %c0_6 = arith.constant 0 : index
    %c0_7 = arith.constant 0 : index
    %8 = vector.load %arg7[%c0_6, %c0_7] : memref<8x256xf32, #tpu.memory_space<vmem>>, vector<8x256xf32>
    tpu.vector_store %arg7[%c0_6, %c0_7], %7 {strides = array<i32>} : memref<8x256xf32, #tpu.memory_space<vmem>>, vector<8x256xf32>,
    %c0_i32_8 = arith.constant 0 : i32
    %9 = arith.cmpi eq, %arg1, %c0_i32_8 : i32
    %10 = arith.extui %9 : i1 to i32
    %c0_i32_9 = arith.constant 0 : i32
    %11 = arith.cmpi ne, %10, %c0_i32_9 : i32
    scf.if %11 {
      %c0_10 = arith.constant 0 : index
      %c0_11 = arith.constant 0 : index
      %12 = vector.load %arg7[%c0_10, %c0_11] : memref<8x256xf32, #tpu.memory_space<vmem>>, vector<8x256xf32>
      %c0_12 = arith.constant 0 : index
      %c0_13 = arith.constant 0 : index
      %13 = vector.load %arg4[%c0_12, %c0_13] : memref<1x256xf32, #tpu.memory_space<vmem>>, vector<1x256xf32>
      %14 = vector.broadcast %13 : vector<1x256xf32> to vector<8x256xf32>
      %15 = arith.mulf %12, %14 : vector<8x256xf32>
      %c0_14 = arith.constant 0 : index
      %c0_15 = arith.constant 0 : index
      %16 = vector.load %arg5[%c0_14, %c0_15] : memref<1x256xf32, #tpu.memory_space<vmem>>, vector<1x256xf32>
      %17 = vector.broadcast %16 : vector<1x256xf32> to vector<8x256xf32>
      %18 = arith.addf %15, %17 : vector<8x256xf32>
      %19 = arith.truncf %18 : vector<8x256xf32> to vector<8x256xbf16>
      %c0_16 = arith.constant 0 : index
      %c0_17 = arith.constant 0 : index
      %20 = vector.load %arg6[%c0_16, %c0_17] : memref<8x256xbf16, #tpu.memory_space<vmem>>, vector<8x256xbf16>
      tpu.vector_store %arg6[%c0_16, %c0_17], %19 {strides = array<i32>} : memref<8x256xbf16, #tpu.memory_space<vmem>>, vector<8x256xbf16>,
    } else {
    }
    return
  }
  func.func @transform_0(%arg0: i32, %arg1: i32) -> (i32, i32) {
    %c0_i32 = arith.constant 0 : i32
    return %arg0, %arg1 : i32, i32
  }
  func.func @transform_1(%arg0: i32, %arg1: i32) -> (i32, i32) {
    %c0_i32 = arith.constant 0 : i32
    %c0_i32_0 = arith.constant 0 : i32
    return %arg1, %c0_i32 : i32, i32
  }
  func.func @transform_2(%arg0: i32, %arg1: i32) -> (i32, i32) {
    %c0_i32 = arith.constant 0 : i32
    %c0_i32_0 = arith.constant 0 : i32
    %c0_i32_1 = arith.constant 0 : i32
    return %c0_i32, %c0_i32_0 : i32, i32
  }
  func.func @transform_3(%arg0: i32, %arg1: i32) -> (i32, i32) {
    %c0_i32 = arith.constant 0 : i32
    %c0_i32_0 = arith.constant 0 : i32
    %c0_i32_1 = arith.constant 0 : i32
    return %c0_i32, %c0_i32_0 : i32, i32
  }
  func.func @transform_4(%arg0: i32, %arg1: i32) -> (i32, i32) {
    %c0_i32 = arith.constant 0 : i32
    %c0_i32_0 = arith.constant 0 : i32
    return %arg0, %c0_i32 : i32, i32
  }
}

module attributes {stable_mosaic.version = 11 : i64} {
  func.func @_matmul_fused_kernel(%arg0: i32, %arg1: i32, %arg2: memref<8x1152xbf16, #tpu.memory_space<vmem>>, %arg3: memref<1152x256xbf16, #tpu.memory_space<vmem>>, %arg4: memref<1x256xf32, #tpu.memory_space<vmem>>, %arg5: memref<1x256xf32, #tpu.memory_space<vmem>>, %arg6: memref<8x256xbf16, #tpu.memory_space<vmem>>, %arg7: memref<8x256xbf16, #tpu.memory_space<vmem>>, %arg8: memref<8x256xf32, #tpu.memory_space<vmem>>) attributes {dimension_semantics = [#tpu.dimension_semantics<parallel>, #tpu.dimension_semantics<arbitrary>], iteration_bounds = array<i64: 1, 2>, scalar_prefetch = 0 : i64, scratch_operands = 1 : i64, tpu.core_type = #tpu.core_type<tc>, window_params = [{transform_indices = @transform_0, window_bounds = array<i64: 8, 1152>}, {transform_indices = @transform_1, window_bounds = array<i64: 1152, 256>}, {pipeline_mode = #tpu.pipeline_mode<synchronous>, transform_indices = @transform_2, window_bounds = array<i64: 1, 256>}, {pipeline_mode = #tpu.pipeline_mode<synchronous>, transform_indices = @transform_3, window_bounds = array<i64: 1, 256>}, {transform_indices = @transform_4, window_bounds = array<i64: 8, 256>}, {transform_indices = @transform_5, window_bounds = array<i64: 8, 256>}]} {
    %c0_i32 = arith.constant 0 : i32
    %0 = arith.cmpi eq, %arg1, %c0_i32 : i32
    %1 = arith.extui %0 : i1 to i32
    %c0_i32_0 = arith.constant 0 : i32
    %2 = arith.cmpi ne, %1, %c0_i32_0 : i32
    scf.if %2 {
      %cst_9 = arith.constant 0.000000e+00 : f32
      %12 = vector.broadcast %cst_9 : f32 to vector<8x256xf32>
      %c0_10 = arith.constant 0 : index
      %c0_11 = arith.constant 0 : index
      %13 = vector.load %arg8[%c0_10, %c0_11] : memref<8x256xf32, #tpu.memory_space<vmem>>, vector<8x256xf32>
      tpu.vector_store %arg8[%c0_10, %c0_11], %12 {strides = array<i32>} : memref<8x256xf32, #tpu.memory_space<vmem>>, vector<8x256xf32>,
    } else {
    }
    %c0 = arith.constant 0 : index
    %c0_1 = arith.constant 0 : index
    %3 = vector.load %arg8[%c0, %c0_1] : memref<8x256xf32, #tpu.memory_space<vmem>>, vector<8x256xf32>
    %c0_2 = arith.constant 0 : index
    %c0_3 = arith.constant 0 : index
    %4 = vector.load %arg2[%c0_2, %c0_3] : memref<8x1152xbf16, #tpu.memory_space<vmem>>, vector<8x1152xbf16>
    %c0_4 = arith.constant 0 : index
    %c0_5 = arith.constant 0 : index
    %5 = vector.load %arg3[%c0_4, %c0_5] : memref<1152x256xbf16, #tpu.memory_space<vmem>>, vector<1152x256xbf16>
    %cst = arith.constant dense<0.000000e+00> : vector<8x256xf32>
    %6 = tpu.matmul %4, %5, %cst {dimension_numbers = #tpu.dot_dimension_numbers<[1], [0], [0], [1], [0, 0, 1, 1], [], []>} : vector<8x1152xbf16>, vector<1152x256xbf16>, vector<8x256xf32> -> vector<8x256xf32>
    %7 = arith.addf %3, %6 : vector<8x256xf32>
    %c0_6 = arith.constant 0 : index
    %c0_7 = arith.constant 0 : index
    %8 = vector.load %arg8[%c0_6, %c0_7] : memref<8x256xf32, #tpu.memory_space<vmem>>, vector<8x256xf32>
    tpu.vector_store %arg8[%c0_6, %c0_7], %7 {strides = array<i32>} : memref<8x256xf32, #tpu.memory_space<vmem>>, vector<8x256xf32>,
    %c1_i32 = arith.constant 1 : i32
    %9 = arith.cmpi eq, %arg1, %c1_i32 : i32
    %10 = arith.extui %9 : i1 to i32
    %c0_i32_8 = arith.constant 0 : i32
    %11 = arith.cmpi ne, %10, %c0_i32_8 : i32
    scf.if %11 {
      %c0_9 = arith.constant 0 : index
      %c0_10 = arith.constant 0 : index
      %12 = vector.load %arg8[%c0_9, %c0_10] : memref<8x256xf32, #tpu.memory_space<vmem>>, vector<8x256xf32>
      %c0_11 = arith.constant 0 : index
      %c0_12 = arith.constant 0 : index
      %13 = vector.load %arg4[%c0_11, %c0_12] : memref<1x256xf32, #tpu.memory_space<vmem>>, vector<1x256xf32>
      %14 = vector.broadcast %13 : vector<1x256xf32> to vector<8x256xf32>
      %15 = arith.mulf %12, %14 : vector<8x256xf32>
      %c0_13 = arith.constant 0 : index
      %c0_14 = arith.constant 0 : index
      %16 = vector.load %arg5[%c0_13, %c0_14] : memref<1x256xf32, #tpu.memory_space<vmem>>, vector<1x256xf32>
      %17 = vector.broadcast %16 : vector<1x256xf32> to vector<8x256xf32>
      %18 = arith.addf %15, %17 : vector<8x256xf32>
      %c0_15 = arith.constant 0 : index
      %c0_16 = arith.constant 0 : index
      %19 = vector.load %arg6[%c0_15, %c0_16] : memref<8x256xbf16, #tpu.memory_space<vmem>>, vector<8x256xbf16>
      %20 = arith.extf %19 : vector<8x256xbf16> to vector<8x256xf32>
      %21 = arith.addf %18, %20 : vector<8x256xf32>
      %cst_17 = arith.constant 0.000000e+00 : f32
      %22 = vector.broadcast %cst_17 : f32 to vector<8x256xf32>
      %23 = arith.maximumf %21, %22 : vector<8x256xf32>
      %24 = arith.truncf %23 : vector<8x256xf32> to vector<8x256xbf16>
      %c0_18 = arith.constant 0 : index
      %c0_19 = arith.constant 0 : index
      %25 = vector.load %arg7[%c0_18, %c0_19] : memref<8x256xbf16, #tpu.memory_space<vmem>>, vector<8x256xbf16>
      tpu.vector_store %arg7[%c0_18, %c0_19], %24 {strides = array<i32>} : memref<8x256xbf16, #tpu.memory_space<vmem>>, vector<8x256xbf16>,
    } else {
    }
    return
  }
  func.func @transform_0(%arg0: i32, %arg1: i32) -> (i32, i32) {
    %c0_i32 = arith.constant 0 : i32
    return %arg0, %arg1 : i32, i32
  }
  func.func @transform_1(%arg0: i32, %arg1: i32) -> (i32, i32) {
    %c0_i32 = arith.constant 0 : i32
    %c0_i32_0 = arith.constant 0 : i32
    return %arg1, %c0_i32 : i32, i32
  }
  func.func @transform_2(%arg0: i32, %arg1: i32) -> (i32, i32) {
    %c0_i32 = arith.constant 0 : i32
    %c0_i32_0 = arith.constant 0 : i32
    %c0_i32_1 = arith.constant 0 : i32
    return %c0_i32, %c0_i32_0 : i32, i32
  }
  func.func @transform_3(%arg0: i32, %arg1: i32) -> (i32, i32) {
    %c0_i32 = arith.constant 0 : i32
    %c0_i32_0 = arith.constant 0 : i32
    %c0_i32_1 = arith.constant 0 : i32
    return %c0_i32, %c0_i32_0 : i32, i32
  }
  func.func @transform_4(%arg0: i32, %arg1: i32) -> (i32, i32) {
    %c0_i32 = arith.constant 0 : i32
    %c0_i32_0 = arith.constant 0 : i32
    return %arg0, %c0_i32 : i32, i32
  }
  func.func @transform_5(%arg0: i32, %arg1: i32) -> (i32, i32) {
    %c0_i32 = arith.constant 0 : i32
    %c0_i32_0 = arith.constant 0 : i32
    return %arg0, %c0_i32 : i32, i32
  }
}

module attributes {stable_mosaic.version = 11 : i64} {
  func.func @_matmul_fused_kernel(%arg0: i32, %arg1: i32, %arg2: memref<8x1152xbf16, #tpu.memory_space<vmem>>, %arg3: memref<1152x512xbf16, #tpu.memory_space<vmem>>, %arg4: memref<1x512xf32, #tpu.memory_space<vmem>>, %arg5: memref<1x512xf32, #tpu.memory_space<vmem>>, %arg6: memref<8x512xbf16, #tpu.memory_space<vmem>>, %arg7: memref<8x512xf32, #tpu.memory_space<vmem>>) attributes {dimension_semantics = [#tpu.dimension_semantics<parallel>, #tpu.dimension_semantics<arbitrary>], iteration_bounds = array<i64: 1, 2>, scalar_prefetch = 0 : i64, scratch_operands = 1 : i64, tpu.core_type = #tpu.core_type<tc>, window_params = [{transform_indices = @transform_0, window_bounds = array<i64: 8, 1152>}, {transform_indices = @transform_1, window_bounds = array<i64: 1152, 512>}, {pipeline_mode = #tpu.pipeline_mode<synchronous>, transform_indices = @transform_2, window_bounds = array<i64: 1, 512>}, {pipeline_mode = #tpu.pipeline_mode<synchronous>, transform_indices = @transform_3, window_bounds = array<i64: 1, 512>}, {transform_indices = @transform_4, window_bounds = array<i64: 8, 512>}]} {
    %c0_i32 = arith.constant 0 : i32
    %0 = arith.cmpi eq, %arg1, %c0_i32 : i32
    %1 = arith.extui %0 : i1 to i32
    %c0_i32_0 = arith.constant 0 : i32
    %2 = arith.cmpi ne, %1, %c0_i32_0 : i32
    scf.if %2 {
      %cst_9 = arith.constant 0.000000e+00 : f32
      %12 = vector.broadcast %cst_9 : f32 to vector<8x512xf32>
      %c0_10 = arith.constant 0 : index
      %c0_11 = arith.constant 0 : index
      %13 = vector.load %arg7[%c0_10, %c0_11] : memref<8x512xf32, #tpu.memory_space<vmem>>, vector<8x512xf32>
      tpu.vector_store %arg7[%c0_10, %c0_11], %12 {strides = array<i32>} : memref<8x512xf32, #tpu.memory_space<vmem>>, vector<8x512xf32>,
    } else {
    }
    %c0 = arith.constant 0 : index
    %c0_1 = arith.constant 0 : index
    %3 = vector.load %arg7[%c0, %c0_1] : memref<8x512xf32, #tpu.memory_space<vmem>>, vector<8x512xf32>
    %c0_2 = arith.constant 0 : index
    %c0_3 = arith.constant 0 : index
    %4 = vector.load %arg2[%c0_2, %c0_3] : memref<8x1152xbf16, #tpu.memory_space<vmem>>, vector<8x1152xbf16>
    %c0_4 = arith.constant 0 : index
    %c0_5 = arith.constant 0 : index
    %5 = vector.load %arg3[%c0_4, %c0_5] : memref<1152x512xbf16, #tpu.memory_space<vmem>>, vector<1152x512xbf16>
    %cst = arith.constant dense<0.000000e+00> : vector<8x512xf32>
    %6 = tpu.matmul %4, %5, %cst {dimension_numbers = #tpu.dot_dimension_numbers<[1], [0], [0], [1], [0, 0, 1, 1], [], []>} : vector<8x1152xbf16>, vector<1152x512xbf16>, vector<8x512xf32> -> vector<8x512xf32>
    %7 = arith.addf %3, %6 : vector<8x512xf32>
    %c0_6 = arith.constant 0 : index
    %c0_7 = arith.constant 0 : index
    %8 = vector.load %arg7[%c0_6, %c0_7] : memref<8x512xf32, #tpu.memory_space<vmem>>, vector<8x512xf32>
    tpu.vector_store %arg7[%c0_6, %c0_7], %7 {strides = array<i32>} : memref<8x512xf32, #tpu.memory_space<vmem>>, vector<8x512xf32>,
    %c1_i32 = arith.constant 1 : i32
    %9 = arith.cmpi eq, %arg1, %c1_i32 : i32
    %10 = arith.extui %9 : i1 to i32
    %c0_i32_8 = arith.constant 0 : i32
    %11 = arith.cmpi ne, %10, %c0_i32_8 : i32
    scf.if %11 {
      %c0_9 = arith.constant 0 : index
      %c0_10 = arith.constant 0 : index
      %12 = vector.load %arg7[%c0_9, %c0_10] : memref<8x512xf32, #tpu.memory_space<vmem>>, vector<8x512xf32>
      %c0_11 = arith.constant 0 : index
      %c0_12 = arith.constant 0 : index
      %13 = vector.load %arg4[%c0_11, %c0_12] : memref<1x512xf32, #tpu.memory_space<vmem>>, vector<1x512xf32>
      %14 = vector.broadcast %13 : vector<1x512xf32> to vector<8x512xf32>
      %15 = arith.mulf %12, %14 : vector<8x512xf32>
      %c0_13 = arith.constant 0 : index
      %c0_14 = arith.constant 0 : index
      %16 = vector.load %arg5[%c0_13, %c0_14] : memref<1x512xf32, #tpu.memory_space<vmem>>, vector<1x512xf32>
      %17 = vector.broadcast %16 : vector<1x512xf32> to vector<8x512xf32>
      %18 = arith.addf %15, %17 : vector<8x512xf32>
      %cst_15 = arith.constant 0.000000e+00 : f32
      %19 = vector.broadcast %cst_15 : f32 to vector<8x512xf32>
      %20 = arith.maximumf %18, %19 : vector<8x512xf32>
      %21 = arith.truncf %20 : vector<8x512xf32> to vector<8x512xbf16>
      %c0_16 = arith.constant 0 : index
      %c0_17 = arith.constant 0 : index
      %22 = vector.load %arg6[%c0_16, %c0_17] : memref<8x512xbf16, #tpu.memory_space<vmem>>, vector<8x512xbf16>
      tpu.vector_store %arg6[%c0_16, %c0_17], %21 {strides = array<i32>} : memref<8x512xbf16, #tpu.memory_space<vmem>>, vector<8x512xbf16>,
    } else {
    }
    return
  }
  func.func @transform_0(%arg0: i32, %arg1: i32) -> (i32, i32) {
    %c0_i32 = arith.constant 0 : i32
    return %arg0, %arg1 : i32, i32
  }
  func.func @transform_1(%arg0: i32, %arg1: i32) -> (i32, i32) {
    %c0_i32 = arith.constant 0 : i32
    %c0_i32_0 = arith.constant 0 : i32
    return %arg1, %c0_i32 : i32, i32
  }
  func.func @transform_2(%arg0: i32, %arg1: i32) -> (i32, i32) {
    %c0_i32 = arith.constant 0 : i32
    %c0_i32_0 = arith.constant 0 : i32
    %c0_i32_1 = arith.constant 0 : i32
    return %c0_i32, %c0_i32_0 : i32, i32
  }
  func.func @transform_3(%arg0: i32, %arg1: i32) -> (i32, i32) {
    %c0_i32 = arith.constant 0 : i32
    %c0_i32_0 = arith.constant 0 : i32
    %c0_i32_1 = arith.constant 0 : i32
    return %c0_i32, %c0_i32_0 : i32, i32
  }
  func.func @transform_4(%arg0: i32, %arg1: i32) -> (i32, i32) {
    %c0_i32 = arith.constant 0 : i32
    %c0_i32_0 = arith.constant 0 : i32
    return %arg0, %c0_i32 : i32, i32
  }
}

module attributes {stable_mosaic.version = 11 : i64} {
  func.func @_matmul_fused_kernel(%arg0: i32, %arg1: i32, %arg2: memref<8x256xbf16, #tpu.memory_space<vmem>>, %arg3: memref<256x512xbf16, #tpu.memory_space<vmem>>, %arg4: memref<1x512xf32, #tpu.memory_space<vmem>>, %arg5: memref<1x512xf32, #tpu.memory_space<vmem>>, %arg6: memref<8x512xbf16, #tpu.memory_space<vmem>>, %arg7: memref<8x512xf32, #tpu.memory_space<vmem>>) attributes {dimension_semantics = [#tpu.dimension_semantics<parallel>, #tpu.dimension_semantics<arbitrary>], iteration_bounds = array<i64: 1, 1>, scalar_prefetch = 0 : i64, scratch_operands = 1 : i64, tpu.core_type = #tpu.core_type<tc>, window_params = [{transform_indices = @transform_0, window_bounds = array<i64: 8, 256>}, {transform_indices = @transform_1, window_bounds = array<i64: 256, 512>}, {pipeline_mode = #tpu.pipeline_mode<synchronous>, transform_indices = @transform_2, window_bounds = array<i64: 1, 512>}, {pipeline_mode = #tpu.pipeline_mode<synchronous>, transform_indices = @transform_3, window_bounds = array<i64: 1, 512>}, {transform_indices = @transform_4, window_bounds = array<i64: 8, 512>}]} {
    %c0_i32 = arith.constant 0 : i32
    %0 = arith.cmpi eq, %arg1, %c0_i32 : i32
    %1 = arith.extui %0 : i1 to i32
    %c0_i32_0 = arith.constant 0 : i32
    %2 = arith.cmpi ne, %1, %c0_i32_0 : i32
    scf.if %2 {
      %cst_10 = arith.constant 0.000000e+00 : f32
      %12 = vector.broadcast %cst_10 : f32 to vector<8x512xf32>
      %c0_11 = arith.constant 0 : index
      %c0_12 = arith.constant 0 : index
      %13 = vector.load %arg7[%c0_11, %c0_12] : memref<8x512xf32, #tpu.memory_space<vmem>>, vector<8x512xf32>
      tpu.vector_store %arg7[%c0_11, %c0_12], %12 {strides = array<i32>} : memref<8x512xf32, #tpu.memory_space<vmem>>, vector<8x512xf32>,
    } else {
    }
    %c0 = arith.constant 0 : index
    %c0_1 = arith.constant 0 : index
    %3 = vector.load %arg7[%c0, %c0_1] : memref<8x512xf32, #tpu.memory_space<vmem>>, vector<8x512xf32>
    %c0_2 = arith.constant 0 : index
    %c0_3 = arith.constant 0 : index
    %4 = vector.load %arg2[%c0_2, %c0_3] : memref<8x256xbf16, #tpu.memory_space<vmem>>, vector<8x256xbf16>
    %c0_4 = arith.constant 0 : index
    %c0_5 = arith.constant 0 : index
    %5 = vector.load %arg3[%c0_4, %c0_5] : memref<256x512xbf16, #tpu.memory_space<vmem>>, vector<256x512xbf16>
    %cst = arith.constant dense<0.000000e+00> : vector<8x512xf32>
    %6 = tpu.matmul %4, %5, %cst {dimension_numbers = #tpu.dot_dimension_numbers<[1], [0], [0], [1], [0, 0, 1, 1], [], []>} : vector<8x256xbf16>, vector<256x512xbf16>, vector<8x512xf32> -> vector<8x512xf32>
    %7 = arith.addf %3, %6 : vector<8x512xf32>
    %c0_6 = arith.constant 0 : index
    %c0_7 = arith.constant 0 : index
    %8 = vector.load %arg7[%c0_6, %c0_7] : memref<8x512xf32, #tpu.memory_space<vmem>>, vector<8x512xf32>
    tpu.vector_store %arg7[%c0_6, %c0_7], %7 {strides = array<i32>} : memref<8x512xf32, #tpu.memory_space<vmem>>, vector<8x512xf32>,
    %c0_i32_8 = arith.constant 0 : i32
    %9 = arith.cmpi eq, %arg1, %c0_i32_8 : i32
    %10 = arith.extui %9 : i1 to i32
    %c0_i32_9 = arith.constant 0 : i32
    %11 = arith.cmpi ne, %10, %c0_i32_9 : i32
    scf.if %11 {
      %c0_10 = arith.constant 0 : index
      %c0_11 = arith.constant 0 : index
      %12 = vector.load %arg7[%c0_10, %c0_11] : memref<8x512xf32, #tpu.memory_space<vmem>>, vector<8x512xf32>
      %c0_12 = arith.constant 0 : index
      %c0_13 = arith.constant 0 : index
      %13 = vector.load %arg4[%c0_12, %c0_13] : memref<1x512xf32, #tpu.memory_space<vmem>>, vector<1x512xf32>
      %14 = vector.broadcast %13 : vector<1x512xf32> to vector<8x512xf32>
      %15 = arith.mulf %12, %14 : vector<8x512xf32>
      %c0_14 = arith.constant 0 : index
      %c0_15 = arith.constant 0 : index
      %16 = vector.load %arg5[%c0_14, %c0_15] : memref<1x512xf32, #tpu.memory_space<vmem>>, vector<1x512xf32>
      %17 = vector.broadcast %16 : vector<1x512xf32> to vector<8x512xf32>
      %18 = arith.addf %15, %17 : vector<8x512xf32>
      %19 = arith.truncf %18 : vector<8x512xf32> to vector<8x512xbf16>
      %c0_16 = arith.constant 0 : index
      %c0_17 = arith.constant 0 : index
      %20 = vector.load %arg6[%c0_16, %c0_17] : memref<8x512xbf16, #tpu.memory_space<vmem>>, vector<8x512xbf16>
      tpu.vector_store %arg6[%c0_16, %c0_17], %19 {strides = array<i32>} : memref<8x512xbf16, #tpu.memory_space<vmem>>, vector<8x512xbf16>,
    } else {
    }
    return
  }
  func.func @transform_0(%arg0: i32, %arg1: i32) -> (i32, i32) {
    %c0_i32 = arith.constant 0 : i32
    return %arg0, %arg1 : i32, i32
  }
  func.func @transform_1(%arg0: i32, %arg1: i32) -> (i32, i32) {
    %c0_i32 = arith.constant 0 : i32
    %c0_i32_0 = arith.constant 0 : i32
    return %arg1, %c0_i32 : i32, i32
  }
  func.func @transform_2(%arg0: i32, %arg1: i32) -> (i32, i32) {
    %c0_i32 = arith.constant 0 : i32
    %c0_i32_0 = arith.constant 0 : i32
    %c0_i32_1 = arith.constant 0 : i32
    return %c0_i32, %c0_i32_0 : i32, i32
  }
  func.func @transform_3(%arg0: i32, %arg1: i32) -> (i32, i32) {
    %c0_i32 = arith.constant 0 : i32
    %c0_i32_0 = arith.constant 0 : i32
    %c0_i32_1 = arith.constant 0 : i32
    return %c0_i32, %c0_i32_0 : i32, i32
  }
  func.func @transform_4(%arg0: i32, %arg1: i32) -> (i32, i32) {
    %c0_i32 = arith.constant 0 : i32
    %c0_i32_0 = arith.constant 0 : i32
    return %arg0, %c0_i32 : i32, i32
  }
}

module attributes {stable_mosaic.version = 11 : i64} {
  func.func @_matmul_fused_kernel(%arg0: i32, %arg1: i32, %arg2: memref<8x1536xbf16, #tpu.memory_space<vmem>>, %arg3: memref<1536x512xbf16, #tpu.memory_space<vmem>>, %arg4: memref<1x512xf32, #tpu.memory_space<vmem>>, %arg5: memref<1x512xf32, #tpu.memory_space<vmem>>, %arg6: memref<8x512xbf16, #tpu.memory_space<vmem>>, %arg7: memref<8x512xbf16, #tpu.memory_space<vmem>>, %arg8: memref<8x512xf32, #tpu.memory_space<vmem>>) attributes {dimension_semantics = [#tpu.dimension_semantics<parallel>, #tpu.dimension_semantics<arbitrary>], iteration_bounds = array<i64: 1, 3>, scalar_prefetch = 0 : i64, scratch_operands = 1 : i64, tpu.core_type = #tpu.core_type<tc>, window_params = [{transform_indices = @transform_0, window_bounds = array<i64: 8, 1536>}, {transform_indices = @transform_1, window_bounds = array<i64: 1536, 512>}, {pipeline_mode = #tpu.pipeline_mode<synchronous>, transform_indices = @transform_2, window_bounds = array<i64: 1, 512>}, {pipeline_mode = #tpu.pipeline_mode<synchronous>, transform_indices = @transform_3, window_bounds = array<i64: 1, 512>}, {transform_indices = @transform_4, window_bounds = array<i64: 8, 512>}, {transform_indices = @transform_5, window_bounds = array<i64: 8, 512>}]} {
    %c0_i32 = arith.constant 0 : i32
    %0 = arith.cmpi eq, %arg1, %c0_i32 : i32
    %1 = arith.extui %0 : i1 to i32
    %c0_i32_0 = arith.constant 0 : i32
    %2 = arith.cmpi ne, %1, %c0_i32_0 : i32
    scf.if %2 {
      %cst_9 = arith.constant 0.000000e+00 : f32
      %12 = vector.broadcast %cst_9 : f32 to vector<8x512xf32>
      %c0_10 = arith.constant 0 : index
      %c0_11 = arith.constant 0 : index
      %13 = vector.load %arg8[%c0_10, %c0_11] : memref<8x512xf32, #tpu.memory_space<vmem>>, vector<8x512xf32>
      tpu.vector_store %arg8[%c0_10, %c0_11], %12 {strides = array<i32>} : memref<8x512xf32, #tpu.memory_space<vmem>>, vector<8x512xf32>,
    } else {
    }
    %c0 = arith.constant 0 : index
    %c0_1 = arith.constant 0 : index
    %3 = vector.load %arg8[%c0, %c0_1] : memref<8x512xf32, #tpu.memory_space<vmem>>, vector<8x512xf32>
    %c0_2 = arith.constant 0 : index
    %c0_3 = arith.constant 0 : index
    %4 = vector.load %arg2[%c0_2, %c0_3] : memref<8x1536xbf16, #tpu.memory_space<vmem>>, vector<8x1536xbf16>
    %c0_4 = arith.constant 0 : index
    %c0_5 = arith.constant 0 : index
    %5 = vector.load %arg3[%c0_4, %c0_5] : memref<1536x512xbf16, #tpu.memory_space<vmem>>, vector<1536x512xbf16>
    %cst = arith.constant dense<0.000000e+00> : vector<8x512xf32>
    %6 = tpu.matmul %4, %5, %cst {dimension_numbers = #tpu.dot_dimension_numbers<[1], [0], [0], [1], [0, 0, 1, 1], [], []>} : vector<8x1536xbf16>, vector<1536x512xbf16>, vector<8x512xf32> -> vector<8x512xf32>
    %7 = arith.addf %3, %6 : vector<8x512xf32>
    %c0_6 = arith.constant 0 : index
    %c0_7 = arith.constant 0 : index
    %8 = vector.load %arg8[%c0_6, %c0_7] : memref<8x512xf32, #tpu.memory_space<vmem>>, vector<8x512xf32>
    tpu.vector_store %arg8[%c0_6, %c0_7], %7 {strides = array<i32>} : memref<8x512xf32, #tpu.memory_space<vmem>>, vector<8x512xf32>,
    %c2_i32 = arith.constant 2 : i32
    %9 = arith.cmpi eq, %arg1, %c2_i32 : i32
    %10 = arith.extui %9 : i1 to i32
    %c0_i32_8 = arith.constant 0 : i32
    %11 = arith.cmpi ne, %10, %c0_i32_8 : i32
    scf.if %11 {
      %c0_9 = arith.constant 0 : index
      %c0_10 = arith.constant 0 : index
      %12 = vector.load %arg8[%c0_9, %c0_10] : memref<8x512xf32, #tpu.memory_space<vmem>>, vector<8x512xf32>
      %c0_11 = arith.constant 0 : index
      %c0_12 = arith.constant 0 : index
      %13 = vector.load %arg4[%c0_11, %c0_12] : memref<1x512xf32, #tpu.memory_space<vmem>>, vector<1x512xf32>
      %14 = vector.broadcast %13 : vector<1x512xf32> to vector<8x512xf32>
      %15 = arith.mulf %12, %14 : vector<8x512xf32>
      %c0_13 = arith.constant 0 : index
      %c0_14 = arith.constant 0 : index
      %16 = vector.load %arg5[%c0_13, %c0_14] : memref<1x512xf32, #tpu.memory_space<vmem>>, vector<1x512xf32>
      %17 = vector.broadcast %16 : vector<1x512xf32> to vector<8x512xf32>
      %18 = arith.addf %15, %17 : vector<8x512xf32>
      %c0_15 = arith.constant 0 : index
      %c0_16 = arith.constant 0 : index
      %19 = vector.load %arg6[%c0_15, %c0_16] : memref<8x512xbf16, #tpu.memory_space<vmem>>, vector<8x512xbf16>
      %20 = arith.extf %19 : vector<8x512xbf16> to vector<8x512xf32>
      %21 = arith.addf %18, %20 : vector<8x512xf32>
      %cst_17 = arith.constant 0.000000e+00 : f32
      %22 = vector.broadcast %cst_17 : f32 to vector<8x512xf32>
      %23 = arith.maximumf %21, %22 : vector<8x512xf32>
      %24 = arith.truncf %23 : vector<8x512xf32> to vector<8x512xbf16>
      %c0_18 = arith.constant 0 : index
      %c0_19 = arith.constant 0 : index
      %25 = vector.load %arg7[%c0_18, %c0_19] : memref<8x512xbf16, #tpu.memory_space<vmem>>, vector<8x512xbf16>
      tpu.vector_store %arg7[%c0_18, %c0_19], %24 {strides = array<i32>} : memref<8x512xbf16, #tpu.memory_space<vmem>>, vector<8x512xbf16>,
    } else {
    }
    return
  }
  func.func @transform_0(%arg0: i32, %arg1: i32) -> (i32, i32) {
    %c0_i32 = arith.constant 0 : i32
    return %arg0, %arg1 : i32, i32
  }
  func.func @transform_1(%arg0: i32, %arg1: i32) -> (i32, i32) {
    %c0_i32 = arith.constant 0 : i32
    %c0_i32_0 = arith.constant 0 : i32
    return %arg1, %c0_i32 : i32, i32
  }
  func.func @transform_2(%arg0: i32, %arg1: i32) -> (i32, i32) {
    %c0_i32 = arith.constant 0 : i32
    %c0_i32_0 = arith.constant 0 : i32
    %c0_i32_1 = arith.constant 0 : i32
    return %c0_i32, %c0_i32_0 : i32, i32
  }
  func.func @transform_3(%arg0: i32, %arg1: i32) -> (i32, i32) {
    %c0_i32 = arith.constant 0 : i32
    %c0_i32_0 = arith.constant 0 : i32
    %c0_i32_1 = arith.constant 0 : i32
    return %c0_i32, %c0_i32_0 : i32, i32
  }
  func.func @transform_4(%arg0: i32, %arg1: i32) -> (i32, i32) {
    %c0_i32 = arith.constant 0 : i32
    %c0_i32_0 = arith.constant 0 : i32
    return %arg0, %c0_i32 : i32, i32
  }
  func.func @transform_5(%arg0: i32, %arg1: i32) -> (i32, i32) {
    %c0_i32 = arith.constant 0 : i32
    %c0_i32_0 = arith.constant 0 : i32
    return %arg0, %c0_i32 : i32, i32
  }
}

module attributes {stable_mosaic.version = 11 : i64} {
  func.func @_gap_kernel(%arg0: i32, %arg1: memref<2x1x512xbf16, #tpu.memory_space<vmem>>, %arg2: memref<2x512xf32, #tpu.memory_space<vmem>>, %arg3: memref<2x512xf32, #tpu.memory_space<vmem>>) attributes {dimension_semantics = [#tpu.dimension_semantics<arbitrary>], iteration_bounds = array<i64: 1>, scalar_prefetch = 0 : i64, scratch_operands = 1 : i64, tpu.core_type = #tpu.core_type<tc>, window_params = [{transform_indices = @transform_0, window_bounds = array<i64: 2, 1, 512>}, {pipeline_mode = #tpu.pipeline_mode<synchronous>, transform_indices = @transform_1, window_bounds = array<i64: 2, 512>}]} {
    %c0_i32 = arith.constant 0 : i32
    %0 = arith.cmpi eq, %arg0, %c0_i32 : i32
    %1 = arith.extui %0 : i1 to i32
    %c0_i32_0 = arith.constant 0 : i32
    %2 = arith.cmpi ne, %1, %c0_i32_0 : i32
    scf.if %2 {
      %cst_9 = arith.constant 0.000000e+00 : f32
      %12 = vector.broadcast %cst_9 : f32 to vector<2x512xf32>
      %c0_10 = arith.constant 0 : index
      %c0_11 = arith.constant 0 : index
      %13 = vector.load %arg3[%c0_10, %c0_11] : memref<2x512xf32, #tpu.memory_space<vmem>>, vector<2x512xf32>
      tpu.vector_store %arg3[%c0_10, %c0_11], %12 {strides = array<i32>} : memref<2x512xf32, #tpu.memory_space<vmem>>, vector<2x512xf32>,
    } else {
    }
    %c0 = arith.constant 0 : index
    %c0_1 = arith.constant 0 : index
    %3 = vector.load %arg3[%c0, %c0_1] : memref<2x512xf32, #tpu.memory_space<vmem>>, vector<2x512xf32>
    %c0_2 = arith.constant 0 : index
    %c0_3 = arith.constant 0 : index
    %c0_4 = arith.constant 0 : index
    %4 = vector.load %arg1[%c0_2, %c0_3, %c0_4] : memref<2x1x512xbf16, #tpu.memory_space<vmem>>, vector<2x1x512xbf16>
    %5 = arith.extf %4 : vector<2x1x512xbf16> to vector<2x1x512xf32>
    %cst = arith.constant dense<0.000000e+00> : vector<2x512xf32>
    %6 = vector.multi_reduction <add>, %5, %cst [1] : vector<2x1x512xf32> to vector<2x512xf32>
    %7 = arith.addf %3, %6 : vector<2x512xf32>
    %c0_5 = arith.constant 0 : index
    %c0_6 = arith.constant 0 : index
    %8 = vector.load %arg3[%c0_5, %c0_6] : memref<2x512xf32, #tpu.memory_space<vmem>>, vector<2x512xf32>
    tpu.vector_store %arg3[%c0_5, %c0_6], %7 {strides = array<i32>} : memref<2x512xf32, #tpu.memory_space<vmem>>, vector<2x512xf32>,
    %c0_i32_7 = arith.constant 0 : i32
    %9 = arith.cmpi eq, %arg0, %c0_i32_7 : i32
    %10 = arith.extui %9 : i1 to i32
    %c0_i32_8 = arith.constant 0 : i32
    %11 = arith.cmpi ne, %10, %c0_i32_8 : i32
    scf.if %11 {
      %c0_9 = arith.constant 0 : index
      %c0_10 = arith.constant 0 : index
      %12 = vector.load %arg3[%c0_9, %c0_10] : memref<2x512xf32, #tpu.memory_space<vmem>>, vector<2x512xf32>
      %cst_11 = arith.constant 1.000000e+00 : f32
      %13 = vector.broadcast %cst_11 : f32 to vector<2x512xf32>
      %14 = arith.mulf %12, %13 : vector<2x512xf32>
      %c0_12 = arith.constant 0 : index
      %c0_13 = arith.constant 0 : index
      %15 = vector.load %arg2[%c0_12, %c0_13] : memref<2x512xf32, #tpu.memory_space<vmem>>, vector<2x512xf32>
      tpu.vector_store %arg2[%c0_12, %c0_13], %14 {strides = array<i32>} : memref<2x512xf32, #tpu.memory_space<vmem>>, vector<2x512xf32>,
    } else {
    }
    return
  }
  func.func @transform_0(%arg0: i32) -> (i32, i32, i32) {
    %c0_i32 = arith.constant 0 : i32
    %c0_i32_0 = arith.constant 0 : i32
    %c0_i32_1 = arith.constant 0 : i32
    return %c0_i32, %arg0, %c0_i32_0 : i32, i32, i32
  }
  func.func @transform_1(%arg0: i32) -> (i32, i32) {
    %c0_i32 = arith.constant 0 : i32
    %c0_i32_0 = arith.constant 0 : i32
    %c0_i32_1 = arith.constant 0 : i32
    return %c0_i32, %c0_i32_0 : i32, i32
  }
}

module attributes {stable_mosaic.version = 11 : i64} {
  func.func @_matmul_fused_kernel(%arg0: i32, %arg1: i32, %arg2: memref<8x512xbf16, #tpu.memory_space<vmem>>, %arg3: memref<512x10xbf16, #tpu.memory_space<vmem>>, %arg4: memref<1x10xf32, #tpu.memory_space<vmem>>, %arg5: memref<1x10xf32, #tpu.memory_space<vmem>>, %arg6: memref<8x10xf32, #tpu.memory_space<vmem>>, %arg7: memref<8x10xf32, #tpu.memory_space<vmem>>) attributes {dimension_semantics = [#tpu.dimension_semantics<parallel>, #tpu.dimension_semantics<arbitrary>], iteration_bounds = array<i64: 1, 1>, scalar_prefetch = 0 : i64, scratch_operands = 1 : i64, tpu.core_type = #tpu.core_type<tc>, window_params = [{transform_indices = @transform_0, window_bounds = array<i64: 8, 512>}, {transform_indices = @transform_1, window_bounds = array<i64: 512, 10>}, {pipeline_mode = #tpu.pipeline_mode<synchronous>, transform_indices = @transform_2, window_bounds = array<i64: 1, 10>}, {pipeline_mode = #tpu.pipeline_mode<synchronous>, transform_indices = @transform_3, window_bounds = array<i64: 1, 10>}, {transform_indices = @transform_4, window_bounds = array<i64: 8, 10>}]} {
    %c0_i32 = arith.constant 0 : i32
    %0 = arith.cmpi eq, %arg1, %c0_i32 : i32
    %1 = arith.extui %0 : i1 to i32
    %c0_i32_0 = arith.constant 0 : i32
    %2 = arith.cmpi ne, %1, %c0_i32_0 : i32
    scf.if %2 {
      %cst_10 = arith.constant 0.000000e+00 : f32
      %12 = vector.broadcast %cst_10 : f32 to vector<8x10xf32>
      %c0_11 = arith.constant 0 : index
      %c0_12 = arith.constant 0 : index
      %13 = vector.load %arg7[%c0_11, %c0_12] : memref<8x10xf32, #tpu.memory_space<vmem>>, vector<8x10xf32>
      tpu.vector_store %arg7[%c0_11, %c0_12], %12 {strides = array<i32>} : memref<8x10xf32, #tpu.memory_space<vmem>>, vector<8x10xf32>,
    } else {
    }
    %c0 = arith.constant 0 : index
    %c0_1 = arith.constant 0 : index
    %3 = vector.load %arg7[%c0, %c0_1] : memref<8x10xf32, #tpu.memory_space<vmem>>, vector<8x10xf32>
    %c0_2 = arith.constant 0 : index
    %c0_3 = arith.constant 0 : index
    %4 = vector.load %arg2[%c0_2, %c0_3] : memref<8x512xbf16, #tpu.memory_space<vmem>>, vector<8x512xbf16>
    %c0_4 = arith.constant 0 : index
    %c0_5 = arith.constant 0 : index
    %5 = vector.load %arg3[%c0_4, %c0_5] : memref<512x10xbf16, #tpu.memory_space<vmem>>, vector<512x10xbf16>
    %cst = arith.constant dense<0.000000e+00> : vector<8x10xf32>
    %6 = tpu.matmul %4, %5, %cst {dimension_numbers = #tpu.dot_dimension_numbers<[1], [0], [0], [1], [0, 0, 1, 1], [], []>} : vector<8x512xbf16>, vector<512x10xbf16>, vector<8x10xf32> -> vector<8x10xf32>
    %7 = arith.addf %3, %6 : vector<8x10xf32>
    %c0_6 = arith.constant 0 : index
    %c0_7 = arith.constant 0 : index
    %8 = vector.load %arg7[%c0_6, %c0_7] : memref<8x10xf32, #tpu.memory_space<vmem>>, vector<8x10xf32>
    tpu.vector_store %arg7[%c0_6, %c0_7], %7 {strides = array<i32>} : memref<8x10xf32, #tpu.memory_space<vmem>>, vector<8x10xf32>,
    %c0_i32_8 = arith.constant 0 : i32
    %9 = arith.cmpi eq, %arg1, %c0_i32_8 : i32
    %10 = arith.extui %9 : i1 to i32
    %c0_i32_9 = arith.constant 0 : i32
    %11 = arith.cmpi ne, %10, %c0_i32_9 : i32
    scf.if %11 {
      %c0_10 = arith.constant 0 : index
      %c0_11 = arith.constant 0 : index
      %12 = vector.load %arg7[%c0_10, %c0_11] : memref<8x10xf32, #tpu.memory_space<vmem>>, vector<8x10xf32>
      %c0_12 = arith.constant 0 : index
      %c0_13 = arith.constant 0 : index
      %13 = vector.load %arg4[%c0_12, %c0_13] : memref<1x10xf32, #tpu.memory_space<vmem>>, vector<1x10xf32>
      %14 = vector.broadcast %13 : vector<1x10xf32> to vector<8x10xf32>
      %15 = arith.mulf %12, %14 : vector<8x10xf32>
      %c0_14 = arith.constant 0 : index
      %c0_15 = arith.constant 0 : index
      %16 = vector.load %arg5[%c0_14, %c0_15] : memref<1x10xf32, #tpu.memory_space<vmem>>, vector<1x10xf32>
      %17 = vector.broadcast %16 : vector<1x10xf32> to vector<8x10xf32>
      %18 = arith.addf %15, %17 : vector<8x10xf32>
      %c0_16 = arith.constant 0 : index
      %c0_17 = arith.constant 0 : index
      %19 = vector.load %arg6[%c0_16, %c0_17] : memref<8x10xf32, #tpu.memory_space<vmem>>, vector<8x10xf32>
      tpu.vector_store %arg6[%c0_16, %c0_17], %18 {strides = array<i32>} : memref<8x10xf32, #tpu.memory_space<vmem>>, vector<8x10xf32>,
    } else {
    }
    return
  }
  func.func @transform_0(%arg0: i32, %arg1: i32) -> (i32, i32) {
    %c0_i32 = arith.constant 0 : i32
    return %arg0, %arg1 : i32, i32
  }
  func.func @transform_1(%arg0: i32, %arg1: i32) -> (i32, i32) {
    %c0_i32 = arith.constant 0 : i32
    %c0_i32_0 = arith.constant 0 : i32
    return %arg1, %c0_i32 : i32, i32
  }
  func.func @transform_2(%arg0: i32, %arg1: i32) -> (i32, i32) {
    %c0_i32 = arith.constant 0 : i32
    %c0_i32_0 = arith.constant 0 : i32
    %c0_i32_1 = arith.constant 0 : i32
    return %c0_i32, %c0_i32_0 : i32, i32
  }
  func.func @transform_3(%arg0: i32, %arg1: i32) -> (i32, i32) {
    %c0_i32 = arith.constant 0 : i32
    %c0_i32_0 = arith.constant 0 : i32
    %c0_i32_1 = arith.constant 0 : i32
    return %c0_i32, %c0_i32_0 : i32, i32
  }
  func.func @transform_4(%arg0: i32, %arg1: i32) -> (i32, i32) {
    %c0_i32 = arith.constant 0 : i32
    %c0_i32_0 = arith.constant 0 : i32
    return %arg0, %c0_i32 : i32, i32
  }
}

</mosaic_0001>

<bundles_post_ra>
// kernel: _lambda_.16
= control target key start
LH: loop header
LB: loop body
LE: loop exit
PB: predicated region body
PF: predicated region fallthrough
CT: control target
= control target key end

     0   :  { %s885_s0 = inlined_call_operand.vmem [shape: bf16[128,128], index: 0, kind: input, shape index: {}]   ;;  %s886_s1 = inlined_call_operand.vmem [shape: bf16[128,128], index: 1, kind: input, shape index: {}]   ;;  %s887_s2 = inlined_call_operand.vmem [shape: bf16[128,128], index: 2, kind: input, shape index: {}]   ;;  %s888_s3 = inlined_call_operand.vmem [shape: bf16[128,128], index: 3, kind: input, shape index: {}]   ;;  %s889_s4 = inlined_call_operand.vmem [shape: bf16[128,128], index: 4, kind: input, shape index: {}]   ;;  %s890_s5 = inlined_call_operand.vmem [shape: bf16[128,128], index: 5, kind: input, shape index: {}]   ;;  %s891_s6 = inlined_call_operand.vmem [shape: bf16[128,128], index: 6, kind: input, shape index: {}]   ;;  %s892_s7 = inlined_call_operand.vmem [shape: bf16[128,128], index: 7, kind: input, shape index: {}]   ;;  %s893_s8 = inlined_call_operand.vmem [shape: bf16[128,128], index: 8, kind: input, shape index: {}]   ;;  %s894_s9 = inlined_call_operand.vmem [shape: bf16[128,128], index: 9, kind: output, shape index: {}]  }
   0x1   :  { %v32_v0 = vld [vmem:[%s885_s0] sm:$0xf]  ;;  %v33_v1 = vld [vmem:[%s885_s0 + $0x4] sm:$0xf]  ;;  %v34_v18 = vld [vmem:[%s885_s0 + $0x8] sm:$0xf] }
   0x2   :  { %v48_v2 = vld [vmem:[%s886_s1] sm:$0xf]  ;;  %v49_v3 = vld [vmem:[%s886_s1 + $0x4] sm:$0xf]  ;;  %v35_v19 = vld [vmem:[%s885_s0 + $0xc] sm:$0xf] }
   0x3   :  { %v64_v4 = vmax.bf16 %v48_v2, %v32_v0  ;;  %v80_v5 = vld [vmem:[%s887_s2] sm:$0xf]  ;;  %v81_v6 = vld [vmem:[%s887_s2 + $0x4] sm:$0xf]  ;;  %v65_v7 = vmax.bf16 %v49_v3, %v33_v1  ;;  %v50_v20 = vld [vmem:[%s886_s1 + $0x8] sm:$0xf] }
   0x4   :  { %v112_v8 = vld [vmem:[%s888_s3] sm:$0xf]  ;;  %v113_v10 = vld [vmem:[%s888_s3 + $0x4] sm:$0xf]  ;;  %v51_v22 = vld [vmem:[%s886_s1 + $0xc] sm:$0xf]  ;;  %v66_v23 = vmax.bf16 %v50_v20, %v34_v18 }
   0x5   :  { %v96_v9 = vmax.bf16 %v80_v5, %v64_v4  ;;  %v97_v11 = vmax.bf16 %v81_v6, %v65_v7  ;;  %v144_v12 = vld [vmem:[%s889_s4] sm:$0xf]  ;;  %v145_v14 = vld [vmem:[%s889_s4 + $0x4] sm:$0xf]  ;;  %v82_v24 = vld [vmem:[%s887_s2 + $0x8] sm:$0xf]  ;;  %v67_v28 = vmax.bf16 %v51_v22, %v35_v19 }
   0x6   :  { %v176_v15 = vld [vmem:[%s890_s5] sm:$0xf]  ;;  %v177_v16 = vld [vmem:[%s890_s5 + $0x4] sm:$0xf]  ;;  %v83_v25 = vld [vmem:[%s887_s2 + $0xc] sm:$0xf]  ;;  %v98_v33 = vmax.bf16 %v82_v24, %v66_v23 }
   0x7   :  { %v128_v13 = vmax.bf16 %v112_v8, %v96_v9  ;;  %v129_v17 = vmax.bf16 %v113_v10, %v97_v11  ;;  %v208_v27 = vld [vmem:[%s891_s6] sm:$0xf]  ;;  %v114_v29 = vld [vmem:[%s888_s3 + $0x8] sm:$0xf]  ;;  %v209_v31 = vld [vmem:[%s891_s6 + $0x4] sm:$0xf]  ;;  %v99_v38 = vmax.bf16 %v83_v25, %v67_v28 }
   0x8   :  { %v240_v32 = vld [vmem:[%s892_s7] sm:$0xf]  ;;  %v115_v34 = vld [vmem:[%s888_s3 + $0xc] sm:$0xf]  ;;  %v241_v36 = vld [vmem:[%s892_s7 + $0x4] sm:$0xf]  ;;  %v130_v42 = vmax.bf16 %v114_v29, %v98_v33 }
   0x9   :  { %v160_v21 = vmax.bf16 %v144_v12, %v128_v13  ;;  %v161_v26 = vmax.bf16 %v145_v14, %v129_v17  ;;  %v272_v37 = vld [vmem:[%s893_s8] sm:$0xf]  ;;  %v146_v39 = vld [vmem:[%s889_s4 + $0x8] sm:$0xf]  ;;  %v273_v41 = vld [vmem:[%s893_s8 + $0x4] sm:$0xf]  ;;  %v131_v47 = vmax.bf16 %v115_v34, %v99_v38 }
   0xa   :  { %v147_v43 = vld [vmem:[%s889_s4 + $0xc] sm:$0xf]  ;;  %v178_v44 = vld [vmem:[%s890_s5 + $0x8] sm:$0xf]  ;;  %v36_v48 = vld [vmem:[%s885_s0 + $0x10] sm:$0xf]  ;;  %v162_v52 = vmax.bf16 %v146_v39, %v130_v42 }
   0xb   :  { %v192_v30 = vmax.bf16 %v176_v15, %v160_v21  ;;  %v193_v35 = vmax.bf16 %v177_v16, %v161_v26  ;;  %v179_v45 = vld [vmem:[%s890_s5 + $0xc] sm:$0xf]  ;;  %v37_v49 = vld [vmem:[%s885_s0 + $0x14] sm:$0xf]  ;;  %v52_v50 = vld [vmem:[%s886_s1 + $0x10] sm:$0xf]  ;;  %v163_v58 = vmax.bf16 %v147_v43, %v131_v47 }
   0xc   :  { %v53_v53 = vld [vmem:[%s886_s1 + $0x14] sm:$0xf]  ;;  %v68_v54 = vmax.bf16 %v52_v50, %v36_v48  ;;  %v84_v55 = vld [vmem:[%s887_s2 + $0x10] sm:$0xf]  ;;  %v210_v59 = vld [vmem:[%s891_s6 + $0x8] sm:$0xf]  ;;  %v194_v63 = vmax.bf16 %v178_v44, %v162_v52 }
   0xd   :  { %v224_v40 = vmax.bf16 %v208_v27, %v192_v30  ;;  %v225_v46 = vmax.bf16 %v209_v31, %v193_v35  ;;  %v85_v56 = vld [vmem:[%s887_s2 + $0x14] sm:$0xf]  ;;  %v69_v60 = vmax.bf16 %v53_v53, %v37_v49  ;;  %v116_v61 = vld [vmem:[%s888_s3 + $0x10] sm:$0xf]  ;;  %v211_v0 = vld [vmem:[%s891_s6 + $0xc] sm:$0xf]  ;;  %v195_v5 = vmax.bf16 %v179_v45, %v163_v58 }
   0xe   :  { %v242_v1 = vld [vmem:[%s892_s7 + $0x8] sm:$0xf]  ;;  %v100_v2 = vmax.bf16 %v84_v55, %v68_v54  ;;  %v117_v3 = vld [vmem:[%s888_s3 + $0x14] sm:$0xf]  ;;  %v243_v6 = vld [vmem:[%s892_s7 + $0xc] sm:$0xf]  ;;  %v226_v10 = vmax.bf16 %v210_v59, %v194_v63 }
   0xf   :  { %v256_v51 = vmax.bf16 %v240_v32, %v224_v40  ;;  %v257_v57 = vmax.bf16 %v241_v36, %v225_v46  ;;  %v274_v7 = vld [vmem:[%s893_s8 + $0x8] sm:$0xf]  ;;  %v101_v8 = vmax.bf16 %v85_v56, %v69_v60  ;;  %v148_v9 = vld [vmem:[%s889_s4 + $0x10] sm:$0xf]  ;;  %v275_v11 = vld [vmem:[%s893_s8 + $0xc] sm:$0xf]  ;;  %v227_v17 = vmax.bf16 %v211_v0, %v195_v5 }
  0x10   :  { %v132_v12 = vmax.bf16 %v116_v61, %v100_v2  ;;  %v149_v13 = vld [vmem:[%s889_s4 + $0x14] sm:$0xf]  ;;  %v180_v14 = vld [vmem:[%s890_s5 + $0x10] sm:$0xf]  ;;  %v38_v19 = vld [vmem:[%s885_s0 + $0x18] sm:$0xf]  ;;  %v258_v22 = vmax.bf16 %v242_v1, %v226_v10 }
  0x11   :  { %v288_v62 = vmax.bf16 %v272_v37, %v256_v51  ;;  %v289_v4 = vmax.bf16 %v273_v41, %v257_v57  ;;  %v181_v15 = vld [vmem:[%s890_s5 + $0x14] sm:$0xf]  ;;  %v133_v18 = vmax.bf16 %v117_v3, %v101_v8  ;;  %v39_v20 = vld [vmem:[%s885_s0 + $0x1c] sm:$0xf]  ;;  %v54_v21 = vld [vmem:[%s886_s1 + $0x18] sm:$0xf]  ;;  %v259_v28 = vmax.bf16 %v243_v6, %v227_v17 }
  0x12   :  { %v164_v23 = vmax.bf16 %v148_v9, %v132_v12  ;;  %v55_v24 = vld [vmem:[%s886_s1 + $0x1c] sm:$0xf]  ;;  %v70_v25 = vmax.bf16 %v54_v21, %v38_v19  ;;  %v86_v26 = vld [vmem:[%s887_s2 + $0x18] sm:$0xf]  ;;  %v212_v30 = vld [vmem:[%s891_s6 + $0x10] sm:$0xf]  ;;  %v290_v33 = vmax.bf16 %v274_v7, %v258_v22 }
  0x13   :  { %v364_v16 = vcombine.low %v288_v62, %v289_v4  ;;  %v87_v27 = vld [vmem:[%s887_s2 + $0x1c] sm:$0xf]  ;;  %v165_v29 = vmax.bf16 %v149_v13, %v133_v18  ;;  %v71_v31 = vmax.bf16 %v55_v24, %v39_v20  ;;  %v118_v32 = vld [vmem:[%s888_s3 + $0x18] sm:$0xf]  ;;  %v213_v35 = vld [vmem:[%s891_s6 + $0x14] sm:$0xf]  ;;  %v291_v39 = vmax.bf16 %v275_v11, %v259_v28 }
  0x14   :  { %v196_v34 = vmax.bf16 %v180_v14, %v164_v23  ;;  %v244_v36 = vld [vmem:[%s892_s7 + $0x10] sm:$0xf]  ;;  %v102_v37 = vmax.bf16 %v86_v26, %v70_v25  ;;  %v119_v38 = vld [vmem:[%s888_s3 + $0x1c] sm:$0xf]  ;;  %v245_v41 = vld [vmem:[%s892_s7 + $0x14] sm:$0xf] }
  0x15   :  { %328 = vst [vmem:[%s894_s9] sm:$0xff] %v364_v16   ;;  %v197_v40 = vmax.bf16 %v181_v15, %v165_v29  ;;  %v276_v42 = vld [vmem:[%s893_s8 + $0x10] sm:$0xf]  ;;  %v103_v43 = vmax.bf16 %v87_v27, %v71_v31  ;;  %v150_v44 = vld [vmem:[%s889_s4 + $0x18] sm:$0xf]  ;;  %v277_v46 = vld [vmem:[%s893_s8 + $0x14] sm:$0xf]  ;;  %v365_v51 = vcombine.low %v290_v33, %v291_v39 }
  0x16   :  { %v228_v45 = vmax.bf16 %v212_v30, %v196_v34  ;;  %v134_v47 = vmax.bf16 %v118_v32, %v102_v37  ;;  %v151_v48 = vld [vmem:[%s889_s4 + $0x1c] sm:$0xf]  ;;  %v182_v49 = vld [vmem:[%s890_s5 + $0x18] sm:$0xf]  ;;  %v40_v54 = vld [vmem:[%s885_s0 + $0x20] sm:$0xf] }
  0x17   :  { %v183_v50 = vld [vmem:[%s890_s5 + $0x1c] sm:$0xf]  ;;  %v229_v52 = vmax.bf16 %v213_v35, %v197_v40  ;;  %v135_v53 = vmax.bf16 %v119_v38, %v103_v43  ;;  %v41_v55 = vld [vmem:[%s885_s0 + $0x24] sm:$0xf]  ;;  %v56_v56 = vld [vmem:[%s886_s1 + $0x20] sm:$0xf] }
  0x18   :  { %v260_v57 = vmax.bf16 %v244_v36, %v228_v45  ;;  %v166_v58 = vmax.bf16 %v150_v44, %v134_v47  ;;  %v57_v59 = vld [vmem:[%s886_s1 + $0x24] sm:$0xf]  ;;  %v72_v60 = vmax.bf16 %v56_v56, %v40_v54  ;;  %v88_v61 = vld [vmem:[%s887_s2 + $0x20] sm:$0xf]  ;;  %366 = vst [vmem:[%s894_s9 + $0x8] sm:$0xff] %v365_v51  }
  0x19   :  { %v89_v62 = vld [vmem:[%s887_s2 + $0x24] sm:$0xf]  ;;  %v261_v63 = vmax.bf16 %v245_v41, %v229_v52  ;;  %v167_v0 = vmax.bf16 %v151_v48, %v135_v53  ;;  %v214_v1 = vld [vmem:[%s891_s6 + $0x18] sm:$0xf]  ;;  %v73_v2 = vmax.bf16 %v57_v59, %v41_v55  ;;  %v120_v3 = vld [vmem:[%s888_s3 + $0x20] sm:$0xf] }
  0x1a   :  { %v292_v4 = vmax.bf16 %v276_v42, %v260_v57  ;;  %v198_v5 = vmax.bf16 %v182_v49, %v166_v58  ;;  %v215_v6 = vld [vmem:[%s891_s6 + $0x1c] sm:$0xf]  ;;  %v246_v7 = vld [vmem:[%s892_s7 + $0x18] sm:$0xf]  ;;  %v104_v8 = vmax.bf16 %v88_v61, %v72_v60  ;;  %v121_v9 = vld [vmem:[%s888_s3 + $0x24] sm:$0xf] }
  0x1b   :  { %v293_v10 = vmax.bf16 %v277_v46, %v261_v63  ;;  %v199_v11 = vmax.bf16 %v183_v50, %v167_v0  ;;  %v247_v12 = vld [vmem:[%s892_s7 + $0x1c] sm:$0xf]  ;;  %v278_v13 = vld [vmem:[%s893_s8 + $0x18] sm:$0xf]  ;;  %v105_v14 = vmax.bf16 %v89_v62, %v73_v2  ;;  %v152_v15 = vld [vmem:[%s889_s4 + $0x20] sm:$0xf] }
  0x1c   :  { %v230_v16 = vmax.bf16 %v214_v1, %v198_v5  ;;  %v279_v17 = vld [vmem:[%s893_s8 + $0x1c] sm:$0xf]  ;;  %v136_v18 = vmax.bf16 %v120_v3, %v104_v8  ;;  %v153_v19 = vld [vmem:[%s889_s4 + $0x24] sm:$0xf]  ;;  %v184_v20 = vld [vmem:[%s890_s5 + $0x20] sm:$0xf] }
  0x1d   :  { %v185_v21 = vld [vmem:[%s890_s5 + $0x24] sm:$0xf]  ;;  %v367_v22 = vcombine.low %v292_v4, %v293_v10  ;;  %v231_v23 = vmax.bf16 %v215_v6, %v199_v11  ;;  %v137_v24 = vmax.bf16 %v121_v9, %v105_v14  ;;  %v42_v25 = vld [vmem:[%s885_s0 + $0x28] sm:$0xf]  ;;  %v43_v26 = vld [vmem:[%s885_s0 + $0x2c] sm:$0xf] }
  0x1e   :  { %v58_v27 = vld [vmem:[%s886_s1 + $0x28] sm:$0xf]  ;;  %v262_v28 = vmax.bf16 %v246_v7, %v230_v16  ;;  %v168_v29 = vmax.bf16 %v152_v15, %v136_v18  ;;  %v59_v30 = vld [vmem:[%s886_s1 + $0x2c] sm:$0xf]  ;;  %v216_v36 = vld [vmem:[%s891_s6 + $0x20] sm:$0xf] }
  0x1f   :  { %v74_v31 = vmax.bf16 %v58_v27, %v42_v25  ;;  %v90_v32 = vld [vmem:[%s887_s2 + $0x28] sm:$0xf]  ;;  %v91_v33 = vld [vmem:[%s887_s2 + $0x2c] sm:$0xf]  ;;  %368 = vst [vmem:[%s894_s9 + $0x10] sm:$0xff] %v367_v22   ;;  %v263_v34 = vmax.bf16 %v247_v12, %v231_v23  ;;  %v169_v35 = vmax.bf16 %v153_v19, %v137_v24  ;;  %v75_v37 = vmax.bf16 %v59_v30, %v43_v26 }
  0x20   :  { %v122_v38 = vld [vmem:[%s888_s3 + $0x28] sm:$0xf]  ;;  %v294_v39 = vmax.bf16 %v278_v13, %v262_v28  ;;  %v200_v40 = vmax.bf16 %v184_v20, %v168_v29  ;;  %v217_v41 = vld [vmem:[%s891_s6 + $0x24] sm:$0xf]  ;;  %v248_v42 = vld [vmem:[%s892_s7 + $0x20] sm:$0xf] }
  0x21   :  { %v106_v43 = vmax.bf16 %v90_v32, %v74_v31  ;;  %v123_v44 = vld [vmem:[%s888_s3 + $0x2c] sm:$0xf]  ;;  %v295_v45 = vmax.bf16 %v279_v17, %v263_v34  ;;  %v201_v46 = vmax.bf16 %v185_v21, %v169_v35  ;;  %v249_v47 = vld [vmem:[%s892_s7 + $0x24] sm:$0xf]  ;;  %v280_v48 = vld [vmem:[%s893_s8 + $0x20] sm:$0xf]  ;;  %v107_v49 = vmax.bf16 %v91_v33, %v75_v37 }
  0x22   :  { %v154_v50 = vld [vmem:[%s889_s4 + $0x28] sm:$0xf]  ;;  %v232_v51 = vmax.bf16 %v216_v36, %v200_v40  ;;  %v281_v52 = vld [vmem:[%s893_s8 + $0x24] sm:$0xf]  ;;  %v155_v54 = vld [vmem:[%s889_s4 + $0x2c] sm:$0xf] }
  0x23   :  { %v138_v53 = vmax.bf16 %v122_v38, %v106_v43  ;;  %v186_v55 = vld [vmem:[%s890_s5 + $0x28] sm:$0xf]  ;;  %v187_v56 = vld [vmem:[%s890_s5 + $0x2c] sm:$0xf]  ;;  %v369_v57 = vcombine.low %v294_v39, %v295_v45  ;;  %v233_v58 = vmax.bf16 %v217_v41, %v201_v46  ;;  %v139_v59 = vmax.bf16 %v123_v44, %v107_v49  ;;  %v44_v60 = vld [vmem:[%s885_s0 + $0x30] sm:$0xf] }
  0x24   :  { %v45_v61 = vld [vmem:[%s885_s0 + $0x34] sm:$0xf]  ;;  %v60_v62 = vld [vmem:[%s886_s1 + $0x30] sm:$0xf]  ;;  %v264_v63 = vmax.bf16 %v248_v42, %v232_v51  ;;  %v218_v7 = vld [vmem:[%s891_s6 + $0x28] sm:$0xf] }
  0x25   :  { %v170_v0 = vmax.bf16 %v154_v50, %v138_v53  ;;  %v61_v1 = vld [vmem:[%s886_s1 + $0x34] sm:$0xf]  ;;  %v76_v2 = vmax.bf16 %v60_v62, %v44_v60  ;;  %v92_v3 = vld [vmem:[%s887_s2 + $0x30] sm:$0xf]  ;;  %370 = vst [vmem:[%s894_s9 + $0x18] sm:$0xff] %v369_v57   ;;  %v265_v5 = vmax.bf16 %v249_v47, %v233_v58  ;;  %v171_v6 = vmax.bf16 %v155_v54, %v139_v59 }
  0x26   :  { %v93_v4 = vld [vmem:[%s887_s2 + $0x34] sm:$0xf]  ;;  %v77_v8 = vmax.bf16 %v61_v1, %v45_v61  ;;  %v124_v9 = vld [vmem:[%s888_s3 + $0x30] sm:$0xf]  ;;  %v296_v10 = vmax.bf16 %v280_v48, %v264_v63  ;;  %v219_v12 = vld [vmem:[%s891_s6 + $0x2c] sm:$0xf] }
  0x27   :  { %v202_v11 = vmax.bf16 %v186_v55, %v170_v0  ;;  %v250_v13 = vld [vmem:[%s892_s7 + $0x28] sm:$0xf]  ;;  %v108_v14 = vmax.bf16 %v92_v3, %v76_v2  ;;  %v125_v15 = vld [vmem:[%s888_s3 + $0x34] sm:$0xf]  ;;  %v297_v16 = vmax.bf16 %v281_v52, %v265_v5  ;;  %v203_v17 = vmax.bf16 %v187_v56, %v171_v6  ;;  %v251_v18 = vld [vmem:[%s892_s7 + $0x2c] sm:$0xf] }
  0x28   :  { %v282_v19 = vld [vmem:[%s893_s8 + $0x28] sm:$0xf]  ;;  %v109_v20 = vmax.bf16 %v93_v4, %v77_v8  ;;  %v156_v21 = vld [vmem:[%s889_s4 + $0x30] sm:$0xf]  ;;  %v283_v23 = vld [vmem:[%s893_s8 + $0x2c] sm:$0xf] }
  0x29   :  { %v234_v22 = vmax.bf16 %v218_v7, %v202_v11  ;;  %v140_v24 = vmax.bf16 %v124_v9, %v108_v14  ;;  %v157_v25 = vld [vmem:[%s889_s4 + $0x34] sm:$0xf]  ;;  %v188_v26 = vld [vmem:[%s890_s5 + $0x30] sm:$0xf]  ;;  %v371_v28 = vcombine.low %v296_v10, %v297_v16  ;;  %v235_v29 = vmax.bf16 %v219_v12, %v203_v17  ;;  %v46_v31 = vld [vmem:[%s885_s0 + $0x38] sm:$0xf] }
  0x2a   :  { %v189_v27 = vld [vmem:[%s890_s5 + $0x34] sm:$0xf]  ;;  %v141_v30 = vmax.bf16 %v125_v15, %v109_v20  ;;  %v47_v32 = vld [vmem:[%s885_s0 + $0x3c] sm:$0xf]  ;;  %v62_v33 = vld [vmem:[%s886_s1 + $0x38] sm:$0xf] }
  0x2b   :  { %v266_v34 = vmax.bf16 %v250_v13, %v234_v22  ;;  %v172_v35 = vmax.bf16 %v156_v21, %v140_v24  ;;  %v63_v36 = vld [vmem:[%s886_s1 + $0x3c] sm:$0xf]  ;;  %v78_v37 = vmax.bf16 %v62_v33, %v46_v31  ;;  %v94_v38 = vld [vmem:[%s887_s2 + $0x38] sm:$0xf]  ;;  %372 = vst [vmem:[%s894_s9 + $0x20] sm:$0xff] %v371_v28   ;;  %v267_v40 = vmax.bf16 %v251_v18, %v235_v29 }
  0x2c   :  { %v95_v39 = vld [vmem:[%s887_s2 + $0x3c] sm:$0xf]  ;;  %v173_v41 = vmax.bf16 %v157_v25, %v141_v30  ;;  %v220_v42 = vld [vmem:[%s891_s6 + $0x30] sm:$0xf]  ;;  %v79_v43 = vmax.bf16 %v63_v36, %v47_v32  ;;  %v126_v44 = vld [vmem:[%s888_s3 + $0x38] sm:$0xf] }
  0x2d   :  { %v298_v45 = vmax.bf16 %v282_v19, %v266_v34  ;;  %v204_v46 = vmax.bf16 %v188_v26, %v172_v35  ;;  %v221_v47 = vld [vmem:[%s891_s6 + $0x34] sm:$0xf]  ;;  %v110_v48 = vmax.bf16 %v94_v38, %v78_v37  ;;  %v127_v49 = vld [vmem:[%s888_s3 + $0x3c] sm:$0xf]  ;;  %v299_v50 = vmax.bf16 %v283_v23, %v267_v40  ;;  %v252_v52 = vld [vmem:[%s892_s7 + $0x30] sm:$0xf] }
  0x2e   :  { %v205_v51 = vmax.bf16 %v189_v27, %v173_v41  ;;  %v111_v53 = vmax.bf16 %v95_v39, %v79_v43  ;;  %v158_v54 = vld [vmem:[%s889_s4 + $0x38] sm:$0xf]  ;;  %v253_v56 = vld [vmem:[%s892_s7 + $0x34] sm:$0xf]  ;;  %v159_v58 = vld [vmem:[%s889_s4 + $0x3c] sm:$0xf] }
  0x2f   :  { %v236_v55 = vmax.bf16 %v220_v42, %v204_v46  ;;  %v142_v57 = vmax.bf16 %v126_v44, %v110_v48  ;;  %v373_v59 = vcombine.low %v298_v45, %v299_v50  ;;  %v284_v61 = vld [vmem:[%s893_s8 + $0x30] sm:$0xf]  ;;  %v190_v63 = vld [vmem:[%s890_s5 + $0x38] sm:$0xf]  ;;  %v285_v1 = vld [vmem:[%s893_s8 + $0x34] sm:$0xf] }
  0x30   :  { %v237_v60 = vmax.bf16 %v221_v47, %v205_v51  ;;  %v143_v62 = vmax.bf16 %v127_v49, %v111_v53  ;;  %v191_v3 = vld [vmem:[%s890_s5 + $0x3c] sm:$0xf]  ;;  %v222_v6 = vld [vmem:[%s891_s6 + $0x38] sm:$0xf] }
  0x31   :  { %v268_v0 = vmax.bf16 %v252_v52, %v236_v55  ;;  %v174_v2 = vmax.bf16 %v158_v54, %v142_v57  ;;  %374 = vst [vmem:[%s894_s9 + $0x28] sm:$0xff] %v373_v59   ;;  %v223_v9 = vld [vmem:[%s891_s6 + $0x3c] sm:$0xf]  ;;  %v254_v12 = vld [vmem:[%s892_s7 + $0x38] sm:$0xf] }
  0x32   :  { %v269_v4 = vmax.bf16 %v253_v56, %v237_v60  ;;  %v175_v5 = vmax.bf16 %v159_v58, %v143_v62  ;;  %v255_v14 = vld [vmem:[%s892_s7 + $0x3c] sm:$0xf]  ;;  %v286_v17 = vld [vmem:[%s893_s8 + $0x38] sm:$0xf] }
  0x33   :  { %v300_v7 = vmax.bf16 %v284_v61, %v268_v0  ;;  %v206_v8 = vmax.bf16 %v190_v63, %v174_v2  ;;  %v287_v19 = vld [vmem:[%s893_s8 + $0x3c] sm:$0xf] }
  0x34   :  { %v301_v10 = vmax.bf16 %v285_v1, %v269_v4  ;;  %v207_v11 = vmax.bf16 %v191_v3, %v175_v5 }
  0x35   :  { %v238_v13 = vmax.bf16 %v222_v6, %v206_v8 }
  0x36   :  { %v375_v15 = vcombine.low %v300_v7, %v301_v10  ;;  %v239_v16 = vmax.bf16 %v223_v9, %v207_v11 }
  0x37   :  { %v270_v18 = vmax.bf16 %v254_v12, %v238_v13 }
  0x38   :  { %376 = vst [vmem:[%s894_s9 + $0x30] sm:$0xff] %v375_v15   ;;  %v271_v20 = vmax.bf16 %v255_v14, %v239_v16 }
  0x39   :  { %v302_v21 = vmax.bf16 %v286_v17, %v270_v18 }
  0x3a   :  { %v303_v22 = vmax.bf16 %v287_v19, %v271_v20 }
  0x3c   :  { %v377_v23 = vcombine.low %v302_v21, %v303_v22 }
  0x3e   :  { %378 = vst [vmem:[%s894_s9 + $0x38] sm:$0xff] %v377_v23  }

// kernel: _lambda_.15
= control target key start
LH: loop header
LB: loop body
LE: loop exit
PB: predicated region body
PF: predicated region fallthrough
CT: control target
= control target key end

     0   :  { %s1123_s15 = smov 0   ;;  %s1125_s16 = smov 0   ;;  %s1268_s0 = inlined_call_operand.vmem [shape: bf16[512,147], index: 0, kind: input, shape index: {}]   ;;  %s1269_s1 = inlined_call_operand.vmem [shape: bf16[147,128], index: 1, kind: input, shape index: {}]   ;;  %s1270_s2 = inlined_call_operand.vmem [shape: f32[1,128], index: 2, kind: input, shape index: {}]   ;;  %s1271_s3 = inlined_call_operand.vmem [shape: f32[1,128], index: 3, kind: input, shape index: {}]   ;;  %s1272_s4 = inlined_call_operand.vmem [shape: bf16[512,128], index: 4, kind: output, shape index: {}]  }
   0x1   :  { %s1127_s17 = smov 0  }
   0x2 LB: > { %s26_s18 = sadd.s32 1, %s1090_s16  ;;  %p868_p0 = scmp.ge.s32.totalorder %s1094_s17, 1  ;;  %s1094_s17 = sphi %s1127_s17, %s14_s17   ;;  %s1090_s16 = sphi %s1125_s16, %s1274_s16   ;;  %s1086_s15 = sphi %s1123_s15, %s1273_s15  }
   0x3   : > { %p28_p1 = scmp.ge.s32.totalorder %s26_s18, 4  ;;  %p194_p2 = scmp.lt.s32.totalorder %s1094_s17, 5 }
   0x5   : > { %s1276_s18 = smov (%p28_p1, %s26_s18), 0  ;;  %p195_p3 = pnand %p868_p0, %p194_p2 }
   0x6   : > { %v1038_v0 = vld [vmem:[%s1269_s1] sm:$0xff] (!%p195_p3)   ;;  %v1096_v1 = vmov (!%p195_p3), 0   ;;  %v1039_v2 = vld [vmem:[%s1269_s1 + $0x8] sm:$0xff] (!%p195_p3)   ;;  %v1040_v3 = vld [vmem:[%s1269_s1 + $0x10] sm:$0xff] (!%p195_p3)   ;;  %s869_s25 = sshll.u32 (!%p195_p3), %s1086_s15, 4  ;;  %vm455_vm0 = vcmask (!%p195_p3), 154624  }
   0x7   : > { %198 = sbr.rel (%p195_p3) target bundleno = 295 (0x127), region = 36  ;;  %487 = vmatprep.subr.bf16.mxu0 (!%p195_p3), %v1096_v1  ;;  %992 = vmatprep.subr.bf16.mxu1 (!%p195_p3), %v1096_v1  ;;  %p232_p4 = scmp.lt.s32.totalorder (!%p195_p3), %s869_s25, 63  ;;  %v1041_v4 = vld [vmem:[%s1269_s1 + $0x18] sm:$0xff] (!%p195_p3)   ;;  %v1042_v5 = vld [vmem:[%s1269_s1 + $0x20] sm:$0xff] (!%p195_p3)   ;;  %v1043_v8 = vld [vmem:[%s1269_s1 + $0x28] sm:$0xff] (!%p195_p3)   ;;  %vm480_vm1 = vcmask (!%p195_p3), 1040384  }
   0x8   : > { %488 = vmatpush1.bf16.msra.mxu0 (!%p195_p3), %v1038_v0  ;;  %1002 = vmatpush1.bf16.msra.mxu1 (!%p195_p3), %v1038_v0  ;;  %v1044_v9 = vld [vmem:[%s1269_s1 + $0x30] sm:$0xff] (!%p195_p3)   ;;  %v1045_v10 = vld [vmem:[%s1269_s1 + $0x38] sm:$0xff] (!%p195_p3)   ;;  %vm481_vm2 = vcmask (!%p195_p3), 1041408   ;;  %v1097_v11 = vmov (!%p195_p3), 65535   ;;  %v1046_v13 = vld [vmem:[%s1269_s1 + $0x40] sm:$0xff] (!%p195_p3)  }
   0x9   : > { %489 = vmatprep.subr.bf16.mxu0 (!%p195_p3), %v1096_v1  ;;  %993 = vmatprep.subr.bf16.mxu1 (!%p195_p3), %v1096_v1  ;;  %v482_v12 = vsel (!%p195_p3), %vm480_vm1, 4294967295, %v1097_v11  ;;  %v1047_v14 = vld [vmem:[%s1269_s1 + $0x48] ss:$0 sps:$4 sm:$0x33] (!%p195_p3)   ;;  %v1206_v31 = vld [vmem:[%s1270_s2] ss:$0 sm:$0xff] (!%p195_p3) }
   0xa   : > { %v483_v15 = vsel (!%p195_p3), %vm481_vm2, %v482_v12, 0  ;;  %v1211_v33 = vld [vmem:[%s1271_s3] ss:$0 sm:$0xff] (!%p195_p3) }
   0xb   : > { %v485_v16 = vand.u32 (!%p195_p3), %v1047_v14, %v483_v15 }
   0xc   : > { %490 = vmatpush1.bf16.msra.mxu0 (!%p195_p3), %v1039_v2  ;;  %1003 = vmatpush1.bf16.msra.mxu1 (!%p195_p3), %v1039_v2 }
   0xd   : > { %491 = vmatprep.subr.bf16.mxu0 (!%p195_p3), %v1096_v1  ;;  %994 = vmatprep.subr.bf16.mxu1 (!%p195_p3), %v1096_v1 }
   0xe   : > { %s1278_s25 = smov (!%p232_p4, %s869_s25), 63 }
   0xf   : > { %s928_s28 = sshll.u32 %s1278_s25, 3  ;;  %s873_s26 = sshll.u32 %s1278_s25, 2 }
  0x10   : > { %492 = vmatpush1.bf16.msra.mxu0 %v1040_v3  ;;  %1004 = vmatpush1.bf16.msra.mxu1 %v1040_v3  ;;  %s1159_s5 = scalar_lea.vmem %s1268_s0, %s928_s28  ;;  %s1225_s29 = scalar_lea.vmem %s1272_s4, %s873_s26 }
  0x11   : > { %493 = vmatprep.subr.bf16.mxu0 %v1096_v1  ;;  %995 = vmatprep.subr.bf16.mxu1 %v1096_v1  ;;  %v1050_v6 = vld [vmem:[%s1159_s5 + $0x4] ss:$8 sps:$4 sm:$0xff]   ;;  %v1048_v17 = vld [vmem:[%s1159_s5] ss:$8 sps:$4 sm:$0xff]   ;;  %v1054_v19 = vld [vmem:[%s1159_s5 + $0x14] ss:$8 sps:$4 sm:$0xff]  }
  0x12   : > { %v1053_v7 = vld [vmem:[%s1159_s5 + $0x44] ss:$8 sps:$4 sm:$0xff]   ;;  %900 = vmatprep.mubr.msk.bf16.mxu0 %vm455_vm0, %v1050_v6  ;;  %v1051_v18 = vld [vmem:[%s1159_s5 + $0x40] ss:$8 sps:$4 sm:$0xff]   ;;  %v1056_v20 = vld [vmem:[%s1159_s5 + $0x54] ss:$8 sps:$4 sm:$0xff]  }
  0x13   : > { %904 = vmatprep.mubr.msk.bf16.mxu1 %vm455_vm0, %v1053_v7  ;;  %v1058_v21 = vld [vmem:[%s1159_s5 + $0x10] ss:$8 sps:$4 sm:$0xff]   ;;  %v1060_v23 = vld [vmem:[%s1159_s5 + $0x24] ss:$8 sps:$4 sm:$0xff]   ;;  %v1064_v25 = vld [vmem:[%s1159_s5 + $0x20] ss:$8 sps:$4 sm:$0xff]  }
  0x14   : > { %494 = vmatpush1.bf16.msra.mxu0 %v1041_v4  ;;  %1005 = vmatpush1.bf16.msra.mxu1 %v1041_v4  ;;  %v1059_v22 = vld [vmem:[%s1159_s5 + $0x50] ss:$8 sps:$4 sm:$0xff]   ;;  %v1062_v24 = vld [vmem:[%s1159_s5 + $0x64] ss:$8 sps:$4 sm:$0xff]   ;;  %v1065_v26 = vld [vmem:[%s1159_s5 + $0x60] ss:$8 sps:$4 sm:$0xff]  }
  0x15   : > { %495 = vmatprep.subr.bf16.mxu0 %v1096_v1  ;;  %996 = vmatprep.subr.bf16.mxu1 %v1096_v1  ;;  %v1066_v27 = vld [vmem:[%s1159_s5 + $0x34] ss:$8 sps:$4 sm:$0xff]   ;;  %v1070_v29 = vld [vmem:[%s1159_s5 + $0x30] ss:$8 sps:$4 sm:$0xff]  }
  0x16   : > { %v1068_v28 = vld [vmem:[%s1159_s5 + $0x74] ss:$8 sps:$4 sm:$0xff]   ;;  %v1071_v30 = vld [vmem:[%s1159_s5 + $0x70] ss:$8 sps:$4 sm:$0xff]  }
  0x18   : > { %496 = vmatpush1.bf16.msra.mxu0 %v1042_v5  ;;  %1006 = vmatpush1.bf16.msra.mxu1 %v1042_v5 }
  0x19   : > { %497 = vmatprep.subr.bf16.mxu0 %v1096_v1  ;;  %997 = vmatprep.subr.bf16.mxu1 %v1096_v1 }
  0x1c   : > { %498 = vmatpush1.bf16.msra.mxu0 %v1043_v8  ;;  %1007 = vmatpush1.bf16.msra.mxu1 %v1043_v8 }
  0x1d   : > { %499 = vmatprep.subr.bf16.mxu0 %v1096_v1  ;;  %998 = vmatprep.subr.bf16.mxu1 %v1096_v1 }
  0x20   : > { %500 = vmatpush1.bf16.msra.mxu0 %v1044_v9  ;;  %1008 = vmatpush1.bf16.msra.mxu1 %v1044_v9 }
  0x21   : > { %501 = vmatprep.subr.bf16.mxu0 %v1096_v1  ;;  %999 = vmatprep.subr.bf16.mxu1 %v1096_v1 }
  0x24   : > { %502 = vmatpush1.bf16.msra.mxu0 %v1045_v10  ;;  %1009 = vmatpush1.bf16.msra.mxu1 %v1045_v10 }
  0x25   : > { %503 = vmatprep.subr.bf16.mxu0 %v1096_v1  ;;  %1000 = vmatprep.subr.bf16.mxu1 %v1096_v1 }
  0x28   : > { %504 = vmatpush1.bf16.msra.mxu0 %v1046_v13  ;;  %1010 = vmatpush1.bf16.msra.mxu1 %v1046_v13 }
  0x29   : > { %505 = vmatprep.subr.bf16.mxu0 %v1096_v1  ;;  %1001 = vmatprep.subr.bf16.mxu1 %v1096_v1 }
  0x2c   : > { %506 = vmatpush1.bf16.msra.mxu0 %v485_v16  ;;  %1011 = vmatpush1.bf16.msra.mxu1 %v485_v16 }
  0x2f   : > { %520 = vmatmul.mubr.bf16.vlgmr.msra.gmra.mrb[0].mxu0 %v1048_v17  ;;  %552 = vmatmul.mubr.bf16.vlgmr.msra.gmra.mrb[0].mxu1 %v1051_v18 }
  0x30   : > { %901 = vmatprep.mubr.msk.bf16.mxu0 %vm455_vm0, %v1054_v19  ;;  %905 = vmatprep.mubr.msk.bf16.mxu1 %vm455_vm0, %v1056_v20 }
  0x37   : > { %528 = vmatmul.mubr.bf16.gmra.mrb[4].mxu0 %v1058_v21  ;;  %560 = vmatmul.mubr.bf16.gmra.mrb[4].mxu1 %v1059_v22 }
  0x38   : > { %902 = vmatprep.mubr.msk.bf16.mxu0 %vm455_vm0, %v1060_v23  ;;  %906 = vmatprep.mubr.msk.bf16.mxu1 %vm455_vm0, %v1062_v24 }
  0x3f   : > { %536 = vmatmul.mubr.bf16.gmra.mrb[8].mxu0 %v1064_v25  ;;  %568 = vmatmul.mubr.bf16.gmra.mrb[8].mxu1 %v1065_v26 }
  0x40   : > { %903 = vmatprep.mubr.msk.bf16.mxu0 %vm455_vm0, %v1066_v27  ;;  %907 = vmatprep.mubr.msk.bf16.mxu1 %vm455_vm0, %v1068_v28 }
  0x47   : > { %544 = vmatmul.mubr.bf16.gmra.mrb[12].mxu0 %v1070_v29  ;;  %576 = vmatmul.mubr.bf16.gmra.mrb[12].mxu1 %v1071_v30 }
 0x102   : > { %v521_v32 = vpop.f32.mrb[0].mxu0  ;;  %v553_v34 = vpop.f32.mrb[0].mxu1 }
 0x103   : > { %v642_v35 = vmul.f32 %v1206_v31, %v521_v32  ;;  %v650_v36 = vmul.f32 %v1206_v31, %v553_v34  ;;  %v523_v37 = vpop.f32.mrb[1].mxu0  ;;  %v555_v38 = vpop.f32.mrb[1].mxu1 }
 0x104   : > { %v524_v39 = vpop.f32.mrb[2].mxu0  ;;  %v556_v40 = vpop.f32.mrb[2].mxu1 }
 0x105   : > { %v665_v41 = vadd.f32 %v1211_v33, %v642_v35  ;;  %v673_v42 = vadd.f32 %v1211_v33, %v650_v36  ;;  %v643_v43 = vmul.f32 %v1206_v31, %v524_v39  ;;  %v651_v44 = vmul.f32 %v1206_v31, %v556_v40  ;;  %v526_v45 = vpop.f32.mrb[3].mxu0  ;;  %v558_v46 = vpop.f32.mrb[3].mxu1 }
 0x107   : > { %v666_v47 = vadd.f32 %v1211_v33, %v643_v43  ;;  %v674_v48 = vadd.f32 %v1211_v33, %v651_v44  ;;  %v681_v49 = vmax.f32 %v665_v41, 0.0  ;;  %v689_v50 = vmax.f32 %v673_v42, 0.0 }
 0x109   : > { %v682_v51 = vmax.f32 %v666_v47, 0.0  ;;  %v690_v52 = vmax.f32 %v674_v48, 0.0 }
 0x10a   : > { %v529_v53 = vpop.f32.mrb[4].mxu0  ;;  %v561_v54 = vpop.f32.mrb[4].mxu1 }
 0x10b   : > { %v948_v55 = vpack.c.bf16 %v682_v51, %v681_v49  ;;  %v968_v56 = vpack.c.bf16 %v690_v52, %v689_v50  ;;  %v644_v57 = vmul.f32 %v1206_v31, %v529_v53  ;;  %v652_v58 = vmul.f32 %v1206_v31, %v561_v54  ;;  %v531_v59 = vpop.f32.mrb[5].mxu0  ;;  %v563_v60 = vpop.f32.mrb[5].mxu1 }
 0x10c   : > { %v532_v61 = vpop.f32.mrb[6].mxu0  ;;  %v564_v62 = vpop.f32.mrb[6].mxu1 }
 0x10d   : > { %949 = vst [vmem:[%s1225_s29] sm:$0xff] %v948_v55   ;;  %988 = vst [vmem:[%s1225_s29 + $0x20] sm:$0xff] %v968_v56   ;;  %v667_v63 = vadd.f32 %v1211_v33, %v644_v57  ;;  %v675_v0 = vadd.f32 %v1211_v33, %v652_v58  ;;  %v645_v1 = vmul.f32 %v1206_v31, %v532_v61  ;;  %v534_v3 = vpop.f32.mrb[7].mxu0  ;;  %v566_v4 = vpop.f32.mrb[7].mxu1 }
 0x10e   : > { %v653_v2 = vmul.f32 %v1206_v31, %v564_v62 }
 0x10f   : > { %v668_v5 = vadd.f32 %v1211_v33, %v645_v1  ;;  %v683_v7 = vmax.f32 %v667_v63, 0.0  ;;  %v691_v8 = vmax.f32 %v675_v0, 0.0 }
 0x110   : > { %v676_v6 = vadd.f32 %v1211_v33, %v653_v2 }
 0x111   : > { %v684_v9 = vmax.f32 %v668_v5, 0.0 }
 0x112   : > { %v692_v10 = vmax.f32 %v676_v6, 0.0  ;;  %v537_v11 = vpop.f32.mrb[8].mxu0  ;;  %v569_v12 = vpop.f32.mrb[8].mxu1 }
 0x113   : > { %v953_v13 = vpack.c.bf16 %v684_v9, %v683_v7  ;;  %v646_v15 = vmul.f32 %v1206_v31, %v537_v11  ;;  %v654_v16 = vmul.f32 %v1206_v31, %v569_v12  ;;  %v539_v17 = vpop.f32.mrb[9].mxu0  ;;  %v571_v18 = vpop.f32.mrb[9].mxu1 }
 0x114   : > { %v973_v14 = vpack.c.bf16 %v692_v10, %v691_v8  ;;  %v540_v19 = vpop.f32.mrb[10].mxu0  ;;  %v572_v20 = vpop.f32.mrb[10].mxu1 }
 0x115   : > { %985 = vst [vmem:[%s1225_s29 + $0x8] sm:$0xff] %v953_v13   ;;  %v669_v21 = vadd.f32 %v1211_v33, %v646_v15  ;;  %v677_v22 = vadd.f32 %v1211_v33, %v654_v16  ;;  %v647_v23 = vmul.f32 %v1206_v31, %v540_v19  ;;  %v655_v24 = vmul.f32 %v1206_v31, %v572_v20  ;;  %v542_v25 = vpop.f32.mrb[11].mxu0  ;;  %v574_v26 = vpop.f32.mrb[11].mxu1 }
 0x116   : > { %989 = vst [vmem:[%s1225_s29 + $0x28] sm:$0xff] %v973_v14  }
 0x117   : > { %v670_v27 = vadd.f32 %v1211_v33, %v647_v23  ;;  %v678_v28 = vadd.f32 %v1211_v33, %v655_v24  ;;  %v685_v29 = vmax.f32 %v669_v21, 0.0  ;;  %v693_v30 = vmax.f32 %v677_v22, 0.0 }
 0x119   : > { %v686_v32 = vmax.f32 %v670_v27, 0.0  ;;  %v694_v34 = vmax.f32 %v678_v28, 0.0 }
 0x11a   : > { %v545_v35 = vpop.f32.mrb[12].mxu0  ;;  %v577_v36 = vpop.f32.mrb[12].mxu1 }
 0x11b   : > { %v958_v37 = vpack.c.bf16 %v686_v32, %v685_v29  ;;  %v978_v38 = vpack.c.bf16 %v694_v34, %v693_v30  ;;  %v648_v39 = vmul.f32 %v1206_v31, %v545_v35  ;;  %v656_v40 = vmul.f32 %v1206_v31, %v577_v36  ;;  %v547_v41 = vpop.f32.mrb[13].mxu0  ;;  %v579_v42 = vpop.f32.mrb[13].mxu1 }
 0x11c   : > { %v548_v43 = vpop.f32.mrb[14].mxu0  ;;  %v580_v44 = vpop.f32.mrb[14].mxu1 }
 0x11d   : > { %986 = vst [vmem:[%s1225_s29 + $0x10] sm:$0xff] %v958_v37   ;;  %990 = vst [vmem:[%s1225_s29 + $0x30] sm:$0xff] %v978_v38   ;;  %v671_v45 = vadd.f32 %v1211_v33, %v648_v39  ;;  %v679_v46 = vadd.f32 %v1211_v33, %v656_v40  ;;  %v649_v47 = vmul.f32 %v1206_v31, %v548_v43  ;;  %v550_v49 = vpop.f32.mrb[15].mxu0  ;;  %v582_v50 = vpop.f32.mrb[15].mxu1 }
 0x11e   : > { %v657_v48 = vmul.f32 %v1206_v31, %v580_v44 }
 0x11f   : > { %v672_v51 = vadd.f32 %v1211_v33, %v649_v47  ;;  %v687_v53 = vmax.f32 %v671_v45, 0.0  ;;  %v695_v54 = vmax.f32 %v679_v46, 0.0 }
 0x120   : > { %v680_v52 = vadd.f32 %v1211_v33, %v657_v48 }
 0x121   : > { %v688_v55 = vmax.f32 %v672_v51, 0.0 }
 0x122   : > { %v696_v56 = vmax.f32 %v680_v52, 0.0 }
 0x123   : > { %v963_v57 = vpack.c.bf16 %v688_v55, %v687_v53 }
 0x124   : > { %v983_v58 = vpack.c.bf16 %v696_v56, %v695_v54 }
 0x125   : > { %987 = vst [vmem:[%s1225_s29 + $0x18] sm:$0xff] %v963_v57  }
 0x126   : > { %991 = vst [vmem:[%s1225_s29 + $0x38] sm:$0xff] %v983_v58  }
 0x127 PF: > { %s14_s17 = sadd.s32 1, %s1094_s17   ;;  %s1273_s15 = smov %s1090_s16 }
 0x128   : > { %p11_p5 = scmp.ge.s32.totalorder %s14_s17, 6   ;;  %s1274_s16 = smov %s1276_s18 }
 0x12a   :  { %13 = sbr.rel (!%p11_p5) target bundleno = 2 (0x2), region = 77 }

// kernel: _lambda_.17
= control target key start
LH: loop header
LB: loop body
LE: loop exit
PB: predicated region body
PF: predicated region fallthrough
CT: control target
= control target key end

     0   :  { %s3091_s1 = inlined_call_operand.vmem [shape: bf16[1152,128], index: 1, kind: input, shape index: {}]   ;;  %s3092_s0 = inlined_call_operand.vmem [shape: bf16[128,1152], index: 0, kind: input, shape index: {}]   ;;  %s3093_s2 = inlined_call_operand.vmem [shape: f32[1,128], index: 2, kind: input, shape index: {}]   ;;  %s3094_s3 = inlined_call_operand.vmem [shape: f32[1,128], index: 3, kind: input, shape index: {}]   ;;  %s3095_s4 = inlined_call_operand.vmem [shape: bf16[128,128], index: 4, kind: output, shape index: {}]  }
   0x1   :  { %v2305_v0 = vld [vmem:[%s3091_s1 + $0x40] sm:$0xff]   ;;  %v2309_v4 = vld [vmem:[%s3091_s1 + $0x48] sm:$0xff]   ;;  %v2313_v8 = vld [vmem:[%s3091_s1 + $0x50] sm:$0xff]  }
   0x2   :  { %v2306_v1 = vld [vmem:[%s3091_s1 + $0xc0] sm:$0xff]   ;;  %1985 = vmatprep.subr.bf16.mxu0 %v2305_v0  ;;  %v2310_v5 = vld [vmem:[%s3091_s1 + $0xc8] sm:$0xff]   ;;  %v2314_v9 = vld [vmem:[%s3091_s1 + $0xd0] sm:$0xff]  }
   0x3   :  { %v2307_v2 = vld [vmem:[%s3091_s1] sm:$0xff]   ;;  %2049 = vmatprep.subr.bf16.mxu1 %v2306_v1  ;;  %v2311_v6 = vld [vmem:[%s3091_s1 + $0x8] sm:$0xff]   ;;  %v2315_v10 = vld [vmem:[%s3091_s1 + $0x10] sm:$0xff]  }
   0x4   :  { %v2308_v3 = vld [vmem:[%s3091_s1 + $0x80] sm:$0xff]   ;;  %1986 = vmatpush3.bf16.msra.mxu0 %v2307_v2  ;;  %v2312_v7 = vld [vmem:[%s3091_s1 + $0x88] sm:$0xff]   ;;  %v2316_v11 = vld [vmem:[%s3091_s1 + $0x90] sm:$0xff]  }
   0x5   :  { %2050 = vmatpush3.bf16.msra.mxu1 %v2308_v3  ;;  %1987 = vmatprep.subr.bf16.mxu0 %v2309_v4  ;;  %v2317_v12 = vld [vmem:[%s3091_s1 + $0x58] sm:$0xff]   ;;  %v2321_v16 = vld [vmem:[%s3091_s1 + $0x60] sm:$0xff]   ;;  %v2325_v20 = vld [vmem:[%s3091_s1 + $0x68] sm:$0xff]  }
   0x6   :  { %2051 = vmatprep.subr.bf16.mxu1 %v2310_v5  ;;  %v2318_v13 = vld [vmem:[%s3091_s1 + $0xd8] sm:$0xff]   ;;  %v2322_v17 = vld [vmem:[%s3091_s1 + $0xe0] sm:$0xff]   ;;  %v2326_v21 = vld [vmem:[%s3091_s1 + $0xe8] sm:$0xff]  }
   0x7   :  { %v2319_v14 = vld [vmem:[%s3091_s1 + $0x18] sm:$0xff]   ;;  %v2323_v18 = vld [vmem:[%s3091_s1 + $0x20] sm:$0xff]   ;;  %v2327_v22 = vld [vmem:[%s3091_s1 + $0x28] sm:$0xff]  }
   0x8   :  { %1988 = vmatpush3.bf16.msra.mxu0 %v2311_v6  ;;  %v2320_v15 = vld [vmem:[%s3091_s1 + $0x98] sm:$0xff]   ;;  %v2324_v19 = vld [vmem:[%s3091_s1 + $0xa0] sm:$0xff]   ;;  %v2328_v23 = vld [vmem:[%s3091_s1 + $0xa8] sm:$0xff]  }
   0x9   :  { %2052 = vmatpush3.bf16.msra.mxu1 %v2312_v7  ;;  %1989 = vmatprep.subr.bf16.mxu0 %v2313_v8  ;;  %v2329_v24 = vld [vmem:[%s3091_s1 + $0x70] sm:$0xff]   ;;  %v2333_v28 = vld [vmem:[%s3091_s1 + $0x78] sm:$0xff]   ;;  %v2337_v32 = vld [vmem:[%s3092_s0] ss:$36 sps:$4 sm:$0xff]  }
   0xa   :  { %2053 = vmatprep.subr.bf16.mxu1 %v2314_v9  ;;  %v2330_v25 = vld [vmem:[%s3091_s1 + $0xf0] sm:$0xff]   ;;  %v2334_v29 = vld [vmem:[%s3091_s1 + $0xf8] sm:$0xff]   ;;  %v2339_v33 = vld [vmem:[%s3092_s0 + $0x4] ss:$36 sps:$4 sm:$0xff]  }
   0xb   :  { %v2331_v26 = vld [vmem:[%s3091_s1 + $0x30] sm:$0xff]   ;;  %v2335_v30 = vld [vmem:[%s3091_s1 + $0x38] sm:$0xff]   ;;  %v2340_v34 = vld [vmem:[%s3092_s0 + $0x8] ss:$36 sps:$4 sm:$0xff]   ;;  %1110 = vmatprep.mubr.bf16.mxu0 %v2339_v33 }
   0xc   :  { %1990 = vmatpush3.bf16.msra.mxu0 %v2315_v10  ;;  %v2332_v27 = vld [vmem:[%s3091_s1 + $0xb0] sm:$0xff]   ;;  %v2336_v31 = vld [vmem:[%s3091_s1 + $0xb8] sm:$0xff]   ;;  %v2343_v36 = vld [vmem:[%s3091_s1 + $0x140] sm:$0xff]  }
   0xd   :  { %2054 = vmatpush3.bf16.msra.mxu1 %v2316_v11  ;;  %1991 = vmatprep.subr.bf16.mxu0 %v2317_v12  ;;  %v2342_v35 = vld [vmem:[%s3092_s0 + $0xc] ss:$36 sps:$4 sm:$0xff]   ;;  %v2344_v37 = vld [vmem:[%s3091_s1 + $0x1c0] sm:$0xff]   ;;  %v2349_v41 = vld [vmem:[%s3092_s0 + $0x54] ss:$36 sps:$4 sm:$0xff]  }
   0xe   :  { %2055 = vmatprep.subr.bf16.mxu1 %v2318_v13  ;;  %1207 = vmatprep.mubr.bf16.mxu1 %v2342_v35  ;;  %v2345_v38 = vld [vmem:[%s3091_s1 + $0x100] sm:$0xff]   ;;  %v2347_v40 = vld [vmem:[%s3092_s0 + $0x4c] ss:$36 sps:$4 sm:$0xff]   ;;  %v2357_v48 = vld [vmem:[%s3092_s0 + $0x94] ss:$36 sps:$4 sm:$0xff]  }
   0xf   :  { %v2346_v39 = vld [vmem:[%s3091_s1 + $0x180] sm:$0xff]   ;;  %v2351_v42 = vld [vmem:[%s3092_s0 + $0x48] ss:$36 sps:$4 sm:$0xff]   ;;  %v2352_v43 = vld [vmem:[%s3092_s0 + $0x50] ss:$36 sps:$4 sm:$0xff]  }
  0x10   :  { %1992 = vmatpush3.bf16.msra.mxu0 %v2319_v14  ;;  %v2353_v44 = vld [vmem:[%s3091_s1 + $0x148] sm:$0xff]   ;;  %v2359_v49 = vld [vmem:[%s3092_s0 + $0x9c] ss:$36 sps:$4 sm:$0xff]   ;;  %v2361_v50 = vld [vmem:[%s3092_s0 + $0x90] ss:$36 sps:$4 sm:$0xff]  }
  0x11   :  { %2056 = vmatpush3.bf16.msra.mxu1 %v2320_v15  ;;  %1993 = vmatprep.subr.bf16.mxu0 %v2321_v16  ;;  %v2354_v45 = vld [vmem:[%s3091_s1 + $0x1c8] sm:$0xff]   ;;  %v2362_v51 = vld [vmem:[%s3092_s0 + $0x98] ss:$36 sps:$4 sm:$0xff]   ;;  %v2363_v52 = vld [vmem:[%s3091_s1 + $0x150] sm:$0xff]  }
  0x12   :  { %2057 = vmatprep.subr.bf16.mxu1 %v2322_v17  ;;  %v2355_v46 = vld [vmem:[%s3091_s1 + $0x108] sm:$0xff]   ;;  %v2364_v53 = vld [vmem:[%s3091_s1 + $0x1d0] sm:$0xff]   ;;  %v2367_v56 = vld [vmem:[%s3092_s0 + $0xdc] ss:$36 sps:$4 sm:$0xff]  }
  0x13   :  { %v2356_v47 = vld [vmem:[%s3091_s1 + $0x188] sm:$0xff]   ;;  %v2365_v54 = vld [vmem:[%s3091_s1 + $0x110] sm:$0xff]   ;;  %v2371_v58 = vld [vmem:[%s3092_s0 + $0xd8] ss:$36 sps:$4 sm:$0xff]  }
  0x14   :  { %1994 = vmatpush3.bf16.msra.mxu0 %v2323_v18  ;;  %v2366_v55 = vld [vmem:[%s3091_s1 + $0x190] sm:$0xff]   ;;  %v2369_v57 = vld [vmem:[%s3092_s0 + $0xe4] ss:$36 sps:$4 sm:$0xff]   ;;  %v2373_v60 = vld [vmem:[%s3091_s1 + $0x158] sm:$0xff]  }
  0x15   :  { %2058 = vmatpush3.bf16.msra.mxu1 %v2324_v19  ;;  %1995 = vmatprep.subr.bf16.mxu0 %v2325_v20  ;;  %v2372_v59 = vld [vmem:[%s3092_s0 + $0xe0] ss:$36 sps:$4 sm:$0xff]   ;;  %v2374_v61 = vld [vmem:[%s3091_s1 + $0x1d8] sm:$0xff]   ;;  %v2379_v1 = vld [vmem:[%s3092_s0 + $0x12c] ss:$36 sps:$4 sm:$0xff]  }
  0x16   :  { %2059 = vmatprep.subr.bf16.mxu1 %v2326_v21  ;;  %v2375_v62 = vld [vmem:[%s3091_s1 + $0x118] sm:$0xff]   ;;  %v2377_v0 = vld [vmem:[%s3092_s0 + $0x124] ss:$36 sps:$4 sm:$0xff]   ;;  %v2387_v8 = vld [vmem:[%s3092_s0 + $0x16c] ss:$36 sps:$4 sm:$0xff]  }
  0x17   :  { %v2376_v63 = vld [vmem:[%s3091_s1 + $0x198] sm:$0xff]   ;;  %v2381_v2 = vld [vmem:[%s3092_s0 + $0x120] ss:$36 sps:$4 sm:$0xff]   ;;  %v2382_v4 = vld [vmem:[%s3092_s0 + $0x128] ss:$36 sps:$4 sm:$0xff]  }
  0x18   :  { %1996 = vmatpush3.bf16.msra.mxu0 %v2327_v22  ;;  %v2383_v3 = vld [vmem:[%s3091_s1 + $0x160] sm:$0xff]   ;;  %v2389_v9 = vld [vmem:[%s3092_s0 + $0x174] ss:$36 sps:$4 sm:$0xff]   ;;  %v2393_v10 = vld [vmem:[%s3091_s1 + $0x168] sm:$0xff]  }
  0x19   :  { %2060 = vmatpush3.bf16.msra.mxu1 %v2328_v23  ;;  %1997 = vmatprep.subr.bf16.mxu0 %v2329_v24  ;;  %v2384_v5 = vld [vmem:[%s3091_s1 + $0x1e0] sm:$0xff]   ;;  %v2394_v11 = vld [vmem:[%s3091_s1 + $0x1e8] sm:$0xff]   ;;  %v2392_v15 = vld [vmem:[%s3092_s0 + $0x170] ss:$36 sps:$4 sm:$0xff]  }
  0x1a   :  { %2061 = vmatprep.subr.bf16.mxu1 %v2330_v25  ;;  %v2385_v6 = vld [vmem:[%s3091_s1 + $0x120] sm:$0xff]   ;;  %v2391_v12 = vld [vmem:[%s3092_s0 + $0x168] ss:$36 sps:$4 sm:$0xff]   ;;  %v2397_v16 = vld [vmem:[%s3092_s0 + $0x1b4] ss:$36 sps:$4 sm:$0xff]  }
  0x1b   :  { %v2386_v7 = vld [vmem:[%s3091_s1 + $0x1a0] sm:$0xff]   ;;  %v2395_v13 = vld [vmem:[%s3091_s1 + $0x128] sm:$0xff]   ;;  %v2403_v18 = vld [vmem:[%s3091_s1 + $0x170] sm:$0xff]  }
  0x1c   :  { %1998 = vmatpush3.bf16.msra.mxu0 %v2331_v26  ;;  %v2396_v14 = vld [vmem:[%s3091_s1 + $0x1a8] sm:$0xff]   ;;  %v2399_v17 = vld [vmem:[%s3092_s0 + $0x1bc] ss:$36 sps:$4 sm:$0xff]   ;;  %v2404_v19 = vld [vmem:[%s3091_s1 + $0x1f0] sm:$0xff]  }
  0x1d   :  { %2062 = vmatpush3.bf16.msra.mxu1 %v2332_v27  ;;  %1999 = vmatprep.subr.bf16.mxu0 %v2333_v28  ;;  %v2405_v20 = vld [vmem:[%s3091_s1 + $0x130] sm:$0xff]   ;;  %v2402_v23 = vld [vmem:[%s3092_s0 + $0x1b8] ss:$36 sps:$4 sm:$0xff]   ;;  %v2409_v25 = vld [vmem:[%s3092_s0 + $0x204] ss:$36 sps:$4 sm:$0xff]  }
  0x1e   :  { %2063 = vmatprep.subr.bf16.mxu1 %v2334_v29  ;;  %v2406_v21 = vld [vmem:[%s3091_s1 + $0x1b0] sm:$0xff]   ;;  %v2407_v24 = vld [vmem:[%s3092_s0 + $0x1fc] ss:$36 sps:$4 sm:$0xff]  }
  0x1f   :  { %v2401_v22 = vld [vmem:[%s3092_s0 + $0x1b0] ss:$36 sps:$4 sm:$0xff]   ;;  %v2413_v26 = vld [vmem:[%s3091_s1 + $0x178] sm:$0xff]  }
  0x20   :  { %2000 = vmatpush3.bf16.msra.mxu0 %v2335_v30  ;;  %v2414_v27 = vld [vmem:[%s3091_s1 + $0x1f8] sm:$0xff]   ;;  %v2417_v35 = vld [vmem:[%s3092_s0 + $0x10] ss:$36 sps:$4 sm:$0xff]  }
  0x21   :  { %2064 = vmatpush3.bf16.msra.mxu1 %v2336_v31  ;;  %2113 = vmatprep.subr.bf16.mxu0 %v2343_v36  ;;  %v2415_v28 = vld [vmem:[%s3091_s1 + $0x138] sm:$0xff]   ;;  %v2412_v31 = vld [vmem:[%s3092_s0 + $0x200] ss:$36 sps:$4 sm:$0xff]  }
  0x22   :  { %2177 = vmatprep.subr.bf16.mxu1 %v2344_v37  ;;  %v2416_v29 = vld [vmem:[%s3091_s1 + $0x1b8] sm:$0xff]  }
  0x23   :  { %1111 = vmatmul.mubr.bf16.vlgmr.msra.gmra.mrb[0].mxu0 %v2337_v32  ;;  %v2411_v30 = vld [vmem:[%s3092_s0 + $0x1f8] ss:$36 sps:$4 sm:$0xff]   ;;  %v2423_v32 = vld [vmem:[%s3091_s1 + $0x200] sm:$0xff]  }
  0x24   :  { %1208 = vmatmul.mubr.bf16.vlgmr.msra.gmra.mrb[0].mxu1 %v2340_v34  ;;  %2114 = vmatpush3.bf16.msra.mxu0 %v2345_v38  ;;  %v2419_v33 = vld [vmem:[%s3092_s0 + $0x14] ss:$36 sps:$4 sm:$0xff]   ;;  %v2422_v34 = vld [vmem:[%s3092_s0 + $0x1c] ss:$36 sps:$4 sm:$0xff]   ;;  %v2426_v38 = vld [vmem:[%s3092_s0 + $0x64] ss:$36 sps:$4 sm:$0xff]  }
  0x25   :  { %2178 = vmatpush3.bf16.msra.mxu1 %v2346_v39  ;;  %1118 = vmatprep.mubr.bf16.mxu0 %v2347_v40  ;;  %v2420_v36 = vld [vmem:[%s3092_s0 + $0x18] ss:$36 sps:$4 sm:$0xff]   ;;  %v2430_v39 = vld [vmem:[%s3091_s1 + $0x208] sm:$0xff]   ;;  %v2437_v40 = vld [vmem:[%s3091_s1 + $0x210] sm:$0xff]  }
  0x26   :  { %1215 = vmatprep.mubr.bf16.mxu1 %v2349_v41  ;;  %2115 = vmatprep.subr.bf16.mxu0 %v2353_v44  ;;  %v2424_v37 = vld [vmem:[%s3092_s0 + $0x5c] ss:$36 sps:$4 sm:$0xff]   ;;  %v2433_v44 = vld [vmem:[%s3092_s0 + $0xac] ss:$36 sps:$4 sm:$0xff]  }
  0x27   :  { %2179 = vmatprep.subr.bf16.mxu1 %v2354_v45  ;;  %v2428_v41 = vld [vmem:[%s3092_s0 + $0x58] ss:$36 sps:$4 sm:$0xff]  }
  0x28   :  { %2116 = vmatpush3.bf16.msra.mxu0 %v2355_v46  ;;  %v2444_v45 = vld [vmem:[%s3091_s1 + $0x218] sm:$0xff]   ;;  %v2451_v46 = vld [vmem:[%s3091_s1 + $0x220] sm:$0xff]  }
  0x29   :  { %2180 = vmatpush3.bf16.msra.mxu1 %v2356_v47  ;;  %2117 = vmatprep.subr.bf16.mxu0 %v2363_v52  ;;  %v2435_v47 = vld [vmem:[%s3092_s0 + $0xa0] ss:$36 sps:$4 sm:$0xff]   ;;  %v2442_v52 = vld [vmem:[%s3092_s0 + $0xe8] ss:$36 sps:$4 sm:$0xff]  }
  0x2a   :  { %2181 = vmatprep.subr.bf16.mxu1 %v2364_v53  ;;  %v2465_v53 = vld [vmem:[%s3091_s1 + $0x230] sm:$0xff]  }
  0x2b   :  { %1119 = vmatmul.mubr.bf16.gmra.mrb[4].mxu0 %v2351_v42  ;;  %v2429_v42 = vld [vmem:[%s3092_s0 + $0x60] ss:$36 sps:$4 sm:$0xff]  }
  0x2c   :  { %1216 = vmatmul.mubr.bf16.gmra.mrb[4].mxu1 %v2352_v43  ;;  %1126 = vmatprep.mubr.bf16.mxu0 %v2357_v48  ;;  %v2431_v43 = vld [vmem:[%s3092_s0 + $0xa4] ss:$36 sps:$4 sm:$0xff]  }
  0x2d   :  { %1223 = vmatprep.mubr.bf16.mxu1 %v2359_v49  ;;  %2118 = vmatpush3.bf16.msra.mxu0 %v2365_v54  ;;  %v2436_v48 = vld [vmem:[%s3092_s0 + $0xa8] ss:$36 sps:$4 sm:$0xff]   ;;  %v2443_v54 = vld [vmem:[%s3092_s0 + $0xf0] ss:$36 sps:$4 sm:$0xff]  }
  0x2e   :  { %2182 = vmatpush3.bf16.msra.mxu1 %v2366_v55  ;;  %2119 = vmatprep.subr.bf16.mxu0 %v2373_v60  ;;  %v2438_v49 = vld [vmem:[%s3092_s0 + $0xec] ss:$36 sps:$4 sm:$0xff]   ;;  %v2445_v55 = vld [vmem:[%s3092_s0 + $0x134] ss:$36 sps:$4 sm:$0xff]   ;;  %v2452_v60 = vld [vmem:[%s3092_s0 + $0x17c] ss:$36 sps:$4 sm:$0xff]  }
  0x2f   :  { %2183 = vmatprep.subr.bf16.mxu1 %v2374_v61  ;;  %v2454_v61 = vld [vmem:[%s3092_s0 + $0x184] ss:$36 sps:$4 sm:$0xff]  }
  0x31   :  { %2120 = vmatpush3.bf16.msra.mxu0 %v2375_v62  ;;  %v2456_v62 = vld [vmem:[%s3092_s0 + $0x178] ss:$36 sps:$4 sm:$0xff]  }
  0x32   :  { %2184 = vmatpush3.bf16.msra.mxu1 %v2376_v63  ;;  %2121 = vmatprep.subr.bf16.mxu0 %v2383_v3  ;;  %v2457_v63 = vld [vmem:[%s3092_s0 + $0x180] ss:$36 sps:$4 sm:$0xff]   ;;  %v2464_v3 = vld [vmem:[%s3092_s0 + $0x1c8] ss:$36 sps:$4 sm:$0xff]  }
  0x33   :  { %1127 = vmatmul.mubr.bf16.gmra.mrb[8].mxu0 %v2361_v50  ;;  %2185 = vmatprep.subr.bf16.mxu1 %v2384_v5  ;;  %v2440_v50 = vld [vmem:[%s3092_s0 + $0xf4] ss:$36 sps:$4 sm:$0xff]  }
  0x34   :  { %1224 = vmatmul.mubr.bf16.gmra.mrb[8].mxu1 %v2362_v51  ;;  %1134 = vmatprep.mubr.bf16.mxu0 %v2367_v56  ;;  %v2458_v51 = vld [vmem:[%s3091_s1 + $0x228] sm:$0xff]   ;;  %v2447_v56 = vld [vmem:[%s3092_s0 + $0x13c] ss:$36 sps:$4 sm:$0xff]   ;;  %v2468_v5 = vld [vmem:[%s3092_s0 + $0x214] ss:$36 sps:$4 sm:$0xff]  }
  0x35   :  { %1231 = vmatprep.mubr.bf16.mxu1 %v2369_v57  ;;  %2122 = vmatpush3.bf16.msra.mxu0 %v2385_v6  ;;  %v2472_v57 = vld [vmem:[%s3091_s1 + $0x238] sm:$0xff]   ;;  %v2470_v6 = vld [vmem:[%s3092_s0 + $0x208] ss:$36 sps:$4 sm:$0xff]  }
  0x36   :  { %2186 = vmatpush3.bf16.msra.mxu1 %v2386_v7  ;;  %2123 = vmatprep.subr.bf16.mxu0 %v2393_v10  ;;  %v2471_v7 = vld [vmem:[%s3092_s0 + $0x210] ss:$36 sps:$4 sm:$0xff]   ;;  %v2475_v10 = vld [vmem:[%s3092_s0 + $0x68] ss:$36 sps:$4 sm:$0xff]  }
  0x37   :  { %2187 = vmatprep.subr.bf16.mxu1 %v2394_v11  ;;  %v2476_v11 = vld [vmem:[%s3092_s0 + $0x188] ss:$36 sps:$4 sm:$0xff]  }
  0x39   :  { %2124 = vmatpush3.bf16.msra.mxu0 %v2395_v13  ;;  %v2478_v13 = vld [vmem:[%s3092_s0 + $0x1d0] ss:$36 sps:$4 sm:$0xff]  }
  0x3a   :  { %2188 = vmatpush3.bf16.msra.mxu1 %v2396_v14  ;;  %2125 = vmatprep.subr.bf16.mxu0 %v2403_v18  ;;  %v2479_v14 = vld [vmem:[%s3092_s0 + $0xf8] ss:$36 sps:$4 sm:$0xff]  }
  0x3b   :  { %1135 = vmatmul.mubr.bf16.gmra.mrb[12].mxu0 %v2371_v58  ;;  %2189 = vmatprep.subr.bf16.mxu1 %v2404_v19  ;;  %v2449_v58 = vld [vmem:[%s3092_s0 + $0x130] ss:$36 sps:$4 sm:$0xff]  }
  0x3c   :  { %1232 = vmatmul.mubr.bf16.gmra.mrb[12].mxu1 %v2372_v59  ;;  %1142 = vmatprep.mubr.bf16.mxu0 %v2377_v0  ;;  %v2450_v59 = vld [vmem:[%s3092_s0 + $0x138] ss:$36 sps:$4 sm:$0xff]   ;;  %v2459_v0 = vld [vmem:[%s3092_s0 + $0x1c4] ss:$36 sps:$4 sm:$0xff]  }
  0x3d   :  { %1239 = vmatprep.mubr.bf16.mxu1 %v2379_v1  ;;  %2126 = vmatpush3.bf16.msra.mxu0 %v2405_v20  ;;  %v2461_v1 = vld [vmem:[%s3092_s0 + $0x1cc] ss:$36 sps:$4 sm:$0xff]  }
  0x3e   :  { %2190 = vmatpush3.bf16.msra.mxu1 %v2406_v21  ;;  %2127 = vmatprep.subr.bf16.mxu0 %v2413_v26 }
  0x3f   :  { %2191 = vmatprep.subr.bf16.mxu1 %v2414_v27 }
  0x41   :  { %2128 = vmatpush3.bf16.msra.mxu0 %v2415_v28 }
  0x42   :  { %2192 = vmatpush3.bf16.msra.mxu1 %v2416_v29  ;;  %2257 = vmatprep.subr.bf16.mxu0 %v2423_v32 }
  0x43   :  { %1143 = vmatmul.mubr.bf16.gmra.mrb[16].mxu0 %v2381_v2  ;;  %2289 = vmatprep.subr.bf16.mxu1 %v2423_v32  ;;  %v2463_v2 = vld [vmem:[%s3092_s0 + $0x1c0] ss:$36 sps:$4 sm:$0xff]  }
  0x44   :  { %1240 = vmatmul.mubr.bf16.gmra.mrb[16].mxu1 %v2382_v4  ;;  %1150 = vmatprep.mubr.bf16.mxu0 %v2387_v8  ;;  %v2466_v4 = vld [vmem:[%s3092_s0 + $0x20c] ss:$36 sps:$4 sm:$0xff]   ;;  %v2473_v8 = vld [vmem:[%s3092_s0 + $0x20] ss:$36 sps:$4 sm:$0xff]  }
  0x45   :  { %1247 = vmatprep.mubr.bf16.mxu1 %v2389_v9  ;;  %v2474_v9 = vld [vmem:[%s3092_s0 + $0x140] ss:$36 sps:$4 sm:$0xff]  }
  0x4b   :  { %1151 = vmatmul.mubr.bf16.gmra.mrb[20].mxu0 %v2391_v12  ;;  %v2477_v12 = vld [vmem:[%s3092_s0 + $0xb0] ss:$36 sps:$4 sm:$0xff]  }
  0x4c   :  { %1248 = vmatmul.mubr.bf16.gmra.mrb[20].mxu1 %v2392_v15  ;;  %1158 = vmatprep.mubr.bf16.mxu0 %v2397_v16  ;;  %v2480_v15 = vld [vmem:[%s3092_s0 + $0x218] ss:$36 sps:$4 sm:$0xff]  }
  0x4d   :  { %1255 = vmatprep.mubr.bf16.mxu1 %v2399_v17 }
  0x53   :  { %1159 = vmatmul.mubr.bf16.gmra.mrb[24].mxu0 %v2401_v22 }
  0x54   :  { %1256 = vmatmul.mubr.bf16.gmra.mrb[24].mxu1 %v2402_v23  ;;  %1166 = vmatprep.mubr.bf16.mxu0 %v2407_v24 }
  0x55   :  { %1263 = vmatprep.mubr.bf16.mxu1 %v2409_v25 }
  0x5b   :  { %1167 = vmatmul.mubr.bf16.gmra.mrb[28].mxu0 %v2411_v30 }
  0x5c   :  { %1264 = vmatmul.mubr.bf16.gmra.mrb[28].mxu1 %v2412_v31  ;;  %1304 = vmatprep.mubr.bf16.mxu0 %v2419_v33 }
  0x5d   :  { %1401 = vmatprep.mubr.bf16.mxu1 %v2422_v34 }
  0x63   :  { %1305 = vmatmul.mubr.bf16.vlgmr.msra.gmra.mrb[32].mxu0 %v2417_v35 }
  0x64   :  { %1402 = vmatmul.mubr.bf16.vlgmr.msra.gmra.mrb[32].mxu1 %v2420_v36  ;;  %2258 = vmatpush3.bf16.msra.mxu0 %v2423_v32 }
  0x65   :  { %2297 = vmatpush3.bf16.msra.mxu1 %v2423_v32  ;;  %1312 = vmatprep.mubr.bf16.mxu0 %v2424_v37 }
  0x66   :  { %1409 = vmatprep.mubr.bf16.mxu1 %v2426_v38  ;;  %2259 = vmatprep.subr.bf16.mxu0 %v2430_v39 }
  0x67   :  { %2290 = vmatprep.subr.bf16.mxu1 %v2430_v39 }
  0x68   :  { %2260 = vmatpush3.bf16.msra.mxu0 %v2430_v39 }
  0x69   :  { %2298 = vmatpush3.bf16.msra.mxu1 %v2430_v39  ;;  %2261 = vmatprep.subr.bf16.mxu0 %v2437_v40 }
  0x6a   :  { %2291 = vmatprep.subr.bf16.mxu1 %v2437_v40 }
  0x6b   :  { %1313 = vmatmul.mubr.bf16.gmra.mrb[36].mxu0 %v2428_v41 }
  0x6c   :  { %1410 = vmatmul.mubr.bf16.gmra.mrb[36].mxu1 %v2429_v42  ;;  %1320 = vmatprep.mubr.bf16.mxu0 %v2431_v43 }
  0x6d   :  { %1417 = vmatprep.mubr.bf16.mxu1 %v2433_v44  ;;  %2262 = vmatpush3.bf16.msra.mxu0 %v2437_v40 }
  0x6e   :  { %2299 = vmatpush3.bf16.msra.mxu1 %v2437_v40  ;;  %2263 = vmatprep.subr.bf16.mxu0 %v2444_v45 }
  0x6f   :  { %2292 = vmatprep.subr.bf16.mxu1 %v2444_v45 }
  0x71   :  { %2264 = vmatpush3.bf16.msra.mxu0 %v2444_v45 }
  0x72   :  { %2300 = vmatpush3.bf16.msra.mxu1 %v2444_v45  ;;  %2265 = vmatprep.subr.bf16.mxu0 %v2451_v46 }
  0x73   :  { %1321 = vmatmul.mubr.bf16.gmra.mrb[40].mxu0 %v2435_v47  ;;  %2293 = vmatprep.subr.bf16.mxu1 %v2451_v46 }
  0x74   :  { %1418 = vmatmul.mubr.bf16.gmra.mrb[40].mxu1 %v2436_v48  ;;  %1328 = vmatprep.mubr.bf16.mxu0 %v2438_v49 }
  0x75   :  { %1425 = vmatprep.mubr.bf16.mxu1 %v2440_v50  ;;  %2266 = vmatpush3.bf16.msra.mxu0 %v2451_v46 }
  0x76   :  { %2301 = vmatpush3.bf16.msra.mxu1 %v2451_v46  ;;  %2267 = vmatprep.subr.bf16.mxu0 %v2458_v51 }
  0x77   :  { %2294 = vmatprep.subr.bf16.mxu1 %v2458_v51 }
  0x79   :  { %2268 = vmatpush3.bf16.msra.mxu0 %v2458_v51 }
  0x7a   :  { %2302 = vmatpush3.bf16.msra.mxu1 %v2458_v51  ;;  %2269 = vmatprep.subr.bf16.mxu0 %v2465_v53 }
  0x7b   :  { %1329 = vmatmul.mubr.bf16.gmra.mrb[44].mxu0 %v2442_v52  ;;  %2295 = vmatprep.subr.bf16.mxu1 %v2465_v53 }
  0x7c   :  { %1426 = vmatmul.mubr.bf16.gmra.mrb[44].mxu1 %v2443_v54  ;;  %1336 = vmatprep.mubr.bf16.mxu0 %v2445_v55 }
  0x7d   :  { %1433 = vmatprep.mubr.bf16.mxu1 %v2447_v56  ;;  %2270 = vmatpush3.bf16.msra.mxu0 %v2465_v53 }
  0x7e   :  { %2303 = vmatpush3.bf16.msra.mxu1 %v2465_v53  ;;  %2271 = vmatprep.subr.bf16.mxu0 %v2472_v57 }
  0x7f   :  { %2296 = vmatprep.subr.bf16.mxu1 %v2472_v57 }
  0x81   :  { %2272 = vmatpush3.bf16.msra.mxu0 %v2472_v57 }
  0x82   :  { %2304 = vmatpush3.bf16.msra.mxu1 %v2472_v57 }
  0x83   :  { %1337 = vmatmul.mubr.bf16.gmra.mrb[48].mxu0 %v2449_v58 }
  0x84   :  { %1434 = vmatmul.mubr.bf16.gmra.mrb[48].mxu1 %v2450_v59  ;;  %1344 = vmatprep.mubr.bf16.mxu0 %v2452_v60 }
  0x85   :  { %1441 = vmatprep.mubr.bf16.mxu1 %v2454_v61 }
  0x8b   :  { %1345 = vmatmul.mubr.bf16.gmra.mrb[52].mxu0 %v2456_v62 }
  0x8c   :  { %1442 = vmatmul.mubr.bf16.gmra.mrb[52].mxu1 %v2457_v63  ;;  %1352 = vmatprep.mubr.bf16.mxu0 %v2459_v0 }
  0x8d   :  { %1449 = vmatprep.mubr.bf16.mxu1 %v2461_v1 }
  0x93   :  { %1353 = vmatmul.mubr.bf16.gmra.mrb[56].mxu0 %v2463_v2 }
  0x94   :  { %1450 = vmatmul.mubr.bf16.gmra.mrb[56].mxu1 %v2464_v3  ;;  %1360 = vmatprep.mubr.bf16.mxu0 %v2466_v4 }
  0x95   :  { %1457 = vmatprep.mubr.bf16.mxu1 %v2468_v5 }
  0x9b   :  { %1361 = vmatmul.mubr.bf16.gmra.mrb[60].mxu0 %v2470_v6 }
  0x9c   :  { %1458 = vmatmul.mubr.bf16.gmra.mrb[60].mxu1 %v2471_v7  ;;  %2273 = vmatprep.mubr.bf16.mxu0 %v2473_v8 }
  0x9d   :  { %2281 = vmatprep.mubr.bf16.mxu1 %v2474_v9 }
  0xa3   :  { %2274 = vmatmul.mubr.bf16.vlgmr.msra.gmra.mrb[64].mxu0 %v2475_v10 }
  0xa4   :  { %2282 = vmatmul.mubr.bf16.vlgmr.msra.gmra.mrb[64].mxu1 %v2476_v11  ;;  %2277 = vmatprep.mubr.bf16.mxu0 %v2477_v12 }
  0xa5   :  { %2285 = vmatprep.mubr.bf16.mxu1 %v2478_v13 }
  0xab   :  { %2278 = vmatmul.mubr.bf16.gmra.mrb[68].mxu0 %v2479_v14 }
  0xac   :  { %2286 = vmatmul.mubr.bf16.gmra.mrb[68].mxu1 %v2480_v15 }
  0xf6   :  { %v2001_v16 = vpop.f32.mrb[0].mxu0 }
  0xf7   :  { %v2065_v17 = vpop.f32.mrb[0].mxu1  ;;  %v2002_v18 = vpop.f32.mrb[1].mxu0 }
  0xf8   :  { %v2003_v19 = vadd.f32 %v2002_v18, %v2001_v16  ;;  %v2066_v20 = vpop.f32.mrb[1].mxu1  ;;  %v2004_v21 = vpop.f32.mrb[2].mxu0 }
  0xf9   :  { %v2067_v22 = vadd.f32 %v2066_v20, %v2065_v17  ;;  %v2068_v23 = vpop.f32.mrb[2].mxu1  ;;  %v2005_v24 = vpop.f32.mrb[3].mxu0 }
  0xfa   :  { %v2006_v25 = vadd.f32 %v2005_v24, %v2004_v21  ;;  %v2069_v26 = vpop.f32.mrb[3].mxu1 }
  0xfb   :  { %v2938_v27 = vadd.f32 %v2067_v22, %v2003_v19  ;;  %v2070_v28 = vadd.f32 %v2069_v26, %v2068_v23 }
  0xfd   :  { %v2940_v29 = vadd.f32 %v2070_v28, %v2006_v25 }
  0xfe   :  { %v2007_v30 = vpop.f32.mrb[4].mxu0 }
  0xff   :  { %v2071_v31 = vpop.f32.mrb[4].mxu1  ;;  %v2008_v32 = vpop.f32.mrb[5].mxu0 }
 0x100   :  { %v2009_v33 = vadd.f32 %v2008_v32, %v2007_v30  ;;  %v2072_v34 = vpop.f32.mrb[5].mxu1  ;;  %v2010_v35 = vpop.f32.mrb[6].mxu0 }
 0x101   :  { %v2073_v36 = vadd.f32 %v2072_v34, %v2071_v31  ;;  %v2074_v37 = vpop.f32.mrb[6].mxu1  ;;  %v2011_v38 = vpop.f32.mrb[7].mxu0 }
 0x102   :  { %v2012_v39 = vadd.f32 %v2011_v38, %v2010_v35  ;;  %v2075_v40 = vpop.f32.mrb[7].mxu1 }
 0x103   :  { %v2942_v41 = vadd.f32 %v2073_v36, %v2009_v33  ;;  %v2076_v42 = vadd.f32 %v2075_v40, %v2074_v37 }
 0x105   :  { %v2944_v43 = vadd.f32 %v2076_v42, %v2012_v39 }
 0x106   :  { %v2013_v44 = vpop.f32.mrb[8].mxu0 }
 0x107   :  { %v2077_v45 = vpop.f32.mrb[8].mxu1  ;;  %v2014_v46 = vpop.f32.mrb[9].mxu0 }
 0x108   :  { %v2015_v47 = vadd.f32 %v2014_v46, %v2013_v44  ;;  %v2078_v48 = vpop.f32.mrb[9].mxu1  ;;  %v2016_v49 = vpop.f32.mrb[10].mxu0 }
 0x109   :  { %v2079_v50 = vadd.f32 %v2078_v48, %v2077_v45  ;;  %v2080_v51 = vpop.f32.mrb[10].mxu1  ;;  %v2017_v52 = vpop.f32.mrb[11].mxu0 }
 0x10a   :  { %v2018_v53 = vadd.f32 %v2017_v52, %v2016_v49  ;;  %v2081_v54 = vpop.f32.mrb[11].mxu1 }
 0x10b   :  { %v2946_v55 = vadd.f32 %v2079_v50, %v2015_v47  ;;  %v2082_v56 = vadd.f32 %v2081_v54, %v2080_v51 }
 0x10d   :  { %v2948_v57 = vadd.f32 %v2082_v56, %v2018_v53 }
 0x10e   :  { %v2019_v58 = vpop.f32.mrb[12].mxu0 }
 0x10f   :  { %v2083_v59 = vpop.f32.mrb[12].mxu1  ;;  %v2020_v60 = vpop.f32.mrb[13].mxu0 }
 0x110   :  { %v2021_v61 = vadd.f32 %v2020_v60, %v2019_v58  ;;  %v2084_v62 = vpop.f32.mrb[13].mxu1  ;;  %v2022_v63 = vpop.f32.mrb[14].mxu0 }
 0x111   :  { %v2085_v0 = vadd.f32 %v2084_v62, %v2083_v59  ;;  %v2086_v1 = vpop.f32.mrb[14].mxu1  ;;  %v2023_v2 = vpop.f32.mrb[15].mxu0 }
 0x112   :  { %v2024_v3 = vadd.f32 %v2023_v2, %v2022_v63  ;;  %v2087_v4 = vpop.f32.mrb[15].mxu1 }
 0x113   :  { %v2950_v5 = vadd.f32 %v2085_v0, %v2021_v61  ;;  %v2088_v6 = vadd.f32 %v2087_v4, %v2086_v1 }
 0x115   :  { %v2952_v7 = vadd.f32 %v2088_v6, %v2024_v3 }
 0x116   :  { %v2025_v8 = vpop.f32.mrb[16].mxu0 }
 0x117   :  { %v2089_v9 = vpop.f32.mrb[16].mxu1  ;;  %v2026_v10 = vpop.f32.mrb[17].mxu0 }
 0x118   :  { %v2027_v11 = vadd.f32 %v2026_v10, %v2025_v8  ;;  %v2090_v12 = vpop.f32.mrb[17].mxu1  ;;  %v2028_v13 = vpop.f32.mrb[18].mxu0 }
 0x119   :  { %v2091_v14 = vadd.f32 %v2090_v12, %v2089_v9  ;;  %v2092_v15 = vpop.f32.mrb[18].mxu1  ;;  %v2029_v16 = vpop.f32.mrb[19].mxu0 }
 0x11a   :  { %v2030_v17 = vadd.f32 %v2029_v16, %v2028_v13  ;;  %v2093_v18 = vpop.f32.mrb[19].mxu1 }
 0x11b   :  { %v2954_v19 = vadd.f32 %v2091_v14, %v2027_v11  ;;  %v2094_v20 = vadd.f32 %v2093_v18, %v2092_v15 }
 0x11d   :  { %v2956_v21 = vadd.f32 %v2094_v20, %v2030_v17 }
 0x11e   :  { %v2031_v22 = vpop.f32.mrb[20].mxu0 }
 0x11f   :  { %v2095_v23 = vpop.f32.mrb[20].mxu1  ;;  %v2032_v24 = vpop.f32.mrb[21].mxu0 }
 0x120   :  { %v2033_v25 = vadd.f32 %v2032_v24, %v2031_v22  ;;  %v2096_v26 = vpop.f32.mrb[21].mxu1  ;;  %v2034_v28 = vpop.f32.mrb[22].mxu0 }
 0x121   :  { %v2097_v30 = vadd.f32 %v2096_v26, %v2095_v23  ;;  %v2098_v31 = vpop.f32.mrb[22].mxu1  ;;  %v2035_v32 = vpop.f32.mrb[23].mxu0 }
 0x122   :  { %v2036_v33 = vadd.f32 %v2035_v32, %v2034_v28  ;;  %v2099_v34 = vpop.f32.mrb[23].mxu1 }
 0x123   :  { %v2958_v35 = vadd.f32 %v2097_v30, %v2033_v25  ;;  %v2100_v36 = vadd.f32 %v2099_v34, %v2098_v31 }
 0x125   :  { %v2960_v37 = vadd.f32 %v2100_v36, %v2036_v33 }
 0x126   :  { %v2037_v38 = vpop.f32.mrb[24].mxu0 }
 0x127   :  { %v2101_v39 = vpop.f32.mrb[24].mxu1  ;;  %v2038_v40 = vpop.f32.mrb[25].mxu0 }
 0x128   :  { %v2039_v42 = vadd.f32 %v2038_v40, %v2037_v38  ;;  %v2102_v44 = vpop.f32.mrb[25].mxu1  ;;  %v2040_v45 = vpop.f32.mrb[26].mxu0 }
 0x129   :  { %v2103_v46 = vadd.f32 %v2102_v44, %v2101_v39  ;;  %v2104_v47 = vpop.f32.mrb[26].mxu1  ;;  %v2041_v48 = vpop.f32.mrb[27].mxu0 }
 0x12a   :  { %v2042_v49 = vadd.f32 %v2041_v48, %v2040_v45  ;;  %v2105_v50 = vpop.f32.mrb[27].mxu1 }
 0x12b   :  { %v2962_v51 = vadd.f32 %v2103_v46, %v2039_v42  ;;  %v2106_v52 = vadd.f32 %v2105_v50, %v2104_v47 }
 0x12d   :  { %v2964_v53 = vadd.f32 %v2106_v52, %v2042_v49 }
 0x12e   :  { %v2043_v54 = vpop.f32.mrb[28].mxu0 }
 0x12f   :  { %v2107_v56 = vpop.f32.mrb[28].mxu1  ;;  %v2044_v58 = vpop.f32.mrb[29].mxu0 }
 0x130   :  { %v2045_v59 = vadd.f32 %v2044_v58, %v2043_v54  ;;  %v2108_v60 = vpop.f32.mrb[29].mxu1  ;;  %v2046_v61 = vpop.f32.mrb[30].mxu0 }
 0x131   :  { %v2109_v62 = vadd.f32 %v2108_v60, %v2107_v56  ;;  %v2110_v63 = vpop.f32.mrb[30].mxu1  ;;  %v2047_v0 = vpop.f32.mrb[31].mxu0 }
 0x132   :  { %v2048_v1 = vadd.f32 %v2047_v0, %v2046_v61  ;;  %v2111_v2 = vpop.f32.mrb[31].mxu1 }
 0x133   :  { %v2966_v3 = vadd.f32 %v2109_v62, %v2045_v59  ;;  %v2112_v4 = vadd.f32 %v2111_v2, %v2110_v63 }
 0x135   :  { %v2968_v6 = vadd.f32 %v2112_v4, %v2048_v1 }
 0x136   :  { %v2129_v8 = vpop.f32.mrb[32].mxu0 }
 0x137   :  { %v2193_v9 = vpop.f32.mrb[32].mxu1  ;;  %v2130_v10 = vpop.f32.mrb[33].mxu0 }
 0x138   :  { %v2131_v11 = vadd.f32 %v2130_v10, %v2129_v8  ;;  %v2194_v12 = vpop.f32.mrb[33].mxu1  ;;  %v2132_v13 = vpop.f32.mrb[34].mxu0 }
 0x139   :  { %v2195_v14 = vadd.f32 %v2194_v12, %v2193_v9  ;;  %v2196_v15 = vpop.f32.mrb[34].mxu1  ;;  %v2133_v16 = vpop.f32.mrb[35].mxu0 }
 0x13a   :  { %v1307_v17 = vadd.f32 %v2131_v11, %v2938_v27  ;;  %v2134_v18 = vadd.f32 %v2133_v16, %v2132_v13  ;;  %v2197_v20 = vpop.f32.mrb[35].mxu1 }
 0x13b   :  { %v2198_v22 = vadd.f32 %v2197_v20, %v2196_v15 }
 0x13c   :  { %v1310_v23 = vadd.f32 %v2134_v18, %v2940_v29  ;;  %v2972_v24 = vadd.f32 %v2195_v14, %v1307_v17 }
 0x13e   :  { %v2135_v25 = vpop.f32.mrb[36].mxu0  ;;  %v2974_v26 = vadd.f32 %v2198_v22, %v1310_v23 }
 0x13f   :  { %v2199_v28 = vpop.f32.mrb[36].mxu1  ;;  %v2136_v30 = vpop.f32.mrb[37].mxu0 }
 0x140   :  { %v2137_v31 = vadd.f32 %v2136_v30, %v2135_v25  ;;  %v2200_v32 = vpop.f32.mrb[37].mxu1  ;;  %v2138_v33 = vpop.f32.mrb[38].mxu0 }
 0x141   :  { %v2201_v34 = vadd.f32 %v2200_v32, %v2199_v28  ;;  %v2202_v36 = vpop.f32.mrb[38].mxu1  ;;  %v2139_v38 = vpop.f32.mrb[39].mxu0 }
 0x142   :  { %v1315_v27 = vadd.f32 %v2137_v31, %v2942_v41  ;;  %v2140_v39 = vadd.f32 %v2139_v38, %v2138_v33  ;;  %v2203_v40 = vpop.f32.mrb[39].mxu1 }
 0x143   :  { %v2204_v42 = vadd.f32 %v2203_v40, %v2202_v36 }
 0x144   :  { %v1318_v29 = vadd.f32 %v2140_v39, %v2944_v43  ;;  %v2978_v44 = vadd.f32 %v2201_v34, %v1315_v27 }
 0x146   :  { %v2141_v45 = vpop.f32.mrb[40].mxu0  ;;  %v2980_v46 = vadd.f32 %v2204_v42, %v1318_v29 }
 0x147   :  { %v2205_v47 = vpop.f32.mrb[40].mxu1  ;;  %v2142_v48 = vpop.f32.mrb[41].mxu0 }
 0x148   :  { %v2143_v49 = vadd.f32 %v2142_v48, %v2141_v45  ;;  %v2206_v50 = vpop.f32.mrb[41].mxu1  ;;  %v2144_v52 = vpop.f32.mrb[42].mxu0 }
 0x149   :  { %v2207_v54 = vadd.f32 %v2206_v50, %v2205_v47  ;;  %v2208_v56 = vpop.f32.mrb[42].mxu1  ;;  %v2145_v58 = vpop.f32.mrb[43].mxu0 }
 0x14a   :  { %v1323_v41 = vadd.f32 %v2143_v49, %v2946_v55  ;;  %v2146_v59 = vadd.f32 %v2145_v58, %v2144_v52  ;;  %v2209_v60 = vpop.f32.mrb[43].mxu1 }
 0x14b   :  { %v2210_v61 = vadd.f32 %v2209_v60, %v2208_v56 }
 0x14c   :  { %v1326_v43 = vadd.f32 %v2146_v59, %v2948_v57  ;;  %v2984_v62 = vadd.f32 %v2207_v54, %v1323_v41 }
 0x14e   :  { %v2147_v63 = vpop.f32.mrb[44].mxu0  ;;  %v2986_v0 = vadd.f32 %v2210_v61, %v1326_v43 }
 0x14f   :  { %v2211_v1 = vpop.f32.mrb[44].mxu1  ;;  %v2148_v2 = vpop.f32.mrb[45].mxu0 }
 0x150   :  { %v2149_v4 = vadd.f32 %v2148_v2, %v2147_v63  ;;  %v2212_v8 = vpop.f32.mrb[45].mxu1  ;;  %v2150_v9 = vpop.f32.mrb[46].mxu0 }
 0x151   :  { %v2213_v10 = vadd.f32 %v2212_v8, %v2211_v1  ;;  %v2214_v11 = vpop.f32.mrb[46].mxu1  ;;  %v2151_v12 = vpop.f32.mrb[47].mxu0 }
 0x152   :  { %v1331_v55 = vadd.f32 %v2149_v4, %v2950_v5  ;;  %v2152_v13 = vadd.f32 %v2151_v12, %v2150_v9  ;;  %v2215_v14 = vpop.f32.mrb[47].mxu1 }
 0x153   :  { %v2216_v15 = vadd.f32 %v2215_v14, %v2214_v11 }
 0x154   :  { %v1334_v57 = vadd.f32 %v2152_v13, %v2952_v7  ;;  %v2990_v16 = vadd.f32 %v2213_v10, %v1331_v55 }
 0x156   :  { %v2153_v17 = vpop.f32.mrb[48].mxu0  ;;  %v2992_v18 = vadd.f32 %v2216_v15, %v1334_v57 }
 0x157   :  { %v2217_v20 = vpop.f32.mrb[48].mxu1  ;;  %v2154_v22 = vpop.f32.mrb[49].mxu0 }
 0x158   :  { %v2155_v23 = vadd.f32 %v2154_v22, %v2153_v17  ;;  %v2218_v25 = vpop.f32.mrb[49].mxu1  ;;  %v2156_v28 = vpop.f32.mrb[50].mxu0 }
 0x159   :  { %v2219_v30 = vadd.f32 %v2218_v25, %v2217_v20  ;;  %v2220_v31 = vpop.f32.mrb[50].mxu1  ;;  %v2157_v32 = vpop.f32.mrb[51].mxu0 }
 0x15a   :  { %v1339_v5 = vadd.f32 %v2155_v23, %v2954_v19  ;;  %v2158_v33 = vadd.f32 %v2157_v32, %v2156_v28  ;;  %v2221_v34 = vpop.f32.mrb[51].mxu1 }
 0x15b   :  { %v2222_v36 = vadd.f32 %v2221_v34, %v2220_v31 }
 0x15c   :  { %v1342_v7 = vadd.f32 %v2158_v33, %v2956_v21  ;;  %v2996_v38 = vadd.f32 %v2219_v30, %v1339_v5  ;;  %v3013_v33 = vld [vmem:[%s3093_s2] ss:$0 sm:$0xff] }
 0x15e   :  { %v2159_v27 = vpop.f32.mrb[52].mxu0  ;;  %v2998_v39 = vadd.f32 %v2222_v36, %v1342_v7 }
 0x15f   :  { %v2223_v40 = vpop.f32.mrb[52].mxu1  ;;  %v2160_v42 = vpop.f32.mrb[53].mxu0 }
 0x160   :  { %v2161_v29 = vadd.f32 %v2160_v42, %v2159_v27  ;;  %v2224_v45 = vpop.f32.mrb[53].mxu1  ;;  %v2162_v47 = vpop.f32.mrb[54].mxu0 }
 0x161   :  { %v2225_v48 = vadd.f32 %v2224_v45, %v2223_v40  ;;  %v2226_v49 = vpop.f32.mrb[54].mxu1  ;;  %v2163_v50 = vpop.f32.mrb[55].mxu0 }
 0x162   :  { %v1347_v19 = vadd.f32 %v2161_v29, %v2958_v35  ;;  %v2164_v52 = vadd.f32 %v2163_v50, %v2162_v47  ;;  %v2227_v54 = vpop.f32.mrb[55].mxu1 }
 0x163   :  { %v2228_v56 = vadd.f32 %v2227_v54, %v2226_v49 }
 0x164   :  { %v1350_v21 = vadd.f32 %v2164_v52, %v2960_v37  ;;  %v1444_v58 = vadd.f32 %v2225_v48, %v1347_v19 }
 0x166   :  { %v2165_v41 = vpop.f32.mrb[56].mxu0  ;;  %v1447_v59 = vadd.f32 %v2228_v56, %v1350_v21 }
 0x167   :  { %v2229_v60 = vpop.f32.mrb[56].mxu1  ;;  %v2166_v61 = vpop.f32.mrb[57].mxu0 }
 0x168   :  { %v2167_v43 = vadd.f32 %v2166_v61, %v2165_v41  ;;  %v2230_v63 = vpop.f32.mrb[57].mxu1  ;;  %v2168_v1 = vpop.f32.mrb[58].mxu0 }
 0x169   :  { %v2231_v2 = vadd.f32 %v2230_v63, %v2229_v60  ;;  %v2232_v4 = vpop.f32.mrb[58].mxu1  ;;  %v2169_v8 = vpop.f32.mrb[59].mxu0 }
 0x16a   :  { %v1355_v9 = vadd.f32 %v2167_v43, %v2962_v51  ;;  %v2170_v10 = vadd.f32 %v2169_v8, %v2168_v1  ;;  %v2233_v35 = vpop.f32.mrb[59].mxu1 }
 0x16b   :  { %v2234_v11 = vadd.f32 %v2233_v35, %v2232_v4 }
 0x16c   :  { %v1358_v12 = vadd.f32 %v2170_v10, %v2964_v53  ;;  %v3004_v55 = vadd.f32 %v2231_v2, %v1355_v9 }
 0x16e   :  { %v2171_v37 = vpop.f32.mrb[60].mxu0  ;;  %v3006_v13 = vadd.f32 %v2234_v11, %v1358_v12 }
 0x16f   :  { %v2235_v14 = vpop.f32.mrb[60].mxu1  ;;  %v2172_v15 = vpop.f32.mrb[61].mxu0 }
 0x170   :  { %v2173_v57 = vadd.f32 %v2172_v15, %v2171_v37  ;;  %v2236_v17 = vpop.f32.mrb[61].mxu1  ;;  %v2174_v20 = vpop.f32.mrb[62].mxu0 }
 0x171   :  { %v2237_v22 = vadd.f32 %v2236_v17, %v2235_v14  ;;  %v2238_v23 = vpop.f32.mrb[62].mxu1  ;;  %v2175_v25 = vpop.f32.mrb[63].mxu0 }
 0x172   :  { %v1363_v51 = vadd.f32 %v2173_v57, %v2966_v3  ;;  %v2176_v28 = vadd.f32 %v2175_v25, %v2174_v20  ;;  %v2239_v30 = vpop.f32.mrb[63].mxu1  ;;  %v3021_v3 = vld [vmem:[%s3094_s3] ss:$0 sm:$0xff] }
 0x173   :  { %v2240_v31 = vadd.f32 %v2239_v30, %v2238_v23 }
 0x174   :  { %v1366_v53 = vadd.f32 %v2176_v28, %v2968_v6  ;;  %v1460_v32 = vadd.f32 %v2237_v22, %v1363_v51 }
 0x176   :  { %v2275_v5 = vpop.f32.mrb[64].mxu0  ;;  %v3015_v34 = vadd.f32 %v2240_v31, %v1366_v53 }
 0x177   :  { %v1509_v36 = vadd.f32 %v2275_v5, %v2978_v44  ;;  %v2283_v7 = vpop.f32.mrb[64].mxu1  ;;  %v1500_v27 = vpop.f32.mrb[65].mxu0 }
 0x178   :  { %v1541_v40 = vadd.f32 %v2283_v7, %v1444_v58  ;;  %v1501_v6 = vadd.f32 %v1500_v27, %v2972_v24  ;;  %v1532_v42 = vpop.f32.mrb[65].mxu1  ;;  %v2276_v29 = vpop.f32.mrb[66].mxu0 }
 0x179   :  { %v1623_v45 = vmul.f32 %v3013_v33, %v1509_v36  ;;  %v1533_v47 = vadd.f32 %v1532_v42, %v2996_v38  ;;  %v1512_v48 = vadd.f32 %v2276_v29, %v2980_v46  ;;  %v2284_v49 = vpop.f32.mrb[66].mxu1  ;;  %v1503_v44 = vpop.f32.mrb[67].mxu0 }
 0x17a   :  { %v1631_v50 = vmul.f32 %v3013_v33, %v1541_v40  ;;  %v1621_v19 = vmul.f32 %v3013_v33, %v1501_v6  ;;  %v1544_v52 = vadd.f32 %v2284_v49, %v1447_v59  ;;  %v1504_v54 = vadd.f32 %v1503_v44, %v2974_v26  ;;  %v1535_v56 = vpop.f32.mrb[67].mxu1 }
 0x17b   :  { %v1646_v24 = vadd.f32 %v3021_v3, %v1623_v45  ;;  %v1629_v21 = vmul.f32 %v3013_v33, %v1533_v47  ;;  %v1624_v58 = vmul.f32 %v3013_v33, %v1512_v48  ;;  %v1536_v38 = vadd.f32 %v1535_v56, %v2998_v39 }
 0x17c   :  { %v1654_v46 = vadd.f32 %v3021_v3, %v1631_v50  ;;  %v1644_v41 = vadd.f32 %v3021_v3, %v1621_v19  ;;  %v1632_v60 = vmul.f32 %v3013_v33, %v1544_v52  ;;  %v1622_v61 = vmul.f32 %v3013_v33, %v1504_v54 }
 0x17d   :  { %v1662_v59 = vmax.f32 %v1646_v24, 0.0  ;;  %v1652_v26 = vadd.f32 %v3021_v3, %v1629_v21  ;;  %v1647_v43 = vadd.f32 %v3021_v3, %v1624_v58  ;;  %v1630_v63 = vmul.f32 %v3013_v33, %v1536_v38 }
 0x17e   :  { %v1670_v1 = vmax.f32 %v1654_v46, 0.0  ;;  %v1660_v2 = vmax.f32 %v1644_v41, 0.0  ;;  %v1655_v4 = vadd.f32 %v3021_v3, %v1632_v60  ;;  %v1645_v39 = vadd.f32 %v3021_v3, %v1622_v61  ;;  %v2279_v8 = vpop.f32.mrb[68].mxu0 }
 0x17f   :  { %v1668_v9 = vmax.f32 %v1652_v26, 0.0  ;;  %v1663_v10 = vmax.f32 %v1647_v43, 0.0  ;;  %v1653_v35 = vadd.f32 %v3021_v3, %v1630_v63  ;;  %v1525_v11 = vadd.f32 %v2279_v8, %v2990_v16  ;;  %v2287_v12 = vpop.f32.mrb[68].mxu1  ;;  %v1516_v37 = vpop.f32.mrb[69].mxu0 }
 0x180   :  { %v1671_v14 = vmax.f32 %v1655_v4, 0.0  ;;  %v1661_v15 = vmax.f32 %v1645_v39, 0.0  ;;  %v1557_v57 = vadd.f32 %v2287_v12, %v1460_v32  ;;  %v1517_v17 = vadd.f32 %v1516_v37, %v2984_v62  ;;  %v1548_v20 = vpop.f32.mrb[69].mxu1  ;;  %v2280_v22 = vpop.f32.mrb[70].mxu0 }
 0x181   :  { %v1946_v23 = vpack.c.bf16 %v1663_v10, %v1662_v59  ;;  %v1669_v25 = vmax.f32 %v1653_v35, 0.0  ;;  %v1627_v51 = vmul.f32 %v3013_v33, %v1525_v11  ;;  %v1549_v28 = vadd.f32 %v1548_v20, %v3004_v55  ;;  %v2288_v30 = vpop.f32.mrb[70].mxu1  ;;  %v1519_v31 = vpop.f32.mrb[71].mxu0 }
 0x182   :  { %v1966_v53 = vpack.c.bf16 %v1671_v14, %v1670_v1  ;;  %v1941_v5 = vpack.c.bf16 %v1661_v15, %v1660_v2  ;;  %v1635_v16 = vmul.f32 %v3013_v33, %v1557_v57  ;;  %v1625_v36 = vmul.f32 %v3013_v33, %v1517_v17  ;;  %v1551_v7 = vpop.f32.mrb[71].mxu1 }
 0x183   :  { %1978 = vst [vmem:[%s3095_s4 + $0x8] sm:$0xff] %v1946_v23   ;;  %v1961_v62 = vpack.c.bf16 %v1669_v25, %v1668_v9  ;;  %v1633_v32 = vmul.f32 %v3013_v33, %v1549_v28  ;;  %v1528_v27 = vadd.f32 %v2280_v22, %v2992_v18  ;;  %v1560_v55 = vadd.f32 %v2288_v30, %v3015_v34 }
 0x184   :  { %1982 = vst [vmem:[%s3095_s4 + $0x28] sm:$0xff] %v1966_v53   ;;  %1942 = vst [vmem:[%s3095_s4] sm:$0xff] %v1941_v5   ;;  %v1520_v40 = vadd.f32 %v1519_v31, %v2986_v0  ;;  %v1650_v6 = vadd.f32 %v3021_v3, %v1627_v51  ;;  %v1552_v42 = vadd.f32 %v1551_v7, %v3006_v13 }
 0x185   :  { %1981 = vst [vmem:[%s3095_s4 + $0x20] sm:$0xff] %v1961_v62   ;;  %v1628_v18 = vmul.f32 %v3013_v33, %v1528_v27  ;;  %v1658_v29 = vadd.f32 %v3021_v3, %v1635_v16  ;;  %v1648_v45 = vadd.f32 %v3021_v3, %v1625_v36  ;;  %v1636_v47 = vmul.f32 %v3013_v33, %v1560_v55 }
 0x186   :  { %v1626_v34 = vmul.f32 %v3013_v33, %v1520_v40  ;;  %v1656_v0 = vadd.f32 %v3021_v3, %v1633_v32  ;;  %v1634_v49 = vmul.f32 %v3013_v33, %v1552_v42  ;;  %v1666_v19 = vmax.f32 %v1650_v6, 0.0 }
 0x187   :  { %v1651_v48 = vadd.f32 %v3021_v3, %v1628_v18  ;;  %v1659_v44 = vadd.f32 %v3021_v3, %v1636_v47  ;;  %v1674_v54 = vmax.f32 %v1658_v29, 0.0  ;;  %v1664_v56 = vmax.f32 %v1648_v45, 0.0 }
 0x188   :  { %v1649_v50 = vadd.f32 %v3021_v3, %v1626_v34  ;;  %v1657_v52 = vadd.f32 %v3021_v3, %v1634_v49  ;;  %v1672_v58 = vmax.f32 %v1656_v0, 0.0 }
 0x189   :  { %v1667_v13 = vmax.f32 %v1651_v48, 0.0  ;;  %v1675_v24 = vmax.f32 %v1659_v44, 0.0 }
 0x18a   :  { %v1665_v21 = vmax.f32 %v1649_v50, 0.0  ;;  %v1673_v46 = vmax.f32 %v1657_v52, 0.0 }
 0x18b   :  { %v1956_v38 = vpack.c.bf16 %v1667_v13, %v1666_v19  ;;  %v1976_v41 = vpack.c.bf16 %v1675_v24, %v1674_v54 }
 0x18c   :  { %v1951_v60 = vpack.c.bf16 %v1665_v21, %v1664_v56  ;;  %v1971_v33 = vpack.c.bf16 %v1673_v46, %v1672_v58 }
 0x18d   :  { %1980 = vst [vmem:[%s3095_s4 + $0x18] sm:$0xff] %v1956_v38   ;;  %1984 = vst [vmem:[%s3095_s4 + $0x38] sm:$0xff] %v1976_v41  }
 0x18e   :  { %1979 = vst [vmem:[%s3095_s4 + $0x10] sm:$0xff] %v1951_v60   ;;  %1983 = vst [vmem:[%s3095_s4 + $0x30] sm:$0xff] %v1971_v33  }

// kernel: _lambda_.18
= control target key start
LH: loop header
LB: loop body
LE: loop exit
PB: predicated region body
PF: predicated region fallthrough
CT: control target
= control target key end

     0   :  { %s3256_s1 = inlined_call_operand.vmem [shape: bf16[1152,128], index: 1, kind: input, shape index: {}]   ;;  %s3257_s0 = inlined_call_operand.vmem [shape: bf16[128,1152], index: 0, kind: input, shape index: {}]   ;;  %s3258_s4 = inlined_call_operand.vmem [shape: bf16[128,128], index: 4, kind: input, shape index: {}]   ;;  %s3259_s2 = inlined_call_operand.vmem [shape: f32[1,128], index: 2, kind: input, shape index: {}]   ;;  %s3260_s3 = inlined_call_operand.vmem [shape: f32[1,128], index: 3, kind: input, shape index: {}]   ;;  %s3261_s5 = inlined_call_operand.vmem [shape: bf16[128,128], index: 5, kind: output, shape index: {}]  }
   0x1   :  { %v2395_v0 = vld [vmem:[%s3256_s1 + $0x40] sm:$0xff]   ;;  %v2399_v4 = vld [vmem:[%s3256_s1 + $0x48] sm:$0xff]   ;;  %v2403_v8 = vld [vmem:[%s3256_s1 + $0x50] sm:$0xff]  }
   0x2   :  { %v2396_v1 = vld [vmem:[%s3256_s1 + $0xc0] sm:$0xff]   ;;  %2075 = vmatprep.subr.bf16.mxu0 %v2395_v0  ;;  %v2400_v5 = vld [vmem:[%s3256_s1 + $0xc8] sm:$0xff]   ;;  %v2404_v9 = vld [vmem:[%s3256_s1 + $0xd0] sm:$0xff]  }
   0x3   :  { %v2397_v2 = vld [vmem:[%s3256_s1] sm:$0xff]   ;;  %2139 = vmatprep.subr.bf16.mxu1 %v2396_v1  ;;  %v2401_v6 = vld [vmem:[%s3256_s1 + $0x8] sm:$0xff]   ;;  %v2405_v10 = vld [vmem:[%s3256_s1 + $0x10] sm:$0xff]  }
   0x4   :  { %v2398_v3 = vld [vmem:[%s3256_s1 + $0x80] sm:$0xff]   ;;  %2076 = vmatpush3.bf16.msra.mxu0 %v2397_v2  ;;  %v2402_v7 = vld [vmem:[%s3256_s1 + $0x88] sm:$0xff]   ;;  %v2406_v11 = vld [vmem:[%s3256_s1 + $0x90] sm:$0xff]  }
   0x5   :  { %2140 = vmatpush3.bf16.msra.mxu1 %v2398_v3  ;;  %2077 = vmatprep.subr.bf16.mxu0 %v2399_v4  ;;  %v2407_v12 = vld [vmem:[%s3256_s1 + $0x58] sm:$0xff]   ;;  %v2411_v16 = vld [vmem:[%s3256_s1 + $0x60] sm:$0xff]   ;;  %v2415_v20 = vld [vmem:[%s3256_s1 + $0x68] sm:$0xff]  }
   0x6   :  { %2141 = vmatprep.subr.bf16.mxu1 %v2400_v5  ;;  %v2408_v13 = vld [vmem:[%s3256_s1 + $0xd8] sm:$0xff]   ;;  %v2412_v17 = vld [vmem:[%s3256_s1 + $0xe0] sm:$0xff]   ;;  %v2416_v21 = vld [vmem:[%s3256_s1 + $0xe8] sm:$0xff]  }
   0x7   :  { %v2409_v14 = vld [vmem:[%s3256_s1 + $0x18] sm:$0xff]   ;;  %v2413_v18 = vld [vmem:[%s3256_s1 + $0x20] sm:$0xff]   ;;  %v2417_v22 = vld [vmem:[%s3256_s1 + $0x28] sm:$0xff]  }
   0x8   :  { %2078 = vmatpush3.bf16.msra.mxu0 %v2401_v6  ;;  %v2410_v15 = vld [vmem:[%s3256_s1 + $0x98] sm:$0xff]   ;;  %v2414_v19 = vld [vmem:[%s3256_s1 + $0xa0] sm:$0xff]   ;;  %v2418_v23 = vld [vmem:[%s3256_s1 + $0xa8] sm:$0xff]  }
   0x9   :  { %2142 = vmatpush3.bf16.msra.mxu1 %v2402_v7  ;;  %2079 = vmatprep.subr.bf16.mxu0 %v2403_v8  ;;  %v2419_v24 = vld [vmem:[%s3256_s1 + $0x70] sm:$0xff]   ;;  %v2423_v28 = vld [vmem:[%s3256_s1 + $0x78] sm:$0xff]   ;;  %v2427_v32 = vld [vmem:[%s3257_s0] ss:$36 sps:$4 sm:$0xff]  }
   0xa   :  { %2143 = vmatprep.subr.bf16.mxu1 %v2404_v9  ;;  %v2420_v25 = vld [vmem:[%s3256_s1 + $0xf0] sm:$0xff]   ;;  %v2424_v29 = vld [vmem:[%s3256_s1 + $0xf8] sm:$0xff]   ;;  %v2429_v33 = vld [vmem:[%s3257_s0 + $0x4] ss:$36 sps:$4 sm:$0xff]  }
   0xb   :  { %v2421_v26 = vld [vmem:[%s3256_s1 + $0x30] sm:$0xff]   ;;  %v2425_v30 = vld [vmem:[%s3256_s1 + $0x38] sm:$0xff]   ;;  %v2430_v34 = vld [vmem:[%s3257_s0 + $0x8] ss:$36 sps:$4 sm:$0xff]   ;;  %1113 = vmatprep.mubr.bf16.mxu0 %v2429_v33 }
   0xc   :  { %2080 = vmatpush3.bf16.msra.mxu0 %v2405_v10  ;;  %v2422_v27 = vld [vmem:[%s3256_s1 + $0xb0] sm:$0xff]   ;;  %v2426_v31 = vld [vmem:[%s3256_s1 + $0xb8] sm:$0xff]   ;;  %v2433_v36 = vld [vmem:[%s3256_s1 + $0x140] sm:$0xff]  }
   0xd   :  { %2144 = vmatpush3.bf16.msra.mxu1 %v2406_v11  ;;  %2081 = vmatprep.subr.bf16.mxu0 %v2407_v12  ;;  %v2432_v35 = vld [vmem:[%s3257_s0 + $0xc] ss:$36 sps:$4 sm:$0xff]   ;;  %v2434_v37 = vld [vmem:[%s3256_s1 + $0x1c0] sm:$0xff]   ;;  %v2439_v41 = vld [vmem:[%s3257_s0 + $0x54] ss:$36 sps:$4 sm:$0xff]  }
   0xe   :  { %2145 = vmatprep.subr.bf16.mxu1 %v2408_v13  ;;  %1210 = vmatprep.mubr.bf16.mxu1 %v2432_v35  ;;  %v2435_v38 = vld [vmem:[%s3256_s1 + $0x100] sm:$0xff]   ;;  %v2437_v40 = vld [vmem:[%s3257_s0 + $0x4c] ss:$36 sps:$4 sm:$0xff]   ;;  %v2447_v48 = vld [vmem:[%s3257_s0 + $0x94] ss:$36 sps:$4 sm:$0xff]  }
   0xf   :  { %v2436_v39 = vld [vmem:[%s3256_s1 + $0x180] sm:$0xff]   ;;  %v2441_v42 = vld [vmem:[%s3257_s0 + $0x48] ss:$36 sps:$4 sm:$0xff]   ;;  %v2442_v43 = vld [vmem:[%s3257_s0 + $0x50] ss:$36 sps:$4 sm:$0xff]  }
  0x10   :  { %2082 = vmatpush3.bf16.msra.mxu0 %v2409_v14  ;;  %v2443_v44 = vld [vmem:[%s3256_s1 + $0x148] sm:$0xff]   ;;  %v2449_v49 = vld [vmem:[%s3257_s0 + $0x9c] ss:$36 sps:$4 sm:$0xff]   ;;  %v2451_v50 = vld [vmem:[%s3257_s0 + $0x90] ss:$36 sps:$4 sm:$0xff]  }
  0x11   :  { %2146 = vmatpush3.bf16.msra.mxu1 %v2410_v15  ;;  %2083 = vmatprep.subr.bf16.mxu0 %v2411_v16  ;;  %v2444_v45 = vld [vmem:[%s3256_s1 + $0x1c8] sm:$0xff]   ;;  %v2452_v51 = vld [vmem:[%s3257_s0 + $0x98] ss:$36 sps:$4 sm:$0xff]   ;;  %v2453_v52 = vld [vmem:[%s3256_s1 + $0x150] sm:$0xff]  }
  0x12   :  { %2147 = vmatprep.subr.bf16.mxu1 %v2412_v17  ;;  %v2445_v46 = vld [vmem:[%s3256_s1 + $0x108] sm:$0xff]   ;;  %v2454_v53 = vld [vmem:[%s3256_s1 + $0x1d0] sm:$0xff]   ;;  %v2457_v56 = vld [vmem:[%s3257_s0 + $0xdc] ss:$36 sps:$4 sm:$0xff]  }
  0x13   :  { %v2446_v47 = vld [vmem:[%s3256_s1 + $0x188] sm:$0xff]   ;;  %v2455_v54 = vld [vmem:[%s3256_s1 + $0x110] sm:$0xff]   ;;  %v2461_v58 = vld [vmem:[%s3257_s0 + $0xd8] ss:$36 sps:$4 sm:$0xff]  }
  0x14   :  { %2084 = vmatpush3.bf16.msra.mxu0 %v2413_v18  ;;  %v2456_v55 = vld [vmem:[%s3256_s1 + $0x190] sm:$0xff]   ;;  %v2459_v57 = vld [vmem:[%s3257_s0 + $0xe4] ss:$36 sps:$4 sm:$0xff]   ;;  %v2463_v60 = vld [vmem:[%s3256_s1 + $0x158] sm:$0xff]  }
  0x15   :  { %2148 = vmatpush3.bf16.msra.mxu1 %v2414_v19  ;;  %2085 = vmatprep.subr.bf16.mxu0 %v2415_v20  ;;  %v2462_v59 = vld [vmem:[%s3257_s0 + $0xe0] ss:$36 sps:$4 sm:$0xff]   ;;  %v2464_v61 = vld [vmem:[%s3256_s1 + $0x1d8] sm:$0xff]   ;;  %v2469_v1 = vld [vmem:[%s3257_s0 + $0x12c] ss:$36 sps:$4 sm:$0xff]  }
  0x16   :  { %2149 = vmatprep.subr.bf16.mxu1 %v2416_v21  ;;  %v2465_v62 = vld [vmem:[%s3256_s1 + $0x118] sm:$0xff]   ;;  %v2467_v0 = vld [vmem:[%s3257_s0 + $0x124] ss:$36 sps:$4 sm:$0xff]   ;;  %v2477_v8 = vld [vmem:[%s3257_s0 + $0x16c] ss:$36 sps:$4 sm:$0xff]  }
  0x17   :  { %v2466_v63 = vld [vmem:[%s3256_s1 + $0x198] sm:$0xff]   ;;  %v2471_v2 = vld [vmem:[%s3257_s0 + $0x120] ss:$36 sps:$4 sm:$0xff]   ;;  %v2472_v4 = vld [vmem:[%s3257_s0 + $0x128] ss:$36 sps:$4 sm:$0xff]  }
  0x18   :  { %2086 = vmatpush3.bf16.msra.mxu0 %v2417_v22  ;;  %v2473_v3 = vld [vmem:[%s3256_s1 + $0x160] sm:$0xff]   ;;  %v2479_v9 = vld [vmem:[%s3257_s0 + $0x174] ss:$36 sps:$4 sm:$0xff]   ;;  %v2483_v10 = vld [vmem:[%s3256_s1 + $0x168] sm:$0xff]  }
  0x19   :  { %2150 = vmatpush3.bf16.msra.mxu1 %v2418_v23  ;;  %2087 = vmatprep.subr.bf16.mxu0 %v2419_v24  ;;  %v2474_v5 = vld [vmem:[%s3256_s1 + $0x1e0] sm:$0xff]   ;;  %v2484_v11 = vld [vmem:[%s3256_s1 + $0x1e8] sm:$0xff]   ;;  %v2482_v15 = vld [vmem:[%s3257_s0 + $0x170] ss:$36 sps:$4 sm:$0xff]  }
  0x1a   :  { %2151 = vmatprep.subr.bf16.mxu1 %v2420_v25  ;;  %v2475_v6 = vld [vmem:[%s3256_s1 + $0x120] sm:$0xff]   ;;  %v2481_v12 = vld [vmem:[%s3257_s0 + $0x168] ss:$36 sps:$4 sm:$0xff]   ;;  %v2487_v16 = vld [vmem:[%s3257_s0 + $0x1b4] ss:$36 sps:$4 sm:$0xff]  }
  0x1b   :  { %v2476_v7 = vld [vmem:[%s3256_s1 + $0x1a0] sm:$0xff]   ;;  %v2485_v13 = vld [vmem:[%s3256_s1 + $0x128] sm:$0xff]   ;;  %v2493_v18 = vld [vmem:[%s3256_s1 + $0x170] sm:$0xff]  }
  0x1c   :  { %2088 = vmatpush3.bf16.msra.mxu0 %v2421_v26  ;;  %v2486_v14 = vld [vmem:[%s3256_s1 + $0x1a8] sm:$0xff]   ;;  %v2489_v17 = vld [vmem:[%s3257_s0 + $0x1bc] ss:$36 sps:$4 sm:$0xff]   ;;  %v2494_v19 = vld [vmem:[%s3256_s1 + $0x1f0] sm:$0xff]  }
  0x1d   :  { %2152 = vmatpush3.bf16.msra.mxu1 %v2422_v27  ;;  %2089 = vmatprep.subr.bf16.mxu0 %v2423_v28  ;;  %v2495_v20 = vld [vmem:[%s3256_s1 + $0x130] sm:$0xff]   ;;  %v2492_v23 = vld [vmem:[%s3257_s0 + $0x1b8] ss:$36 sps:$4 sm:$0xff]   ;;  %v2499_v25 = vld [vmem:[%s3257_s0 + $0x204] ss:$36 sps:$4 sm:$0xff]  }
  0x1e   :  { %2153 = vmatprep.subr.bf16.mxu1 %v2424_v29  ;;  %v2496_v21 = vld [vmem:[%s3256_s1 + $0x1b0] sm:$0xff]   ;;  %v2497_v24 = vld [vmem:[%s3257_s0 + $0x1fc] ss:$36 sps:$4 sm:$0xff]  }
  0x1f   :  { %v2491_v22 = vld [vmem:[%s3257_s0 + $0x1b0] ss:$36 sps:$4 sm:$0xff]   ;;  %v2503_v26 = vld [vmem:[%s3256_s1 + $0x178] sm:$0xff]  }
  0x20   :  { %2090 = vmatpush3.bf16.msra.mxu0 %v2425_v30  ;;  %v2504_v27 = vld [vmem:[%s3256_s1 + $0x1f8] sm:$0xff]   ;;  %v2507_v35 = vld [vmem:[%s3257_s0 + $0x10] ss:$36 sps:$4 sm:$0xff]  }
  0x21   :  { %2154 = vmatpush3.bf16.msra.mxu1 %v2426_v31  ;;  %2203 = vmatprep.subr.bf16.mxu0 %v2433_v36  ;;  %v2505_v28 = vld [vmem:[%s3256_s1 + $0x138] sm:$0xff]   ;;  %v2502_v31 = vld [vmem:[%s3257_s0 + $0x200] ss:$36 sps:$4 sm:$0xff]  }
  0x22   :  { %2267 = vmatprep.subr.bf16.mxu1 %v2434_v37  ;;  %v2506_v29 = vld [vmem:[%s3256_s1 + $0x1b8] sm:$0xff]  }
  0x23   :  { %1114 = vmatmul.mubr.bf16.vlgmr.msra.gmra.mrb[0].mxu0 %v2427_v32  ;;  %v2501_v30 = vld [vmem:[%s3257_s0 + $0x1f8] ss:$36 sps:$4 sm:$0xff]   ;;  %v2513_v32 = vld [vmem:[%s3256_s1 + $0x200] sm:$0xff]  }
  0x24   :  { %1211 = vmatmul.mubr.bf16.vlgmr.msra.gmra.mrb[0].mxu1 %v2430_v34  ;;  %2204 = vmatpush3.bf16.msra.mxu0 %v2435_v38  ;;  %v2509_v33 = vld [vmem:[%s3257_s0 + $0x14] ss:$36 sps:$4 sm:$0xff]   ;;  %v2512_v34 = vld [vmem:[%s3257_s0 + $0x1c] ss:$36 sps:$4 sm:$0xff]   ;;  %v2516_v38 = vld [vmem:[%s3257_s0 + $0x64] ss:$36 sps:$4 sm:$0xff]  }
  0x25   :  { %2268 = vmatpush3.bf16.msra.mxu1 %v2436_v39  ;;  %1121 = vmatprep.mubr.bf16.mxu0 %v2437_v40  ;;  %v2510_v36 = vld [vmem:[%s3257_s0 + $0x18] ss:$36 sps:$4 sm:$0xff]   ;;  %v2520_v39 = vld [vmem:[%s3256_s1 + $0x208] sm:$0xff]   ;;  %v2527_v40 = vld [vmem:[%s3256_s1 + $0x210] sm:$0xff]  }
  0x26   :  { %1218 = vmatprep.mubr.bf16.mxu1 %v2439_v41  ;;  %2205 = vmatprep.subr.bf16.mxu0 %v2443_v44  ;;  %v2514_v37 = vld [vmem:[%s3257_s0 + $0x5c] ss:$36 sps:$4 sm:$0xff]   ;;  %v2523_v44 = vld [vmem:[%s3257_s0 + $0xac] ss:$36 sps:$4 sm:$0xff]  }
  0x27   :  { %2269 = vmatprep.subr.bf16.mxu1 %v2444_v45  ;;  %v2518_v41 = vld [vmem:[%s3257_s0 + $0x58] ss:$36 sps:$4 sm:$0xff]  }
  0x28   :  { %2206 = vmatpush3.bf16.msra.mxu0 %v2445_v46  ;;  %v2534_v45 = vld [vmem:[%s3256_s1 + $0x218] sm:$0xff]   ;;  %v2541_v46 = vld [vmem:[%s3256_s1 + $0x220] sm:$0xff]  }
  0x29   :  { %2270 = vmatpush3.bf16.msra.mxu1 %v2446_v47  ;;  %2207 = vmatprep.subr.bf16.mxu0 %v2453_v52  ;;  %v2525_v47 = vld [vmem:[%s3257_s0 + $0xa0] ss:$36 sps:$4 sm:$0xff]   ;;  %v2532_v52 = vld [vmem:[%s3257_s0 + $0xe8] ss:$36 sps:$4 sm:$0xff]  }
  0x2a   :  { %2271 = vmatprep.subr.bf16.mxu1 %v2454_v53  ;;  %v2555_v53 = vld [vmem:[%s3256_s1 + $0x230] sm:$0xff]  }
  0x2b   :  { %1122 = vmatmul.mubr.bf16.gmra.mrb[4].mxu0 %v2441_v42  ;;  %v2519_v42 = vld [vmem:[%s3257_s0 + $0x60] ss:$36 sps:$4 sm:$0xff]  }
  0x2c   :  { %1219 = vmatmul.mubr.bf16.gmra.mrb[4].mxu1 %v2442_v43  ;;  %1129 = vmatprep.mubr.bf16.mxu0 %v2447_v48  ;;  %v2521_v43 = vld [vmem:[%s3257_s0 + $0xa4] ss:$36 sps:$4 sm:$0xff]  }
  0x2d   :  { %1226 = vmatprep.mubr.bf16.mxu1 %v2449_v49  ;;  %2208 = vmatpush3.bf16.msra.mxu0 %v2455_v54  ;;  %v2526_v48 = vld [vmem:[%s3257_s0 + $0xa8] ss:$36 sps:$4 sm:$0xff]   ;;  %v2533_v54 = vld [vmem:[%s3257_s0 + $0xf0] ss:$36 sps:$4 sm:$0xff]  }
  0x2e   :  { %2272 = vmatpush3.bf16.msra.mxu1 %v2456_v55  ;;  %2209 = vmatprep.subr.bf16.mxu0 %v2463_v60  ;;  %v2528_v49 = vld [vmem:[%s3257_s0 + $0xec] ss:$36 sps:$4 sm:$0xff]   ;;  %v2535_v55 = vld [vmem:[%s3257_s0 + $0x134] ss:$36 sps:$4 sm:$0xff]   ;;  %v2542_v60 = vld [vmem:[%s3257_s0 + $0x17c] ss:$36 sps:$4 sm:$0xff]  }
  0x2f   :  { %2273 = vmatprep.subr.bf16.mxu1 %v2464_v61  ;;  %v2544_v61 = vld [vmem:[%s3257_s0 + $0x184] ss:$36 sps:$4 sm:$0xff]  }
  0x31   :  { %2210 = vmatpush3.bf16.msra.mxu0 %v2465_v62  ;;  %v2546_v62 = vld [vmem:[%s3257_s0 + $0x178] ss:$36 sps:$4 sm:$0xff]  }
  0x32   :  { %2274 = vmatpush3.bf16.msra.mxu1 %v2466_v63  ;;  %2211 = vmatprep.subr.bf16.mxu0 %v2473_v3  ;;  %v2547_v63 = vld [vmem:[%s3257_s0 + $0x180] ss:$36 sps:$4 sm:$0xff]   ;;  %v2554_v3 = vld [vmem:[%s3257_s0 + $0x1c8] ss:$36 sps:$4 sm:$0xff]  }
  0x33   :  { %1130 = vmatmul.mubr.bf16.gmra.mrb[8].mxu0 %v2451_v50  ;;  %2275 = vmatprep.subr.bf16.mxu1 %v2474_v5  ;;  %v2530_v50 = vld [vmem:[%s3257_s0 + $0xf4] ss:$36 sps:$4 sm:$0xff]  }
  0x34   :  { %1227 = vmatmul.mubr.bf16.gmra.mrb[8].mxu1 %v2452_v51  ;;  %1137 = vmatprep.mubr.bf16.mxu0 %v2457_v56  ;;  %v2548_v51 = vld [vmem:[%s3256_s1 + $0x228] sm:$0xff]   ;;  %v2537_v56 = vld [vmem:[%s3257_s0 + $0x13c] ss:$36 sps:$4 sm:$0xff]   ;;  %v2558_v5 = vld [vmem:[%s3257_s0 + $0x214] ss:$36 sps:$4 sm:$0xff]  }
  0x35   :  { %1234 = vmatprep.mubr.bf16.mxu1 %v2459_v57  ;;  %2212 = vmatpush3.bf16.msra.mxu0 %v2475_v6  ;;  %v2562_v57 = vld [vmem:[%s3256_s1 + $0x238] sm:$0xff]   ;;  %v2560_v6 = vld [vmem:[%s3257_s0 + $0x208] ss:$36 sps:$4 sm:$0xff]  }
  0x36   :  { %2276 = vmatpush3.bf16.msra.mxu1 %v2476_v7  ;;  %2213 = vmatprep.subr.bf16.mxu0 %v2483_v10  ;;  %v2561_v7 = vld [vmem:[%s3257_s0 + $0x210] ss:$36 sps:$4 sm:$0xff]   ;;  %v2565_v10 = vld [vmem:[%s3257_s0 + $0x68] ss:$36 sps:$4 sm:$0xff]  }
  0x37   :  { %2277 = vmatprep.subr.bf16.mxu1 %v2484_v11  ;;  %v2566_v11 = vld [vmem:[%s3257_s0 + $0x188] ss:$36 sps:$4 sm:$0xff]  }
  0x39   :  { %2214 = vmatpush3.bf16.msra.mxu0 %v2485_v13  ;;  %v2568_v13 = vld [vmem:[%s3257_s0 + $0x1d0] ss:$36 sps:$4 sm:$0xff]  }
  0x3a   :  { %2278 = vmatpush3.bf16.msra.mxu1 %v2486_v14  ;;  %2215 = vmatprep.subr.bf16.mxu0 %v2493_v18  ;;  %v2569_v14 = vld [vmem:[%s3257_s0 + $0xf8] ss:$36 sps:$4 sm:$0xff]  }
  0x3b   :  { %1138 = vmatmul.mubr.bf16.gmra.mrb[12].mxu0 %v2461_v58  ;;  %2279 = vmatprep.subr.bf16.mxu1 %v2494_v19  ;;  %v2539_v58 = vld [vmem:[%s3257_s0 + $0x130] ss:$36 sps:$4 sm:$0xff]  }
  0x3c   :  { %1235 = vmatmul.mubr.bf16.gmra.mrb[12].mxu1 %v2462_v59  ;;  %1145 = vmatprep.mubr.bf16.mxu0 %v2467_v0  ;;  %v2540_v59 = vld [vmem:[%s3257_s0 + $0x138] ss:$36 sps:$4 sm:$0xff]   ;;  %v2549_v0 = vld [vmem:[%s3257_s0 + $0x1c4] ss:$36 sps:$4 sm:$0xff]  }
  0x3d   :  { %1242 = vmatprep.mubr.bf16.mxu1 %v2469_v1  ;;  %2216 = vmatpush3.bf16.msra.mxu0 %v2495_v20  ;;  %v2551_v1 = vld [vmem:[%s3257_s0 + $0x1cc] ss:$36 sps:$4 sm:$0xff]  }
  0x3e   :  { %2280 = vmatpush3.bf16.msra.mxu1 %v2496_v21  ;;  %2217 = vmatprep.subr.bf16.mxu0 %v2503_v26 }
  0x3f   :  { %2281 = vmatprep.subr.bf16.mxu1 %v2504_v27 }
  0x41   :  { %2218 = vmatpush3.bf16.msra.mxu0 %v2505_v28 }
  0x42   :  { %2282 = vmatpush3.bf16.msra.mxu1 %v2506_v29  ;;  %2347 = vmatprep.subr.bf16.mxu0 %v2513_v32 }
  0x43   :  { %1146 = vmatmul.mubr.bf16.gmra.mrb[16].mxu0 %v2471_v2  ;;  %2379 = vmatprep.subr.bf16.mxu1 %v2513_v32  ;;  %v2553_v2 = vld [vmem:[%s3257_s0 + $0x1c0] ss:$36 sps:$4 sm:$0xff]  }
  0x44   :  { %1243 = vmatmul.mubr.bf16.gmra.mrb[16].mxu1 %v2472_v4  ;;  %1153 = vmatprep.mubr.bf16.mxu0 %v2477_v8  ;;  %v2556_v4 = vld [vmem:[%s3257_s0 + $0x20c] ss:$36 sps:$4 sm:$0xff]   ;;  %v2563_v8 = vld [vmem:[%s3257_s0 + $0x20] ss:$36 sps:$4 sm:$0xff]  }
  0x45   :  { %1250 = vmatprep.mubr.bf16.mxu1 %v2479_v9  ;;  %v2564_v9 = vld [vmem:[%s3257_s0 + $0x140] ss:$36 sps:$4 sm:$0xff]  }
  0x4b   :  { %1154 = vmatmul.mubr.bf16.gmra.mrb[20].mxu0 %v2481_v12  ;;  %v2567_v12 = vld [vmem:[%s3257_s0 + $0xb0] ss:$36 sps:$4 sm:$0xff]  }
  0x4c   :  { %1251 = vmatmul.mubr.bf16.gmra.mrb[20].mxu1 %v2482_v15  ;;  %1161 = vmatprep.mubr.bf16.mxu0 %v2487_v16  ;;  %v2570_v15 = vld [vmem:[%s3257_s0 + $0x218] ss:$36 sps:$4 sm:$0xff]  }
  0x4d   :  { %1258 = vmatprep.mubr.bf16.mxu1 %v2489_v17 }
  0x53   :  { %1162 = vmatmul.mubr.bf16.gmra.mrb[24].mxu0 %v2491_v22 }
  0x54   :  { %1259 = vmatmul.mubr.bf16.gmra.mrb[24].mxu1 %v2492_v23  ;;  %1169 = vmatprep.mubr.bf16.mxu0 %v2497_v24 }
  0x55   :  { %1266 = vmatprep.mubr.bf16.mxu1 %v2499_v25 }
  0x5b   :  { %1170 = vmatmul.mubr.bf16.gmra.mrb[28].mxu0 %v2501_v30 }
  0x5c   :  { %1267 = vmatmul.mubr.bf16.gmra.mrb[28].mxu1 %v2502_v31  ;;  %1307 = vmatprep.mubr.bf16.mxu0 %v2509_v33 }
  0x5d   :  { %1404 = vmatprep.mubr.bf16.mxu1 %v2512_v34 }
  0x63   :  { %1308 = vmatmul.mubr.bf16.vlgmr.msra.gmra.mrb[32].mxu0 %v2507_v35 }
  0x64   :  { %1405 = vmatmul.mubr.bf16.vlgmr.msra.gmra.mrb[32].mxu1 %v2510_v36  ;;  %2348 = vmatpush3.bf16.msra.mxu0 %v2513_v32 }
  0x65   :  { %2387 = vmatpush3.bf16.msra.mxu1 %v2513_v32  ;;  %1315 = vmatprep.mubr.bf16.mxu0 %v2514_v37 }
  0x66   :  { %1412 = vmatprep.mubr.bf16.mxu1 %v2516_v38  ;;  %2349 = vmatprep.subr.bf16.mxu0 %v2520_v39 }
  0x67   :  { %2380 = vmatprep.subr.bf16.mxu1 %v2520_v39 }
  0x68   :  { %2350 = vmatpush3.bf16.msra.mxu0 %v2520_v39 }
  0x69   :  { %2388 = vmatpush3.bf16.msra.mxu1 %v2520_v39  ;;  %2351 = vmatprep.subr.bf16.mxu0 %v2527_v40 }
  0x6a   :  { %2381 = vmatprep.subr.bf16.mxu1 %v2527_v40 }
  0x6b   :  { %1316 = vmatmul.mubr.bf16.gmra.mrb[36].mxu0 %v2518_v41 }
  0x6c   :  { %1413 = vmatmul.mubr.bf16.gmra.mrb[36].mxu1 %v2519_v42  ;;  %1323 = vmatprep.mubr.bf16.mxu0 %v2521_v43 }
  0x6d   :  { %1420 = vmatprep.mubr.bf16.mxu1 %v2523_v44  ;;  %2352 = vmatpush3.bf16.msra.mxu0 %v2527_v40 }
  0x6e   :  { %2389 = vmatpush3.bf16.msra.mxu1 %v2527_v40  ;;  %2353 = vmatprep.subr.bf16.mxu0 %v2534_v45 }
  0x6f   :  { %2382 = vmatprep.subr.bf16.mxu1 %v2534_v45 }
  0x71   :  { %2354 = vmatpush3.bf16.msra.mxu0 %v2534_v45 }
  0x72   :  { %2390 = vmatpush3.bf16.msra.mxu1 %v2534_v45  ;;  %2355 = vmatprep.subr.bf16.mxu0 %v2541_v46 }
  0x73   :  { %1324 = vmatmul.mubr.bf16.gmra.mrb[40].mxu0 %v2525_v47  ;;  %2383 = vmatprep.subr.bf16.mxu1 %v2541_v46 }
  0x74   :  { %1421 = vmatmul.mubr.bf16.gmra.mrb[40].mxu1 %v2526_v48  ;;  %1331 = vmatprep.mubr.bf16.mxu0 %v2528_v49 }
  0x75   :  { %1428 = vmatprep.mubr.bf16.mxu1 %v2530_v50  ;;  %2356 = vmatpush3.bf16.msra.mxu0 %v2541_v46 }
  0x76   :  { %2391 = vmatpush3.bf16.msra.mxu1 %v2541_v46  ;;  %2357 = vmatprep.subr.bf16.mxu0 %v2548_v51 }
  0x77   :  { %2384 = vmatprep.subr.bf16.mxu1 %v2548_v51 }
  0x79   :  { %2358 = vmatpush3.bf16.msra.mxu0 %v2548_v51 }
  0x7a   :  { %2392 = vmatpush3.bf16.msra.mxu1 %v2548_v51  ;;  %2359 = vmatprep.subr.bf16.mxu0 %v2555_v53 }
  0x7b   :  { %1332 = vmatmul.mubr.bf16.gmra.mrb[44].mxu0 %v2532_v52  ;;  %2385 = vmatprep.subr.bf16.mxu1 %v2555_v53 }
  0x7c   :  { %1429 = vmatmul.mubr.bf16.gmra.mrb[44].mxu1 %v2533_v54  ;;  %1339 = vmatprep.mubr.bf16.mxu0 %v2535_v55 }
  0x7d   :  { %1436 = vmatprep.mubr.bf16.mxu1 %v2537_v56  ;;  %2360 = vmatpush3.bf16.msra.mxu0 %v2555_v53 }
  0x7e   :  { %2393 = vmatpush3.bf16.msra.mxu1 %v2555_v53  ;;  %2361 = vmatprep.subr.bf16.mxu0 %v2562_v57 }
  0x7f   :  { %2386 = vmatprep.subr.bf16.mxu1 %v2562_v57 }
  0x81   :  { %2362 = vmatpush3.bf16.msra.mxu0 %v2562_v57 }
  0x82   :  { %2394 = vmatpush3.bf16.msra.mxu1 %v2562_v57 }
  0x83   :  { %1340 = vmatmul.mubr.bf16.gmra.mrb[48].mxu0 %v2539_v58 }
  0x84   :  { %1437 = vmatmul.mubr.bf16.gmra.mrb[48].mxu1 %v2540_v59  ;;  %1347 = vmatprep.mubr.bf16.mxu0 %v2542_v60 }
  0x85   :  { %1444 = vmatprep.mubr.bf16.mxu1 %v2544_v61 }
  0x8b   :  { %1348 = vmatmul.mubr.bf16.gmra.mrb[52].mxu0 %v2546_v62 }
  0x8c   :  { %1445 = vmatmul.mubr.bf16.gmra.mrb[52].mxu1 %v2547_v63  ;;  %1355 = vmatprep.mubr.bf16.mxu0 %v2549_v0 }
  0x8d   :  { %1452 = vmatprep.mubr.bf16.mxu1 %v2551_v1 }
  0x93   :  { %1356 = vmatmul.mubr.bf16.gmra.mrb[56].mxu0 %v2553_v2 }
  0x94   :  { %1453 = vmatmul.mubr.bf16.gmra.mrb[56].mxu1 %v2554_v3  ;;  %1363 = vmatprep.mubr.bf16.mxu0 %v2556_v4 }
  0x95   :  { %1460 = vmatprep.mubr.bf16.mxu1 %v2558_v5 }
  0x9b   :  { %1364 = vmatmul.mubr.bf16.gmra.mrb[60].mxu0 %v2560_v6 }
  0x9c   :  { %1461 = vmatmul.mubr.bf16.gmra.mrb[60].mxu1 %v2561_v7  ;;  %2363 = vmatprep.mubr.bf16.mxu0 %v2563_v8 }
  0x9d   :  { %2371 = vmatprep.mubr.bf16.mxu1 %v2564_v9 }
  0xa3   :  { %2364 = vmatmul.mubr.bf16.vlgmr.msra.gmra.mrb[64].mxu0 %v2565_v10 }
  0xa4   :  { %2372 = vmatmul.mubr.bf16.vlgmr.msra.gmra.mrb[64].mxu1 %v2566_v11  ;;  %2367 = vmatprep.mubr.bf16.mxu0 %v2567_v12 }
  0xa5   :  { %2375 = vmatprep.mubr.bf16.mxu1 %v2568_v13 }
  0xab   :  { %2368 = vmatmul.mubr.bf16.gmra.mrb[68].mxu0 %v2569_v14 }
  0xac   :  { %2376 = vmatmul.mubr.bf16.gmra.mrb[68].mxu1 %v2570_v15 }
  0xf6   :  { %v2091_v16 = vpop.f32.mrb[0].mxu0 }
  0xf7   :  { %v2155_v17 = vpop.f32.mrb[0].mxu1  ;;  %v2092_v18 = vpop.f32.mrb[1].mxu0 }
  0xf8   :  { %v2093_v19 = vadd.f32 %v2092_v18, %v2091_v16  ;;  %v2156_v20 = vpop.f32.mrb[1].mxu1  ;;  %v2094_v21 = vpop.f32.mrb[2].mxu0 }
  0xf9   :  { %v2157_v22 = vadd.f32 %v2156_v20, %v2155_v17  ;;  %v2158_v23 = vpop.f32.mrb[2].mxu1  ;;  %v2095_v24 = vpop.f32.mrb[3].mxu0 }
  0xfa   :  { %v2096_v25 = vadd.f32 %v2095_v24, %v2094_v21  ;;  %v2159_v26 = vpop.f32.mrb[3].mxu1 }
  0xfb   :  { %v3033_v27 = vadd.f32 %v2157_v22, %v2093_v19  ;;  %v2160_v28 = vadd.f32 %v2159_v26, %v2158_v23 }
  0xfd   :  { %v3035_v29 = vadd.f32 %v2160_v28, %v2096_v25 }
  0xfe   :  { %v2097_v30 = vpop.f32.mrb[4].mxu0 }
  0xff   :  { %v2161_v31 = vpop.f32.mrb[4].mxu1  ;;  %v2098_v32 = vpop.f32.mrb[5].mxu0 }
 0x100   :  { %v2099_v33 = vadd.f32 %v2098_v32, %v2097_v30  ;;  %v2162_v34 = vpop.f32.mrb[5].mxu1  ;;  %v2100_v35 = vpop.f32.mrb[6].mxu0 }
 0x101   :  { %v2163_v36 = vadd.f32 %v2162_v34, %v2161_v31  ;;  %v2164_v37 = vpop.f32.mrb[6].mxu1  ;;  %v2101_v38 = vpop.f32.mrb[7].mxu0 }
 0x102   :  { %v2102_v39 = vadd.f32 %v2101_v38, %v2100_v35  ;;  %v2165_v40 = vpop.f32.mrb[7].mxu1 }
 0x103   :  { %v3037_v41 = vadd.f32 %v2163_v36, %v2099_v33  ;;  %v2166_v42 = vadd.f32 %v2165_v40, %v2164_v37 }
 0x105   :  { %v3039_v43 = vadd.f32 %v2166_v42, %v2102_v39 }
 0x106   :  { %v2103_v44 = vpop.f32.mrb[8].mxu0 }
 0x107   :  { %v2167_v45 = vpop.f32.mrb[8].mxu1  ;;  %v2104_v46 = vpop.f32.mrb[9].mxu0 }
 0x108   :  { %v2105_v47 = vadd.f32 %v2104_v46, %v2103_v44  ;;  %v2168_v48 = vpop.f32.mrb[9].mxu1  ;;  %v2106_v49 = vpop.f32.mrb[10].mxu0 }
 0x109   :  { %v2169_v50 = vadd.f32 %v2168_v48, %v2167_v45  ;;  %v2170_v51 = vpop.f32.mrb[10].mxu1  ;;  %v2107_v52 = vpop.f32.mrb[11].mxu0 }
 0x10a   :  { %v2108_v53 = vadd.f32 %v2107_v52, %v2106_v49  ;;  %v2171_v54 = vpop.f32.mrb[11].mxu1 }
 0x10b   :  { %v3041_v55 = vadd.f32 %v2169_v50, %v2105_v47  ;;  %v2172_v56 = vadd.f32 %v2171_v54, %v2170_v51 }
 0x10d   :  { %v3043_v57 = vadd.f32 %v2172_v56, %v2108_v53 }
 0x10e   :  { %v2109_v58 = vpop.f32.mrb[12].mxu0 }
 0x10f   :  { %v2173_v59 = vpop.f32.mrb[12].mxu1  ;;  %v2110_v60 = vpop.f32.mrb[13].mxu0 }
 0x110   :  { %v2111_v61 = vadd.f32 %v2110_v60, %v2109_v58  ;;  %v2174_v62 = vpop.f32.mrb[13].mxu1  ;;  %v2112_v63 = vpop.f32.mrb[14].mxu0 }
 0x111   :  { %v2175_v0 = vadd.f32 %v2174_v62, %v2173_v59  ;;  %v2176_v1 = vpop.f32.mrb[14].mxu1  ;;  %v2113_v2 = vpop.f32.mrb[15].mxu0 }
 0x112   :  { %v2114_v3 = vadd.f32 %v2113_v2, %v2112_v63  ;;  %v2177_v4 = vpop.f32.mrb[15].mxu1 }
 0x113   :  { %v3045_v5 = vadd.f32 %v2175_v0, %v2111_v61  ;;  %v2178_v6 = vadd.f32 %v2177_v4, %v2176_v1 }
 0x115   :  { %v3047_v7 = vadd.f32 %v2178_v6, %v2114_v3 }
 0x116   :  { %v2115_v8 = vpop.f32.mrb[16].mxu0 }
 0x117   :  { %v2179_v9 = vpop.f32.mrb[16].mxu1  ;;  %v2116_v10 = vpop.f32.mrb[17].mxu0 }
 0x118   :  { %v2117_v11 = vadd.f32 %v2116_v10, %v2115_v8  ;;  %v2180_v12 = vpop.f32.mrb[17].mxu1  ;;  %v2118_v13 = vpop.f32.mrb[18].mxu0 }
 0x119   :  { %v2181_v14 = vadd.f32 %v2180_v12, %v2179_v9  ;;  %v2182_v15 = vpop.f32.mrb[18].mxu1  ;;  %v2119_v16 = vpop.f32.mrb[19].mxu0 }
 0x11a   :  { %v2120_v17 = vadd.f32 %v2119_v16, %v2118_v13  ;;  %v2183_v18 = vpop.f32.mrb[19].mxu1 }
 0x11b   :  { %v3049_v19 = vadd.f32 %v2181_v14, %v2117_v11  ;;  %v2184_v20 = vadd.f32 %v2183_v18, %v2182_v15 }
 0x11d   :  { %v3051_v21 = vadd.f32 %v2184_v20, %v2120_v17 }
 0x11e   :  { %v2121_v22 = vpop.f32.mrb[20].mxu0 }
 0x11f   :  { %v2185_v23 = vpop.f32.mrb[20].mxu1  ;;  %v2122_v24 = vpop.f32.mrb[21].mxu0 }
 0x120   :  { %v2123_v25 = vadd.f32 %v2122_v24, %v2121_v22  ;;  %v2186_v26 = vpop.f32.mrb[21].mxu1  ;;  %v2124_v28 = vpop.f32.mrb[22].mxu0 }
 0x121   :  { %v2187_v30 = vadd.f32 %v2186_v26, %v2185_v23  ;;  %v2188_v31 = vpop.f32.mrb[22].mxu1  ;;  %v2125_v32 = vpop.f32.mrb[23].mxu0 }
 0x122   :  { %v2126_v33 = vadd.f32 %v2125_v32, %v2124_v28  ;;  %v2189_v34 = vpop.f32.mrb[23].mxu1 }
 0x123   :  { %v3053_v35 = vadd.f32 %v2187_v30, %v2123_v25  ;;  %v2190_v36 = vadd.f32 %v2189_v34, %v2188_v31 }
 0x125   :  { %v3055_v37 = vadd.f32 %v2190_v36, %v2126_v33 }
 0x126   :  { %v2127_v38 = vpop.f32.mrb[24].mxu0 }
 0x127   :  { %v2191_v39 = vpop.f32.mrb[24].mxu1  ;;  %v2128_v40 = vpop.f32.mrb[25].mxu0 }
 0x128   :  { %v2129_v42 = vadd.f32 %v2128_v40, %v2127_v38  ;;  %v2192_v44 = vpop.f32.mrb[25].mxu1  ;;  %v2130_v45 = vpop.f32.mrb[26].mxu0 }
 0x129   :  { %v2193_v46 = vadd.f32 %v2192_v44, %v2191_v39  ;;  %v2194_v47 = vpop.f32.mrb[26].mxu1  ;;  %v2131_v48 = vpop.f32.mrb[27].mxu0 }
 0x12a   :  { %v2132_v49 = vadd.f32 %v2131_v48, %v2130_v45  ;;  %v2195_v50 = vpop.f32.mrb[27].mxu1 }
 0x12b   :  { %v3057_v51 = vadd.f32 %v2193_v46, %v2129_v42  ;;  %v2196_v52 = vadd.f32 %v2195_v50, %v2194_v47 }
 0x12d   :  { %v3059_v53 = vadd.f32 %v2196_v52, %v2132_v49 }
 0x12e   :  { %v2133_v54 = vpop.f32.mrb[28].mxu0 }
 0x12f   :  { %v2197_v56 = vpop.f32.mrb[28].mxu1  ;;  %v2134_v58 = vpop.f32.mrb[29].mxu0 }
 0x130   :  { %v2135_v59 = vadd.f32 %v2134_v58, %v2133_v54  ;;  %v2198_v60 = vpop.f32.mrb[29].mxu1  ;;  %v2136_v61 = vpop.f32.mrb[30].mxu0 }
 0x131   :  { %v2199_v62 = vadd.f32 %v2198_v60, %v2197_v56  ;;  %v2200_v63 = vpop.f32.mrb[30].mxu1  ;;  %v2137_v0 = vpop.f32.mrb[31].mxu0 }
 0x132   :  { %v2138_v1 = vadd.f32 %v2137_v0, %v2136_v61  ;;  %v2201_v2 = vpop.f32.mrb[31].mxu1 }
 0x133   :  { %v3061_v3 = vadd.f32 %v2199_v62, %v2135_v59  ;;  %v2202_v4 = vadd.f32 %v2201_v2, %v2200_v63 }
 0x135   :  { %v3063_v6 = vadd.f32 %v2202_v4, %v2138_v1 }
 0x136   :  { %v2219_v8 = vpop.f32.mrb[32].mxu0 }
 0x137   :  { %v2283_v9 = vpop.f32.mrb[32].mxu1  ;;  %v2220_v10 = vpop.f32.mrb[33].mxu0 }
 0x138   :  { %v2221_v11 = vadd.f32 %v2220_v10, %v2219_v8  ;;  %v2284_v12 = vpop.f32.mrb[33].mxu1  ;;  %v2222_v13 = vpop.f32.mrb[34].mxu0 }
 0x139   :  { %v2285_v14 = vadd.f32 %v2284_v12, %v2283_v9  ;;  %v2286_v15 = vpop.f32.mrb[34].mxu1  ;;  %v2223_v16 = vpop.f32.mrb[35].mxu0 }
 0x13a   :  { %v1310_v17 = vadd.f32 %v2221_v11, %v3033_v27  ;;  %v2224_v18 = vadd.f32 %v2223_v16, %v2222_v13  ;;  %v2287_v20 = vpop.f32.mrb[35].mxu1 }
 0x13b   :  { %v2288_v22 = vadd.f32 %v2287_v20, %v2286_v15 }
 0x13c   :  { %v1313_v23 = vadd.f32 %v2224_v18, %v3035_v29  ;;  %v3067_v24 = vadd.f32 %v2285_v14, %v1310_v17 }
 0x13e   :  { %v2225_v25 = vpop.f32.mrb[36].mxu0  ;;  %v3069_v26 = vadd.f32 %v2288_v22, %v1313_v23 }
 0x13f   :  { %v2289_v28 = vpop.f32.mrb[36].mxu1  ;;  %v2226_v30 = vpop.f32.mrb[37].mxu0 }
 0x140   :  { %v2227_v31 = vadd.f32 %v2226_v30, %v2225_v25  ;;  %v2290_v32 = vpop.f32.mrb[37].mxu1  ;;  %v2228_v33 = vpop.f32.mrb[38].mxu0 }
 0x141   :  { %v2291_v34 = vadd.f32 %v2290_v32, %v2289_v28  ;;  %v2292_v36 = vpop.f32.mrb[38].mxu1  ;;  %v2229_v38 = vpop.f32.mrb[39].mxu0 }
 0x142   :  { %v1318_v27 = vadd.f32 %v2227_v31, %v3037_v41  ;;  %v2230_v39 = vadd.f32 %v2229_v38, %v2228_v33  ;;  %v2293_v40 = vpop.f32.mrb[39].mxu1 }
 0x143   :  { %v2294_v42 = vadd.f32 %v2293_v40, %v2292_v36 }
 0x144   :  { %v1321_v29 = vadd.f32 %v2230_v39, %v3039_v43  ;;  %v3073_v44 = vadd.f32 %v2291_v34, %v1318_v27 }
 0x146   :  { %v2231_v45 = vpop.f32.mrb[40].mxu0  ;;  %v3075_v46 = vadd.f32 %v2294_v42, %v1321_v29 }
 0x147   :  { %v2295_v47 = vpop.f32.mrb[40].mxu1  ;;  %v2232_v48 = vpop.f32.mrb[41].mxu0 }
 0x148   :  { %v2233_v49 = vadd.f32 %v2232_v48, %v2231_v45  ;;  %v2296_v50 = vpop.f32.mrb[41].mxu1  ;;  %v2234_v52 = vpop.f32.mrb[42].mxu0 }
 0x149   :  { %v2297_v54 = vadd.f32 %v2296_v50, %v2295_v47  ;;  %v2298_v56 = vpop.f32.mrb[42].mxu1  ;;  %v2235_v58 = vpop.f32.mrb[43].mxu0 }
 0x14a   :  { %v1326_v41 = vadd.f32 %v2233_v49, %v3041_v55  ;;  %v2236_v59 = vadd.f32 %v2235_v58, %v2234_v52  ;;  %v2299_v60 = vpop.f32.mrb[43].mxu1 }
 0x14b   :  { %v2300_v61 = vadd.f32 %v2299_v60, %v2298_v56 }
 0x14c   :  { %v1329_v43 = vadd.f32 %v2236_v59, %v3043_v57  ;;  %v3079_v62 = vadd.f32 %v2297_v54, %v1326_v41 }
 0x14e   :  { %v2237_v63 = vpop.f32.mrb[44].mxu0  ;;  %v3081_v0 = vadd.f32 %v2300_v61, %v1329_v43 }
 0x14f   :  { %v2301_v1 = vpop.f32.mrb[44].mxu1  ;;  %v2238_v2 = vpop.f32.mrb[45].mxu0 }
 0x150   :  { %v2239_v4 = vadd.f32 %v2238_v2, %v2237_v63  ;;  %v2302_v8 = vpop.f32.mrb[45].mxu1  ;;  %v2240_v9 = vpop.f32.mrb[46].mxu0 }
 0x151   :  { %v2303_v10 = vadd.f32 %v2302_v8, %v2301_v1  ;;  %v2304_v11 = vpop.f32.mrb[46].mxu1  ;;  %v2241_v12 = vpop.f32.mrb[47].mxu0 }
 0x152   :  { %v1334_v55 = vadd.f32 %v2239_v4, %v3045_v5  ;;  %v2242_v13 = vadd.f32 %v2241_v12, %v2240_v9  ;;  %v2305_v14 = vpop.f32.mrb[47].mxu1 }
 0x153   :  { %v2306_v15 = vadd.f32 %v2305_v14, %v2304_v11 }
 0x154   :  { %v1337_v57 = vadd.f32 %v2242_v13, %v3047_v7  ;;  %v3085_v16 = vadd.f32 %v2303_v10, %v1334_v55 }
 0x156   :  { %v2243_v17 = vpop.f32.mrb[48].mxu0  ;;  %v3087_v18 = vadd.f32 %v2306_v15, %v1337_v57 }
 0x157   :  { %v2307_v20 = vpop.f32.mrb[48].mxu1  ;;  %v2244_v22 = vpop.f32.mrb[49].mxu0 }
 0x158   :  { %v2245_v23 = vadd.f32 %v2244_v22, %v2243_v17  ;;  %v2308_v25 = vpop.f32.mrb[49].mxu1  ;;  %v2246_v28 = vpop.f32.mrb[50].mxu0 }
 0x159   :  { %v2309_v30 = vadd.f32 %v2308_v25, %v2307_v20  ;;  %v2310_v31 = vpop.f32.mrb[50].mxu1  ;;  %v2247_v32 = vpop.f32.mrb[51].mxu0 }
 0x15a   :  { %v1342_v5 = vadd.f32 %v2245_v23, %v3049_v19  ;;  %v2248_v33 = vadd.f32 %v2247_v32, %v2246_v28  ;;  %v2311_v34 = vpop.f32.mrb[51].mxu1  ;;  %v3119_v32 = vld [vmem:[%s3258_s4] sm:$0xff]  }
 0x15b   :  { %v2312_v36 = vadd.f32 %v2311_v34, %v2310_v31  ;;  %v3114_v31 = vld [vmem:[%s3258_s4 + $0x28] sm:$0xff]   ;;  %v3130_v34 = vld [vmem:[%s3258_s4 + $0x18] sm:$0xff]  }
 0x15c   :  { %v1345_v7 = vadd.f32 %v2248_v33, %v3051_v21  ;;  %v3091_v38 = vadd.f32 %v2309_v30, %v1342_v5 }
 0x15e   :  { %v2249_v27 = vpop.f32.mrb[52].mxu0  ;;  %v3093_v39 = vadd.f32 %v2312_v36, %v1345_v7 }
 0x15f   :  { %v2313_v40 = vpop.f32.mrb[52].mxu1  ;;  %v2250_v42 = vpop.f32.mrb[53].mxu0 }
 0x160   :  { %v2251_v29 = vadd.f32 %v2250_v42, %v2249_v27  ;;  %v2314_v45 = vpop.f32.mrb[53].mxu1  ;;  %v2252_v47 = vpop.f32.mrb[54].mxu0  ;;  %v2011_v27 = vunpack.c.l.bf16 %v3114_v31  ;;  %v3140_v42 = vld [vmem:[%s3258_s4 + $0x38] sm:$0xff]  }
 0x161   :  { %v2315_v48 = vadd.f32 %v2314_v45, %v2313_v40  ;;  %v2316_v49 = vpop.f32.mrb[54].mxu1  ;;  %v2253_v50 = vpop.f32.mrb[55].mxu0  ;;  %v1991_v40 = vunpack.c.l.bf16 %v3119_v32  ;;  %v3150_v45 = vld [vmem:[%s3259_s2] ss:$0 sm:$0xff] }
 0x162   :  { %v1350_v19 = vadd.f32 %v2251_v29, %v3053_v35  ;;  %v2254_v52 = vadd.f32 %v2253_v50, %v2252_v47  ;;  %v2317_v54 = vpop.f32.mrb[55].mxu1  ;;  %v3158_v50 = vld [vmem:[%s3258_s4 + $0x30] sm:$0xff]  }
 0x163   :  { %v2318_v56 = vadd.f32 %v2317_v54, %v2316_v49  ;;  %v2012_v49 = vunpack.c.h.bf16 %v3114_v31 }
 0x164   :  { %v1353_v21 = vadd.f32 %v2254_v52, %v3055_v37  ;;  %v1447_v58 = vadd.f32 %v2315_v48, %v1350_v19 }
 0x166   :  { %v2255_v41 = vpop.f32.mrb[56].mxu0  ;;  %v3097_v59 = vadd.f32 %v2318_v56, %v1353_v21  ;;  %v1992_v21 = vunpack.c.h.bf16 %v3119_v32 }
 0x167   :  { %v2319_v60 = vpop.f32.mrb[56].mxu1  ;;  %v2256_v61 = vpop.f32.mrb[57].mxu0 }
 0x168   :  { %v2257_v43 = vadd.f32 %v2256_v61, %v2255_v41  ;;  %v2320_v63 = vpop.f32.mrb[57].mxu1  ;;  %v2258_v1 = vpop.f32.mrb[58].mxu0  ;;  %v3169_v61 = vld [vmem:[%s3260_s3] ss:$0 sm:$0xff] }
 0x169   :  { %v2321_v2 = vadd.f32 %v2320_v63, %v2319_v60  ;;  %v2322_v4 = vpop.f32.mrb[58].mxu1  ;;  %v2259_v8 = vpop.f32.mrb[59].mxu0  ;;  %v2003_v60 = vunpack.c.l.bf16 %v3130_v34 }
 0x16a   :  { %v1358_v9 = vadd.f32 %v2257_v43, %v3057_v51  ;;  %v2260_v35 = vadd.f32 %v2259_v8, %v2258_v1  ;;  %v2323_v10 = vpop.f32.mrb[59].mxu1 }
 0x16b   :  { %v2324_v11 = vadd.f32 %v2323_v10, %v2322_v4 }
 0x16c   :  { %v1361_v12 = vadd.f32 %v2260_v35, %v3059_v53  ;;  %v3101_v37 = vadd.f32 %v2321_v2, %v1358_v9  ;;  %v3109_v53 = vld [vmem:[%s3258_s4 + $0x8] sm:$0xff]  }
 0x16d   :  { %v1995_v7 = vunpack.c.l.bf16 %v3109_v53  ;;  %v1996_v48 = vunpack.c.h.bf16 %v3109_v53 }
 0x16e   :  { %v2261_v55 = vpop.f32.mrb[60].mxu0  ;;  %v3103_v13 = vadd.f32 %v2324_v11, %v1361_v12  ;;  %v2015_v12 = vunpack.c.l.bf16 %v3158_v50 }
 0x16f   :  { %v2325_v14 = vpop.f32.mrb[60].mxu1  ;;  %v2262_v15 = vpop.f32.mrb[61].mxu0 }
 0x170   :  { %v2263_v57 = vadd.f32 %v2262_v15, %v2261_v55  ;;  %v2326_v17 = vpop.f32.mrb[61].mxu1  ;;  %v2264_v20 = vpop.f32.mrb[62].mxu0 }
 0x171   :  { %v2327_v22 = vadd.f32 %v2326_v17, %v2325_v14  ;;  %v2328_v23 = vpop.f32.mrb[62].mxu1  ;;  %v2265_v25 = vpop.f32.mrb[63].mxu0 }
 0x172   :  { %v1366_v51 = vadd.f32 %v2263_v57, %v3061_v3  ;;  %v2266_v28 = vadd.f32 %v2265_v25, %v2264_v20  ;;  %v2329_v30 = vpop.f32.mrb[63].mxu1  ;;  %v3124_v3 = vld [vmem:[%s3258_s4 + $0x20] sm:$0xff]  }
 0x173   :  { %v2330_v5 = vadd.f32 %v2329_v30, %v2328_v23  ;;  %v2007_v47 = vunpack.c.l.bf16 %v3124_v3  ;;  %v2008_v41 = vunpack.c.h.bf16 %v3124_v3 }
 0x174   :  { %v1369_v33 = vadd.f32 %v2266_v28, %v3063_v6  ;;  %v3132_v36 = vadd.f32 %v2327_v22, %v1366_v51  ;;  %v3145_v6 = vld [vmem:[%s3258_s4 + $0x10] sm:$0xff]  }
 0x175   :  { %v1999_v4 = vunpack.c.l.bf16 %v3145_v6 }
 0x176   :  { %v2365_v29 = vpop.f32.mrb[64].mxu0  ;;  %v3160_v19 = vadd.f32 %v2330_v5, %v1369_v33 }
 0x177   :  { %v1512_v52 = vadd.f32 %v2365_v29, %v3073_v44  ;;  %v2373_v54 = vpop.f32.mrb[64].mxu1  ;;  %v1503_v56 = vpop.f32.mrb[65].mxu0  ;;  %v2019_v44 = vunpack.c.l.bf16 %v3140_v42 }
 0x178   :  { %v1544_v43 = vadd.f32 %v2373_v54, %v1447_v58  ;;  %v1504_v63 = vadd.f32 %v1503_v56, %v3067_v24  ;;  %v1535_v1 = vpop.f32.mrb[65].mxu1  ;;  %v2366_v2 = vpop.f32.mrb[66].mxu0 }
 0x179   :  { %v1626_v8 = vmul.f32 %v3150_v45, %v1512_v52  ;;  %v1536_v9 = vadd.f32 %v1535_v1, %v3091_v38  ;;  %v1515_v35 = vadd.f32 %v2366_v2, %v3075_v46  ;;  %v2374_v10 = vpop.f32.mrb[66].mxu1  ;;  %v1506_v11 = vpop.f32.mrb[67].mxu0 }
 0x17a   :  { %v1634_v58 = vmul.f32 %v3150_v45, %v1544_v43  ;;  %v1624_v24 = vmul.f32 %v3150_v45, %v1504_v63  ;;  %v1547_v55 = vadd.f32 %v2374_v10, %v3097_v59  ;;  %v1507_v14 = vadd.f32 %v1506_v11, %v3069_v26  ;;  %v1538_v15 = vpop.f32.mrb[67].mxu1 }
 0x17b   :  { %v1649_v57 = vadd.f32 %v3169_v61, %v1626_v8  ;;  %v1632_v17 = vmul.f32 %v3150_v45, %v1536_v9  ;;  %v1627_v38 = vmul.f32 %v3150_v45, %v1515_v35  ;;  %v1539_v46 = vadd.f32 %v1538_v15, %v3093_v39 }
 0x17c   :  { %v1657_v20 = vadd.f32 %v3169_v61, %v1634_v58  ;;  %v1647_v22 = vadd.f32 %v3169_v61, %v1624_v24  ;;  %v1635_v23 = vmul.f32 %v3150_v45, %v1547_v55  ;;  %v1625_v25 = vmul.f32 %v3150_v45, %v1507_v14 }
 0x17d   :  { %v1697_v59 = vadd.f32 %v1995_v7, %v1649_v57  ;;  %v1655_v26 = vadd.f32 %v3169_v61, %v1632_v17  ;;  %v1650_v51 = vadd.f32 %v3169_v61, %v1627_v38  ;;  %v1633_v28 = vmul.f32 %v3150_v45, %v1539_v46 }
 0x17e   :  { %v1705_v30 = vadd.f32 %v2011_v27, %v1657_v20  ;;  %v1695_v53 = vadd.f32 %v1991_v40, %v1647_v22  ;;  %v1658_v31 = vadd.f32 %v3169_v61, %v1635_v23  ;;  %v1648_v39 = vadd.f32 %v3169_v61, %v1625_v25  ;;  %v2369_v32 = vpop.f32.mrb[68].mxu0 }
 0x17f   :  { %v1713_v5 = vmax.f32 %v1697_v59, 0.0  ;;  %v1703_v3 = vadd.f32 %v2007_v47, %v1655_v26  ;;  %v1698_v33 = vadd.f32 %v1996_v48, %v1650_v51  ;;  %v1656_v29 = vadd.f32 %v3169_v61, %v1633_v28  ;;  %v2377_v52 = vpop.f32.mrb[68].mxu1  ;;  %v1519_v7 = vpop.f32.mrb[69].mxu0 }
 0x180   :  { %v1721_v54 = vmax.f32 %v1705_v30, 0.0  ;;  %v1711_v56 = vmax.f32 %v1695_v53, 0.0  ;;  %v1706_v43 = vadd.f32 %v2012_v49, %v1658_v31  ;;  %v1696_v63 = vadd.f32 %v1992_v21, %v1648_v39  ;;  %v1551_v1 = vpop.f32.mrb[69].mxu1  ;;  %v2370_v2 = vpop.f32.mrb[70].mxu0 }
 0x181   :  { %v1719_v27 = vmax.f32 %v1703_v3, 0.0  ;;  %v1714_v40 = vmax.f32 %v1698_v33, 0.0  ;;  %v1704_v8 = vadd.f32 %v2008_v41, %v1656_v29  ;;  %v1528_v9 = vadd.f32 %v2369_v32, %v3085_v16  ;;  %v2378_v35 = vpop.f32.mrb[70].mxu1  ;;  %v1522_v10 = vpop.f32.mrb[71].mxu0 }
 0x182   :  { %v1722_v11 = vmax.f32 %v1706_v43, 0.0  ;;  %v1712_v47 = vmax.f32 %v1696_v63, 0.0  ;;  %v1560_v48 = vadd.f32 %v2377_v52, %v3132_v36  ;;  %v1520_v58 = vadd.f32 %v1519_v7, %v3079_v62  ;;  %v1554_v24 = vpop.f32.mrb[71].mxu1 }
 0x183   :  { %v2029_v55 = vpack.c.bf16 %v1714_v40, %v1713_v5  ;;  %v1720_v14 = vmax.f32 %v1704_v8, 0.0  ;;  %v1630_v49 = vmul.f32 %v3150_v45, %v1528_v9  ;;  %v1552_v21 = vadd.f32 %v1551_v1, %v3101_v37 }
 0x184   :  { %v2049_v15 = vpack.c.bf16 %v1722_v11, %v1721_v54  ;;  %v2024_v57 = vpack.c.bf16 %v1712_v47, %v1711_v56  ;;  %v1638_v41 = vmul.f32 %v3150_v45, %v1560_v48  ;;  %v1628_v16 = vmul.f32 %v3150_v45, %v1520_v58 }
 0x185   :  { %2068 = vst [vmem:[%s3261_s5 + $0x8] sm:$0xff] %v2029_v55   ;;  %v2044_v36 = vpack.c.bf16 %v1720_v14, %v1719_v27  ;;  %v1653_v62 = vadd.f32 %v3169_v61, %v1630_v49  ;;  %v1636_v17 = vmul.f32 %v3150_v45, %v1552_v21  ;;  %v1531_v38 = vadd.f32 %v2370_v2, %v3087_v18 }
 0x186   :  { %2072 = vst [vmem:[%s3261_s5 + $0x28] sm:$0xff] %v2049_v15   ;;  %2025 = vst [vmem:[%s3261_s5] sm:$0xff] %v2024_v57   ;;  %v1661_v37 = vadd.f32 %v3169_v61, %v1638_v41  ;;  %v1651_v46 = vadd.f32 %v3169_v61, %v1628_v16  ;;  %v1563_v20 = vadd.f32 %v2378_v35, %v3160_v19  ;;  %v2004_v25 = vunpack.c.h.bf16 %v3130_v34 }
 0x187   :  { %v1523_v22 = vadd.f32 %v1522_v10, %v3081_v0  ;;  %2071 = vst [vmem:[%s3261_s5 + $0x20] sm:$0xff] %v2044_v36   ;;  %v1659_v18 = vadd.f32 %v3169_v61, %v1636_v17  ;;  %v1631_v23 = vmul.f32 %v3150_v45, %v1531_v38  ;;  %v1555_v59 = vadd.f32 %v1554_v24, %v3103_v13 }
 0x188   :  { %v1639_v26 = vmul.f32 %v3150_v45, %v1563_v20  ;;  %v2020_v51 = vunpack.c.h.bf16 %v3140_v42  ;;  %v2000_v0 = vunpack.c.h.bf16 %v3145_v6  ;;  %v1701_v28 = vadd.f32 %v2003_v60, %v1653_v62 }
 0x189   :  { %v1629_v19 = vmul.f32 %v3150_v45, %v1523_v22  ;;  %v1654_v30 = vadd.f32 %v3169_v61, %v1631_v23  ;;  %v1637_v53 = vmul.f32 %v3150_v45, %v1555_v59  ;;  %v2016_v31 = vunpack.c.h.bf16 %v3158_v50 }
 0x18a   :  { %v1709_v13 = vadd.f32 %v2019_v44, %v1661_v37  ;;  %v1699_v39 = vadd.f32 %v1999_v4, %v1651_v46  ;;  %v1662_v32 = vadd.f32 %v3169_v61, %v1639_v26  ;;  %v1707_v34 = vadd.f32 %v2015_v12, %v1659_v18 }
 0x18b   :  { %v1652_v5 = vadd.f32 %v3169_v61, %v1629_v19  ;;  %v1702_v60 = vadd.f32 %v2004_v25, %v1654_v30  ;;  %v1660_v3 = vadd.f32 %v3169_v61, %v1637_v53  ;;  %v1717_v29 = vmax.f32 %v1701_v28, 0.0 }
 0x18c   :  { %v1710_v33 = vadd.f32 %v2020_v51, %v1662_v32  ;;  %v1725_v42 = vmax.f32 %v1709_v13, 0.0  ;;  %v1715_v44 = vmax.f32 %v1699_v39, 0.0  ;;  %v1723_v4 = vmax.f32 %v1707_v34, 0.0 }
 0x18d   :  { %v1700_v45 = vadd.f32 %v2000_v0, %v1652_v5  ;;  %v1718_v52 = vmax.f32 %v1702_v60, 0.0  ;;  %v1708_v7 = vadd.f32 %v2016_v31, %v1660_v3 }
 0x18e   :  { %v1726_v54 = vmax.f32 %v1710_v33, 0.0 }
 0x18f   :  { %v1716_v6 = vmax.f32 %v1700_v45, 0.0  ;;  %v2039_v56 = vpack.c.bf16 %v1718_v52, %v1717_v29  ;;  %v1724_v43 = vmax.f32 %v1708_v7, 0.0 }
 0x190   :  { %v2059_v63 = vpack.c.bf16 %v1726_v54, %v1725_v42 }
 0x191   :  { %v2034_v1 = vpack.c.bf16 %v1716_v6, %v1715_v44  ;;  %2070 = vst [vmem:[%s3261_s5 + $0x18] sm:$0xff] %v2039_v56   ;;  %v2054_v50 = vpack.c.bf16 %v1724_v43, %v1723_v4 }
 0x192   :  { %2074 = vst [vmem:[%s3261_s5 + $0x38] sm:$0xff] %v2059_v63  }
 0x193   :  { %2069 = vst [vmem:[%s3261_s5 + $0x10] sm:$0xff] %v2034_v1   ;;  %2073 = vst [vmem:[%s3261_s5 + $0x30] sm:$0xff] %v2054_v50  }

// kernel: _lambda_.19
= control target key start
LH: loop header
LB: loop body
LE: loop exit
PB: predicated region body
PF: predicated region fallthrough
CT: control target
= control target key end

     0   :  { %s1686_s1 = inlined_call_operand.vmem [shape: bf16[1152,128], index: 1, kind: input, shape index: {}]   ;;  %s1687_s0 = inlined_call_operand.vmem [shape: bf16[32,1152], index: 0, kind: input, shape index: {}]   ;;  %s1688_s2 = inlined_call_operand.vmem [shape: f32[1,128], index: 2, kind: input, shape index: {}]   ;;  %s1689_s3 = inlined_call_operand.vmem [shape: f32[1,128], index: 3, kind: input, shape index: {}]   ;;  %s1690_s4 = inlined_call_operand.vmem [shape: bf16[32,128], index: 4, kind: output, shape index: {}]  }
   0x1   :  { %v1281_v0 = vld [vmem:[%s1686_s1 + $0x40] sm:$0xff]   ;;  %v1285_v4 = vld [vmem:[%s1686_s1 + $0x48] sm:$0xff]   ;;  %v1289_v8 = vld [vmem:[%s1686_s1 + $0x50] sm:$0xff]  }
   0x2   :  { %v1282_v1 = vld [vmem:[%s1686_s1 + $0xc0] sm:$0xff]   ;;  %1139 = vmatprep.subr.bf16.mxu0 %v1281_v0  ;;  %v1286_v5 = vld [vmem:[%s1686_s1 + $0xc8] sm:$0xff]   ;;  %v1290_v9 = vld [vmem:[%s1686_s1 + $0xd0] sm:$0xff]  }
   0x3   :  { %v1283_v2 = vld [vmem:[%s1686_s1] sm:$0xff]   ;;  %1167 = vmatprep.subr.bf16.mxu1 %v1282_v1  ;;  %v1287_v6 = vld [vmem:[%s1686_s1 + $0x8] sm:$0xff]   ;;  %v1291_v10 = vld [vmem:[%s1686_s1 + $0x10] sm:$0xff]  }
   0x4   :  { %v1284_v3 = vld [vmem:[%s1686_s1 + $0x80] sm:$0xff]   ;;  %1140 = vmatpush3.bf16.msra.mxu0 %v1283_v2  ;;  %v1288_v7 = vld [vmem:[%s1686_s1 + $0x88] sm:$0xff]   ;;  %v1292_v11 = vld [vmem:[%s1686_s1 + $0x90] sm:$0xff]  }
   0x5   :  { %1168 = vmatpush3.bf16.msra.mxu1 %v1284_v3  ;;  %1141 = vmatprep.subr.bf16.mxu0 %v1285_v4  ;;  %v1293_v12 = vld [vmem:[%s1686_s1 + $0x58] sm:$0xff]   ;;  %v1297_v16 = vld [vmem:[%s1686_s1 + $0x60] sm:$0xff]   ;;  %v1301_v20 = vld [vmem:[%s1686_s1 + $0x68] sm:$0xff]  }
   0x6   :  { %1169 = vmatprep.subr.bf16.mxu1 %v1286_v5  ;;  %v1294_v13 = vld [vmem:[%s1686_s1 + $0xd8] sm:$0xff]   ;;  %v1298_v17 = vld [vmem:[%s1686_s1 + $0xe0] sm:$0xff]   ;;  %v1302_v21 = vld [vmem:[%s1686_s1 + $0xe8] sm:$0xff]  }
   0x7   :  { %v1295_v14 = vld [vmem:[%s1686_s1 + $0x18] sm:$0xff]   ;;  %v1299_v18 = vld [vmem:[%s1686_s1 + $0x20] sm:$0xff]   ;;  %v1303_v22 = vld [vmem:[%s1686_s1 + $0x28] sm:$0xff]  }
   0x8   :  { %1142 = vmatpush3.bf16.msra.mxu0 %v1287_v6  ;;  %v1296_v15 = vld [vmem:[%s1686_s1 + $0x98] sm:$0xff]   ;;  %v1300_v19 = vld [vmem:[%s1686_s1 + $0xa0] sm:$0xff]   ;;  %v1304_v23 = vld [vmem:[%s1686_s1 + $0xa8] sm:$0xff]  }
   0x9   :  { %1170 = vmatpush3.bf16.msra.mxu1 %v1288_v7  ;;  %1143 = vmatprep.subr.bf16.mxu0 %v1289_v8  ;;  %v1305_v24 = vld [vmem:[%s1686_s1 + $0x70] sm:$0xff]   ;;  %v1309_v28 = vld [vmem:[%s1686_s1 + $0x78] sm:$0xff]   ;;  %v1313_v32 = vld [vmem:[%s1687_s0] ss:$36 sps:$4 sm:$0xff]  }
   0xa   :  { %1171 = vmatprep.subr.bf16.mxu1 %v1290_v9  ;;  %v1306_v25 = vld [vmem:[%s1686_s1 + $0xf0] sm:$0xff]   ;;  %v1310_v29 = vld [vmem:[%s1686_s1 + $0xf8] sm:$0xff]   ;;  %v1315_v33 = vld [vmem:[%s1687_s0 + $0x4] ss:$36 sps:$4 sm:$0xff]  }
   0xb   :  { %v1307_v26 = vld [vmem:[%s1686_s1 + $0x30] sm:$0xff]   ;;  %v1311_v30 = vld [vmem:[%s1686_s1 + $0x38] sm:$0xff]   ;;  %v1316_v34 = vld [vmem:[%s1687_s0 + $0x8] ss:$36 sps:$4 sm:$0xff]   ;;  %750 = vmatprep.mubr.bf16.mxu0 %v1315_v33 }
   0xc   :  { %1144 = vmatpush3.bf16.msra.mxu0 %v1291_v10  ;;  %v1308_v27 = vld [vmem:[%s1686_s1 + $0xb0] sm:$0xff]   ;;  %v1312_v31 = vld [vmem:[%s1686_s1 + $0xb8] sm:$0xff]   ;;  %v1319_v36 = vld [vmem:[%s1686_s1 + $0x140] sm:$0xff]  }
   0xd   :  { %1172 = vmatpush3.bf16.msra.mxu1 %v1292_v11  ;;  %1145 = vmatprep.subr.bf16.mxu0 %v1293_v12  ;;  %v1318_v35 = vld [vmem:[%s1687_s0 + $0xc] ss:$36 sps:$4 sm:$0xff]   ;;  %v1320_v37 = vld [vmem:[%s1686_s1 + $0x100] sm:$0xff]   ;;  %v1331_v48 = vld [vmem:[%s1686_s1 + $0x158] sm:$0xff]  }
   0xe   :  { %1173 = vmatprep.subr.bf16.mxu1 %v1294_v13  ;;  %799 = vmatprep.mubr.bf16.mxu1 %v1318_v35  ;;  %v1321_v38 = vld [vmem:[%s1686_s1 + $0x1c0] sm:$0xff]   ;;  %v1323_v40 = vld [vmem:[%s1686_s1 + $0x148] sm:$0xff]   ;;  %v1327_v44 = vld [vmem:[%s1686_s1 + $0x150] sm:$0xff]  }
   0xf   :  { %v1322_v39 = vld [vmem:[%s1686_s1 + $0x180] sm:$0xff]   ;;  %v1324_v41 = vld [vmem:[%s1686_s1 + $0x108] sm:$0xff]   ;;  %v1328_v45 = vld [vmem:[%s1686_s1 + $0x110] sm:$0xff]  }
  0x10   :  { %1146 = vmatpush3.bf16.msra.mxu0 %v1295_v14  ;;  %v1325_v42 = vld [vmem:[%s1686_s1 + $0x1c8] sm:$0xff]   ;;  %v1329_v46 = vld [vmem:[%s1686_s1 + $0x1d0] sm:$0xff]   ;;  %v1332_v49 = vld [vmem:[%s1686_s1 + $0x118] sm:$0xff]  }
  0x11   :  { %1174 = vmatpush3.bf16.msra.mxu1 %v1296_v15  ;;  %1147 = vmatprep.subr.bf16.mxu0 %v1297_v16  ;;  %v1326_v43 = vld [vmem:[%s1686_s1 + $0x188] sm:$0xff]   ;;  %v1330_v47 = vld [vmem:[%s1686_s1 + $0x190] sm:$0xff]   ;;  %v1333_v50 = vld [vmem:[%s1686_s1 + $0x1d8] sm:$0xff]  }
  0x12   :  { %1175 = vmatprep.subr.bf16.mxu1 %v1298_v17  ;;  %v1334_v51 = vld [vmem:[%s1686_s1 + $0x198] sm:$0xff]   ;;  %v1335_v52 = vld [vmem:[%s1686_s1 + $0x160] sm:$0xff]   ;;  %v1339_v56 = vld [vmem:[%s1686_s1 + $0x168] sm:$0xff]  }
  0x13   :  { %v1336_v53 = vld [vmem:[%s1686_s1 + $0x120] sm:$0xff]   ;;  %v1340_v57 = vld [vmem:[%s1687_s0 + $0x4c] ss:$36 sps:$4 sm:$0xff]   ;;  %v1342_v58 = vld [vmem:[%s1687_s0 + $0x54] ss:$36 sps:$4 sm:$0xff]  }
  0x14   :  { %1148 = vmatpush3.bf16.msra.mxu0 %v1299_v18  ;;  %v1337_v54 = vld [vmem:[%s1686_s1 + $0x1e0] sm:$0xff]   ;;  %v1344_v59 = vld [vmem:[%s1686_s1 + $0x128] sm:$0xff]   ;;  %v1346_v61 = vld [vmem:[%s1687_s0 + $0x50] ss:$36 sps:$4 sm:$0xff]  }
  0x15   :  { %1176 = vmatpush3.bf16.msra.mxu1 %v1300_v19  ;;  %1149 = vmatprep.subr.bf16.mxu0 %v1301_v20  ;;  %v1338_v55 = vld [vmem:[%s1686_s1 + $0x1a0] sm:$0xff]   ;;  %v1345_v60 = vld [vmem:[%s1687_s0 + $0x48] ss:$36 sps:$4 sm:$0xff]   ;;  %v1349_v0 = vld [vmem:[%s1686_s1 + $0x170] sm:$0xff]  }
  0x16   :  { %1177 = vmatprep.subr.bf16.mxu1 %v1302_v21  ;;  %v1347_v62 = vld [vmem:[%s1686_s1 + $0x1e8] sm:$0xff]   ;;  %v1350_v1 = vld [vmem:[%s1686_s1 + $0x130] sm:$0xff]   ;;  %v1353_v4 = vld [vmem:[%s1686_s1 + $0x178] sm:$0xff]  }
  0x17   :  { %v1348_v63 = vld [vmem:[%s1686_s1 + $0x1a8] sm:$0xff]   ;;  %v1351_v2 = vld [vmem:[%s1686_s1 + $0x1f0] sm:$0xff]   ;;  %v1354_v5 = vld [vmem:[%s1686_s1 + $0x138] sm:$0xff]  }
  0x18   :  { %1150 = vmatpush3.bf16.msra.mxu0 %v1303_v22  ;;  %v1352_v3 = vld [vmem:[%s1686_s1 + $0x1b0] sm:$0xff]   ;;  %v1355_v6 = vld [vmem:[%s1686_s1 + $0x1f8] sm:$0xff]   ;;  %v1360_v10 = vld [vmem:[%s1686_s1 + $0x200] sm:$0xff]  }
  0x19   :  { %1178 = vmatpush3.bf16.msra.mxu1 %v1304_v23  ;;  %1151 = vmatprep.subr.bf16.mxu0 %v1305_v24  ;;  %v1356_v7 = vld [vmem:[%s1687_s0 + $0x10] ss:$36 sps:$4 sm:$0xff]   ;;  %v1359_v9 = vld [vmem:[%s1686_s1 + $0x1b8] sm:$0xff]   ;;  %v1364_v13 = vld [vmem:[%s1686_s1 + $0x208] sm:$0xff]  }
  0x1a   :  { %1179 = vmatprep.subr.bf16.mxu1 %v1306_v25  ;;  %v1358_v8 = vld [vmem:[%s1687_s0 + $0x14] ss:$36 sps:$4 sm:$0xff]   ;;  %v1363_v12 = vld [vmem:[%s1687_s0 + $0x1c] ss:$36 sps:$4 sm:$0xff]   ;;  %v1369_v17 = vld [vmem:[%s1687_s0 + $0x64] ss:$36 sps:$4 sm:$0xff]  }
  0x1b   :  { %v1361_v11 = vld [vmem:[%s1687_s0 + $0x18] ss:$36 sps:$4 sm:$0xff]   ;;  %v1368_v16 = vld [vmem:[%s1686_s1 + $0x210] sm:$0xff]   ;;  %v1371_v18 = vld [vmem:[%s1687_s0 + $0x60] ss:$36 sps:$4 sm:$0xff]  }
  0x1c   :  { %1152 = vmatpush3.bf16.msra.mxu0 %v1307_v26  ;;  %v1365_v14 = vld [vmem:[%s1687_s0 + $0x5c] ss:$36 sps:$4 sm:$0xff]   ;;  %v1374_v22 = vld [vmem:[%s1686_s1 + $0x228] sm:$0xff]   ;;  %v1375_v23 = vld [vmem:[%s1686_s1 + $0x230] sm:$0xff]  }
  0x1d   :  { %1180 = vmatpush3.bf16.msra.mxu1 %v1308_v27  ;;  %1153 = vmatprep.subr.bf16.mxu0 %v1309_v28  ;;  %v1367_v15 = vld [vmem:[%s1687_s0 + $0x58] ss:$36 sps:$4 sm:$0xff]   ;;  %v1373_v20 = vld [vmem:[%s1686_s1 + $0x220] sm:$0xff]   ;;  %v1378_v25 = vld [vmem:[%s1687_s0 + $0x68] ss:$36 sps:$4 sm:$0xff]  }
  0x1e   :  { %1181 = vmatprep.subr.bf16.mxu1 %v1310_v29  ;;  %v1372_v19 = vld [vmem:[%s1686_s1 + $0x218] sm:$0xff]   ;;  %v1377_v21 = vld [vmem:[%s1687_s0 + $0x20] ss:$36 sps:$4 sm:$0xff]  }
  0x1f   :  { %v1376_v24 = vld [vmem:[%s1686_s1 + $0x238] sm:$0xff]  }
  0x20   :  { %1154 = vmatpush3.bf16.msra.mxu0 %v1311_v30 }
  0x21   :  { %1182 = vmatpush3.bf16.msra.mxu1 %v1312_v31  ;;  %1195 = vmatprep.subr.bf16.mxu0 %v1319_v36 }
  0x22   :  { %1223 = vmatprep.subr.bf16.mxu1 %v1321_v38 }
  0x23   :  { %751 = vmatmul.mubr.bf16.vlgmr.msra.gmra.mrb[0].mxu0 %v1313_v32 }
  0x24   :  { %800 = vmatmul.mubr.bf16.vlgmr.msra.gmra.mrb[0].mxu1 %v1316_v34  ;;  %1196 = vmatpush3.bf16.msra.mxu0 %v1320_v37 }
  0x25   :  { %1224 = vmatpush3.bf16.msra.mxu1 %v1322_v39  ;;  %1197 = vmatprep.subr.bf16.mxu0 %v1323_v40 }
  0x26   :  { %1225 = vmatprep.subr.bf16.mxu1 %v1325_v42  ;;  %758 = vmatprep.mubr.bf16.mxu0 %v1340_v57 }
  0x27   :  { %807 = vmatprep.mubr.bf16.mxu1 %v1342_v58 }
  0x28   :  { %1198 = vmatpush3.bf16.msra.mxu0 %v1324_v41 }
  0x29   :  { %1226 = vmatpush3.bf16.msra.mxu1 %v1326_v43  ;;  %1199 = vmatprep.subr.bf16.mxu0 %v1327_v44 }
  0x2a   :  { %1227 = vmatprep.subr.bf16.mxu1 %v1329_v46 }
  0x2b   :  { %759 = vmatmul.mubr.bf16.gmra.mrb[4].mxu0 %v1345_v60 }
  0x2c   :  { %1200 = vmatpush3.bf16.msra.mxu0 %v1328_v45  ;;  %808 = vmatmul.mubr.bf16.gmra.mrb[4].mxu1 %v1346_v61 }
  0x2d   :  { %1228 = vmatpush3.bf16.msra.mxu1 %v1330_v47  ;;  %1201 = vmatprep.subr.bf16.mxu0 %v1331_v48 }
  0x2e   :  { %1229 = vmatprep.subr.bf16.mxu1 %v1333_v50  ;;  %848 = vmatprep.mubr.bf16.mxu0 %v1358_v8 }
  0x2f   :  { %897 = vmatprep.mubr.bf16.mxu1 %v1363_v12 }
  0x30   :  { %1202 = vmatpush3.bf16.msra.mxu0 %v1332_v49 }
  0x31   :  { %1230 = vmatpush3.bf16.msra.mxu1 %v1334_v51  ;;  %1203 = vmatprep.subr.bf16.mxu0 %v1335_v52 }
  0x32   :  { %1231 = vmatprep.subr.bf16.mxu1 %v1337_v54 }
  0x34   :  { %1204 = vmatpush3.bf16.msra.mxu0 %v1336_v53 }
  0x35   :  { %1232 = vmatpush3.bf16.msra.mxu1 %v1338_v55  ;;  %1205 = vmatprep.subr.bf16.mxu0 %v1339_v56 }
  0x36   :  { %1233 = vmatprep.subr.bf16.mxu1 %v1347_v62 }
  0x38   :  { %1206 = vmatpush3.bf16.msra.mxu0 %v1344_v59 }
  0x39   :  { %1234 = vmatpush3.bf16.msra.mxu1 %v1348_v63  ;;  %1207 = vmatprep.subr.bf16.mxu0 %v1349_v0 }
  0x3a   :  { %1235 = vmatprep.subr.bf16.mxu1 %v1351_v2 }
  0x3c   :  { %1208 = vmatpush3.bf16.msra.mxu0 %v1350_v1 }
  0x3d   :  { %1236 = vmatpush3.bf16.msra.mxu1 %v1352_v3  ;;  %1209 = vmatprep.subr.bf16.mxu0 %v1353_v4 }
  0x3e   :  { %1237 = vmatprep.subr.bf16.mxu1 %v1355_v6 }
  0x40   :  { %1210 = vmatpush3.bf16.msra.mxu0 %v1354_v5 }
  0x41   :  { %1238 = vmatpush3.bf16.msra.mxu1 %v1359_v9  ;;  %1261 = vmatprep.subr.bf16.mxu0 %v1360_v10 }
  0x43   :  { %849 = vmatmul.mubr.bf16.vlgmr.msra.gmra.mrb[8].mxu0 %v1356_v7 }
  0x44   :  { %1262 = vmatpush3.bf16.msra.mxu0 %v1360_v10  ;;  %898 = vmatmul.mubr.bf16.vlgmr.msra.gmra.mrb[8].mxu1 %v1361_v11 }
  0x45   :  { %1263 = vmatprep.subr.bf16.mxu0 %v1364_v13  ;;  %856 = vmatprep.mubr.bf16.mxu0 %v1365_v14 }
  0x46   :  { %905 = vmatprep.mubr.bf16.mxu1 %v1369_v17 }
  0x48   :  { %1264 = vmatpush3.bf16.msra.mxu0 %v1364_v13 }
  0x49   :  { %1265 = vmatprep.subr.bf16.mxu0 %v1368_v16 }
  0x4b   :  { %857 = vmatmul.mubr.bf16.gmra.mrb[12].mxu0 %v1367_v15 }
  0x4c   :  { %1266 = vmatpush3.bf16.msra.mxu0 %v1368_v16  ;;  %906 = vmatmul.mubr.bf16.gmra.mrb[12].mxu1 %v1371_v18 }
  0x4d   :  { %1267 = vmatprep.subr.bf16.mxu0 %v1372_v19  ;;  %1277 = vmatprep.mubr.bf16.mxu0 %v1377_v21 }
  0x50   :  { %1268 = vmatpush3.bf16.msra.mxu0 %v1372_v19 }
  0x51   :  { %1269 = vmatprep.subr.bf16.mxu0 %v1373_v20 }
  0x54   :  { %1270 = vmatpush3.bf16.msra.mxu0 %v1373_v20 }
  0x55   :  { %1271 = vmatprep.subr.bf16.mxu0 %v1374_v22 }
  0x58   :  { %1272 = vmatpush3.bf16.msra.mxu0 %v1374_v22 }
  0x59   :  { %1273 = vmatprep.subr.bf16.mxu0 %v1375_v23 }
  0x5c   :  { %1274 = vmatpush3.bf16.msra.mxu0 %v1375_v23  ;;  %v1118_v23 = vld [vmem:[%s1688_s2] ss:$0 sm:$0xff] }
  0x5d   :  { %1275 = vmatprep.subr.bf16.mxu0 %v1376_v24 }
  0x60   :  { %1276 = vmatpush3.bf16.msra.mxu0 %v1376_v24 }
  0x63   :  { %1278 = vmatmul.mubr.bf16.vlgmr.msra.gmra.mrb[16].mxu0 %v1378_v25 }
  0xf6   :  { %v1155_v26 = vpop.f32.mrb[0].mxu0 }
  0xf7   :  { %v1183_v27 = vpop.f32.mrb[0].mxu1  ;;  %v1156_v28 = vpop.f32.mrb[1].mxu0 }
  0xf8   :  { %v1157_v29 = vadd.f32 %v1156_v28, %v1155_v26  ;;  %v1184_v30 = vpop.f32.mrb[1].mxu1  ;;  %v1158_v31 = vpop.f32.mrb[2].mxu0  ;;  %v1119_v26 = vld [vmem:[%s1689_s3] ss:$0 sm:$0xff] }
  0xf9   :  { %v1185_v32 = vadd.f32 %v1184_v30, %v1183_v27  ;;  %v1186_v33 = vpop.f32.mrb[2].mxu1  ;;  %v1159_v34 = vpop.f32.mrb[3].mxu0 }
  0xfa   :  { %v1160_v35 = vadd.f32 %v1159_v34, %v1158_v31  ;;  %v1187_v36 = vpop.f32.mrb[3].mxu1 }
  0xfb   :  { %v802_v37 = vadd.f32 %v1185_v32, %v1157_v29  ;;  %v1188_v38 = vadd.f32 %v1187_v36, %v1186_v33 }
  0xfd   :  { %v805_v39 = vadd.f32 %v1188_v38, %v1160_v35 }
  0xfe   :  { %v1161_v40 = vpop.f32.mrb[4].mxu0 }
  0xff   :  { %v1189_v41 = vpop.f32.mrb[4].mxu1  ;;  %v1162_v42 = vpop.f32.mrb[5].mxu0 }
 0x100   :  { %v1190_v43 = vpop.f32.mrb[5].mxu1  ;;  %v1163_v44 = vadd.f32 %v1162_v42, %v1161_v40  ;;  %v1164_v46 = vpop.f32.mrb[6].mxu0 }
 0x101   :  { %v1191_v45 = vadd.f32 %v1190_v43, %v1189_v41  ;;  %v1192_v47 = vpop.f32.mrb[6].mxu1  ;;  %v1165_v48 = vpop.f32.mrb[7].mxu0 }
 0x102   :  { %v1193_v49 = vpop.f32.mrb[7].mxu1  ;;  %v1166_v51 = vadd.f32 %v1165_v48, %v1164_v46 }
 0x103   :  { %v810_v50 = vadd.f32 %v1191_v45, %v1163_v44  ;;  %v1194_v52 = vadd.f32 %v1193_v49, %v1192_v47 }
 0x105   :  { %v813_v53 = vadd.f32 %v1194_v52, %v1166_v51 }
 0x116   :  { %v1211_v54 = vpop.f32.mrb[8].mxu0 }
 0x117   :  { %v1212_v55 = vpop.f32.mrb[9].mxu0  ;;  %v1239_v58 = vpop.f32.mrb[8].mxu1 }
 0x118   :  { %v1213_v56 = vadd.f32 %v1212_v55, %v1211_v54  ;;  %v1214_v57 = vpop.f32.mrb[10].mxu0  ;;  %v1240_v62 = vpop.f32.mrb[9].mxu1 }
 0x119   :  { %v1215_v59 = vpop.f32.mrb[11].mxu0  ;;  %v1241_v63 = vadd.f32 %v1240_v62, %v1239_v58  ;;  %v1242_v0 = vpop.f32.mrb[10].mxu1 }
 0x11a   :  { %v851_v60 = vadd.f32 %v1213_v56, %v802_v37  ;;  %v1216_v61 = vadd.f32 %v1215_v59, %v1214_v57  ;;  %v1243_v2 = vpop.f32.mrb[11].mxu1 }
 0x11b   :  { %v1244_v3 = vadd.f32 %v1243_v2, %v1242_v0 }
 0x11c   :  { %v854_v1 = vadd.f32 %v1216_v61, %v805_v39  ;;  %v900_v4 = vadd.f32 %v1241_v63, %v851_v60 }
 0x11e   :  { %v1217_v5 = vpop.f32.mrb[12].mxu0  ;;  %v903_v7 = vadd.f32 %v1244_v3, %v854_v1 }
 0x11f   :  { %v1218_v6 = vpop.f32.mrb[13].mxu0  ;;  %v1245_v10 = vpop.f32.mrb[12].mxu1 }
 0x120   :  { %v1219_v8 = vadd.f32 %v1218_v6, %v1217_v5  ;;  %v1220_v9 = vpop.f32.mrb[14].mxu0  ;;  %v1246_v14 = vpop.f32.mrb[13].mxu1 }
 0x121   :  { %v1221_v11 = vpop.f32.mrb[15].mxu0  ;;  %v1247_v15 = vadd.f32 %v1246_v14, %v1245_v10  ;;  %v1248_v16 = vpop.f32.mrb[14].mxu1 }
 0x122   :  { %v859_v12 = vadd.f32 %v1219_v8, %v810_v50  ;;  %v1222_v13 = vadd.f32 %v1221_v11, %v1220_v9  ;;  %v1249_v18 = vpop.f32.mrb[15].mxu1 }
 0x123   :  { %v1250_v19 = vadd.f32 %v1249_v18, %v1248_v16 }
 0x124   :  { %v862_v17 = vadd.f32 %v1222_v13, %v813_v53  ;;  %v908_v20 = vadd.f32 %v1247_v15, %v859_v12 }
 0x126   :  { %v911_v21 = vadd.f32 %v1250_v19, %v862_v17 }
 0x136   :  { %v1279_v22 = vpop.f32.mrb[16].mxu0 }
 0x137   :  { %v957_v24 = vadd.f32 %v1279_v22, %v908_v20  ;;  %v948_v25 = vpop.f32.mrb[17].mxu0 }
 0x138   :  { %v949_v27 = vadd.f32 %v948_v25, %v900_v4  ;;  %v1280_v28 = vpop.f32.mrb[18].mxu0 }
 0x139   :  { %v987_v29 = vmul.f32 %v1118_v23, %v957_v24  ;;  %v960_v30 = vadd.f32 %v1280_v28, %v911_v21  ;;  %v951_v31 = vpop.f32.mrb[19].mxu0 }
 0x13a   :  { %v985_v32 = vmul.f32 %v1118_v23, %v949_v27  ;;  %v952_v33 = vadd.f32 %v951_v31, %v903_v7 }
 0x13b   :  { %v998_v34 = vadd.f32 %v1119_v26, %v987_v29  ;;  %v988_v35 = vmul.f32 %v1118_v23, %v960_v30 }
 0x13c   :  { %v996_v36 = vadd.f32 %v1119_v26, %v985_v32  ;;  %v986_v37 = vmul.f32 %v1118_v23, %v952_v33 }
 0x13d   :  { %v999_v38 = vadd.f32 %v1119_v26, %v988_v35  ;;  %v1002_v40 = vmax.f32 %v998_v34, 0.0 }
 0x13e   :  { %v997_v39 = vadd.f32 %v1119_v26, %v986_v37  ;;  %v1000_v42 = vmax.f32 %v996_v36, 0.0 }
 0x13f   :  { %v1003_v41 = vmax.f32 %v999_v38, 0.0 }
 0x140   :  { %v1001_v43 = vmax.f32 %v997_v39, 0.0 }
 0x141   :  { %v1136_v44 = vpack.c.bf16 %v1003_v41, %v1002_v40 }
 0x142   :  { %v1131_v45 = vpack.c.bf16 %v1001_v43, %v1000_v42 }
 0x143   :  { %1138 = vst [vmem:[%s1690_s4 + $0x8] sm:$0xff] %v1136_v44  }
 0x144   :  { %1132 = vst [vmem:[%s1690_s4] sm:$0xff] %v1131_v45  }

// kernel: _lambda_.20
= control target key start
LH: loop header
LB: loop body
LE: loop exit
PB: predicated region body
PF: predicated region fallthrough
CT: control target
= control target key end

     0   :  { %s358_s1 = inlined_call_operand.vmem [shape: bf16[128,128], index: 1, kind: input, shape index: {}]   ;;  %s359_s0 = inlined_call_operand.vmem [shape: bf16[32,128], index: 0, kind: input, shape index: {}]   ;;  %s360_s2 = inlined_call_operand.vmem [shape: f32[1,128], index: 2, kind: input, shape index: {}]   ;;  %s361_s3 = inlined_call_operand.vmem [shape: f32[1,128], index: 3, kind: input, shape index: {}]   ;;  %s362_s4 = inlined_call_operand.vmem [shape: bf16[32,128], index: 4, kind: output, shape index: {}]  }
   0x1   :  { %v281_v0 = vld [vmem:[%s358_s1] sm:$0xff]   ;;  %v282_v1 = vld [vmem:[%s358_s1 + $0x8] sm:$0xff]   ;;  %v283_v2 = vld [vmem:[%s358_s1 + $0x10] sm:$0xff]  }
   0x2   :  { %261 = vmatprep.subr.bf16.mxu0 %v281_v0  ;;  %v284_v3 = vld [vmem:[%s358_s1 + $0x18] sm:$0xff]   ;;  %v289_v4 = vld [vmem:[%s359_s0] sm:$0xff]   ;;  %v286_v6 = vld [vmem:[%s358_s1 + $0x28] sm:$0xff]  }
   0x3   :  { %262 = vmatpush3.bf16.msra.mxu0 %v281_v0  ;;  %277 = vmatprep.mubr.bf16.mxu0 %v289_v4  ;;  %v285_v5 = vld [vmem:[%s358_s1 + $0x20] sm:$0xff]   ;;  %v287_v7 = vld [vmem:[%s358_s1 + $0x30] sm:$0xff]   ;;  %v288_v8 = vld [vmem:[%s358_s1 + $0x38] sm:$0xff]  }
   0x4   :  { %263 = vmatprep.subr.bf16.mxu0 %v282_v1  ;;  %v290_v9 = vld [vmem:[%s359_s0 + $0x8] sm:$0xff]   ;;  %v230_v10 = vld [vmem:[%s360_s2] ss:$0 sm:$0xff] }
   0x5   :  { %v231_v14 = vld [vmem:[%s361_s3] ss:$0 sm:$0xff] }
   0x7   :  { %264 = vmatpush3.bf16.msra.mxu0 %v282_v1 }
   0x8   :  { %265 = vmatprep.subr.bf16.mxu0 %v283_v2 }
   0xb   :  { %266 = vmatpush3.bf16.msra.mxu0 %v283_v2 }
   0xc   :  { %267 = vmatprep.subr.bf16.mxu0 %v284_v3 }
   0xf   :  { %268 = vmatpush3.bf16.msra.mxu0 %v284_v3 }
  0x10   :  { %269 = vmatprep.subr.bf16.mxu0 %v285_v5 }
  0x13   :  { %270 = vmatpush3.bf16.msra.mxu0 %v285_v5 }
  0x14   :  { %271 = vmatprep.subr.bf16.mxu0 %v286_v6 }
  0x17   :  { %272 = vmatpush3.bf16.msra.mxu0 %v286_v6 }
  0x18   :  { %273 = vmatprep.subr.bf16.mxu0 %v287_v7 }
  0x1b   :  { %274 = vmatpush3.bf16.msra.mxu0 %v287_v7 }
  0x1c   :  { %275 = vmatprep.subr.bf16.mxu0 %v288_v8 }
  0x1f   :  { %276 = vmatpush3.bf16.msra.mxu0 %v288_v8 }
  0x22   :  { %278 = vmatmul.mubr.bf16.vlgmr.msra.gmra.mrb[0].mxu0 %v290_v9 }
  0xf5   :  { %v279_v11 = vpop.f32.mrb[0].mxu0 }
  0xf6   :  { %v183_v12 = vmul.f32 %v279_v11, %v230_v10  ;;  %v144_v13 = vpop.f32.mrb[1].mxu0 }
  0xf7   :  { %v181_v15 = vmul.f32 %v230_v10, %v144_v13  ;;  %v280_v16 = vpop.f32.mrb[2].mxu0 }
  0xf8   :  { %v184_v17 = vmul.f32 %v280_v16, %v230_v10  ;;  %v147_v18 = vpop.f32.mrb[3].mxu0  ;;  %v194_v20 = vadd.f32 %v231_v14, %v183_v12 }
  0xf9   :  { %v182_v19 = vmul.f32 %v230_v10, %v147_v18  ;;  %v192_v22 = vadd.f32 %v231_v14, %v181_v15 }
  0xfa   :  { %v195_v21 = vadd.f32 %v231_v14, %v184_v17 }
  0xfb   :  { %v193_v23 = vadd.f32 %v231_v14, %v182_v19 }
  0xfc   :  { %v248_v24 = vpack.c.bf16 %v195_v21, %v194_v20 }
  0xfd   :  { %v243_v25 = vpack.c.bf16 %v193_v23, %v192_v22 }
  0xfe   :  { %250 = vst [vmem:[%s362_s4 + $0x8] sm:$0xff] %v248_v24  }
  0xff   :  { %244 = vst [vmem:[%s362_s4] sm:$0xff] %v243_v25  }

// kernel: _lambda_.21
= control target key start
LH: loop header
LB: loop body
LE: loop exit
PB: predicated region body
PF: predicated region fallthrough
CT: control target
= control target key end

     0   :  { %s1721_s1 = inlined_call_operand.vmem [shape: bf16[1152,128], index: 1, kind: input, shape index: {}]   ;;  %s1722_s0 = inlined_call_operand.vmem [shape: bf16[32,1152], index: 0, kind: input, shape index: {}]   ;;  %s1723_s2 = inlined_call_operand.vmem [shape: f32[1,128], index: 2, kind: input, shape index: {}]   ;;  %s1724_s4 = inlined_call_operand.vmem [shape: bf16[32,128], index: 4, kind: input, shape index: {}]   ;;  %s1725_s3 = inlined_call_operand.vmem [shape: f32[1,128], index: 3, kind: input, shape index: {}]   ;;  %s1726_s5 = inlined_call_operand.vmem [shape: bf16[32,128], index: 5, kind: output, shape index: {}]  }
   0x1   :  { %v1305_v0 = vld [vmem:[%s1721_s1 + $0x40] sm:$0xff]   ;;  %v1309_v4 = vld [vmem:[%s1721_s1 + $0x48] sm:$0xff]   ;;  %v1313_v8 = vld [vmem:[%s1721_s1 + $0x50] sm:$0xff]  }
   0x2   :  { %v1306_v1 = vld [vmem:[%s1721_s1 + $0xc0] sm:$0xff]   ;;  %1163 = vmatprep.subr.bf16.mxu0 %v1305_v0  ;;  %v1310_v5 = vld [vmem:[%s1721_s1 + $0xc8] sm:$0xff]   ;;  %v1314_v9 = vld [vmem:[%s1721_s1 + $0xd0] sm:$0xff]  }
   0x3   :  { %v1307_v2 = vld [vmem:[%s1721_s1] sm:$0xff]   ;;  %1191 = vmatprep.subr.bf16.mxu1 %v1306_v1  ;;  %v1311_v6 = vld [vmem:[%s1721_s1 + $0x8] sm:$0xff]   ;;  %v1315_v10 = vld [vmem:[%s1721_s1 + $0x10] sm:$0xff]  }
   0x4   :  { %v1308_v3 = vld [vmem:[%s1721_s1 + $0x80] sm:$0xff]   ;;  %1164 = vmatpush3.bf16.msra.mxu0 %v1307_v2  ;;  %v1312_v7 = vld [vmem:[%s1721_s1 + $0x88] sm:$0xff]   ;;  %v1316_v11 = vld [vmem:[%s1721_s1 + $0x90] sm:$0xff]  }
   0x5   :  { %1192 = vmatpush3.bf16.msra.mxu1 %v1308_v3  ;;  %1165 = vmatprep.subr.bf16.mxu0 %v1309_v4  ;;  %v1317_v12 = vld [vmem:[%s1721_s1 + $0x58] sm:$0xff]   ;;  %v1321_v16 = vld [vmem:[%s1721_s1 + $0x60] sm:$0xff]   ;;  %v1325_v20 = vld [vmem:[%s1721_s1 + $0x68] sm:$0xff]  }
   0x6   :  { %1193 = vmatprep.subr.bf16.mxu1 %v1310_v5  ;;  %v1318_v13 = vld [vmem:[%s1721_s1 + $0xd8] sm:$0xff]   ;;  %v1322_v17 = vld [vmem:[%s1721_s1 + $0xe0] sm:$0xff]   ;;  %v1326_v21 = vld [vmem:[%s1721_s1 + $0xe8] sm:$0xff]  }
   0x7   :  { %v1319_v14 = vld [vmem:[%s1721_s1 + $0x18] sm:$0xff]   ;;  %v1323_v18 = vld [vmem:[%s1721_s1 + $0x20] sm:$0xff]   ;;  %v1327_v22 = vld [vmem:[%s1721_s1 + $0x28] sm:$0xff]  }
   0x8   :  { %1166 = vmatpush3.bf16.msra.mxu0 %v1311_v6  ;;  %v1320_v15 = vld [vmem:[%s1721_s1 + $0x98] sm:$0xff]   ;;  %v1324_v19 = vld [vmem:[%s1721_s1 + $0xa0] sm:$0xff]   ;;  %v1328_v23 = vld [vmem:[%s1721_s1 + $0xa8] sm:$0xff]  }
   0x9   :  { %1194 = vmatpush3.bf16.msra.mxu1 %v1312_v7  ;;  %1167 = vmatprep.subr.bf16.mxu0 %v1313_v8  ;;  %v1329_v24 = vld [vmem:[%s1721_s1 + $0x70] sm:$0xff]   ;;  %v1333_v28 = vld [vmem:[%s1721_s1 + $0x78] sm:$0xff]   ;;  %v1337_v32 = vld [vmem:[%s1722_s0] ss:$36 sps:$4 sm:$0xff]  }
   0xa   :  { %1195 = vmatprep.subr.bf16.mxu1 %v1314_v9  ;;  %v1330_v25 = vld [vmem:[%s1721_s1 + $0xf0] sm:$0xff]   ;;  %v1334_v29 = vld [vmem:[%s1721_s1 + $0xf8] sm:$0xff]   ;;  %v1339_v33 = vld [vmem:[%s1722_s0 + $0x4] ss:$36 sps:$4 sm:$0xff]  }
   0xb   :  { %v1331_v26 = vld [vmem:[%s1721_s1 + $0x30] sm:$0xff]   ;;  %v1335_v30 = vld [vmem:[%s1721_s1 + $0x38] sm:$0xff]   ;;  %v1340_v34 = vld [vmem:[%s1722_s0 + $0x8] ss:$36 sps:$4 sm:$0xff]   ;;  %753 = vmatprep.mubr.bf16.mxu0 %v1339_v33 }
   0xc   :  { %1168 = vmatpush3.bf16.msra.mxu0 %v1315_v10  ;;  %v1332_v27 = vld [vmem:[%s1721_s1 + $0xb0] sm:$0xff]   ;;  %v1336_v31 = vld [vmem:[%s1721_s1 + $0xb8] sm:$0xff]   ;;  %v1343_v36 = vld [vmem:[%s1721_s1 + $0x140] sm:$0xff]  }
   0xd   :  { %1196 = vmatpush3.bf16.msra.mxu1 %v1316_v11  ;;  %1169 = vmatprep.subr.bf16.mxu0 %v1317_v12  ;;  %v1342_v35 = vld [vmem:[%s1722_s0 + $0xc] ss:$36 sps:$4 sm:$0xff]   ;;  %v1344_v37 = vld [vmem:[%s1721_s1 + $0x100] sm:$0xff]   ;;  %v1355_v48 = vld [vmem:[%s1721_s1 + $0x158] sm:$0xff]  }
   0xe   :  { %1197 = vmatprep.subr.bf16.mxu1 %v1318_v13  ;;  %802 = vmatprep.mubr.bf16.mxu1 %v1342_v35  ;;  %v1345_v38 = vld [vmem:[%s1721_s1 + $0x1c0] sm:$0xff]   ;;  %v1347_v40 = vld [vmem:[%s1721_s1 + $0x148] sm:$0xff]   ;;  %v1351_v44 = vld [vmem:[%s1721_s1 + $0x150] sm:$0xff]  }
   0xf   :  { %v1346_v39 = vld [vmem:[%s1721_s1 + $0x180] sm:$0xff]   ;;  %v1348_v41 = vld [vmem:[%s1721_s1 + $0x108] sm:$0xff]   ;;  %v1352_v45 = vld [vmem:[%s1721_s1 + $0x110] sm:$0xff]  }
  0x10   :  { %1170 = vmatpush3.bf16.msra.mxu0 %v1319_v14  ;;  %v1349_v42 = vld [vmem:[%s1721_s1 + $0x1c8] sm:$0xff]   ;;  %v1353_v46 = vld [vmem:[%s1721_s1 + $0x1d0] sm:$0xff]   ;;  %v1356_v49 = vld [vmem:[%s1721_s1 + $0x118] sm:$0xff]  }
  0x11   :  { %1198 = vmatpush3.bf16.msra.mxu1 %v1320_v15  ;;  %1171 = vmatprep.subr.bf16.mxu0 %v1321_v16  ;;  %v1350_v43 = vld [vmem:[%s1721_s1 + $0x188] sm:$0xff]   ;;  %v1354_v47 = vld [vmem:[%s1721_s1 + $0x190] sm:$0xff]   ;;  %v1357_v50 = vld [vmem:[%s1721_s1 + $0x1d8] sm:$0xff]  }
  0x12   :  { %1199 = vmatprep.subr.bf16.mxu1 %v1322_v17  ;;  %v1358_v51 = vld [vmem:[%s1721_s1 + $0x198] sm:$0xff]   ;;  %v1359_v52 = vld [vmem:[%s1721_s1 + $0x160] sm:$0xff]   ;;  %v1363_v56 = vld [vmem:[%s1721_s1 + $0x168] sm:$0xff]  }
  0x13   :  { %v1360_v53 = vld [vmem:[%s1721_s1 + $0x120] sm:$0xff]   ;;  %v1364_v57 = vld [vmem:[%s1722_s0 + $0x4c] ss:$36 sps:$4 sm:$0xff]   ;;  %v1366_v58 = vld [vmem:[%s1722_s0 + $0x54] ss:$36 sps:$4 sm:$0xff]  }
  0x14   :  { %1172 = vmatpush3.bf16.msra.mxu0 %v1323_v18  ;;  %v1361_v54 = vld [vmem:[%s1721_s1 + $0x1e0] sm:$0xff]   ;;  %v1368_v59 = vld [vmem:[%s1721_s1 + $0x128] sm:$0xff]   ;;  %v1370_v61 = vld [vmem:[%s1722_s0 + $0x50] ss:$36 sps:$4 sm:$0xff]  }
  0x15   :  { %1200 = vmatpush3.bf16.msra.mxu1 %v1324_v19  ;;  %1173 = vmatprep.subr.bf16.mxu0 %v1325_v20  ;;  %v1362_v55 = vld [vmem:[%s1721_s1 + $0x1a0] sm:$0xff]   ;;  %v1369_v60 = vld [vmem:[%s1722_s0 + $0x48] ss:$36 sps:$4 sm:$0xff]   ;;  %v1373_v0 = vld [vmem:[%s1721_s1 + $0x170] sm:$0xff]  }
  0x16   :  { %1201 = vmatprep.subr.bf16.mxu1 %v1326_v21  ;;  %v1371_v62 = vld [vmem:[%s1721_s1 + $0x1e8] sm:$0xff]   ;;  %v1374_v1 = vld [vmem:[%s1721_s1 + $0x130] sm:$0xff]   ;;  %v1377_v4 = vld [vmem:[%s1721_s1 + $0x178] sm:$0xff]  }
  0x17   :  { %v1372_v63 = vld [vmem:[%s1721_s1 + $0x1a8] sm:$0xff]   ;;  %v1375_v2 = vld [vmem:[%s1721_s1 + $0x1f0] sm:$0xff]   ;;  %v1378_v5 = vld [vmem:[%s1721_s1 + $0x138] sm:$0xff]  }
  0x18   :  { %1174 = vmatpush3.bf16.msra.mxu0 %v1327_v22  ;;  %v1376_v3 = vld [vmem:[%s1721_s1 + $0x1b0] sm:$0xff]   ;;  %v1379_v6 = vld [vmem:[%s1721_s1 + $0x1f8] sm:$0xff]   ;;  %v1384_v10 = vld [vmem:[%s1721_s1 + $0x200] sm:$0xff]  }
  0x19   :  { %1202 = vmatpush3.bf16.msra.mxu1 %v1328_v23  ;;  %1175 = vmatprep.subr.bf16.mxu0 %v1329_v24  ;;  %v1380_v7 = vld [vmem:[%s1722_s0 + $0x10] ss:$36 sps:$4 sm:$0xff]   ;;  %v1383_v9 = vld [vmem:[%s1721_s1 + $0x1b8] sm:$0xff]   ;;  %v1388_v13 = vld [vmem:[%s1721_s1 + $0x208] sm:$0xff]  }
  0x1a   :  { %1203 = vmatprep.subr.bf16.mxu1 %v1330_v25  ;;  %v1382_v8 = vld [vmem:[%s1722_s0 + $0x14] ss:$36 sps:$4 sm:$0xff]   ;;  %v1387_v12 = vld [vmem:[%s1722_s0 + $0x1c] ss:$36 sps:$4 sm:$0xff]   ;;  %v1393_v17 = vld [vmem:[%s1722_s0 + $0x64] ss:$36 sps:$4 sm:$0xff]  }
  0x1b   :  { %v1385_v11 = vld [vmem:[%s1722_s0 + $0x18] ss:$36 sps:$4 sm:$0xff]   ;;  %v1392_v16 = vld [vmem:[%s1721_s1 + $0x210] sm:$0xff]   ;;  %v1395_v18 = vld [vmem:[%s1722_s0 + $0x60] ss:$36 sps:$4 sm:$0xff]  }
  0x1c   :  { %1176 = vmatpush3.bf16.msra.mxu0 %v1331_v26  ;;  %v1389_v14 = vld [vmem:[%s1722_s0 + $0x5c] ss:$36 sps:$4 sm:$0xff]   ;;  %v1398_v22 = vld [vmem:[%s1721_s1 + $0x228] sm:$0xff]   ;;  %v1399_v23 = vld [vmem:[%s1721_s1 + $0x230] sm:$0xff]  }
  0x1d   :  { %1204 = vmatpush3.bf16.msra.mxu1 %v1332_v27  ;;  %1177 = vmatprep.subr.bf16.mxu0 %v1333_v28  ;;  %v1391_v15 = vld [vmem:[%s1722_s0 + $0x58] ss:$36 sps:$4 sm:$0xff]   ;;  %v1397_v20 = vld [vmem:[%s1721_s1 + $0x220] sm:$0xff]   ;;  %v1402_v25 = vld [vmem:[%s1722_s0 + $0x68] ss:$36 sps:$4 sm:$0xff]  }
  0x1e   :  { %1205 = vmatprep.subr.bf16.mxu1 %v1334_v29  ;;  %v1396_v19 = vld [vmem:[%s1721_s1 + $0x218] sm:$0xff]   ;;  %v1401_v21 = vld [vmem:[%s1722_s0 + $0x20] ss:$36 sps:$4 sm:$0xff]  }
  0x1f   :  { %v1400_v24 = vld [vmem:[%s1721_s1 + $0x238] sm:$0xff]  }
  0x20   :  { %1178 = vmatpush3.bf16.msra.mxu0 %v1335_v30 }
  0x21   :  { %1206 = vmatpush3.bf16.msra.mxu1 %v1336_v31  ;;  %1219 = vmatprep.subr.bf16.mxu0 %v1343_v36 }
  0x22   :  { %1247 = vmatprep.subr.bf16.mxu1 %v1345_v38 }
  0x23   :  { %754 = vmatmul.mubr.bf16.vlgmr.msra.gmra.mrb[0].mxu0 %v1337_v32 }
  0x24   :  { %803 = vmatmul.mubr.bf16.vlgmr.msra.gmra.mrb[0].mxu1 %v1340_v34  ;;  %1220 = vmatpush3.bf16.msra.mxu0 %v1344_v37 }
  0x25   :  { %1248 = vmatpush3.bf16.msra.mxu1 %v1346_v39  ;;  %1221 = vmatprep.subr.bf16.mxu0 %v1347_v40 }
  0x26   :  { %1249 = vmatprep.subr.bf16.mxu1 %v1349_v42  ;;  %761 = vmatprep.mubr.bf16.mxu0 %v1364_v57 }
  0x27   :  { %810 = vmatprep.mubr.bf16.mxu1 %v1366_v58 }
  0x28   :  { %1222 = vmatpush3.bf16.msra.mxu0 %v1348_v41 }
  0x29   :  { %1250 = vmatpush3.bf16.msra.mxu1 %v1350_v43  ;;  %1223 = vmatprep.subr.bf16.mxu0 %v1351_v44 }
  0x2a   :  { %1251 = vmatprep.subr.bf16.mxu1 %v1353_v46 }
  0x2b   :  { %762 = vmatmul.mubr.bf16.gmra.mrb[4].mxu0 %v1369_v60 }
  0x2c   :  { %1224 = vmatpush3.bf16.msra.mxu0 %v1352_v45  ;;  %811 = vmatmul.mubr.bf16.gmra.mrb[4].mxu1 %v1370_v61 }
  0x2d   :  { %1252 = vmatpush3.bf16.msra.mxu1 %v1354_v47  ;;  %1225 = vmatprep.subr.bf16.mxu0 %v1355_v48 }
  0x2e   :  { %1253 = vmatprep.subr.bf16.mxu1 %v1357_v50  ;;  %851 = vmatprep.mubr.bf16.mxu0 %v1382_v8 }
  0x2f   :  { %900 = vmatprep.mubr.bf16.mxu1 %v1387_v12 }
  0x30   :  { %1226 = vmatpush3.bf16.msra.mxu0 %v1356_v49 }
  0x31   :  { %1254 = vmatpush3.bf16.msra.mxu1 %v1358_v51  ;;  %1227 = vmatprep.subr.bf16.mxu0 %v1359_v52 }
  0x32   :  { %1255 = vmatprep.subr.bf16.mxu1 %v1361_v54 }
  0x34   :  { %1228 = vmatpush3.bf16.msra.mxu0 %v1360_v53 }
  0x35   :  { %1256 = vmatpush3.bf16.msra.mxu1 %v1362_v55  ;;  %1229 = vmatprep.subr.bf16.mxu0 %v1363_v56 }
  0x36   :  { %1257 = vmatprep.subr.bf16.mxu1 %v1371_v62 }
  0x38   :  { %1230 = vmatpush3.bf16.msra.mxu0 %v1368_v59 }
  0x39   :  { %1258 = vmatpush3.bf16.msra.mxu1 %v1372_v63  ;;  %1231 = vmatprep.subr.bf16.mxu0 %v1373_v0 }
  0x3a   :  { %1259 = vmatprep.subr.bf16.mxu1 %v1375_v2 }
  0x3c   :  { %1232 = vmatpush3.bf16.msra.mxu0 %v1374_v1 }
  0x3d   :  { %1260 = vmatpush3.bf16.msra.mxu1 %v1376_v3  ;;  %1233 = vmatprep.subr.bf16.mxu0 %v1377_v4 }
  0x3e   :  { %1261 = vmatprep.subr.bf16.mxu1 %v1379_v6 }
  0x40   :  { %1234 = vmatpush3.bf16.msra.mxu0 %v1378_v5 }
  0x41   :  { %1262 = vmatpush3.bf16.msra.mxu1 %v1383_v9  ;;  %1285 = vmatprep.subr.bf16.mxu0 %v1384_v10 }
  0x43   :  { %852 = vmatmul.mubr.bf16.vlgmr.msra.gmra.mrb[8].mxu0 %v1380_v7 }
  0x44   :  { %1286 = vmatpush3.bf16.msra.mxu0 %v1384_v10  ;;  %901 = vmatmul.mubr.bf16.vlgmr.msra.gmra.mrb[8].mxu1 %v1385_v11 }
  0x45   :  { %1287 = vmatprep.subr.bf16.mxu0 %v1388_v13  ;;  %859 = vmatprep.mubr.bf16.mxu0 %v1389_v14 }
  0x46   :  { %908 = vmatprep.mubr.bf16.mxu1 %v1393_v17 }
  0x48   :  { %1288 = vmatpush3.bf16.msra.mxu0 %v1388_v13 }
  0x49   :  { %1289 = vmatprep.subr.bf16.mxu0 %v1392_v16 }
  0x4b   :  { %860 = vmatmul.mubr.bf16.gmra.mrb[12].mxu0 %v1391_v15 }
  0x4c   :  { %1290 = vmatpush3.bf16.msra.mxu0 %v1392_v16  ;;  %909 = vmatmul.mubr.bf16.gmra.mrb[12].mxu1 %v1395_v18 }
  0x4d   :  { %1291 = vmatprep.subr.bf16.mxu0 %v1396_v19  ;;  %1301 = vmatprep.mubr.bf16.mxu0 %v1401_v21 }
  0x50   :  { %1292 = vmatpush3.bf16.msra.mxu0 %v1396_v19 }
  0x51   :  { %1293 = vmatprep.subr.bf16.mxu0 %v1397_v20 }
  0x54   :  { %1294 = vmatpush3.bf16.msra.mxu0 %v1397_v20 }
  0x55   :  { %1295 = vmatprep.subr.bf16.mxu0 %v1398_v22 }
  0x58   :  { %1296 = vmatpush3.bf16.msra.mxu0 %v1398_v22 }
  0x59   :  { %1297 = vmatprep.subr.bf16.mxu0 %v1399_v23 }
  0x5c   :  { %1298 = vmatpush3.bf16.msra.mxu0 %v1399_v23  ;;  %v1133_v23 = vld [vmem:[%s1723_s2] ss:$0 sm:$0xff] }
  0x5d   :  { %1299 = vmatprep.subr.bf16.mxu0 %v1400_v24 }
  0x60   :  { %1300 = vmatpush3.bf16.msra.mxu0 %v1400_v24  ;;  %v1161_v24 = vld [vmem:[%s1724_s4 + $0x8] sm:$0xff]  }
  0x63   :  { %1302 = vmatmul.mubr.bf16.vlgmr.msra.gmra.mrb[16].mxu0 %v1402_v25 }
  0xf6   :  { %v1179_v26 = vpop.f32.mrb[0].mxu0 }
  0xf7   :  { %v1207_v27 = vpop.f32.mrb[0].mxu1  ;;  %v1180_v28 = vpop.f32.mrb[1].mxu0 }
  0xf8   :  { %v1181_v29 = vadd.f32 %v1180_v28, %v1179_v26  ;;  %v1208_v30 = vpop.f32.mrb[1].mxu1  ;;  %v1182_v31 = vpop.f32.mrb[2].mxu0  ;;  %v1134_v28 = vld [vmem:[%s1725_s3] ss:$0 sm:$0xff] }
  0xf9   :  { %v1209_v32 = vadd.f32 %v1208_v30, %v1207_v27  ;;  %v1210_v33 = vpop.f32.mrb[2].mxu1  ;;  %v1183_v34 = vpop.f32.mrb[3].mxu0  ;;  %v1144_v27 = vld [vmem:[%s1724_s4] sm:$0xff]  }
  0xfa   :  { %v1184_v35 = vadd.f32 %v1183_v34, %v1182_v31  ;;  %v1211_v36 = vpop.f32.mrb[3].mxu1 }
  0xfb   :  { %v805_v37 = vadd.f32 %v1209_v32, %v1181_v29  ;;  %v1212_v38 = vadd.f32 %v1211_v36, %v1210_v33  ;;  %v1149_v32 = vunpack.c.l.bf16 %v1161_v24  ;;  %v1145_v36 = vunpack.c.l.bf16 %v1144_v27 }
  0xfd   :  { %v808_v39 = vadd.f32 %v1212_v38, %v1184_v35 }
  0xfe   :  { %v1185_v40 = vpop.f32.mrb[4].mxu0 }
  0xff   :  { %v1213_v41 = vpop.f32.mrb[4].mxu1  ;;  %v1186_v42 = vpop.f32.mrb[5].mxu0 }
 0x100   :  { %v1214_v43 = vpop.f32.mrb[5].mxu1  ;;  %v1187_v44 = vadd.f32 %v1186_v42, %v1185_v40  ;;  %v1188_v46 = vpop.f32.mrb[6].mxu0  ;;  %v1150_v40 = vunpack.c.h.bf16 %v1161_v24 }
 0x101   :  { %v1215_v45 = vadd.f32 %v1214_v43, %v1213_v41  ;;  %v1216_v47 = vpop.f32.mrb[6].mxu1  ;;  %v1189_v48 = vpop.f32.mrb[7].mxu0  ;;  %v1146_v43 = vunpack.c.h.bf16 %v1144_v27 }
 0x102   :  { %v1217_v49 = vpop.f32.mrb[7].mxu1  ;;  %v1190_v51 = vadd.f32 %v1189_v48, %v1188_v46 }
 0x103   :  { %v813_v50 = vadd.f32 %v1215_v45, %v1187_v44  ;;  %v1218_v52 = vadd.f32 %v1217_v49, %v1216_v47 }
 0x105   :  { %v816_v53 = vadd.f32 %v1218_v52, %v1190_v51 }
 0x116   :  { %v1235_v54 = vpop.f32.mrb[8].mxu0 }
 0x117   :  { %v1236_v55 = vpop.f32.mrb[9].mxu0  ;;  %v1263_v58 = vpop.f32.mrb[8].mxu1 }
 0x118   :  { %v1237_v56 = vadd.f32 %v1236_v55, %v1235_v54  ;;  %v1238_v57 = vpop.f32.mrb[10].mxu0  ;;  %v1264_v62 = vpop.f32.mrb[9].mxu1 }
 0x119   :  { %v1239_v59 = vpop.f32.mrb[11].mxu0  ;;  %v1265_v63 = vadd.f32 %v1264_v62, %v1263_v58  ;;  %v1266_v0 = vpop.f32.mrb[10].mxu1 }
 0x11a   :  { %v854_v60 = vadd.f32 %v1237_v56, %v805_v37  ;;  %v1240_v61 = vadd.f32 %v1239_v59, %v1238_v57  ;;  %v1267_v2 = vpop.f32.mrb[11].mxu1 }
 0x11b   :  { %v1268_v3 = vadd.f32 %v1267_v2, %v1266_v0 }
 0x11c   :  { %v857_v1 = vadd.f32 %v1240_v61, %v808_v39  ;;  %v903_v4 = vadd.f32 %v1265_v63, %v854_v60 }
 0x11e   :  { %v1241_v5 = vpop.f32.mrb[12].mxu0  ;;  %v906_v7 = vadd.f32 %v1268_v3, %v857_v1 }
 0x11f   :  { %v1242_v6 = vpop.f32.mrb[13].mxu0  ;;  %v1269_v10 = vpop.f32.mrb[12].mxu1 }
 0x120   :  { %v1243_v8 = vadd.f32 %v1242_v6, %v1241_v5  ;;  %v1244_v9 = vpop.f32.mrb[14].mxu0  ;;  %v1270_v14 = vpop.f32.mrb[13].mxu1 }
 0x121   :  { %v1245_v11 = vpop.f32.mrb[15].mxu0  ;;  %v1271_v15 = vadd.f32 %v1270_v14, %v1269_v10  ;;  %v1272_v16 = vpop.f32.mrb[14].mxu1 }
 0x122   :  { %v862_v12 = vadd.f32 %v1243_v8, %v813_v50  ;;  %v1246_v13 = vadd.f32 %v1245_v11, %v1244_v9  ;;  %v1273_v18 = vpop.f32.mrb[15].mxu1 }
 0x123   :  { %v1274_v19 = vadd.f32 %v1273_v18, %v1272_v16 }
 0x124   :  { %v865_v17 = vadd.f32 %v1246_v13, %v816_v53  ;;  %v911_v20 = vadd.f32 %v1271_v15, %v862_v12 }
 0x126   :  { %v914_v21 = vadd.f32 %v1274_v19, %v865_v17 }
 0x136   :  { %v1303_v22 = vpop.f32.mrb[16].mxu0 }
 0x137   :  { %v960_v25 = vadd.f32 %v1303_v22, %v911_v20  ;;  %v951_v26 = vpop.f32.mrb[17].mxu0 }
 0x138   :  { %v952_v29 = vadd.f32 %v951_v26, %v903_v4  ;;  %v1304_v30 = vpop.f32.mrb[18].mxu0 }
 0x139   :  { %v990_v31 = vmul.f32 %v1133_v23, %v960_v25  ;;  %v963_v33 = vadd.f32 %v1304_v30, %v914_v21  ;;  %v954_v34 = vpop.f32.mrb[19].mxu0 }
 0x13a   :  { %v988_v35 = vmul.f32 %v1133_v23, %v952_v29  ;;  %v955_v37 = vadd.f32 %v954_v34, %v906_v7 }
 0x13b   :  { %v1001_v38 = vadd.f32 %v1134_v28, %v990_v31  ;;  %v991_v39 = vmul.f32 %v1133_v23, %v963_v33 }
 0x13c   :  { %v999_v41 = vadd.f32 %v1134_v28, %v988_v35  ;;  %v989_v42 = vmul.f32 %v1133_v23, %v955_v37 }
 0x13d   :  { %v1013_v44 = vadd.f32 %v1149_v32, %v1001_v38  ;;  %v1002_v45 = vadd.f32 %v1134_v28, %v991_v39 }
 0x13e   :  { %v1011_v46 = vadd.f32 %v1145_v36, %v999_v41  ;;  %v1000_v47 = vadd.f32 %v1134_v28, %v989_v42 }
 0x13f   :  { %v1014_v48 = vadd.f32 %v1150_v40, %v1002_v45  ;;  %v1017_v50 = vmax.f32 %v1013_v44, 0.0 }
 0x140   :  { %v1012_v49 = vadd.f32 %v1146_v43, %v1000_v47  ;;  %v1015_v52 = vmax.f32 %v1011_v46, 0.0 }
 0x141   :  { %v1018_v51 = vmax.f32 %v1014_v48, 0.0 }
 0x142   :  { %v1016_v53 = vmax.f32 %v1012_v49, 0.0 }
 0x143   :  { %v1159_v54 = vpack.c.bf16 %v1018_v51, %v1017_v50 }
 0x144   :  { %v1154_v55 = vpack.c.bf16 %v1016_v53, %v1015_v52 }
 0x145   :  { %1162 = vst [vmem:[%s1726_s5 + $0x8] sm:$0xff] %v1159_v54  }
 0x146   :  { %1155 = vst [vmem:[%s1726_s5] sm:$0xff] %v1154_v55  }

// kernel: _lambda_.22
= control target key start
LH: loop header
LB: loop body
LE: loop exit
PB: predicated region body
PF: predicated region fallthrough
CT: control target
= control target key end

     0   :  { %s2073_s1 = inlined_call_operand.vmem [shape: bf16[1152,256], index: 1, kind: input, shape index: {}]   ;;  %s2074_s0 = inlined_call_operand.vmem [shape: bf16[8,1152], index: 0, kind: input, shape index: {}]   ;;  %s2075_s2 = inlined_call_operand.vmem [shape: f32[1,256], index: 2, kind: input, shape index: {}]   ;;  %s2076_s3 = inlined_call_operand.vmem [shape: f32[1,256], index: 3, kind: input, shape index: {}]   ;;  %s2077_s4 = inlined_call_operand.vmem [shape: bf16[8,256], index: 4, kind: output, shape index: {}]  }
   0x1   :  { %v1354_v0 = vld [vmem:[%s2073_s1 + $0x4] ss:$8 sps:$4 sm:$0xff]   ;;  %v1358_v2 = vld [vmem:[%s2073_s1] ss:$8 sps:$4 sm:$0xff]   ;;  %v1360_v4 = vld [vmem:[%s2073_s1 + $0x14] ss:$8 sps:$4 sm:$0xff]  }
   0x2   :  { %v1356_v1 = vld [vmem:[%s2073_s1 + $0x204] ss:$8 sps:$4 sm:$0xff]   ;;  %927 = vmatprep.subr.bf16.mxu1 %v1354_v0  ;;  %v1359_v3 = vld [vmem:[%s2073_s1 + $0x200] ss:$8 sps:$4 sm:$0xff]   ;;  %v1362_v5 = vld [vmem:[%s2073_s1 + $0x214] ss:$8 sps:$4 sm:$0xff]  }
   0x3   :  { %1009 = vmatprep.subr.bf16.mxu0 %v1356_v1  ;;  %928 = vmatpush1.bf16.msra.mxu1 %v1358_v2  ;;  %v1364_v6 = vld [vmem:[%s2073_s1 + $0x10] ss:$8 sps:$4 sm:$0xff]   ;;  %v1366_v8 = vld [vmem:[%s2073_s1 + $0x24] ss:$8 sps:$4 sm:$0xff]   ;;  %v1370_v10 = vld [vmem:[%s2073_s1 + $0x20] ss:$8 sps:$4 sm:$0xff]  }
   0x4   :  { %1010 = vmatpush1.bf16.msra.mxu0 %v1359_v3  ;;  %929 = vmatprep.subr.bf16.mxu1 %v1360_v4  ;;  %v1365_v7 = vld [vmem:[%s2073_s1 + $0x210] ss:$8 sps:$4 sm:$0xff]   ;;  %v1368_v9 = vld [vmem:[%s2073_s1 + $0x224] ss:$8 sps:$4 sm:$0xff]   ;;  %v1371_v11 = vld [vmem:[%s2073_s1 + $0x220] ss:$8 sps:$4 sm:$0xff]  }
   0x5   :  { %1011 = vmatprep.subr.bf16.mxu0 %v1362_v5  ;;  %v1372_v12 = vld [vmem:[%s2073_s1 + $0x34] ss:$8 sps:$4 sm:$0xff]   ;;  %v1376_v14 = vld [vmem:[%s2073_s1 + $0x30] ss:$8 sps:$4 sm:$0xff]   ;;  %v1378_v16 = vld [vmem:[%s2073_s1 + $0x44] ss:$8 sps:$4 sm:$0xff]  }
   0x6   :  { %v1374_v13 = vld [vmem:[%s2073_s1 + $0x234] ss:$8 sps:$4 sm:$0xff]   ;;  %v1377_v15 = vld [vmem:[%s2073_s1 + $0x230] ss:$8 sps:$4 sm:$0xff]   ;;  %v1380_v17 = vld [vmem:[%s2073_s1 + $0x244] ss:$8 sps:$4 sm:$0xff]  }
   0x7   :  { %930 = vmatpush1.bf16.msra.mxu1 %v1364_v6  ;;  %v1382_v18 = vld [vmem:[%s2073_s1 + $0x40] ss:$8 sps:$4 sm:$0xff]   ;;  %v1384_v20 = vld [vmem:[%s2073_s1 + $0x54] ss:$8 sps:$4 sm:$0xff]   ;;  %v1388_v22 = vld [vmem:[%s2073_s1 + $0x50] ss:$8 sps:$4 sm:$0xff]  }
   0x8   :  { %1012 = vmatpush1.bf16.msra.mxu0 %v1365_v7  ;;  %931 = vmatprep.subr.bf16.mxu1 %v1366_v8  ;;  %v1383_v19 = vld [vmem:[%s2073_s1 + $0x240] ss:$8 sps:$4 sm:$0xff]   ;;  %v1386_v21 = vld [vmem:[%s2073_s1 + $0x254] ss:$8 sps:$4 sm:$0xff]   ;;  %v1389_v23 = vld [vmem:[%s2073_s1 + $0x250] ss:$8 sps:$4 sm:$0xff]  }
   0x9   :  { %1013 = vmatprep.subr.bf16.mxu0 %v1368_v9  ;;  %v1390_v24 = vld [vmem:[%s2073_s1 + $0x64] ss:$8 sps:$4 sm:$0xff]   ;;  %v1394_v26 = vld [vmem:[%s2073_s1 + $0x60] ss:$8 sps:$4 sm:$0xff]   ;;  %v1396_v28 = vld [vmem:[%s2073_s1 + $0x74] ss:$8 sps:$4 sm:$0xff]  }
   0xa   :  { %v1392_v25 = vld [vmem:[%s2073_s1 + $0x264] ss:$8 sps:$4 sm:$0xff]   ;;  %v1395_v27 = vld [vmem:[%s2073_s1 + $0x260] ss:$8 sps:$4 sm:$0xff]   ;;  %v1398_v29 = vld [vmem:[%s2073_s1 + $0x274] ss:$8 sps:$4 sm:$0xff]  }
   0xb   :  { %932 = vmatpush1.bf16.msra.mxu1 %v1370_v10  ;;  %v1400_v30 = vld [vmem:[%s2073_s1 + $0x70] ss:$8 sps:$4 sm:$0xff]   ;;  %v1402_v32 = vld [vmem:[%s2073_s1 + $0x84] ss:$8 sps:$4 sm:$0xff]   ;;  %v1406_v34 = vld [vmem:[%s2073_s1 + $0x80] ss:$8 sps:$4 sm:$0xff]  }
   0xc   :  { %1014 = vmatpush1.bf16.msra.mxu0 %v1371_v11  ;;  %933 = vmatprep.subr.bf16.mxu1 %v1372_v12  ;;  %v1401_v31 = vld [vmem:[%s2073_s1 + $0x270] ss:$8 sps:$4 sm:$0xff]   ;;  %v1404_v33 = vld [vmem:[%s2073_s1 + $0x284] ss:$8 sps:$4 sm:$0xff]   ;;  %v1407_v35 = vld [vmem:[%s2073_s1 + $0x280] ss:$8 sps:$4 sm:$0xff]  }
   0xd   :  { %1015 = vmatprep.subr.bf16.mxu0 %v1374_v13  ;;  %v1408_v36 = vld [vmem:[%s2073_s1 + $0x94] ss:$8 sps:$4 sm:$0xff]   ;;  %v1412_v38 = vld [vmem:[%s2073_s1 + $0x90] ss:$8 sps:$4 sm:$0xff]   ;;  %v1414_v40 = vld [vmem:[%s2073_s1 + $0xa4] ss:$8 sps:$4 sm:$0xff]  }
   0xe   :  { %v1410_v37 = vld [vmem:[%s2073_s1 + $0x294] ss:$8 sps:$4 sm:$0xff]   ;;  %v1413_v39 = vld [vmem:[%s2073_s1 + $0x290] ss:$8 sps:$4 sm:$0xff]   ;;  %v1416_v41 = vld [vmem:[%s2073_s1 + $0x2a4] ss:$8 sps:$4 sm:$0xff]  }
   0xf   :  { %934 = vmatpush1.bf16.msra.mxu1 %v1376_v14  ;;  %v1418_v42 = vld [vmem:[%s2073_s1 + $0xa0] ss:$8 sps:$4 sm:$0xff]   ;;  %v1420_v44 = vld [vmem:[%s2073_s1 + $0xb4] ss:$8 sps:$4 sm:$0xff]   ;;  %v1424_v47 = vld [vmem:[%s2073_s1 + $0xb0] ss:$8 sps:$4 sm:$0xff]  }
  0x10   :  { %1016 = vmatpush1.bf16.msra.mxu0 %v1377_v15  ;;  %935 = vmatprep.subr.bf16.mxu1 %v1378_v16  ;;  %v1419_v43 = vld [vmem:[%s2073_s1 + $0x2a0] ss:$8 sps:$4 sm:$0xff]   ;;  %v1422_v45 = vld [vmem:[%s2073_s1 + $0x2b4] ss:$8 sps:$4 sm:$0xff]   ;;  %v1425_v49 = vld [vmem:[%s2073_s1 + $0x2b0] ss:$8 sps:$4 sm:$0xff]  }
  0x11   :  { %1017 = vmatprep.subr.bf16.mxu0 %v1380_v17  ;;  %v26_v46 = vld [vmem:[%s2074_s0] sm:$0xff]  ;;  %v28_v50 = vld [vmem:[%s2074_s0 + $0x10] sm:$0xff] }
  0x12   :  { %v1185_v48 = vcombine.high %v26_v46, %v26_v46  ;;  %v1426_v51 = vld [vmem:[%s2073_s1 + $0xc4] ss:$8 sps:$4 sm:$0xff]   ;;  %v1189_v53 = vcombine.high %v28_v50, %v28_v50  ;;  %v1430_v54 = vld [vmem:[%s2073_s1 + $0xc0] ss:$8 sps:$4 sm:$0xff]   ;;  %v1432_v56 = vld [vmem:[%s2073_s1 + $0xd4] ss:$8 sps:$4 sm:$0xff]   ;;  %v1184_v6 = vcombine.low %v26_v46, %v26_v46  ;;  %v1188_v7 = vcombine.low %v28_v50, %v28_v50 }
  0x13   :  { %936 = vmatpush1.bf16.msra.mxu1 %v1382_v18  ;;  %v1428_v52 = vld [vmem:[%s2073_s1 + $0x2c4] ss:$8 sps:$4 sm:$0xff]   ;;  %v1431_v55 = vld [vmem:[%s2073_s1 + $0x2c0] ss:$8 sps:$4 sm:$0xff]   ;;  %v1434_v57 = vld [vmem:[%s2073_s1 + $0x2d4] ss:$8 sps:$4 sm:$0xff]  }
  0x14   :  { %1018 = vmatpush1.bf16.msra.mxu0 %v1383_v19  ;;  %937 = vmatprep.subr.bf16.mxu1 %v1384_v20  ;;  %v1436_v58 = vld [vmem:[%s2073_s1 + $0xd0] ss:$8 sps:$4 sm:$0xff]   ;;  %v1438_v60 = vld [vmem:[%s2073_s1 + $0xe4] ss:$8 sps:$4 sm:$0xff]   ;;  %v1442_v62 = vld [vmem:[%s2073_s1 + $0xe0] ss:$8 sps:$4 sm:$0xff]  }
  0x15   :  { %1019 = vmatprep.subr.bf16.mxu0 %v1386_v21  ;;  %959 = vmatprep.mubr.bf16.mxu1 %v1185_v48  ;;  %v1437_v59 = vld [vmem:[%s2073_s1 + $0x2d0] ss:$8 sps:$4 sm:$0xff]   ;;  %v1440_v61 = vld [vmem:[%s2073_s1 + $0x2e4] ss:$8 sps:$4 sm:$0xff]   ;;  %v1443_v63 = vld [vmem:[%s2073_s1 + $0x2e0] ss:$8 sps:$4 sm:$0xff]  }
  0x16   :  { %1041 = vmatprep.mubr.bf16.mxu0 %v1189_v53  ;;  %v1444_v0 = vld [vmem:[%s2073_s1 + $0xf4] ss:$8 sps:$4 sm:$0xff]   ;;  %v1448_v2 = vld [vmem:[%s2073_s1 + $0xf0] ss:$8 sps:$4 sm:$0xff]   ;;  %v1454_v4 = vld [vmem:[%s2073_s1 + $0x104] ss:$8 sps:$4 sm:$0xff]  }
  0x17   :  { %938 = vmatpush1.bf16.msra.mxu1 %v1388_v22  ;;  %v1446_v1 = vld [vmem:[%s2073_s1 + $0x2f4] ss:$8 sps:$4 sm:$0xff]   ;;  %v1449_v3 = vld [vmem:[%s2073_s1 + $0x2f0] ss:$8 sps:$4 sm:$0xff]   ;;  %v1459_v5 = vld [vmem:[%s2073_s1 + $0x304] ss:$8 sps:$4 sm:$0xff]  }
  0x18   :  { %1020 = vmatpush1.bf16.msra.mxu0 %v1389_v23  ;;  %939 = vmatprep.subr.bf16.mxu1 %v1390_v24  ;;  %v1452_v8 = vld [vmem:[%s2073_s1 + $0x100] ss:$8 sps:$4 sm:$0xff]   ;;  %v1462_v10 = vld [vmem:[%s2073_s1 + $0x114] ss:$8 sps:$4 sm:$0xff]   ;;  %v1460_v12 = vld [vmem:[%s2073_s1 + $0x110] ss:$8 sps:$4 sm:$0xff]  }
  0x19   :  { %1021 = vmatprep.subr.bf16.mxu0 %v1392_v25  ;;  %v1457_v9 = vld [vmem:[%s2073_s1 + $0x300] ss:$8 sps:$4 sm:$0xff]   ;;  %v1465_v11 = vld [vmem:[%s2073_s1 + $0x314] ss:$8 sps:$4 sm:$0xff]   ;;  %v1463_v13 = vld [vmem:[%s2073_s1 + $0x310] ss:$8 sps:$4 sm:$0xff]  }
  0x1a   :  { %v1468_v14 = vld [vmem:[%s2073_s1 + $0x124] ss:$8 sps:$4 sm:$0xff]   ;;  %v1466_v16 = vld [vmem:[%s2073_s1 + $0x120] ss:$8 sps:$4 sm:$0xff]   ;;  %v1474_v18 = vld [vmem:[%s2073_s1 + $0x134] ss:$8 sps:$4 sm:$0xff]  }
  0x1b   :  { %940 = vmatpush1.bf16.msra.mxu1 %v1394_v26  ;;  %v1471_v15 = vld [vmem:[%s2073_s1 + $0x324] ss:$8 sps:$4 sm:$0xff]   ;;  %v1469_v17 = vld [vmem:[%s2073_s1 + $0x320] ss:$8 sps:$4 sm:$0xff]   ;;  %v1477_v19 = vld [vmem:[%s2073_s1 + $0x334] ss:$8 sps:$4 sm:$0xff]  }
  0x1c   :  { %1022 = vmatpush1.bf16.msra.mxu0 %v1395_v27  ;;  %941 = vmatprep.subr.bf16.mxu1 %v1396_v28  ;;  %v1472_v20 = vld [vmem:[%s2073_s1 + $0x130] ss:$8 sps:$4 sm:$0xff]   ;;  %v1480_v22 = vld [vmem:[%s2073_s1 + $0x144] ss:$8 sps:$4 sm:$0xff]   ;;  %v1478_v24 = vld [vmem:[%s2073_s1 + $0x140] ss:$8 sps:$4 sm:$0xff]  }
  0x1d   :  { %1023 = vmatprep.subr.bf16.mxu0 %v1398_v29  ;;  %v1475_v21 = vld [vmem:[%s2073_s1 + $0x330] ss:$8 sps:$4 sm:$0xff]   ;;  %v1483_v23 = vld [vmem:[%s2073_s1 + $0x344] ss:$8 sps:$4 sm:$0xff]   ;;  %v1481_v25 = vld [vmem:[%s2073_s1 + $0x340] ss:$8 sps:$4 sm:$0xff]  }
  0x1e   :  { %v1486_v26 = vld [vmem:[%s2073_s1 + $0x154] ss:$8 sps:$4 sm:$0xff]   ;;  %v1484_v28 = vld [vmem:[%s2073_s1 + $0x150] ss:$8 sps:$4 sm:$0xff]   ;;  %v1516_v50 = vld [vmem:[%s2073_s1 + $0x1a4] ss:$8 sps:$4 sm:$0xff]  }
  0x1f   :  { %942 = vmatpush1.bf16.msra.mxu1 %v1400_v30  ;;  %v1489_v27 = vld [vmem:[%s2073_s1 + $0x354] ss:$8 sps:$4 sm:$0xff]   ;;  %v1487_v29 = vld [vmem:[%s2073_s1 + $0x350] ss:$8 sps:$4 sm:$0xff]   ;;  %v1492_v30 = vld [vmem:[%s2073_s1 + $0x164] ss:$8 sps:$4 sm:$0xff]  }
  0x20   :  { %1024 = vmatpush1.bf16.msra.mxu0 %v1401_v31  ;;  %943 = vmatprep.subr.bf16.mxu1 %v1402_v32  ;;  %v1495_v31 = vld [vmem:[%s2073_s1 + $0x364] ss:$8 sps:$4 sm:$0xff]   ;;  %v1510_v46 = vld [vmem:[%s2073_s1 + $0x194] ss:$8 sps:$4 sm:$0xff]   ;;  %v1508_v48 = vld [vmem:[%s2073_s1 + $0x190] ss:$8 sps:$4 sm:$0xff]  }
  0x21   :  { %1025 = vmatprep.subr.bf16.mxu0 %v1404_v33  ;;  %v1884_v32 = vld [vmem:[%s2074_s0 + $0x8] sm:$0xff]  ;;  %v1889_v33 = vld [vmem:[%s2074_s0 + $0x18] sm:$0xff] }
  0x22   :  { %v1517_v53 = vld [vmem:[%s2073_s1 + $0x3a0] ss:$8 sps:$4 sm:$0xff]  }
  0x23   :  { %944 = vmatpush1.bf16.msra.mxu1 %v1406_v34  ;;  %v1490_v34 = vld [vmem:[%s2073_s1 + $0x160] ss:$8 sps:$4 sm:$0xff]  }
  0x24   :  { %1026 = vmatpush1.bf16.msra.mxu0 %v1407_v35  ;;  %945 = vmatprep.subr.bf16.mxu1 %v1408_v36  ;;  %v1493_v35 = vld [vmem:[%s2073_s1 + $0x360] ss:$8 sps:$4 sm:$0xff]   ;;  %v1187_v36 = vcombine.high %v1884_v32, %v1884_v32 }
  0x25   :  { %1027 = vmatprep.subr.bf16.mxu0 %v1410_v37  ;;  %v1191_v37 = vcombine.high %v1889_v33, %v1889_v33 }
  0x27   :  { %946 = vmatpush1.bf16.msra.mxu1 %v1412_v38  ;;  %v1498_v38 = vld [vmem:[%s2073_s1 + $0x174] ss:$8 sps:$4 sm:$0xff]  }
  0x28   :  { %1028 = vmatpush1.bf16.msra.mxu0 %v1413_v39  ;;  %947 = vmatprep.subr.bf16.mxu1 %v1414_v40  ;;  %v1501_v39 = vld [vmem:[%s2073_s1 + $0x374] ss:$8 sps:$4 sm:$0xff]   ;;  %v1496_v40 = vld [vmem:[%s2073_s1 + $0x170] ss:$8 sps:$4 sm:$0xff]  }
  0x29   :  { %1029 = vmatprep.subr.bf16.mxu0 %v1416_v41  ;;  %v1499_v41 = vld [vmem:[%s2073_s1 + $0x370] ss:$8 sps:$4 sm:$0xff]  }
  0x2b   :  { %948 = vmatpush1.bf16.msra.mxu1 %v1418_v42  ;;  %v1504_v42 = vld [vmem:[%s2073_s1 + $0x184] ss:$8 sps:$4 sm:$0xff]  }
  0x2c   :  { %1030 = vmatpush1.bf16.msra.mxu0 %v1419_v43  ;;  %949 = vmatprep.subr.bf16.mxu1 %v1420_v44  ;;  %v1507_v43 = vld [vmem:[%s2073_s1 + $0x384] ss:$8 sps:$4 sm:$0xff]   ;;  %v1502_v44 = vld [vmem:[%s2073_s1 + $0x180] ss:$8 sps:$4 sm:$0xff]  }
  0x2d   :  { %1031 = vmatprep.subr.bf16.mxu0 %v1422_v45  ;;  %v1505_v45 = vld [vmem:[%s2073_s1 + $0x380] ss:$8 sps:$4 sm:$0xff]  }
  0x2f   :  { %950 = vmatpush1.bf16.msra.mxu1 %v1424_v47  ;;  %v1513_v47 = vld [vmem:[%s2073_s1 + $0x394] ss:$8 sps:$4 sm:$0xff]  }
  0x30   :  { %1032 = vmatpush1.bf16.msra.mxu0 %v1425_v49  ;;  %951 = vmatprep.subr.bf16.mxu1 %v1426_v51  ;;  %v1511_v49 = vld [vmem:[%s2073_s1 + $0x390] ss:$8 sps:$4 sm:$0xff]   ;;  %v1519_v51 = vld [vmem:[%s2073_s1 + $0x3a4] ss:$8 sps:$4 sm:$0xff]  }
  0x31   :  { %1033 = vmatprep.subr.bf16.mxu0 %v1428_v52  ;;  %v1514_v52 = vld [vmem:[%s2073_s1 + $0x1a0] ss:$8 sps:$4 sm:$0xff]  }
  0x33   :  { %952 = vmatpush1.bf16.msra.mxu1 %v1430_v54  ;;  %v1522_v54 = vld [vmem:[%s2073_s1 + $0x1b4] ss:$8 sps:$4 sm:$0xff]  }
  0x34   :  { %1034 = vmatpush1.bf16.msra.mxu0 %v1431_v55  ;;  %953 = vmatprep.subr.bf16.mxu1 %v1432_v56  ;;  %v1525_v55 = vld [vmem:[%s2073_s1 + $0x3b4] ss:$8 sps:$4 sm:$0xff]   ;;  %v1520_v56 = vld [vmem:[%s2073_s1 + $0x1b0] ss:$8 sps:$4 sm:$0xff]  }
  0x35   :  { %1035 = vmatprep.subr.bf16.mxu0 %v1434_v57  ;;  %v1523_v57 = vld [vmem:[%s2073_s1 + $0x3b0] ss:$8 sps:$4 sm:$0xff]  }
  0x37   :  { %954 = vmatpush1.bf16.msra.mxu1 %v1436_v58  ;;  %v1528_v58 = vld [vmem:[%s2073_s1 + $0x1c4] ss:$8 sps:$4 sm:$0xff]  }
  0x38   :  { %1036 = vmatpush1.bf16.msra.mxu0 %v1437_v59  ;;  %955 = vmatprep.subr.bf16.mxu1 %v1438_v60  ;;  %v1531_v59 = vld [vmem:[%s2073_s1 + $0x3c4] ss:$8 sps:$4 sm:$0xff]   ;;  %v1526_v60 = vld [vmem:[%s2073_s1 + $0x1c0] ss:$8 sps:$4 sm:$0xff]  }
  0x39   :  { %1037 = vmatprep.subr.bf16.mxu0 %v1440_v61  ;;  %v1529_v61 = vld [vmem:[%s2073_s1 + $0x3c0] ss:$8 sps:$4 sm:$0xff]  }
  0x3b   :  { %956 = vmatpush1.bf16.msra.mxu1 %v1442_v62  ;;  %v1534_v62 = vld [vmem:[%s2073_s1 + $0x1d4] ss:$8 sps:$4 sm:$0xff]  }
  0x3c   :  { %1038 = vmatpush1.bf16.msra.mxu0 %v1443_v63  ;;  %957 = vmatprep.subr.bf16.mxu1 %v1444_v0  ;;  %v1537_v63 = vld [vmem:[%s2073_s1 + $0x3d4] ss:$8 sps:$4 sm:$0xff]   ;;  %v1532_v0 = vld [vmem:[%s2073_s1 + $0x1d0] ss:$8 sps:$4 sm:$0xff]  }
  0x3d   :  { %1039 = vmatprep.subr.bf16.mxu0 %v1446_v1  ;;  %v1535_v1 = vld [vmem:[%s2073_s1 + $0x3d0] ss:$8 sps:$4 sm:$0xff]  }
  0x3f   :  { %958 = vmatpush1.bf16.msra.mxu1 %v1448_v2  ;;  %v1540_v2 = vld [vmem:[%s2073_s1 + $0x1e4] ss:$8 sps:$4 sm:$0xff]  }
  0x40   :  { %1040 = vmatpush1.bf16.msra.mxu0 %v1449_v3  ;;  %968 = vmatprep.subr.bf16.mxu1 %v1454_v4  ;;  %v1543_v3 = vld [vmem:[%s2073_s1 + $0x3e4] ss:$8 sps:$4 sm:$0xff]   ;;  %v1538_v4 = vld [vmem:[%s2073_s1 + $0x1e0] ss:$8 sps:$4 sm:$0xff]  }
  0x41   :  { %1050 = vmatprep.subr.bf16.mxu0 %v1459_v5  ;;  %v1541_v5 = vld [vmem:[%s2073_s1 + $0x3e0] ss:$8 sps:$4 sm:$0xff]  }
  0x42   :  { %960 = vmatmul.mubr.bf16.vlgmr.msra.gmra.mrb[0].mxu1 %v1184_v6  ;;  %v1546_v6 = vld [vmem:[%s2073_s1 + $0x1f4] ss:$8 sps:$4 sm:$0xff]  }
  0x43   :  { %1042 = vmatmul.mubr.bf16.vlgmr.msra.gmra.mrb[0].mxu0 %v1188_v7  ;;  %969 = vmatpush1.bf16.msra.mxu1 %v1452_v8  ;;  %v1549_v7 = vld [vmem:[%s2073_s1 + $0x3f4] ss:$8 sps:$4 sm:$0xff]   ;;  %v1544_v8 = vld [vmem:[%s2073_s1 + $0x1f0] ss:$8 sps:$4 sm:$0xff]  }
  0x44   :  { %1051 = vmatpush1.bf16.msra.mxu0 %v1457_v9  ;;  %970 = vmatprep.subr.bf16.mxu1 %v1462_v10  ;;  %v1547_v9 = vld [vmem:[%s2073_s1 + $0x3f0] ss:$8 sps:$4 sm:$0xff]   ;;  %v1556_v10 = vld [vmem:[%s2073_s1 + $0x404] ss:$8 sps:$4 sm:$0xff]  }
  0x45   :  { %1052 = vmatprep.subr.bf16.mxu0 %v1465_v11  ;;  %1000 = vmatprep.mubr.bf16.mxu1 %v1187_v36  ;;  %v1186_v11 = vcombine.low %v1884_v32, %v1884_v32 }
  0x46   :  { %1082 = vmatprep.mubr.bf16.mxu0 %v1191_v37  ;;  %v1141_v37 = vld [vmem:[%s2075_s2] sm:$0x3] }
  0x47   :  { %971 = vmatpush1.bf16.msra.mxu1 %v1460_v12  ;;  %v1190_v12 = vcombine.low %v1889_v33, %v1889_v33 }
  0x48   :  { %1053 = vmatpush1.bf16.msra.mxu0 %v1463_v13  ;;  %972 = vmatprep.subr.bf16.mxu1 %v1468_v14  ;;  %v1554_v13 = vld [vmem:[%s2073_s1 + $0x400] ss:$8 sps:$4 sm:$0xff]   ;;  %v1559_v14 = vld [vmem:[%s2073_s1 + $0x414] ss:$8 sps:$4 sm:$0xff]  }
  0x49   :  { %1054 = vmatprep.subr.bf16.mxu0 %v1471_v15  ;;  %v1557_v15 = vld [vmem:[%s2073_s1 + $0x410] ss:$8 sps:$4 sm:$0xff]  }
  0x4b   :  { %973 = vmatpush1.bf16.msra.mxu1 %v1466_v16  ;;  %v1579_v16 = vmov 0  }
  0x4c   :  { %1055 = vmatpush1.bf16.msra.mxu0 %v1469_v17  ;;  %974 = vmatprep.subr.bf16.mxu1 %v1474_v18  ;;  %v1562_v17 = vld [vmem:[%s2073_s1 + $0x424] ss:$8 sps:$4 sm:$0xff]   ;;  %v1560_v18 = vld [vmem:[%s2073_s1 + $0x420] ss:$8 sps:$4 sm:$0xff]  }
  0x4d   :  { %1056 = vmatprep.subr.bf16.mxu0 %v1477_v19  ;;  %v1565_v19 = vld [vmem:[%s2073_s1 + $0x434] ss:$8 sps:$4 sm:$0xff]  }
  0x4f   :  { %975 = vmatpush1.bf16.msra.mxu1 %v1472_v20  ;;  %v1563_v20 = vld [vmem:[%s2073_s1 + $0x430] ss:$8 sps:$4 sm:$0xff]  }
  0x50   :  { %1057 = vmatpush1.bf16.msra.mxu0 %v1475_v21  ;;  %976 = vmatprep.subr.bf16.mxu1 %v1480_v22  ;;  %v1568_v21 = vld [vmem:[%s2073_s1 + $0x444] ss:$8 sps:$4 sm:$0xff]   ;;  %v1566_v22 = vld [vmem:[%s2073_s1 + $0x440] ss:$8 sps:$4 sm:$0xff]  }
  0x51   :  { %1058 = vmatprep.subr.bf16.mxu0 %v1483_v23  ;;  %v1571_v23 = vld [vmem:[%s2073_s1 + $0x454] ss:$8 sps:$4 sm:$0xff]  }
  0x53   :  { %977 = vmatpush1.bf16.msra.mxu1 %v1478_v24  ;;  %v1569_v24 = vld [vmem:[%s2073_s1 + $0x450] ss:$8 sps:$4 sm:$0xff]  }
  0x54   :  { %1059 = vmatpush1.bf16.msra.mxu0 %v1481_v25  ;;  %978 = vmatprep.subr.bf16.mxu1 %v1486_v26  ;;  %v1574_v25 = vld [vmem:[%s2073_s1 + $0x464] ss:$8 sps:$4 sm:$0xff]   ;;  %v1572_v26 = vld [vmem:[%s2073_s1 + $0x460] ss:$8 sps:$4 sm:$0xff]  }
  0x55   :  { %1060 = vmatprep.subr.bf16.mxu0 %v1489_v27  ;;  %v1577_v27 = vld [vmem:[%s2073_s1 + $0x474] ss:$8 sps:$4 sm:$0xff]  }
  0x57   :  { %979 = vmatpush1.bf16.msra.mxu1 %v1484_v28  ;;  %v1575_v28 = vld [vmem:[%s2073_s1 + $0x470] ss:$8 sps:$4 sm:$0xff]  }
  0x58   :  { %1061 = vmatpush1.bf16.msra.mxu0 %v1487_v29  ;;  %980 = vmatprep.subr.bf16.mxu1 %v1492_v30  ;;  %v1578_v29 = vld [vmem:[%s2074_s0 + $0x20] ss:$0 sps:$4 sm:$0xff]  }
  0x59   :  { %1062 = vmatprep.subr.bf16.mxu0 %v1495_v31 }
  0x5b   :  { %981 = vmatpush1.bf16.msra.mxu1 %v1490_v34  ;;  %v1143_v34 = vlaneseq }
  0x5c   :  { %1063 = vmatpush1.bf16.msra.mxu0 %v1493_v35  ;;  %982 = vmatprep.subr.bf16.mxu1 %v1498_v38 }
  0x5d   :  { %1064 = vmatprep.subr.bf16.mxu0 %v1501_v39  ;;  %v1144_v35 = vshrl.u32 %v1143_v34, 7  ;;  %v1155_v39 = vld [vmem:[%s2076_s3] sm:$0x3] }
  0x5f   :  { %983 = vmatpush1.bf16.msra.mxu1 %v1496_v40  ;;  %v1145_v36 = vsub.s32 0, %v1144_v35  ;;  %v1149_v38 = vsub.s32 1, %v1144_v35 }
  0x60   :  { %1065 = vmatpush1.bf16.msra.mxu0 %v1499_v41  ;;  %984 = vmatprep.subr.bf16.mxu1 %v1504_v42 }
  0x61   :  { %1066 = vmatprep.subr.bf16.mxu0 %v1507_v43  ;;  %v1146_v40 = vrot.slane %v1141_v37, %v1145_v36  ;;  %v1150_v42 = vrot.slane %v1141_v37, %v1149_v38 }
  0x63   :  { %985 = vmatpush1.bf16.msra.mxu1 %v1502_v44  ;;  %v1160_v44 = vrot.slane %v1155_v39, %v1145_v36 }
  0x64   :  { %1067 = vmatpush1.bf16.msra.mxu0 %v1505_v45  ;;  %986 = vmatprep.subr.bf16.mxu1 %v1510_v46 }
  0x65   :  { %1068 = vmatprep.subr.bf16.mxu0 %v1513_v47  ;;  %v1164_v47 = vrot.slane %v1155_v39, %v1149_v38 }
  0x67   :  { %987 = vmatpush1.bf16.msra.mxu1 %v1508_v48 }
  0x68   :  { %1069 = vmatpush1.bf16.msra.mxu0 %v1511_v49  ;;  %988 = vmatprep.subr.bf16.mxu1 %v1516_v50 }
  0x69   :  { %1070 = vmatprep.subr.bf16.mxu0 %v1519_v51 }
  0x6b   :  { %989 = vmatpush1.bf16.msra.mxu1 %v1514_v52 }
  0x6c   :  { %1071 = vmatpush1.bf16.msra.mxu0 %v1517_v53  ;;  %990 = vmatprep.subr.bf16.mxu1 %v1522_v54 }
  0x6d   :  { %1072 = vmatprep.subr.bf16.mxu0 %v1525_v55 }
  0x6f   :  { %991 = vmatpush1.bf16.msra.mxu1 %v1520_v56 }
  0x70   :  { %1073 = vmatpush1.bf16.msra.mxu0 %v1523_v57  ;;  %992 = vmatprep.subr.bf16.mxu1 %v1528_v58 }
  0x71   :  { %1074 = vmatprep.subr.bf16.mxu0 %v1531_v59 }
  0x73   :  { %993 = vmatpush1.bf16.msra.mxu1 %v1526_v60 }
  0x74   :  { %1075 = vmatpush1.bf16.msra.mxu0 %v1529_v61  ;;  %994 = vmatprep.subr.bf16.mxu1 %v1534_v62 }
  0x75   :  { %1076 = vmatprep.subr.bf16.mxu0 %v1537_v63 }
  0x77   :  { %995 = vmatpush1.bf16.msra.mxu1 %v1532_v0 }
  0x78   :  { %1077 = vmatpush1.bf16.msra.mxu0 %v1535_v1  ;;  %996 = vmatprep.subr.bf16.mxu1 %v1540_v2 }
  0x79   :  { %1078 = vmatprep.subr.bf16.mxu0 %v1543_v3 }
  0x7b   :  { %997 = vmatpush1.bf16.msra.mxu1 %v1538_v4 }
  0x7c   :  { %1079 = vmatpush1.bf16.msra.mxu0 %v1541_v5  ;;  %998 = vmatprep.subr.bf16.mxu1 %v1546_v6 }
  0x7d   :  { %1080 = vmatprep.subr.bf16.mxu0 %v1549_v7 }
  0x7f   :  { %999 = vmatpush1.bf16.msra.mxu1 %v1544_v8 }
  0x80   :  { %1081 = vmatpush1.bf16.msra.mxu0 %v1547_v9 }
  0x81   :  { %1091 = vmatprep.subr.bf16.mxu0 %v1556_v10 }
  0x82   :  { %1001 = vmatmul.mubr.bf16.vlgmr.msra.gmra.mrb[0].mxu1 %v1186_v11 }
  0x83   :  { %1083 = vmatmul.mubr.bf16.vlgmr.msra.gmra.mrb[0].mxu0 %v1190_v12 }
  0x84   :  { %1092 = vmatpush1.bf16.msra.mxu0 %v1554_v13  ;;  %1123 = vmatprep.mubr.bf16.mxu0 %v1579_v16 }
  0x85   :  { %1093 = vmatprep.subr.bf16.mxu0 %v1559_v14 }
  0x88   :  { %1094 = vmatpush1.bf16.msra.mxu0 %v1557_v15 }
  0x89   :  { %1095 = vmatprep.subr.bf16.mxu0 %v1562_v17 }
  0x8c   :  { %1096 = vmatpush1.bf16.msra.mxu0 %v1560_v18 }
  0x8d   :  { %1097 = vmatprep.subr.bf16.mxu0 %v1565_v19 }
  0x90   :  { %1098 = vmatpush1.bf16.msra.mxu0 %v1563_v20 }
  0x91   :  { %1099 = vmatprep.subr.bf16.mxu0 %v1568_v21 }
  0x94   :  { %1100 = vmatpush1.bf16.msra.mxu0 %v1566_v22 }
  0x95   :  { %1101 = vmatprep.subr.bf16.mxu0 %v1571_v23 }
  0x98   :  { %1102 = vmatpush1.bf16.msra.mxu0 %v1569_v24 }
  0x99   :  { %1103 = vmatprep.subr.bf16.mxu0 %v1574_v25 }
  0x9c   :  { %1104 = vmatpush1.bf16.msra.mxu0 %v1572_v26 }
  0x9d   :  { %1105 = vmatprep.subr.bf16.mxu0 %v1577_v27 }
  0xa0   :  { %1106 = vmatpush1.bf16.msra.mxu0 %v1575_v28 }
  0xa3   :  { %1124 = vmatmul.mubr.bf16.vlgmr.msra.gmra.mrb[0].mxu0 %v1578_v29 }
 0x155   :  { %v1002_v30 = vpop.f32.mrb[0].mxu1 }
 0x156   :  { %v1004_v31 = vpop.f32.mrb[1].mxu1 }
 0x157   :  { %v1006_v32 = vpop.f32.mrb[2].mxu1 }
 0x158   :  { %v1007_v33 = vpop.f32.mrb[3].mxu1 }
 0x176   :  { %v1125_v41 = vpop.f32.mrb[0].mxu0 }
 0x177   :  { %v1339_v43 = vadd.f32 %v1125_v41, %v1002_v30  ;;  %v1127_v45 = vpop.f32.mrb[1].mxu0 }
 0x178   :  { %v1340_v46 = vadd.f32 %v1127_v45, %v1004_v31  ;;  %v1129_v48 = vpop.f32.mrb[2].mxu0 }
 0x179   :  { %v1153_v49 = vmul.f32 %v1339_v43, %v1146_v40  ;;  %v1130_v50 = vpop.f32.mrb[3].mxu0 }
 0x17a   :  { %v1154_v51 = vmul.f32 %v1340_v46, %v1150_v42 }
 0x17b   :  { %v1167_v52 = vadd.f32 %v1160_v44, %v1153_v49 }
 0x17c   :  { %v1168_v53 = vadd.f32 %v1164_v47, %v1154_v51 }
 0x17d   :  { %v1169_v54 = vmax.f32 %v1167_v52, 0.0 }
 0x17e   :  { %v1170_v55 = vmax.f32 %v1168_v53, 0.0 }
 0x180   :  { %v1338_v56 = vpack.c.bf16 %v1170_v55, %v1169_v54 }
 0x182   :  { %1179 = vst [vmem:[%s2077_s4] sm:$0xff] %v1338_v56 }

// kernel: _lambda_.23
= control target key start
LH: loop header
LB: loop body
LE: loop exit
PB: predicated region body
PF: predicated region fallthrough
CT: control target
= control target key end

     0   :  { %v257_v1 = vmov 0   ;;  %v175_v18 = vlaneseq  ;;  %s343_s1 = inlined_call_operand.vmem [shape: bf16[128,256], index: 1, kind: input, shape index: {}]   ;;  %s344_s0 = inlined_call_operand.vmem [shape: bf16[8,128], index: 0, kind: input, shape index: {}]   ;;  %s345_s2 = inlined_call_operand.vmem [shape: f32[1,256], index: 2, kind: input, shape index: {}]   ;;  %s346_s3 = inlined_call_operand.vmem [shape: f32[1,256], index: 3, kind: input, shape index: {}]   ;;  %s347_s4 = inlined_call_operand.vmem [shape: bf16[8,256], index: 4, kind: output, shape index: {}]  }
   0x1   :  { %v233_v0 = vld [vmem:[%s343_s1 + $0x4] ss:$8 sps:$4 sm:$0xff]   ;;  %155 = vmatprep.mubr.bf16.mxu0 %v257_v1  ;;  %v235_v2 = vld [vmem:[%s343_s1] ss:$8 sps:$4 sm:$0xff]   ;;  %v236_v3 = vld [vmem:[%s343_s1 + $0x14] ss:$8 sps:$4 sm:$0xff]  }
   0x2   :  { %123 = vmatprep.subr.bf16.mxu0 %v233_v0  ;;  %v238_v4 = vld [vmem:[%s343_s1 + $0x10] ss:$8 sps:$4 sm:$0xff]   ;;  %v239_v5 = vld [vmem:[%s343_s1 + $0x24] ss:$8 sps:$4 sm:$0xff]   ;;  %v241_v6 = vld [vmem:[%s343_s1 + $0x20] ss:$8 sps:$4 sm:$0xff]  }
   0x3   :  { %124 = vmatpush1.bf16.msra.mxu0 %v235_v2  ;;  %v242_v7 = vld [vmem:[%s343_s1 + $0x34] ss:$8 sps:$4 sm:$0xff]   ;;  %v244_v8 = vld [vmem:[%s343_s1 + $0x30] ss:$8 sps:$4 sm:$0xff]   ;;  %v245_v9 = vld [vmem:[%s343_s1 + $0x44] ss:$8 sps:$4 sm:$0xff]  }
   0x4   :  { %125 = vmatprep.subr.bf16.mxu0 %v236_v3  ;;  %v247_v10 = vld [vmem:[%s343_s1 + $0x40] ss:$8 sps:$4 sm:$0xff]   ;;  %v248_v11 = vld [vmem:[%s343_s1 + $0x54] ss:$8 sps:$4 sm:$0xff]   ;;  %v250_v12 = vld [vmem:[%s343_s1 + $0x50] ss:$8 sps:$4 sm:$0xff]  }
   0x5   :  { %v251_v13 = vld [vmem:[%s343_s1 + $0x64] ss:$8 sps:$4 sm:$0xff]   ;;  %v253_v14 = vld [vmem:[%s343_s1 + $0x60] ss:$8 sps:$4 sm:$0xff]   ;;  %v254_v15 = vld [vmem:[%s343_s1 + $0x74] ss:$8 sps:$4 sm:$0xff]  }
   0x6   :  { %v256_v16 = vld [vmem:[%s343_s1 + $0x70] ss:$8 sps:$4 sm:$0xff]   ;;  %v26_v17 = vld [vmem:[%s344_s0] sm:$0xf]  ;;  %v176_v19 = vshrl.u32 %v175_v18, 7 }
   0x7   :  { %126 = vmatpush1.bf16.msra.mxu0 %v238_v4  ;;  %v173_v21 = vld [vmem:[%s345_s2] sm:$0x3] }
   0x8   :  { %127 = vmatprep.subr.bf16.mxu0 %v239_v5  ;;  %v177_v20 = vsub.s32 0, %v176_v19  ;;  %v181_v22 = vsub.s32 1, %v176_v19  ;;  %v187_v23 = vld [vmem:[%s346_s3] sm:$0x3] }
   0xa   :  { %v178_v24 = vrot.slane %v173_v21, %v177_v20  ;;  %v182_v25 = vrot.slane %v173_v21, %v181_v22  ;;  %v192_v26 = vrot.slane %v187_v23, %v177_v20  ;;  %v196_v28 = vrot.slane %v187_v23, %v181_v22 }
   0xb   :  { %128 = vmatpush1.bf16.msra.mxu0 %v241_v6 }
   0xc   :  { %129 = vmatprep.subr.bf16.mxu0 %v242_v7 }
   0xf   :  { %130 = vmatpush1.bf16.msra.mxu0 %v244_v8 }
  0x10   :  { %131 = vmatprep.subr.bf16.mxu0 %v245_v9 }
  0x13   :  { %132 = vmatpush1.bf16.msra.mxu0 %v247_v10 }
  0x14   :  { %133 = vmatprep.subr.bf16.mxu0 %v248_v11 }
  0x17   :  { %134 = vmatpush1.bf16.msra.mxu0 %v250_v12 }
  0x18   :  { %135 = vmatprep.subr.bf16.mxu0 %v251_v13 }
  0x1b   :  { %136 = vmatpush1.bf16.msra.mxu0 %v253_v14 }
  0x1c   :  { %137 = vmatprep.subr.bf16.mxu0 %v254_v15 }
  0x1f   :  { %138 = vmatpush1.bf16.msra.mxu0 %v256_v16 }
  0x22   :  { %156 = vmatmul.mubr.bf16.vlgmr.msra.gmra.mrb[0].mxu0 %v26_v17 }
  0xf5   :  { %v157_v27 = vpop.f32.mrb[0].mxu0 }
  0xf6   :  { %v185_v29 = vmul.f32 %v178_v24, %v157_v27  ;;  %v159_v30 = vpop.f32.mrb[1].mxu0 }
  0xf7   :  { %v186_v31 = vmul.f32 %v182_v25, %v159_v30  ;;  %v161_v32 = vpop.f32.mrb[2].mxu0 }
  0xf8   :  { %v199_v33 = vadd.f32 %v192_v26, %v185_v29  ;;  %v162_v34 = vpop.f32.mrb[3].mxu0 }
  0xf9   :  { %v200_v35 = vadd.f32 %v196_v28, %v186_v31 }
  0xfb   :  { %v231_v36 = vpack.c.bf16 %v200_v35, %v199_v33 }
  0xfd   :  { %209 = vst [vmem:[%s347_s4] sm:$0xff] %v231_v36 }

// kernel: _lambda_.24
= control target key start
LH: loop header
LB: loop body
LE: loop exit
PB: predicated region body
PF: predicated region fallthrough
CT: control target
= control target key end

     0   :  { %s2037_s18 = smov 0   ;;  %s2039_s19 = smov 0   ;;  %s2253_s0 = inlined_call_operand.vmem [shape: bf16[8,2304], index: 0, kind: input, shape index: {}]   ;;  %s2254_s1 = inlined_call_operand.vmem [shape: bf16[2304,256], index: 1, kind: input, shape index: {}]   ;;  %s2255_s2 = inlined_call_operand.vmem [shape: f32[1,256], index: 2, kind: input, shape index: {}]   ;;  %s2256_s3 = inlined_call_operand.vmem [shape: f32[1,256], index: 3, kind: input, shape index: {}]   ;;  %s2257_s4 = inlined_call_operand.vmem [shape: bf16[8,256], index: 4, kind: input, shape index: {}]   ;;  %s2258_s5 = inlined_call_operand.vmem [shape: bf16[8,256], index: 5, kind: output, shape index: {}]  }
   0x1   :  { %s2041_s20 = smov 0  }
   0x2 LB: > { %s24_s21 = sadd.s32 1, %s1999_s19  ;;  %p1565_p0 = scmp.ge.s32.totalorder %s2003_s20, 1  ;;  %s2003_s20 = sphi %s2041_s20, %s15_s20   ;;  %s1999_s19 = sphi %s2039_s19, %s2260_s19   ;;  %s1995_s18 = sphi %s2037_s18, %s2259_s18  }
   0x3   : > { %p25_p1 = scmp.ge.s32.totalorder %s24_s21, 2  ;;  %p228_p2 = scmp.lt.s32.totalorder %s2003_s20, 3 }
   0x5   : > { %s2262_s21 = smov (%p25_p1, %s24_s21), 0  ;;  %p229_p3 = pnand %p1565_p0, %p228_p2 }
   0x6   : > { %s271_s22 = smul.u32 (!%p229_p3), 9, %s1995_s18  ;;  %p1569_p6 = scmp.ne.s32.totalorder (!%p229_p3), %s1995_s18, 0 }
   0x7   : > { %232 = sbr.rel (%p229_p3) target bundleno = 421 (0x1a5), region = 40 }
   0x8   : > { %s281_s23 = smul.u32 (!%p229_p3), 144, %s1995_s18  ;;  %p274_p4 = scmp.lt.s32.totalorder (!%p229_p3), %s271_s22, 17 }
   0xa   : > { %p282_p5 = scmp.lt.s32.totalorder (!%p229_p3), %s281_s23, 287 }
   0xe   : > { %s2264_s22 = smov (!%p274_p4, %s271_s22), 17  ;;  %s2266_s23 = smov (!%p282_p5, %s281_s23), 287 }
   0xf   : > { %s1566_s24 = sshll.u32 %s2264_s22, 2  ;;  %s1728_s28 = sshll.u32 %s2266_s23, 3  ;;  %v2005_v0 = vmov (!%p1569_p6), 0.0  }
  0x10   : > { %s2062_s27 = scalar_lea.vmem %s2253_s0, %s1566_s24  ;;  %s2067_s6 = scalar_lea.vmem %s2254_s1, %s1728_s28  ;;  %303 = vst [vmem:[#allocation2] sm:$0xff] (!%p1569_p6), %v2005_v0  ;;  %304 = vst [vmem:[#allocation2 + $0x8] sm:$0xff] (!%p1569_p6), %v2005_v0 }
  0x11   : > { %302 = sbr.rel (%p1569_p6) target bundleno = 24 (0x18), region = 44 }
  0x18 PF: > { %v1756_v1 = vld [vmem:[%s2067_s6 + $0x4] ss:$8 sps:$4 sm:$0xff]   ;;  %v1760_v3 = vld [vmem:[%s2067_s6] ss:$8 sps:$4 sm:$0xff]   ;;  %v1762_v5 = vld [vmem:[%s2067_s6 + $0x14] ss:$8 sps:$4 sm:$0xff]  }
  0x19   : > { %v1758_v2 = vld [vmem:[%s2067_s6 + $0x104] ss:$8 sps:$4 sm:$0xff]   ;;  %1208 = vmatprep.subr.bf16.mxu0 %v1756_v1  ;;  %v1761_v4 = vld [vmem:[%s2067_s6 + $0x100] ss:$8 sps:$4 sm:$0xff]   ;;  %v1764_v6 = vld [vmem:[%s2067_s6 + $0x114] ss:$8 sps:$4 sm:$0xff]  }
  0x1a   : > { %1249 = vmatprep.subr.bf16.mxu1 %v1758_v2  ;;  %1209 = vmatpush1.bf16.msra.mxu0 %v1760_v3  ;;  %v1766_v7 = vld [vmem:[%s2067_s6 + $0x10] ss:$8 sps:$4 sm:$0xff]   ;;  %v1768_v9 = vld [vmem:[%s2067_s6 + $0x24] ss:$8 sps:$4 sm:$0xff]   ;;  %v1772_v11 = vld [vmem:[%s2067_s6 + $0x20] ss:$8 sps:$4 sm:$0xff]  }
  0x1b   : > { %1250 = vmatpush1.bf16.msra.mxu1 %v1761_v4  ;;  %1210 = vmatprep.subr.bf16.mxu0 %v1762_v5  ;;  %v1767_v8 = vld [vmem:[%s2067_s6 + $0x110] ss:$8 sps:$4 sm:$0xff]   ;;  %v1770_v10 = vld [vmem:[%s2067_s6 + $0x124] ss:$8 sps:$4 sm:$0xff]   ;;  %v1773_v12 = vld [vmem:[%s2067_s6 + $0x120] ss:$8 sps:$4 sm:$0xff]  }
  0x1c   : > { %1251 = vmatprep.subr.bf16.mxu1 %v1764_v6  ;;  %v1774_v13 = vld [vmem:[%s2067_s6 + $0x34] ss:$8 sps:$4 sm:$0xff]   ;;  %v1778_v15 = vld [vmem:[%s2067_s6 + $0x30] ss:$8 sps:$4 sm:$0xff]   ;;  %v1780_v17 = vld [vmem:[%s2067_s6 + $0x44] ss:$8 sps:$4 sm:$0xff]  }
  0x1d   : > { %v1776_v14 = vld [vmem:[%s2067_s6 + $0x134] ss:$8 sps:$4 sm:$0xff]   ;;  %v1779_v16 = vld [vmem:[%s2067_s6 + $0x130] ss:$8 sps:$4 sm:$0xff]   ;;  %v1782_v18 = vld [vmem:[%s2067_s6 + $0x144] ss:$8 sps:$4 sm:$0xff]  }
  0x1e   : > { %1211 = vmatpush1.bf16.msra.mxu0 %v1766_v7  ;;  %v1784_v19 = vld [vmem:[%s2067_s6 + $0x40] ss:$8 sps:$4 sm:$0xff]   ;;  %v1786_v21 = vld [vmem:[%s2067_s6 + $0x54] ss:$8 sps:$4 sm:$0xff]   ;;  %v1790_v23 = vld [vmem:[%s2067_s6 + $0x50] ss:$8 sps:$4 sm:$0xff]  }
  0x1f   : > { %1252 = vmatpush1.bf16.msra.mxu1 %v1767_v8  ;;  %1212 = vmatprep.subr.bf16.mxu0 %v1768_v9  ;;  %v1785_v20 = vld [vmem:[%s2067_s6 + $0x140] ss:$8 sps:$4 sm:$0xff]   ;;  %v1788_v22 = vld [vmem:[%s2067_s6 + $0x154] ss:$8 sps:$4 sm:$0xff]   ;;  %v1791_v24 = vld [vmem:[%s2067_s6 + $0x150] ss:$8 sps:$4 sm:$0xff]  }
  0x20   : > { %1253 = vmatprep.subr.bf16.mxu1 %v1770_v10  ;;  %v1792_v25 = vld [vmem:[%s2067_s6 + $0x64] ss:$8 sps:$4 sm:$0xff]   ;;  %v1796_v27 = vld [vmem:[%s2067_s6 + $0x60] ss:$8 sps:$4 sm:$0xff]   ;;  %v1798_v29 = vld [vmem:[%s2067_s6 + $0x74] ss:$8 sps:$4 sm:$0xff]  }
  0x21   : > { %v1794_v26 = vld [vmem:[%s2067_s6 + $0x164] ss:$8 sps:$4 sm:$0xff]   ;;  %v1797_v28 = vld [vmem:[%s2067_s6 + $0x160] ss:$8 sps:$4 sm:$0xff]   ;;  %v1800_v30 = vld [vmem:[%s2067_s6 + $0x174] ss:$8 sps:$4 sm:$0xff]  }
  0x22   : > { %1213 = vmatpush1.bf16.msra.mxu0 %v1772_v11  ;;  %v1802_v31 = vld [vmem:[%s2067_s6 + $0x70] ss:$8 sps:$4 sm:$0xff]   ;;  %v1804_v33 = vld [vmem:[%s2067_s6 + $0x84] ss:$8 sps:$4 sm:$0xff]   ;;  %v1808_v35 = vld [vmem:[%s2067_s6 + $0x80] ss:$8 sps:$4 sm:$0xff]  }
  0x23   : > { %1254 = vmatpush1.bf16.msra.mxu1 %v1773_v12  ;;  %1214 = vmatprep.subr.bf16.mxu0 %v1774_v13  ;;  %v1803_v32 = vld [vmem:[%s2067_s6 + $0x170] ss:$8 sps:$4 sm:$0xff]   ;;  %v1806_v34 = vld [vmem:[%s2067_s6 + $0x184] ss:$8 sps:$4 sm:$0xff]   ;;  %v1809_v36 = vld [vmem:[%s2067_s6 + $0x180] ss:$8 sps:$4 sm:$0xff]  }
  0x24   : > { %1255 = vmatprep.subr.bf16.mxu1 %v1776_v14  ;;  %v1810_v37 = vld [vmem:[%s2067_s6 + $0x94] ss:$8 sps:$4 sm:$0xff]   ;;  %v1814_v39 = vld [vmem:[%s2067_s6 + $0x90] ss:$8 sps:$4 sm:$0xff]   ;;  %v1816_v41 = vld [vmem:[%s2067_s6 + $0xa4] ss:$8 sps:$4 sm:$0xff]  }
  0x25   : > { %v1812_v38 = vld [vmem:[%s2067_s6 + $0x194] ss:$8 sps:$4 sm:$0xff]   ;;  %v1815_v40 = vld [vmem:[%s2067_s6 + $0x190] ss:$8 sps:$4 sm:$0xff]   ;;  %v1818_v42 = vld [vmem:[%s2067_s6 + $0x1a4] ss:$8 sps:$4 sm:$0xff]  }
  0x26   : > { %1215 = vmatpush1.bf16.msra.mxu0 %v1778_v15  ;;  %v1820_v43 = vld [vmem:[%s2067_s6 + $0xa0] ss:$8 sps:$4 sm:$0xff]   ;;  %v1822_v45 = vld [vmem:[%s2067_s6 + $0xb4] ss:$8 sps:$4 sm:$0xff]   ;;  %v1826_v50 = vld [vmem:[%s2067_s6 + $0xb0] ss:$8 sps:$4 sm:$0xff]  }
  0x27   : > { %1256 = vmatpush1.bf16.msra.mxu1 %v1779_v16  ;;  %1216 = vmatprep.subr.bf16.mxu0 %v1780_v17  ;;  %v1821_v44 = vld [vmem:[%s2067_s6 + $0x1a0] ss:$8 sps:$4 sm:$0xff]   ;;  %v1824_v46 = vld [vmem:[%s2067_s6 + $0x1b4] ss:$8 sps:$4 sm:$0xff]   ;;  %v1827_v51 = vld [vmem:[%s2067_s6 + $0x1b0] ss:$8 sps:$4 sm:$0xff]  }
  0x28   : > { %1257 = vmatprep.subr.bf16.mxu1 %v1782_v18  ;;  %v307_v47 = vld [vmem:[%s2062_s27] sm:$0xff]  ;;  %v308_v49 = vld [vmem:[%s2062_s27 + $0x8] sm:$0xff]  ;;  %v1834_v57 = vld [vmem:[%s2067_s6 + $0xd4] ss:$8 sps:$4 sm:$0xff]   ;;  %p1723_p7 = scmp.ne.s32.totalorder %s1995_s18, 1 }
  0x29   : > { %v1571_v48 = vcombine.high %v307_v47, %v307_v47  ;;  %v1573_v52 = vcombine.high %v308_v49, %v308_v49  ;;  %v1828_v53 = vld [vmem:[%s2067_s6 + $0xc4] ss:$8 sps:$4 sm:$0xff]   ;;  %v1832_v55 = vld [vmem:[%s2067_s6 + $0xc0] ss:$8 sps:$4 sm:$0xff]   ;;  %v1836_v58 = vld [vmem:[%s2067_s6 + $0x1d4] ss:$8 sps:$4 sm:$0xff]   ;;  %v1570_v7 = vcombine.low %v307_v47, %v307_v47  ;;  %v1572_v8 = vcombine.low %v308_v49, %v308_v49 }
  0x2a   : > { %1217 = vmatpush1.bf16.msra.mxu0 %v1784_v19  ;;  %v1830_v54 = vld [vmem:[%s2067_s6 + $0x1c4] ss:$8 sps:$4 sm:$0xff]   ;;  %v1833_v56 = vld [vmem:[%s2067_s6 + $0x1c0] ss:$8 sps:$4 sm:$0xff]   ;;  %v1838_v59 = vld [vmem:[%s2067_s6 + $0xd0] ss:$8 sps:$4 sm:$0xff]  }
  0x2b   : > { %1258 = vmatpush1.bf16.msra.mxu1 %v1785_v20  ;;  %1218 = vmatprep.subr.bf16.mxu0 %v1786_v21  ;;  %v1839_v60 = vld [vmem:[%s2067_s6 + $0x1d0] ss:$8 sps:$4 sm:$0xff]   ;;  %v1840_v61 = vld [vmem:[%s2067_s6 + $0xe4] ss:$8 sps:$4 sm:$0xff]   ;;  %v1844_v63 = vld [vmem:[%s2067_s6 + $0xe0] ss:$8 sps:$4 sm:$0xff]  }
  0x2c   : > { %1259 = vmatprep.subr.bf16.mxu1 %v1788_v22  ;;  %1240 = vmatprep.mubr.bf16.mxu0 %v1571_v48  ;;  %v1842_v62 = vld [vmem:[%s2067_s6 + $0x1e4] ss:$8 sps:$4 sm:$0xff]   ;;  %v1845_v0 = vld [vmem:[%s2067_s6 + $0x1e0] ss:$8 sps:$4 sm:$0xff]   ;;  %v1846_v1 = vld [vmem:[%s2067_s6 + $0xf4] ss:$8 sps:$4 sm:$0xff]  }
  0x2d   : > { %1281 = vmatprep.mubr.bf16.mxu1 %v1573_v52  ;;  %v1848_v2 = vld [vmem:[%s2067_s6 + $0x1f4] ss:$8 sps:$4 sm:$0xff]   ;;  %v1850_v3 = vld [vmem:[%s2067_s6 + $0xf0] ss:$8 sps:$4 sm:$0xff]   ;;  %v1858_v5 = vld [vmem:[%s2067_s6 + $0x204] ss:$8 sps:$4 sm:$0xff]  }
  0x2e   : > { %1219 = vmatpush1.bf16.msra.mxu0 %v1790_v23  ;;  %v1851_v4 = vld [vmem:[%s2067_s6 + $0x1f0] ss:$8 sps:$4 sm:$0xff]   ;;  %v1861_v6 = vld [vmem:[%s2067_s6 + $0x304] ss:$8 sps:$4 sm:$0xff]   ;;  %v1856_v9 = vld [vmem:[%s2067_s6 + $0x200] ss:$8 sps:$4 sm:$0xff]  }
  0x2f   : > { %1260 = vmatpush1.bf16.msra.mxu1 %v1791_v24  ;;  %1220 = vmatprep.subr.bf16.mxu0 %v1792_v25  ;;  %v1859_v10 = vld [vmem:[%s2067_s6 + $0x300] ss:$8 sps:$4 sm:$0xff]   ;;  %v1864_v11 = vld [vmem:[%s2067_s6 + $0x214] ss:$8 sps:$4 sm:$0xff]   ;;  %v1862_v13 = vld [vmem:[%s2067_s6 + $0x210] ss:$8 sps:$4 sm:$0xff]  }
  0x30   : > { %1261 = vmatprep.subr.bf16.mxu1 %v1794_v26  ;;  %v1867_v12 = vld [vmem:[%s2067_s6 + $0x314] ss:$8 sps:$4 sm:$0xff]   ;;  %v1865_v14 = vld [vmem:[%s2067_s6 + $0x310] ss:$8 sps:$4 sm:$0xff]   ;;  %v1870_v15 = vld [vmem:[%s2067_s6 + $0x224] ss:$8 sps:$4 sm:$0xff]  }
  0x31   : > { %v1873_v16 = vld [vmem:[%s2067_s6 + $0x324] ss:$8 sps:$4 sm:$0xff]   ;;  %v1868_v17 = vld [vmem:[%s2067_s6 + $0x220] ss:$8 sps:$4 sm:$0xff]   ;;  %v1876_v19 = vld [vmem:[%s2067_s6 + $0x234] ss:$8 sps:$4 sm:$0xff]  }
  0x32   : > { %1221 = vmatpush1.bf16.msra.mxu0 %v1796_v27  ;;  %v1871_v18 = vld [vmem:[%s2067_s6 + $0x320] ss:$8 sps:$4 sm:$0xff]   ;;  %v1879_v20 = vld [vmem:[%s2067_s6 + $0x334] ss:$8 sps:$4 sm:$0xff]   ;;  %v1874_v21 = vld [vmem:[%s2067_s6 + $0x230] ss:$8 sps:$4 sm:$0xff]  }
  0x33   : > { %1262 = vmatpush1.bf16.msra.mxu1 %v1797_v28  ;;  %1222 = vmatprep.subr.bf16.mxu0 %v1798_v29  ;;  %v1877_v22 = vld [vmem:[%s2067_s6 + $0x330] ss:$8 sps:$4 sm:$0xff]   ;;  %v1882_v23 = vld [vmem:[%s2067_s6 + $0x244] ss:$8 sps:$4 sm:$0xff]   ;;  %v1880_v25 = vld [vmem:[%s2067_s6 + $0x240] ss:$8 sps:$4 sm:$0xff]  }
  0x34   : > { %1263 = vmatprep.subr.bf16.mxu1 %v1800_v30  ;;  %v1885_v24 = vld [vmem:[%s2067_s6 + $0x344] ss:$8 sps:$4 sm:$0xff]   ;;  %v1883_v26 = vld [vmem:[%s2067_s6 + $0x340] ss:$8 sps:$4 sm:$0xff]   ;;  %v1888_v27 = vld [vmem:[%s2067_s6 + $0x254] ss:$8 sps:$4 sm:$0xff]  }
  0x35   : > { %v1891_v28 = vld [vmem:[%s2067_s6 + $0x354] ss:$8 sps:$4 sm:$0xff]   ;;  %v1886_v29 = vld [vmem:[%s2067_s6 + $0x250] ss:$8 sps:$4 sm:$0xff]   ;;  %v1921_v52 = vld [vmem:[%s2067_s6 + $0x3a4] ss:$8 sps:$4 sm:$0xff]  }
  0x36   : > { %1223 = vmatpush1.bf16.msra.mxu0 %v1802_v31  ;;  %v1889_v30 = vld [vmem:[%s2067_s6 + $0x350] ss:$8 sps:$4 sm:$0xff]   ;;  %v1894_v31 = vld [vmem:[%s2067_s6 + $0x264] ss:$8 sps:$4 sm:$0xff]   ;;  %v1912_v47 = vld [vmem:[%s2067_s6 + $0x294] ss:$8 sps:$4 sm:$0xff]  }
  0x37   : > { %1264 = vmatpush1.bf16.msra.mxu1 %v1803_v32  ;;  %1224 = vmatprep.subr.bf16.mxu0 %v1804_v33  ;;  %v1897_v32 = vld [vmem:[%s2067_s6 + $0x364] ss:$8 sps:$4 sm:$0xff]   ;;  %v2163_v33 = vld [vmem:[%s2062_s27 + $0x10] sm:$0xff] }
  0x38   : > { %1265 = vmatprep.subr.bf16.mxu1 %v1806_v34  ;;  %v1892_v34 = vld [vmem:[%s2067_s6 + $0x260] ss:$8 sps:$4 sm:$0xff]   ;;  %v1915_v48 = vld [vmem:[%s2067_s6 + $0x394] ss:$8 sps:$4 sm:$0xff]   ;;  %v1910_v49 = vld [vmem:[%s2067_s6 + $0x290] ss:$8 sps:$4 sm:$0xff]  }
  0x3a   : > { %1225 = vmatpush1.bf16.msra.mxu0 %v1808_v35  ;;  %v1895_v35 = vld [vmem:[%s2067_s6 + $0x360] ss:$8 sps:$4 sm:$0xff]  }
  0x3b   : > { %1266 = vmatpush1.bf16.msra.mxu1 %v1809_v36  ;;  %1226 = vmatprep.subr.bf16.mxu0 %v1810_v37  ;;  %v1575_v36 = vcombine.high %v2163_v33, %v2163_v33  ;;  %v2170_v37 = vld [vmem:[%s2062_s27 + $0x18] sm:$0xff] }
  0x3c   : > { %1267 = vmatprep.subr.bf16.mxu1 %v1812_v38  ;;  %v1900_v38 = vld [vmem:[%s2067_s6 + $0x274] ss:$8 sps:$4 sm:$0xff]  }
  0x3e   : > { %1227 = vmatpush1.bf16.msra.mxu0 %v1814_v39  ;;  %v1577_v39 = vcombine.high %v2170_v37, %v2170_v37 }
  0x3f   : > { %1268 = vmatpush1.bf16.msra.mxu1 %v1815_v40  ;;  %1228 = vmatprep.subr.bf16.mxu0 %v1816_v41  ;;  %v1903_v40 = vld [vmem:[%s2067_s6 + $0x374] ss:$8 sps:$4 sm:$0xff]   ;;  %v1898_v41 = vld [vmem:[%s2067_s6 + $0x270] ss:$8 sps:$4 sm:$0xff]  }
  0x40   : > { %1269 = vmatprep.subr.bf16.mxu1 %v1818_v42  ;;  %v1901_v42 = vld [vmem:[%s2067_s6 + $0x370] ss:$8 sps:$4 sm:$0xff]  }
  0x42   : > { %1229 = vmatpush1.bf16.msra.mxu0 %v1820_v43  ;;  %v1906_v43 = vld [vmem:[%s2067_s6 + $0x284] ss:$8 sps:$4 sm:$0xff]  }
  0x43   : > { %1270 = vmatpush1.bf16.msra.mxu1 %v1821_v44  ;;  %1230 = vmatprep.subr.bf16.mxu0 %v1822_v45  ;;  %v1909_v44 = vld [vmem:[%s2067_s6 + $0x384] ss:$8 sps:$4 sm:$0xff]   ;;  %v1904_v45 = vld [vmem:[%s2067_s6 + $0x280] ss:$8 sps:$4 sm:$0xff]  }
  0x44   : > { %1271 = vmatprep.subr.bf16.mxu1 %v1824_v46  ;;  %v1907_v46 = vld [vmem:[%s2067_s6 + $0x380] ss:$8 sps:$4 sm:$0xff]  }
  0x46   : > { %1231 = vmatpush1.bf16.msra.mxu0 %v1826_v50  ;;  %v1913_v50 = vld [vmem:[%s2067_s6 + $0x390] ss:$8 sps:$4 sm:$0xff]  }
  0x47   : > { %1272 = vmatpush1.bf16.msra.mxu1 %v1827_v51  ;;  %1232 = vmatprep.subr.bf16.mxu0 %v1828_v53  ;;  %v1918_v51 = vld [vmem:[%s2067_s6 + $0x2a4] ss:$8 sps:$4 sm:$0xff]   ;;  %v1916_v53 = vld [vmem:[%s2067_s6 + $0x2a0] ss:$8 sps:$4 sm:$0xff]  }
  0x48   : > { %1273 = vmatprep.subr.bf16.mxu1 %v1830_v54  ;;  %v1919_v54 = vld [vmem:[%s2067_s6 + $0x3a0] ss:$8 sps:$4 sm:$0xff]  }
  0x4a   : > { %1233 = vmatpush1.bf16.msra.mxu0 %v1832_v55  ;;  %v1924_v55 = vld [vmem:[%s2067_s6 + $0x2b4] ss:$8 sps:$4 sm:$0xff]  }
  0x4b   : > { %1274 = vmatpush1.bf16.msra.mxu1 %v1833_v56  ;;  %1234 = vmatprep.subr.bf16.mxu0 %v1834_v57  ;;  %v1927_v56 = vld [vmem:[%s2067_s6 + $0x3b4] ss:$8 sps:$4 sm:$0xff]   ;;  %v1922_v57 = vld [vmem:[%s2067_s6 + $0x2b0] ss:$8 sps:$4 sm:$0xff]  }
  0x4c   : > { %1275 = vmatprep.subr.bf16.mxu1 %v1836_v58  ;;  %v1925_v58 = vld [vmem:[%s2067_s6 + $0x3b0] ss:$8 sps:$4 sm:$0xff]  }
  0x4e   : > { %1235 = vmatpush1.bf16.msra.mxu0 %v1838_v59  ;;  %v1930_v59 = vld [vmem:[%s2067_s6 + $0x2c4] ss:$8 sps:$4 sm:$0xff]  }
  0x4f   : > { %1276 = vmatpush1.bf16.msra.mxu1 %v1839_v60  ;;  %1236 = vmatprep.subr.bf16.mxu0 %v1840_v61  ;;  %v1933_v60 = vld [vmem:[%s2067_s6 + $0x3c4] ss:$8 sps:$4 sm:$0xff]   ;;  %v1928_v61 = vld [vmem:[%s2067_s6 + $0x2c0] ss:$8 sps:$4 sm:$0xff]  }
  0x50   : > { %1277 = vmatprep.subr.bf16.mxu1 %v1842_v62  ;;  %v1931_v62 = vld [vmem:[%s2067_s6 + $0x3c0] ss:$8 sps:$4 sm:$0xff]  }
  0x52   : > { %1237 = vmatpush1.bf16.msra.mxu0 %v1844_v63  ;;  %v1936_v63 = vld [vmem:[%s2067_s6 + $0x2d4] ss:$8 sps:$4 sm:$0xff]  }
  0x53   : > { %1278 = vmatpush1.bf16.msra.mxu1 %v1845_v0  ;;  %1238 = vmatprep.subr.bf16.mxu0 %v1846_v1  ;;  %v1939_v0 = vld [vmem:[%s2067_s6 + $0x3d4] ss:$8 sps:$4 sm:$0xff]   ;;  %v1934_v1 = vld [vmem:[%s2067_s6 + $0x2d0] ss:$8 sps:$4 sm:$0xff]  }
  0x54   : > { %1279 = vmatprep.subr.bf16.mxu1 %v1848_v2  ;;  %v1937_v2 = vld [vmem:[%s2067_s6 + $0x3d0] ss:$8 sps:$4 sm:$0xff]  }
  0x56   : > { %1239 = vmatpush1.bf16.msra.mxu0 %v1850_v3  ;;  %v1942_v3 = vld [vmem:[%s2067_s6 + $0x2e4] ss:$8 sps:$4 sm:$0xff]  }
  0x57   : > { %1280 = vmatpush1.bf16.msra.mxu1 %v1851_v4  ;;  %1290 = vmatprep.subr.bf16.mxu0 %v1858_v5  ;;  %v1945_v4 = vld [vmem:[%s2067_s6 + $0x3e4] ss:$8 sps:$4 sm:$0xff]   ;;  %v1940_v5 = vld [vmem:[%s2067_s6 + $0x2e0] ss:$8 sps:$4 sm:$0xff]  }
  0x58   : > { %1331 = vmatprep.subr.bf16.mxu1 %v1861_v6  ;;  %v1943_v6 = vld [vmem:[%s2067_s6 + $0x3e0] ss:$8 sps:$4 sm:$0xff]  }
  0x59   : > { %1241 = vmatmul.mubr.bf16.vlgmr.msra.gmra.mrb[0].mxu0 %v1570_v7  ;;  %v1948_v7 = vld [vmem:[%s2067_s6 + $0x2f4] ss:$8 sps:$4 sm:$0xff]  }
  0x5a   : > { %1282 = vmatmul.mubr.bf16.vlgmr.msra.gmra.mrb[0].mxu1 %v1572_v8  ;;  %1291 = vmatpush1.bf16.msra.mxu0 %v1856_v9  ;;  %v1951_v8 = vld [vmem:[%s2067_s6 + $0x3f4] ss:$8 sps:$4 sm:$0xff]   ;;  %v1946_v9 = vld [vmem:[%s2067_s6 + $0x2f0] ss:$8 sps:$4 sm:$0xff]  }
  0x5b   : > { %1332 = vmatpush1.bf16.msra.mxu1 %v1859_v10  ;;  %1292 = vmatprep.subr.bf16.mxu0 %v1864_v11  ;;  %v1949_v10 = vld [vmem:[%s2067_s6 + $0x3f0] ss:$8 sps:$4 sm:$0xff]   ;;  %v1956_v11 = vld [vmem:[%s2067_s6 + $0x404] ss:$8 sps:$4 sm:$0xff]  }
  0x5c   : > { %1333 = vmatprep.subr.bf16.mxu1 %v1867_v12  ;;  %1322 = vmatprep.mubr.bf16.mxu0 %v1575_v36  ;;  %v1574_v12 = vcombine.low %v2163_v33, %v2163_v33 }
  0x5d   : > { %1363 = vmatprep.mubr.bf16.mxu1 %v1577_v39 }
  0x5e   : > { %1293 = vmatpush1.bf16.msra.mxu0 %v1862_v13  ;;  %v1576_v13 = vcombine.low %v2170_v37, %v2170_v37 }
  0x5f   : > { %1334 = vmatpush1.bf16.msra.mxu1 %v1865_v14  ;;  %1294 = vmatprep.subr.bf16.mxu0 %v1870_v15  ;;  %v1954_v14 = vld [vmem:[%s2067_s6 + $0x400] ss:$8 sps:$4 sm:$0xff]   ;;  %v1961_v15 = vld [vmem:[%s2067_s6 + $0x414] ss:$8 sps:$4 sm:$0xff]  }
  0x60   : > { %1335 = vmatprep.subr.bf16.mxu1 %v1873_v16  ;;  %v1959_v16 = vld [vmem:[%s2067_s6 + $0x410] ss:$8 sps:$4 sm:$0xff]  }
  0x62   : > { %1295 = vmatpush1.bf16.msra.mxu0 %v1868_v17  ;;  %v2006_v17 = vmov 0  }
  0x63   : > { %1336 = vmatpush1.bf16.msra.mxu1 %v1871_v18  ;;  %1296 = vmatprep.subr.bf16.mxu0 %v1876_v19  ;;  %v1964_v18 = vld [vmem:[%s2067_s6 + $0x424] ss:$8 sps:$4 sm:$0xff]   ;;  %v1962_v19 = vld [vmem:[%s2067_s6 + $0x420] ss:$8 sps:$4 sm:$0xff]  }
  0x64   : > { %1337 = vmatprep.subr.bf16.mxu1 %v1879_v20  ;;  %v1967_v20 = vld [vmem:[%s2067_s6 + $0x434] ss:$8 sps:$4 sm:$0xff]  }
  0x66   : > { %1297 = vmatpush1.bf16.msra.mxu0 %v1874_v21  ;;  %v1965_v21 = vld [vmem:[%s2067_s6 + $0x430] ss:$8 sps:$4 sm:$0xff]  }
  0x67   : > { %1338 = vmatpush1.bf16.msra.mxu1 %v1877_v22  ;;  %1298 = vmatprep.subr.bf16.mxu0 %v1882_v23  ;;  %v1970_v22 = vld [vmem:[%s2067_s6 + $0x444] ss:$8 sps:$4 sm:$0xff]   ;;  %v1968_v23 = vld [vmem:[%s2067_s6 + $0x440] ss:$8 sps:$4 sm:$0xff]  }
  0x68   : > { %1339 = vmatprep.subr.bf16.mxu1 %v1885_v24  ;;  %v1973_v24 = vld [vmem:[%s2067_s6 + $0x454] ss:$8 sps:$4 sm:$0xff]  }
  0x6a   : > { %1299 = vmatpush1.bf16.msra.mxu0 %v1880_v25  ;;  %v1971_v25 = vld [vmem:[%s2067_s6 + $0x450] ss:$8 sps:$4 sm:$0xff]  }
  0x6b   : > { %1340 = vmatpush1.bf16.msra.mxu1 %v1883_v26  ;;  %1300 = vmatprep.subr.bf16.mxu0 %v1888_v27  ;;  %v1976_v26 = vld [vmem:[%s2067_s6 + $0x464] ss:$8 sps:$4 sm:$0xff]   ;;  %v1974_v27 = vld [vmem:[%s2067_s6 + $0x460] ss:$8 sps:$4 sm:$0xff]  }
  0x6c   : > { %1341 = vmatprep.subr.bf16.mxu1 %v1891_v28  ;;  %v1979_v28 = vld [vmem:[%s2067_s6 + $0x474] ss:$8 sps:$4 sm:$0xff]  }
  0x6e   : > { %1301 = vmatpush1.bf16.msra.mxu0 %v1886_v29  ;;  %v1977_v29 = vld [vmem:[%s2067_s6 + $0x470] ss:$8 sps:$4 sm:$0xff]  }
  0x6f   : > { %1342 = vmatpush1.bf16.msra.mxu1 %v1889_v30  ;;  %1302 = vmatprep.subr.bf16.mxu0 %v1894_v31  ;;  %v1980_v30 = vld [vmem:[%s2062_s27 + $0x20] ss:$0 sps:$4 sm:$0xff]  }
  0x70   : > { %1343 = vmatprep.subr.bf16.mxu1 %v1897_v32 }
  0x72   : > { %1303 = vmatpush1.bf16.msra.mxu0 %v1892_v34 }
  0x73   : > { %1344 = vmatpush1.bf16.msra.mxu1 %v1895_v35  ;;  %1304 = vmatprep.subr.bf16.mxu0 %v1900_v38 }
  0x74   : > { %1345 = vmatprep.subr.bf16.mxu1 %v1903_v40 }
  0x76   : > { %1305 = vmatpush1.bf16.msra.mxu0 %v1898_v41 }
  0x77   : > { %1346 = vmatpush1.bf16.msra.mxu1 %v1901_v42  ;;  %1306 = vmatprep.subr.bf16.mxu0 %v1906_v43 }
  0x78   : > { %1347 = vmatprep.subr.bf16.mxu1 %v1909_v44 }
  0x7a   : > { %1307 = vmatpush1.bf16.msra.mxu0 %v1904_v45 }
  0x7b   : > { %1348 = vmatpush1.bf16.msra.mxu1 %v1907_v46  ;;  %1308 = vmatprep.subr.bf16.mxu0 %v1912_v47 }
  0x7c   : > { %1349 = vmatprep.subr.bf16.mxu1 %v1915_v48 }
  0x7e   : > { %1309 = vmatpush1.bf16.msra.mxu0 %v1910_v49 }
  0x7f   : > { %1350 = vmatpush1.bf16.msra.mxu1 %v1913_v50  ;;  %1310 = vmatprep.subr.bf16.mxu0 %v1918_v51 }
  0x80   : > { %1351 = vmatprep.subr.bf16.mxu1 %v1921_v52 }
  0x82   : > { %1311 = vmatpush1.bf16.msra.mxu0 %v1916_v53  ;;  %v305_v53 = vld [vmem:[#allocation2] sm:$0xff] }
  0x83   : > { %1352 = vmatpush1.bf16.msra.mxu1 %v1919_v54  ;;  %1312 = vmatprep.subr.bf16.mxu0 %v1924_v55 }
  0x84   : > { %1353 = vmatprep.subr.bf16.mxu1 %v1927_v56  ;;  %v306_v56 = vld [vmem:[#allocation2 + $0x8] sm:$0xff] }
  0x86   : > { %1313 = vmatpush1.bf16.msra.mxu0 %v1922_v57 }
  0x87   : > { %1354 = vmatpush1.bf16.msra.mxu1 %v1925_v58  ;;  %1314 = vmatprep.subr.bf16.mxu0 %v1930_v59 }
  0x88   : > { %1355 = vmatprep.subr.bf16.mxu1 %v1933_v60 }
  0x8a   : > { %1315 = vmatpush1.bf16.msra.mxu0 %v1928_v61 }
  0x8b   : > { %1356 = vmatpush1.bf16.msra.mxu1 %v1931_v62  ;;  %1316 = vmatprep.subr.bf16.mxu0 %v1936_v63  ;;  %v1425_v63 = vlaneseq (!%p1723_p7) }
  0x8c   : > { %1357 = vmatprep.subr.bf16.mxu1 %v1939_v0 }
  0x8d   : > { %v1426_v0 = vshrl.u32 (!%p1723_p7), %v1425_v63, 7 }
  0x8e   : > { %1317 = vmatpush1.bf16.msra.mxu0 %v1934_v1  ;;  %v1423_v1 = vld [vmem:[%s2255_s2] sm:$0x3] (!%p1723_p7) }
  0x8f   : > { %1358 = vmatpush1.bf16.msra.mxu1 %v1937_v2  ;;  %1318 = vmatprep.subr.bf16.mxu0 %v1942_v3  ;;  %v1437_v2 = vld [vmem:[%s2256_s3] sm:$0x3] (!%p1723_p7)  ;;  %v1427_v3 = vsub.s32 (!%p1723_p7), 0, %v1426_v0 }
  0x90   : > { %1359 = vmatprep.subr.bf16.mxu1 %v1945_v4  ;;  %v1431_v4 = vsub.s32 (!%p1723_p7), 1, %v1426_v0 }
  0x92   : > { %1319 = vmatpush1.bf16.msra.mxu0 %v1940_v5 }
  0x93   : > { %1360 = vmatpush1.bf16.msra.mxu1 %v1943_v6  ;;  %1320 = vmatprep.subr.bf16.mxu0 %v1948_v7  ;;  %v1451_v7 = vld [vmem:[%s2257_s4] sm:$0xff] (!%p1723_p7) }
  0x94   : > { %1361 = vmatprep.subr.bf16.mxu1 %v1951_v8  ;;  %v1428_v8 = vrot.slane (!%p1723_p7), %v1423_v1, %v1427_v3 }
  0x96   : > { %1321 = vmatpush1.bf16.msra.mxu0 %v1946_v9  ;;  %v1432_v9 = vrot.slane (!%p1723_p7), %v1423_v1, %v1431_v4 }
  0x97   : > { %1362 = vmatpush1.bf16.msra.mxu1 %v1949_v10  ;;  %1372 = vmatprep.subr.bf16.mxu0 %v1956_v11  ;;  %v1442_v10 = vrot.slane (!%p1723_p7), %v1437_v2, %v1427_v3  ;;  %v1446_v11 = vrot.slane (!%p1723_p7), %v1437_v2, %v1431_v4 }
  0x99   : > { %1323 = vmatmul.mubr.bf16.vlgmr.msra.gmra.mrb[4].mxu0 %v1574_v12 }
  0x9a   : > { %1364 = vmatmul.mubr.bf16.vlgmr.msra.gmra.mrb[4].mxu1 %v1576_v13  ;;  %1373 = vmatpush1.bf16.msra.mxu0 %v1954_v14  ;;  %v1452_v14 = vunpack.c.l.bf16 (!%p1723_p7), %v1451_v7 }
  0x9b   : > { %1404 = vmatprep.mubr.bf16.mxu0 %v2006_v17  ;;  %1374 = vmatprep.subr.bf16.mxu0 %v1961_v15  ;;  %v1453_v15 = vunpack.c.h.bf16 (!%p1723_p7), %v1451_v7 }
  0x9e   : > { %1375 = vmatpush1.bf16.msra.mxu0 %v1959_v16 }
  0x9f   : > { %1376 = vmatprep.subr.bf16.mxu0 %v1964_v18 }
  0xa2   : > { %1377 = vmatpush1.bf16.msra.mxu0 %v1962_v19 }
  0xa3   : > { %1378 = vmatprep.subr.bf16.mxu0 %v1967_v20 }
  0xa6   : > { %1379 = vmatpush1.bf16.msra.mxu0 %v1965_v21 }
  0xa7   : > { %1380 = vmatprep.subr.bf16.mxu0 %v1970_v22 }
  0xaa   : > { %1381 = vmatpush1.bf16.msra.mxu0 %v1968_v23 }
  0xab   : > { %1382 = vmatprep.subr.bf16.mxu0 %v1973_v24 }
  0xae   : > { %1383 = vmatpush1.bf16.msra.mxu0 %v1971_v25 }
  0xaf   : > { %1384 = vmatprep.subr.bf16.mxu0 %v1976_v26 }
  0xb2   : > { %1385 = vmatpush1.bf16.msra.mxu0 %v1974_v27 }
  0xb3   : > { %1386 = vmatprep.subr.bf16.mxu0 %v1979_v28 }
  0xb6   : > { %1387 = vmatpush1.bf16.msra.mxu0 %v1977_v29 }
  0xb9   : > { %1405 = vmatmul.mubr.bf16.vlgmr.msra.gmra.mrb[8].mxu0 %v1980_v30 }
 0x12c   : > { %v1242_v31 = vpop.f32.mrb[0].mxu0 }
 0x12d   : > { %v1283_v32 = vpop.f32.mrb[0].mxu1  ;;  %v1244_v34 = vpop.f32.mrb[1].mxu0 }
 0x12e   : > { %v1284_v33 = vadd.f32 %v1283_v32, %v1242_v31  ;;  %v1285_v35 = vpop.f32.mrb[1].mxu1  ;;  %v1246_v37 = vpop.f32.mrb[2].mxu0 }
 0x12f   : > { %v1286_v36 = vadd.f32 %v1285_v35, %v1244_v34  ;;  %v1287_v38 = vpop.f32.mrb[2].mxu1  ;;  %v1247_v39 = vpop.f32.mrb[3].mxu0 }
 0x130   : > { %v1288_v40 = vpop.f32.mrb[3].mxu1 }
 0x16c   : > { %v1324_v41 = vpop.f32.mrb[4].mxu0 }
 0x16d   : > { %v1365_v42 = vpop.f32.mrb[4].mxu1  ;;  %v1325_v43 = vadd.f32 %v1324_v41, %v1284_v33  ;;  %v1326_v44 = vpop.f32.mrb[5].mxu0 }
 0x16e   : > { %v1367_v45 = vpop.f32.mrb[5].mxu1  ;;  %v1327_v46 = vadd.f32 %v1326_v44, %v1286_v36  ;;  %v1328_v47 = vpop.f32.mrb[6].mxu0 }
 0x16f   : > { %v1369_v48 = vpop.f32.mrb[6].mxu1  ;;  %v1366_v49 = vadd.f32 %v1365_v42, %v1325_v43  ;;  %v1329_v50 = vpop.f32.mrb[7].mxu0 }
 0x170   : > { %v1370_v51 = vpop.f32.mrb[7].mxu1  ;;  %v1368_v52 = vadd.f32 %v1367_v45, %v1327_v46 }
 0x18c   : > { %v1406_v54 = vpop.f32.mrb[8].mxu0  ;;  %1420 = sbr.rel (%p1723_p7) target bundleno = 421 (0x1a5), region = 48 }
 0x18d   : > { %v1407_v55 = vadd.f32 %v1406_v54, %v1366_v49  ;;  %v1408_v57 = vpop.f32.mrb[9].mxu0 }
 0x18e   : > { %v1409_v58 = vadd.f32 %v1408_v57, %v1368_v52  ;;  %v1410_v59 = vpop.f32.mrb[10].mxu0 }
 0x18f   : > { %v1413_v60 = vadd.f32 %v1407_v55, %v305_v53  ;;  %v1411_v61 = vpop.f32.mrb[11].mxu0 }
 0x190   : > { %v1414_v62 = vadd.f32 %v1409_v58, %v306_v56 }
 0x191   : > { %1415 = vst [vmem:[#allocation2] sm:$0xff] %v1413_v60 }
 0x192   : > { %1416 = vst [vmem:[#allocation2 + $0x8] sm:$0xff] %v1414_v62 }
 0x198   : > { %v1421_v5 = vld [vmem:[#allocation2] sm:$0xff] }
 0x199   : > { %v1422_v6 = vld [vmem:[#allocation2 + $0x8] sm:$0xff]  ;;  %v1435_v12 = vmul.f32 %v1428_v8, %v1421_v5 }
 0x19a   : > { %v1436_v13 = vmul.f32 %v1432_v9, %v1422_v6 }
 0x19b   : > { %v1449_v16 = vadd.f32 %v1442_v10, %v1435_v12 }
 0x19c   : > { %v1450_v17 = vadd.f32 %v1446_v11, %v1436_v13 }
 0x19d   : > { %v1454_v18 = vadd.f32 %v1452_v14, %v1449_v16 }
 0x19e   : > { %v1455_v19 = vadd.f32 %v1453_v15, %v1450_v17 }
 0x19f   : > { %v1456_v20 = vmax.f32 %v1454_v18, 0.0 }
 0x1a0   : > { %v1457_v21 = vmax.f32 %v1455_v19, 0.0 }
 0x1a2   : > { %v1729_v22 = vpack.c.bf16 %v1457_v21, %v1456_v20 }
 0x1a4   : > { %1466 = vst [vmem:[%s2258_s5] sm:$0xff] %v1729_v22 }
 0x1a5 PF: > { %s15_s20 = sadd.s32 1, %s2003_s20   ;;  %s2259_s18 = smov %s1999_s19 }
 0x1a6   : > { %p12_p8 = scmp.ge.s32.totalorder %s15_s20, 4   ;;  %s2260_s19 = smov %s2262_s21 }
 0x1a8   :  { %14 = sbr.rel (!%p12_p8) target bundleno = 2 (0x2), region = 84 }

// kernel: _lambda_.25
= control target key start
LH: loop header
LB: loop body
LE: loop exit
PB: predicated region body
PF: predicated region fallthrough
CT: control target
= control target key end

     0   :  { %s3440_s15 = smov 0   ;;  %s3442_s16 = smov 0   ;;  %s3838_s0 = inlined_call_operand.vmem [shape: bf16[8,2304], index: 0, kind: input, shape index: {}]   ;;  %s3839_s1 = inlined_call_operand.vmem [shape: bf16[2304,512], index: 1, kind: input, shape index: {}]   ;;  %s3840_s2 = inlined_call_operand.vmem [shape: f32[1,512], index: 2, kind: input, shape index: {}]   ;;  %s3841_s3 = inlined_call_operand.vmem [shape: f32[1,512], index: 3, kind: input, shape index: {}]   ;;  %s3842_s4 = inlined_call_operand.vmem [shape: bf16[8,512], index: 4, kind: output, shape index: {}]  }
   0x1   :  { %s3444_s17 = smov 0  }
   0x2 LB: > { %s23_s18 = sadd.s32 1, %s3407_s16  ;;  %p2611_p0 = scmp.ge.s32.totalorder %s3411_s17, 1  ;;  %s3411_s17 = sphi %s3444_s17, %s14_s17   ;;  %s3407_s16 = sphi %s3442_s16, %s3844_s16   ;;  %s3403_s15 = sphi %s3440_s15, %s3843_s15  }
   0x3   : > { %p24_p1 = scmp.ge.s32.totalorder %s23_s18, 2  ;;  %p193_p2 = scmp.lt.s32.totalorder %s3411_s17, 3 }
   0x5   : > { %s3846_s18 = smov (%p24_p1, %s23_s18), 0  ;;  %p194_p3 = pnand %p2611_p0, %p193_p2 }
   0x6   : > { %s229_s19 = smul.u32 (!%p194_p3), 9, %s3403_s15  ;;  %p2615_p6 = scmp.ne.s32.totalorder (!%p194_p3), %s3403_s15, 0 }
   0x7   : > { %197 = sbr.rel (%p194_p3) target bundleno = 549 (0x225), region = 36 }
   0x8   : > { %s239_s20 = smul.u32 (!%p194_p3), 144, %s3403_s15  ;;  %p232_p4 = scmp.lt.s32.totalorder (!%p194_p3), %s229_s19, 17 }
   0xa   : > { %p240_p5 = scmp.lt.s32.totalorder (!%p194_p3), %s239_s20, 287 }
   0xe   : > { %s3848_s19 = smov (!%p232_p4, %s229_s19), 17  ;;  %s3850_s20 = smov (!%p240_p5, %s239_s20), 287 }
   0xf   : > { %s2612_s21 = sshll.u32 %s3848_s19, 2  ;;  %s2919_s25 = sshll.u32 %s3850_s20, 4  ;;  %v3413_v0 = vmov (!%p2615_p6), 0.0  }
  0x10   : > { %s3465_s24 = scalar_lea.vmem %s3838_s0, %s2612_s21  ;;  %s3470_s28 = scalar_lea.vmem %s3839_s1, %s2919_s25  ;;  %256 = vst [vmem:[#allocation2] sm:$0xff] (!%p2615_p6), %v3413_v0  ;;  %257 = vst [vmem:[#allocation2 + $0x8] sm:$0xff] (!%p2615_p6), %v3413_v0 }
  0x11   : > { %255 = sbr.rel (%p2615_p6) target bundleno = 24 (0x18), region = 40  ;;  %258 = vst [vmem:[#allocation2 + $0x10] sm:$0xff] (!%p2615_p6), %v3413_v0  ;;  %259 = vst [vmem:[#allocation2 + $0x18] sm:$0xff] (!%p2615_p6), %v3413_v0 }
  0x18 PF: > { %v2948_v1 = vld [vmem:[%s3470_s28 + $0x4] ss:$16 sps:$4 sm:$0xff]   ;;  %v2952_v3 = vld [vmem:[%s3470_s28] ss:$16 sps:$4 sm:$0xff]   ;;  %v265_v49 = vld [vmem:[%s3465_s24 + $0x8] sm:$0xff]  ;;  %p2913_p7 = scmp.ne.s32.totalorder %s3403_s15, 1 }
  0x19   : > { %v2950_v2 = vld [vmem:[%s3470_s28 + $0x204] ss:$16 sps:$4 sm:$0xff]   ;;  %2029 = vmatprep.subr.bf16.mxu0 %v2948_v1  ;;  %v2953_v4 = vld [vmem:[%s3470_s28 + $0x200] ss:$16 sps:$4 sm:$0xff]   ;;  %v3525_v52 = vcombine.high %v265_v49, %v265_v49 }
  0x1a   : > { %2070 = vmatprep.subr.bf16.mxu1 %v2950_v2  ;;  %v2954_v5 = vld [vmem:[%s3470_s28 + $0x24] ss:$16 sps:$4 sm:$0xff]   ;;  %2030 = vmatpush1.bf16.msra.mxu0 %v2952_v3  ;;  %v2958_v7 = vld [vmem:[%s3470_s28 + $0x20] ss:$16 sps:$4 sm:$0xff]  }
  0x1b   : > { %2071 = vmatpush1.bf16.msra.mxu1 %v2953_v4  ;;  %v2956_v6 = vld [vmem:[%s3470_s28 + $0x224] ss:$16 sps:$4 sm:$0xff]   ;;  %2031 = vmatprep.subr.bf16.mxu0 %v2954_v5  ;;  %v2959_v8 = vld [vmem:[%s3470_s28 + $0x220] ss:$16 sps:$4 sm:$0xff]  }
  0x1c   : > { %2072 = vmatprep.subr.bf16.mxu1 %v2956_v6  ;;  %v2960_v9 = vld [vmem:[%s3470_s28 + $0x44] ss:$16 sps:$4 sm:$0xff]   ;;  %v2964_v11 = vld [vmem:[%s3470_s28 + $0x40] ss:$16 sps:$4 sm:$0xff]   ;;  %2102 = vmatprep.mubr.bf16.mxu1 %v3525_v52 }
  0x1d   : > { %v2962_v10 = vld [vmem:[%s3470_s28 + $0x244] ss:$16 sps:$4 sm:$0xff]   ;;  %v2965_v12 = vld [vmem:[%s3470_s28 + $0x240] ss:$16 sps:$4 sm:$0xff]  }
  0x1e   : > { %2032 = vmatpush1.bf16.msra.mxu0 %v2958_v7  ;;  %v2966_v13 = vld [vmem:[%s3470_s28 + $0x64] ss:$16 sps:$4 sm:$0xff]   ;;  %v2970_v15 = vld [vmem:[%s3470_s28 + $0x60] ss:$16 sps:$4 sm:$0xff]  }
  0x1f   : > { %2073 = vmatpush1.bf16.msra.mxu1 %v2959_v8  ;;  %2033 = vmatprep.subr.bf16.mxu0 %v2960_v9  ;;  %v2968_v14 = vld [vmem:[%s3470_s28 + $0x264] ss:$16 sps:$4 sm:$0xff]   ;;  %v2971_v16 = vld [vmem:[%s3470_s28 + $0x260] ss:$16 sps:$4 sm:$0xff]   ;;  %v3549_v8 = vcombine.low %v265_v49, %v265_v49 }
  0x20   : > { %2074 = vmatprep.subr.bf16.mxu1 %v2962_v10  ;;  %v2972_v17 = vld [vmem:[%s3470_s28 + $0x84] ss:$16 sps:$4 sm:$0xff]   ;;  %v2976_v19 = vld [vmem:[%s3470_s28 + $0x80] ss:$16 sps:$4 sm:$0xff]  }
  0x21   : > { %v2974_v18 = vld [vmem:[%s3470_s28 + $0x284] ss:$16 sps:$4 sm:$0xff]   ;;  %v2977_v20 = vld [vmem:[%s3470_s28 + $0x280] ss:$16 sps:$4 sm:$0xff]  }
  0x22   : > { %2034 = vmatpush1.bf16.msra.mxu0 %v2964_v11  ;;  %v2978_v21 = vld [vmem:[%s3470_s28 + $0xa4] ss:$16 sps:$4 sm:$0xff]   ;;  %v2982_v23 = vld [vmem:[%s3470_s28 + $0xa0] ss:$16 sps:$4 sm:$0xff]  }
  0x23   : > { %2075 = vmatpush1.bf16.msra.mxu1 %v2965_v12  ;;  %2035 = vmatprep.subr.bf16.mxu0 %v2966_v13  ;;  %v2980_v22 = vld [vmem:[%s3470_s28 + $0x2a4] ss:$16 sps:$4 sm:$0xff]   ;;  %v2983_v24 = vld [vmem:[%s3470_s28 + $0x2a0] ss:$16 sps:$4 sm:$0xff]  }
  0x24   : > { %2076 = vmatprep.subr.bf16.mxu1 %v2968_v14  ;;  %v2984_v25 = vld [vmem:[%s3470_s28 + $0xc4] ss:$16 sps:$4 sm:$0xff]   ;;  %v2988_v27 = vld [vmem:[%s3470_s28 + $0xc0] ss:$16 sps:$4 sm:$0xff]  }
  0x25   : > { %v2986_v26 = vld [vmem:[%s3470_s28 + $0x2c4] ss:$16 sps:$4 sm:$0xff]   ;;  %v2989_v28 = vld [vmem:[%s3470_s28 + $0x2c0] ss:$16 sps:$4 sm:$0xff]  }
  0x26   : > { %2036 = vmatpush1.bf16.msra.mxu0 %v2970_v15  ;;  %v2990_v29 = vld [vmem:[%s3470_s28 + $0xe4] ss:$16 sps:$4 sm:$0xff]   ;;  %v2994_v31 = vld [vmem:[%s3470_s28 + $0xe0] ss:$16 sps:$4 sm:$0xff]  }
  0x27   : > { %2077 = vmatpush1.bf16.msra.mxu1 %v2971_v16  ;;  %2037 = vmatprep.subr.bf16.mxu0 %v2972_v17  ;;  %v2992_v30 = vld [vmem:[%s3470_s28 + $0x2e4] ss:$16 sps:$4 sm:$0xff]   ;;  %v2995_v32 = vld [vmem:[%s3470_s28 + $0x2e0] ss:$16 sps:$4 sm:$0xff]  }
  0x28   : > { %2078 = vmatprep.subr.bf16.mxu1 %v2974_v18  ;;  %v2996_v33 = vld [vmem:[%s3470_s28 + $0x104] ss:$16 sps:$4 sm:$0xff]   ;;  %v3000_v35 = vld [vmem:[%s3470_s28 + $0x100] ss:$16 sps:$4 sm:$0xff]  }
  0x29   : > { %v2998_v34 = vld [vmem:[%s3470_s28 + $0x304] ss:$16 sps:$4 sm:$0xff]   ;;  %v3001_v36 = vld [vmem:[%s3470_s28 + $0x300] ss:$16 sps:$4 sm:$0xff]  }
  0x2a   : > { %2038 = vmatpush1.bf16.msra.mxu0 %v2976_v19  ;;  %v3002_v37 = vld [vmem:[%s3470_s28 + $0x124] ss:$16 sps:$4 sm:$0xff]   ;;  %v3006_v39 = vld [vmem:[%s3470_s28 + $0x120] ss:$16 sps:$4 sm:$0xff]  }
  0x2b   : > { %2079 = vmatpush1.bf16.msra.mxu1 %v2977_v20  ;;  %2039 = vmatprep.subr.bf16.mxu0 %v2978_v21  ;;  %v3004_v38 = vld [vmem:[%s3470_s28 + $0x324] ss:$16 sps:$4 sm:$0xff]   ;;  %v3007_v40 = vld [vmem:[%s3470_s28 + $0x320] ss:$16 sps:$4 sm:$0xff]  }
  0x2c   : > { %2080 = vmatprep.subr.bf16.mxu1 %v2980_v22  ;;  %v3008_v41 = vld [vmem:[%s3470_s28 + $0x144] ss:$16 sps:$4 sm:$0xff]   ;;  %v3012_v43 = vld [vmem:[%s3470_s28 + $0x140] ss:$16 sps:$4 sm:$0xff]  }
  0x2d   : > { %v3010_v42 = vld [vmem:[%s3470_s28 + $0x344] ss:$16 sps:$4 sm:$0xff]   ;;  %v3013_v44 = vld [vmem:[%s3470_s28 + $0x340] ss:$16 sps:$4 sm:$0xff]  }
  0x2e   : > { %2040 = vmatpush1.bf16.msra.mxu0 %v2982_v23  ;;  %v3014_v45 = vld [vmem:[%s3470_s28 + $0x164] ss:$16 sps:$4 sm:$0xff]   ;;  %v3018_v50 = vld [vmem:[%s3470_s28 + $0x160] ss:$16 sps:$4 sm:$0xff]  }
  0x2f   : > { %2081 = vmatpush1.bf16.msra.mxu1 %v2983_v24  ;;  %2041 = vmatprep.subr.bf16.mxu0 %v2984_v25  ;;  %v3016_v46 = vld [vmem:[%s3470_s28 + $0x364] ss:$16 sps:$4 sm:$0xff]   ;;  %v3019_v51 = vld [vmem:[%s3470_s28 + $0x360] ss:$16 sps:$4 sm:$0xff]  }
  0x30   : > { %2082 = vmatprep.subr.bf16.mxu1 %v2986_v26  ;;  %v264_v47 = vld [vmem:[%s3465_s24] sm:$0xff] }
  0x31   : > { %v3520_v48 = vcombine.high %v264_v47, %v264_v47  ;;  %v3020_v53 = vld [vmem:[%s3470_s28 + $0x184] ss:$16 sps:$4 sm:$0xff]   ;;  %v3024_v55 = vld [vmem:[%s3470_s28 + $0x180] ss:$16 sps:$4 sm:$0xff]   ;;  %v3547_v7 = vcombine.low %v264_v47, %v264_v47 }
  0x32   : > { %2042 = vmatpush1.bf16.msra.mxu0 %v2988_v27  ;;  %v3022_v54 = vld [vmem:[%s3470_s28 + $0x384] ss:$16 sps:$4 sm:$0xff]   ;;  %v3025_v56 = vld [vmem:[%s3470_s28 + $0x380] ss:$16 sps:$4 sm:$0xff]  }
  0x33   : > { %2083 = vmatpush1.bf16.msra.mxu1 %v2989_v28  ;;  %2043 = vmatprep.subr.bf16.mxu0 %v2990_v29  ;;  %v3026_v57 = vld [vmem:[%s3470_s28 + $0x1a4] ss:$16 sps:$4 sm:$0xff]   ;;  %v3030_v59 = vld [vmem:[%s3470_s28 + $0x1a0] ss:$16 sps:$4 sm:$0xff]  }
  0x34   : > { %2084 = vmatprep.subr.bf16.mxu1 %v2992_v30  ;;  %2061 = vmatprep.mubr.bf16.mxu0 %v3520_v48  ;;  %v3028_v58 = vld [vmem:[%s3470_s28 + $0x3a4] ss:$16 sps:$4 sm:$0xff]   ;;  %v3031_v60 = vld [vmem:[%s3470_s28 + $0x3a0] ss:$16 sps:$4 sm:$0xff]  }
  0x35   : > { %v3032_v61 = vld [vmem:[%s3470_s28 + $0x1c4] ss:$16 sps:$4 sm:$0xff]   ;;  %v3036_v63 = vld [vmem:[%s3470_s28 + $0x1c0] ss:$16 sps:$4 sm:$0xff]  }
  0x36   : > { %2044 = vmatpush1.bf16.msra.mxu0 %v2994_v31  ;;  %v3034_v62 = vld [vmem:[%s3470_s28 + $0x3c4] ss:$16 sps:$4 sm:$0xff]   ;;  %v3037_v0 = vld [vmem:[%s3470_s28 + $0x3c0] ss:$16 sps:$4 sm:$0xff]  }
  0x37   : > { %2085 = vmatpush1.bf16.msra.mxu1 %v2995_v32  ;;  %2045 = vmatprep.subr.bf16.mxu0 %v2996_v33  ;;  %v3038_v1 = vld [vmem:[%s3470_s28 + $0x1e4] ss:$16 sps:$4 sm:$0xff]   ;;  %v3042_v3 = vld [vmem:[%s3470_s28 + $0x1e0] ss:$16 sps:$4 sm:$0xff]  }
  0x38   : > { %2086 = vmatprep.subr.bf16.mxu1 %v2998_v34  ;;  %v3040_v2 = vld [vmem:[%s3470_s28 + $0x3e4] ss:$16 sps:$4 sm:$0xff]   ;;  %v3043_v4 = vld [vmem:[%s3470_s28 + $0x3e0] ss:$16 sps:$4 sm:$0xff]   ;;  %v3581_v34 = vld [vmem:[%s3465_s24 + $0x18] sm:$0xff] }
  0x39   : > { %v3050_v5 = vld [vmem:[%s3470_s28 + $0x404] ss:$16 sps:$4 sm:$0xff]   ;;  %v3048_v9 = vld [vmem:[%s3470_s28 + $0x400] ss:$16 sps:$4 sm:$0xff]  }
  0x3a   : > { %2046 = vmatpush1.bf16.msra.mxu0 %v3000_v35  ;;  %v3053_v6 = vld [vmem:[%s3470_s28 + $0x604] ss:$16 sps:$4 sm:$0xff]   ;;  %v3051_v10 = vld [vmem:[%s3470_s28 + $0x600] ss:$16 sps:$4 sm:$0xff]  }
  0x3b   : > { %2087 = vmatpush1.bf16.msra.mxu1 %v3001_v36  ;;  %2047 = vmatprep.subr.bf16.mxu0 %v3002_v37  ;;  %v3056_v11 = vld [vmem:[%s3470_s28 + $0x424] ss:$16 sps:$4 sm:$0xff]   ;;  %v3054_v13 = vld [vmem:[%s3470_s28 + $0x420] ss:$16 sps:$4 sm:$0xff]  }
  0x3c   : > { %2088 = vmatprep.subr.bf16.mxu1 %v3004_v38  ;;  %v3059_v12 = vld [vmem:[%s3470_s28 + $0x624] ss:$16 sps:$4 sm:$0xff]   ;;  %v3057_v14 = vld [vmem:[%s3470_s28 + $0x620] ss:$16 sps:$4 sm:$0xff]   ;;  %v3591_v38 = vcombine.high %v3581_v34, %v3581_v34 }
  0x3d   : > { %v3062_v15 = vld [vmem:[%s3470_s28 + $0x444] ss:$16 sps:$4 sm:$0xff]   ;;  %v3060_v17 = vld [vmem:[%s3470_s28 + $0x440] ss:$16 sps:$4 sm:$0xff]  }
  0x3e   : > { %2048 = vmatpush1.bf16.msra.mxu0 %v3006_v39  ;;  %v3065_v16 = vld [vmem:[%s3470_s28 + $0x644] ss:$16 sps:$4 sm:$0xff]   ;;  %v3063_v18 = vld [vmem:[%s3470_s28 + $0x640] ss:$16 sps:$4 sm:$0xff]  }
  0x3f   : > { %2089 = vmatpush1.bf16.msra.mxu1 %v3007_v40  ;;  %2049 = vmatprep.subr.bf16.mxu0 %v3008_v41  ;;  %v3068_v19 = vld [vmem:[%s3470_s28 + $0x464] ss:$16 sps:$4 sm:$0xff]   ;;  %v3066_v21 = vld [vmem:[%s3470_s28 + $0x460] ss:$16 sps:$4 sm:$0xff]  }
  0x40   : > { %2090 = vmatprep.subr.bf16.mxu1 %v3010_v42  ;;  %v3071_v20 = vld [vmem:[%s3470_s28 + $0x664] ss:$16 sps:$4 sm:$0xff]   ;;  %v3069_v22 = vld [vmem:[%s3470_s28 + $0x660] ss:$16 sps:$4 sm:$0xff]  }
  0x41   : > { %v3074_v23 = vld [vmem:[%s3470_s28 + $0x484] ss:$16 sps:$4 sm:$0xff]   ;;  %v3072_v25 = vld [vmem:[%s3470_s28 + $0x480] ss:$16 sps:$4 sm:$0xff]  }
  0x42   : > { %2050 = vmatpush1.bf16.msra.mxu0 %v3012_v43  ;;  %v3077_v24 = vld [vmem:[%s3470_s28 + $0x684] ss:$16 sps:$4 sm:$0xff]   ;;  %v3075_v26 = vld [vmem:[%s3470_s28 + $0x680] ss:$16 sps:$4 sm:$0xff]  }
  0x43   : > { %2091 = vmatpush1.bf16.msra.mxu1 %v3013_v44  ;;  %2051 = vmatprep.subr.bf16.mxu0 %v3014_v45  ;;  %v3080_v27 = vld [vmem:[%s3470_s28 + $0x4a4] ss:$16 sps:$4 sm:$0xff]   ;;  %v3078_v29 = vld [vmem:[%s3470_s28 + $0x4a0] ss:$16 sps:$4 sm:$0xff]  }
  0x44   : > { %2092 = vmatprep.subr.bf16.mxu1 %v3016_v46  ;;  %v3083_v28 = vld [vmem:[%s3470_s28 + $0x6a4] ss:$16 sps:$4 sm:$0xff]   ;;  %v3081_v30 = vld [vmem:[%s3470_s28 + $0x6a0] ss:$16 sps:$4 sm:$0xff]  }
  0x45   : > { %v3086_v31 = vld [vmem:[%s3470_s28 + $0x4c4] ss:$16 sps:$4 sm:$0xff]   ;;  %v3084_v35 = vld [vmem:[%s3470_s28 + $0x4c0] ss:$16 sps:$4 sm:$0xff]  }
  0x46   : > { %2052 = vmatpush1.bf16.msra.mxu0 %v3018_v50  ;;  %v3089_v32 = vld [vmem:[%s3470_s28 + $0x6c4] ss:$16 sps:$4 sm:$0xff]   ;;  %v3087_v36 = vld [vmem:[%s3470_s28 + $0x6c0] ss:$16 sps:$4 sm:$0xff]  }
  0x47   : > { %2093 = vmatpush1.bf16.msra.mxu1 %v3019_v51  ;;  %2053 = vmatprep.subr.bf16.mxu0 %v3020_v53  ;;  %v3578_v33 = vld [vmem:[%s3465_s24 + $0x10] sm:$0xff] }
  0x48   : > { %2094 = vmatprep.subr.bf16.mxu1 %v3022_v54  ;;  %v3587_v37 = vcombine.high %v3578_v33, %v3578_v33  ;;  %v3092_v39 = vld [vmem:[%s3470_s28 + $0x4e4] ss:$16 sps:$4 sm:$0xff]   ;;  %v3090_v41 = vld [vmem:[%s3470_s28 + $0x4e0] ss:$16 sps:$4 sm:$0xff]  }
  0x49   : > { %v3095_v40 = vld [vmem:[%s3470_s28 + $0x6e4] ss:$16 sps:$4 sm:$0xff]   ;;  %v3093_v42 = vld [vmem:[%s3470_s28 + $0x6e0] ss:$16 sps:$4 sm:$0xff]  }
  0x4a   : > { %2054 = vmatpush1.bf16.msra.mxu0 %v3024_v55  ;;  %v3098_v43 = vld [vmem:[%s3470_s28 + $0x504] ss:$16 sps:$4 sm:$0xff]   ;;  %v3096_v45 = vld [vmem:[%s3470_s28 + $0x500] ss:$16 sps:$4 sm:$0xff]  }
  0x4b   : > { %2095 = vmatpush1.bf16.msra.mxu1 %v3025_v56  ;;  %2055 = vmatprep.subr.bf16.mxu0 %v3026_v57  ;;  %v3101_v44 = vld [vmem:[%s3470_s28 + $0x704] ss:$16 sps:$4 sm:$0xff]   ;;  %v3099_v46 = vld [vmem:[%s3470_s28 + $0x700] ss:$16 sps:$4 sm:$0xff]  }
  0x4c   : > { %2096 = vmatprep.subr.bf16.mxu1 %v3028_v58  ;;  %v3104_v47 = vld [vmem:[%s3470_s28 + $0x524] ss:$16 sps:$4 sm:$0xff]   ;;  %v3102_v50 = vld [vmem:[%s3470_s28 + $0x520] ss:$16 sps:$4 sm:$0xff]  }
  0x4d   : > { %v3107_v49 = vld [vmem:[%s3470_s28 + $0x724] ss:$16 sps:$4 sm:$0xff]   ;;  %v3105_v51 = vld [vmem:[%s3470_s28 + $0x720] ss:$16 sps:$4 sm:$0xff]  }
  0x4e   : > { %2056 = vmatpush1.bf16.msra.mxu0 %v3030_v59  ;;  %v3110_v53 = vld [vmem:[%s3470_s28 + $0x544] ss:$16 sps:$4 sm:$0xff]   ;;  %v3108_v55 = vld [vmem:[%s3470_s28 + $0x540] ss:$16 sps:$4 sm:$0xff]  }
  0x4f   : > { %2097 = vmatpush1.bf16.msra.mxu1 %v3031_v60  ;;  %2057 = vmatprep.subr.bf16.mxu0 %v3032_v61  ;;  %v3113_v54 = vld [vmem:[%s3470_s28 + $0x744] ss:$16 sps:$4 sm:$0xff]   ;;  %v3111_v56 = vld [vmem:[%s3470_s28 + $0x740] ss:$16 sps:$4 sm:$0xff]  }
  0x50   : > { %2098 = vmatprep.subr.bf16.mxu1 %v3034_v62  ;;  %v3116_v57 = vld [vmem:[%s3470_s28 + $0x564] ss:$16 sps:$4 sm:$0xff]   ;;  %v3114_v59 = vld [vmem:[%s3470_s28 + $0x560] ss:$16 sps:$4 sm:$0xff]  }
  0x51   : > { %v3119_v58 = vld [vmem:[%s3470_s28 + $0x764] ss:$16 sps:$4 sm:$0xff]   ;;  %v3117_v60 = vld [vmem:[%s3470_s28 + $0x760] ss:$16 sps:$4 sm:$0xff]  }
  0x52   : > { %2058 = vmatpush1.bf16.msra.mxu0 %v3036_v63  ;;  %v3122_v61 = vld [vmem:[%s3470_s28 + $0x584] ss:$16 sps:$4 sm:$0xff]   ;;  %v3120_v63 = vld [vmem:[%s3470_s28 + $0x580] ss:$16 sps:$4 sm:$0xff]  }
  0x53   : > { %2099 = vmatpush1.bf16.msra.mxu1 %v3037_v0  ;;  %2059 = vmatprep.subr.bf16.mxu0 %v3038_v1  ;;  %v3125_v62 = vld [vmem:[%s3470_s28 + $0x784] ss:$16 sps:$4 sm:$0xff]   ;;  %v3123_v0 = vld [vmem:[%s3470_s28 + $0x780] ss:$16 sps:$4 sm:$0xff]  }
  0x54   : > { %2100 = vmatprep.subr.bf16.mxu1 %v3040_v2  ;;  %v3128_v1 = vld [vmem:[%s3470_s28 + $0x5a4] ss:$16 sps:$4 sm:$0xff]  }
  0x55   : > { %v3131_v2 = vld [vmem:[%s3470_s28 + $0x7a4] ss:$16 sps:$4 sm:$0xff]  }
  0x56   : > { %2060 = vmatpush1.bf16.msra.mxu0 %v3042_v3  ;;  %v3126_v3 = vld [vmem:[%s3470_s28 + $0x5a0] ss:$16 sps:$4 sm:$0xff]  }
  0x57   : > { %2101 = vmatpush1.bf16.msra.mxu1 %v3043_v4  ;;  %2111 = vmatprep.subr.bf16.mxu0 %v3050_v5  ;;  %v3129_v4 = vld [vmem:[%s3470_s28 + $0x7a0] ss:$16 sps:$4 sm:$0xff]   ;;  %v3134_v5 = vld [vmem:[%s3470_s28 + $0x5c4] ss:$16 sps:$4 sm:$0xff]  }
  0x58   : > { %2152 = vmatprep.subr.bf16.mxu1 %v3053_v6  ;;  %v3137_v6 = vld [vmem:[%s3470_s28 + $0x7c4] ss:$16 sps:$4 sm:$0xff]  }
  0x59   : > { %2062 = vmatmul.mubr.bf16.vlgmr.msra.gmra.mrb[0].mxu0 %v3547_v7 }
  0x5a   : > { %2103 = vmatmul.mubr.bf16.vlgmr.msra.gmra.mrb[0].mxu1 %v3549_v8  ;;  %2112 = vmatpush1.bf16.msra.mxu0 %v3048_v9  ;;  %v3132_v9 = vld [vmem:[%s3470_s28 + $0x5c0] ss:$16 sps:$4 sm:$0xff]  }
  0x5b   : > { %2153 = vmatpush1.bf16.msra.mxu1 %v3051_v10  ;;  %2113 = vmatprep.subr.bf16.mxu0 %v3056_v11  ;;  %v3135_v10 = vld [vmem:[%s3470_s28 + $0x7c0] ss:$16 sps:$4 sm:$0xff]   ;;  %v3140_v11 = vld [vmem:[%s3470_s28 + $0x5e4] ss:$16 sps:$4 sm:$0xff]  }
  0x5c   : > { %2154 = vmatprep.subr.bf16.mxu1 %v3059_v12  ;;  %2143 = vmatprep.mubr.bf16.mxu0 %v3587_v37  ;;  %v3143_v12 = vld [vmem:[%s3470_s28 + $0x7e4] ss:$16 sps:$4 sm:$0xff]  }
  0x5d   : > { %2184 = vmatprep.mubr.bf16.mxu1 %v3591_v38 }
  0x5e   : > { %2114 = vmatpush1.bf16.msra.mxu0 %v3054_v13  ;;  %v3138_v13 = vld [vmem:[%s3470_s28 + $0x5e0] ss:$16 sps:$4 sm:$0xff]  }
  0x5f   : > { %2155 = vmatpush1.bf16.msra.mxu1 %v3057_v14  ;;  %2115 = vmatprep.subr.bf16.mxu0 %v3062_v15  ;;  %v3141_v14 = vld [vmem:[%s3470_s28 + $0x7e0] ss:$16 sps:$4 sm:$0xff]   ;;  %v3150_v15 = vld [vmem:[%s3470_s28 + $0x804] ss:$16 sps:$4 sm:$0xff]  }
  0x60   : > { %2156 = vmatprep.subr.bf16.mxu1 %v3065_v16  ;;  %v3153_v16 = vld [vmem:[%s3470_s28 + $0xc] ss:$16 sps:$4 sm:$0xff]  }
  0x62   : > { %2116 = vmatpush1.bf16.msra.mxu0 %v3060_v17  ;;  %v3635_v17 = vcombine.low %v3578_v33, %v3578_v33  ;;  %v3169_v33 = vld [vmem:[%s3470_s28 + $0x68] ss:$16 sps:$4 sm:$0xff]  }
  0x63   : > { %2157 = vmatpush1.bf16.msra.mxu1 %v3063_v18  ;;  %2117 = vmatprep.subr.bf16.mxu0 %v3068_v19  ;;  %v3639_v18 = vcombine.low %v3581_v34, %v3581_v34  ;;  %v3148_v19 = vld [vmem:[%s3470_s28 + $0x800] ss:$16 sps:$4 sm:$0xff]   ;;  %v3177_v34 = vld [vmem:[%s3470_s28 + $0x8c] ss:$16 sps:$4 sm:$0xff]  }
  0x64   : > { %2158 = vmatprep.subr.bf16.mxu1 %v3071_v20  ;;  %v3151_v20 = vld [vmem:[%s3470_s28 + $0x8] ss:$16 sps:$4 sm:$0xff]  }
  0x66   : > { %2118 = vmatpush1.bf16.msra.mxu0 %v3066_v21  ;;  %v3156_v21 = vld [vmem:[%s3470_s28 + $0x824] ss:$16 sps:$4 sm:$0xff]  }
  0x67   : > { %2159 = vmatpush1.bf16.msra.mxu1 %v3069_v22  ;;  %2119 = vmatprep.subr.bf16.mxu0 %v3074_v23  ;;  %v3159_v22 = vld [vmem:[%s3470_s28 + $0x2c] ss:$16 sps:$4 sm:$0xff]   ;;  %v3154_v23 = vld [vmem:[%s3470_s28 + $0x820] ss:$16 sps:$4 sm:$0xff]  }
  0x68   : > { %2160 = vmatprep.subr.bf16.mxu1 %v3077_v24  ;;  %v3157_v24 = vld [vmem:[%s3470_s28 + $0x28] ss:$16 sps:$4 sm:$0xff]  }
  0x6a   : > { %2120 = vmatpush1.bf16.msra.mxu0 %v3072_v25  ;;  %v3162_v25 = vld [vmem:[%s3470_s28 + $0x844] ss:$16 sps:$4 sm:$0xff]  }
  0x6b   : > { %2161 = vmatpush1.bf16.msra.mxu1 %v3075_v26  ;;  %2121 = vmatprep.subr.bf16.mxu0 %v3080_v27  ;;  %v3165_v26 = vld [vmem:[%s3470_s28 + $0x4c] ss:$16 sps:$4 sm:$0xff]   ;;  %v3414_v27 = vmov 0  }
  0x6c   : > { %2162 = vmatprep.subr.bf16.mxu1 %v3083_v28  ;;  %v3160_v28 = vld [vmem:[%s3470_s28 + $0x840] ss:$16 sps:$4 sm:$0xff]  }
  0x6e   : > { %2122 = vmatpush1.bf16.msra.mxu0 %v3078_v29  ;;  %v3163_v29 = vld [vmem:[%s3470_s28 + $0x48] ss:$16 sps:$4 sm:$0xff]  }
  0x6f   : > { %2163 = vmatpush1.bf16.msra.mxu1 %v3081_v30  ;;  %2123 = vmatprep.subr.bf16.mxu0 %v3086_v31  ;;  %v3168_v30 = vld [vmem:[%s3470_s28 + $0x864] ss:$16 sps:$4 sm:$0xff]   ;;  %v3171_v31 = vld [vmem:[%s3470_s28 + $0x6c] ss:$16 sps:$4 sm:$0xff]  }
  0x70   : > { %2164 = vmatprep.subr.bf16.mxu1 %v3089_v32  ;;  %v3166_v32 = vld [vmem:[%s3470_s28 + $0x860] ss:$16 sps:$4 sm:$0xff]  }
  0x72   : > { %2124 = vmatpush1.bf16.msra.mxu0 %v3084_v35  ;;  %v3172_v35 = vld [vmem:[%s3470_s28 + $0x880] ss:$16 sps:$4 sm:$0xff]  }
  0x73   : > { %2165 = vmatpush1.bf16.msra.mxu1 %v3087_v36  ;;  %2125 = vmatprep.subr.bf16.mxu0 %v3092_v39  ;;  %v3175_v36 = vld [vmem:[%s3470_s28 + $0x88] ss:$16 sps:$4 sm:$0xff]   ;;  %v3180_v39 = vld [vmem:[%s3470_s28 + $0x8a4] ss:$16 sps:$4 sm:$0xff]  }
  0x74   : > { %2166 = vmatprep.subr.bf16.mxu1 %v3095_v40  ;;  %v3183_v40 = vld [vmem:[%s3470_s28 + $0xac] ss:$16 sps:$4 sm:$0xff]  }
  0x76   : > { %2126 = vmatpush1.bf16.msra.mxu0 %v3090_v41  ;;  %v3178_v41 = vld [vmem:[%s3470_s28 + $0x8a0] ss:$16 sps:$4 sm:$0xff]  }
  0x77   : > { %2167 = vmatpush1.bf16.msra.mxu1 %v3093_v42  ;;  %2127 = vmatprep.subr.bf16.mxu0 %v3098_v43  ;;  %v3181_v42 = vld [vmem:[%s3470_s28 + $0xa8] ss:$16 sps:$4 sm:$0xff]   ;;  %v3186_v43 = vld [vmem:[%s3470_s28 + $0x8c4] ss:$16 sps:$4 sm:$0xff]  }
  0x78   : > { %2168 = vmatprep.subr.bf16.mxu1 %v3101_v44  ;;  %v3189_v44 = vld [vmem:[%s3470_s28 + $0xcc] ss:$16 sps:$4 sm:$0xff]  }
  0x7a   : > { %2128 = vmatpush1.bf16.msra.mxu0 %v3096_v45  ;;  %v3184_v45 = vld [vmem:[%s3470_s28 + $0x8c0] ss:$16 sps:$4 sm:$0xff]  }
  0x7b   : > { %2169 = vmatpush1.bf16.msra.mxu1 %v3099_v46  ;;  %2129 = vmatprep.subr.bf16.mxu0 %v3104_v47  ;;  %v3187_v46 = vld [vmem:[%s3470_s28 + $0xc8] ss:$16 sps:$4 sm:$0xff]   ;;  %v3192_v47 = vld [vmem:[%s3470_s28 + $0x8e4] ss:$16 sps:$4 sm:$0xff]  }
  0x7c   : > { %2170 = vmatprep.subr.bf16.mxu1 %v3107_v49  ;;  %v3195_v49 = vld [vmem:[%s3470_s28 + $0xec] ss:$16 sps:$4 sm:$0xff]  }
  0x7e   : > { %2130 = vmatpush1.bf16.msra.mxu0 %v3102_v50  ;;  %v3190_v50 = vld [vmem:[%s3470_s28 + $0x8e0] ss:$16 sps:$4 sm:$0xff]  }
  0x7f   : > { %2171 = vmatpush1.bf16.msra.mxu1 %v3105_v51  ;;  %2131 = vmatprep.subr.bf16.mxu0 %v3110_v53  ;;  %v3193_v51 = vld [vmem:[%s3470_s28 + $0xe8] ss:$16 sps:$4 sm:$0xff]   ;;  %v3199_v53 = vld [vmem:[%s3470_s28 + $0x10c] ss:$16 sps:$4 sm:$0xff]  }
  0x80   : > { %2172 = vmatprep.subr.bf16.mxu1 %v3113_v54  ;;  %v3202_v54 = vld [vmem:[%s3470_s28 + $0x20c] ss:$16 sps:$4 sm:$0xff]  }
  0x82   : > { %2132 = vmatpush1.bf16.msra.mxu0 %v3108_v55  ;;  %v3678_v55 = vld [vmem:[%s3465_s24 + $0x20] ss:$0 sps:$4 sm:$0xff]  }
  0x83   : > { %2173 = vmatpush1.bf16.msra.mxu1 %v3111_v56  ;;  %2133 = vmatprep.subr.bf16.mxu0 %v3116_v57  ;;  %v3197_v56 = vld [vmem:[%s3470_s28 + $0x108] ss:$16 sps:$4 sm:$0xff]  }
  0x84   : > { %2174 = vmatprep.subr.bf16.mxu1 %v3119_v58  ;;  %v3200_v57 = vld [vmem:[%s3470_s28 + $0x208] ss:$16 sps:$4 sm:$0xff]   ;;  %v3205_v58 = vld [vmem:[%s3470_s28 + $0x12c] ss:$16 sps:$4 sm:$0xff]  }
  0x86   : > { %2134 = vmatpush1.bf16.msra.mxu0 %v3114_v59  ;;  %v3208_v59 = vld [vmem:[%s3470_s28 + $0x22c] ss:$16 sps:$4 sm:$0xff]  }
  0x87   : > { %2175 = vmatpush1.bf16.msra.mxu1 %v3117_v60  ;;  %2135 = vmatprep.subr.bf16.mxu0 %v3122_v61  ;;  %v3203_v60 = vld [vmem:[%s3470_s28 + $0x128] ss:$16 sps:$4 sm:$0xff]  }
  0x88   : > { %2176 = vmatprep.subr.bf16.mxu1 %v3125_v62  ;;  %v3206_v61 = vld [vmem:[%s3470_s28 + $0x228] ss:$16 sps:$4 sm:$0xff]   ;;  %v3211_v62 = vld [vmem:[%s3470_s28 + $0x14c] ss:$16 sps:$4 sm:$0xff]  }
  0x8a   : > { %2136 = vmatpush1.bf16.msra.mxu0 %v3120_v63  ;;  %v3214_v63 = vld [vmem:[%s3470_s28 + $0x24c] ss:$16 sps:$4 sm:$0xff]  }
  0x8b   : > { %2177 = vmatpush1.bf16.msra.mxu1 %v3123_v0  ;;  %2137 = vmatprep.subr.bf16.mxu0 %v3128_v1  ;;  %v3209_v0 = vld [vmem:[%s3470_s28 + $0x148] ss:$16 sps:$4 sm:$0xff]  }
  0x8c   : > { %2178 = vmatprep.subr.bf16.mxu1 %v3131_v2  ;;  %v3212_v1 = vld [vmem:[%s3470_s28 + $0x248] ss:$16 sps:$4 sm:$0xff]   ;;  %v3217_v2 = vld [vmem:[%s3470_s28 + $0x16c] ss:$16 sps:$4 sm:$0xff]  }
  0x8e   : > { %2138 = vmatpush1.bf16.msra.mxu0 %v3126_v3  ;;  %v3220_v3 = vld [vmem:[%s3470_s28 + $0x26c] ss:$16 sps:$4 sm:$0xff]  }
  0x8f   : > { %2179 = vmatpush1.bf16.msra.mxu1 %v3129_v4  ;;  %2139 = vmatprep.subr.bf16.mxu0 %v3134_v5  ;;  %v3215_v4 = vld [vmem:[%s3470_s28 + $0x168] ss:$16 sps:$4 sm:$0xff]  }
  0x90   : > { %2180 = vmatprep.subr.bf16.mxu1 %v3137_v6  ;;  %v3218_v5 = vld [vmem:[%s3470_s28 + $0x268] ss:$16 sps:$4 sm:$0xff]   ;;  %v3226_v6 = vld [vmem:[%s3470_s28 + $0x28c] ss:$16 sps:$4 sm:$0xff]  }
  0x92   : > { %2140 = vmatpush1.bf16.msra.mxu0 %v3132_v9  ;;  %v3221_v9 = vld [vmem:[%s3470_s28 + $0x188] ss:$16 sps:$4 sm:$0xff]  }
  0x93   : > { %2181 = vmatpush1.bf16.msra.mxu1 %v3135_v10  ;;  %2141 = vmatprep.subr.bf16.mxu0 %v3140_v11  ;;  %v3224_v10 = vld [vmem:[%s3470_s28 + $0x288] ss:$16 sps:$4 sm:$0xff]   ;;  %v3229_v11 = vld [vmem:[%s3470_s28 + $0x1ac] ss:$16 sps:$4 sm:$0xff]  }
  0x94   : > { %2182 = vmatprep.subr.bf16.mxu1 %v3143_v12  ;;  %v3232_v12 = vld [vmem:[%s3470_s28 + $0x2ac] ss:$16 sps:$4 sm:$0xff]  }
  0x96   : > { %2142 = vmatpush1.bf16.msra.mxu0 %v3138_v13  ;;  %v3227_v13 = vld [vmem:[%s3470_s28 + $0x1a8] ss:$16 sps:$4 sm:$0xff]  }
  0x97   : > { %2183 = vmatpush1.bf16.msra.mxu1 %v3141_v14  ;;  %2193 = vmatprep.subr.bf16.mxu0 %v3150_v15  ;;  %v3230_v14 = vld [vmem:[%s3470_s28 + $0x2a8] ss:$16 sps:$4 sm:$0xff]   ;;  %v3235_v15 = vld [vmem:[%s3470_s28 + $0x1cc] ss:$16 sps:$4 sm:$0xff]  }
  0x98   : > { %2234 = vmatprep.subr.bf16.mxu1 %v3153_v16  ;;  %v3238_v16 = vld [vmem:[%s3470_s28 + $0x2cc] ss:$16 sps:$4 sm:$0xff]  }
  0x99   : > { %2144 = vmatmul.mubr.bf16.vlgmr.msra.gmra.mrb[4].mxu0 %v3635_v17 }
  0x9a   : > { %2185 = vmatmul.mubr.bf16.vlgmr.msra.gmra.mrb[4].mxu1 %v3639_v18  ;;  %2194 = vmatpush1.bf16.msra.mxu0 %v3148_v19  ;;  %v3233_v19 = vld [vmem:[%s3470_s28 + $0x1c8] ss:$16 sps:$4 sm:$0xff]  }
  0x9b   : > { %2235 = vmatpush1.bf16.msra.mxu1 %v3151_v20  ;;  %2195 = vmatprep.subr.bf16.mxu0 %v3156_v21  ;;  %v3236_v20 = vld [vmem:[%s3470_s28 + $0x2c8] ss:$16 sps:$4 sm:$0xff]   ;;  %v3241_v21 = vld [vmem:[%s3470_s28 + $0x1ec] ss:$16 sps:$4 sm:$0xff]  }
  0x9c   : > { %2236 = vmatprep.subr.bf16.mxu1 %v3159_v22  ;;  %2225 = vmatprep.mubr.bf16.mxu0 %v3414_v27  ;;  %v3244_v22 = vld [vmem:[%s3470_s28 + $0x2ec] ss:$16 sps:$4 sm:$0xff]  }
  0x9d   : > { %2266 = vmatprep.mubr.bf16.mxu1 %v3520_v48  ;;  %v3174_v48 = vld [vmem:[%s3470_s28 + $0x884] ss:$16 sps:$4 sm:$0xff]  }
  0x9e   : > { %2196 = vmatpush1.bf16.msra.mxu0 %v3154_v23  ;;  %v3239_v23 = vld [vmem:[%s3470_s28 + $0x1e8] ss:$16 sps:$4 sm:$0xff]  }
  0x9f   : > { %2237 = vmatpush1.bf16.msra.mxu1 %v3157_v24  ;;  %2197 = vmatprep.subr.bf16.mxu0 %v3162_v25  ;;  %v3242_v24 = vld [vmem:[%s3470_s28 + $0x2e8] ss:$16 sps:$4 sm:$0xff]   ;;  %v3247_v25 = vld [vmem:[%s3470_s28 + $0x30c] ss:$16 sps:$4 sm:$0xff]  }
  0xa0   : > { %2238 = vmatprep.subr.bf16.mxu1 %v3165_v26  ;;  %v3250_v26 = vld [vmem:[%s3470_s28 + $0x40c] ss:$16 sps:$4 sm:$0xff]  }
  0xa2   : > { %2198 = vmatpush1.bf16.msra.mxu0 %v3160_v28  ;;  %v3245_v28 = vld [vmem:[%s3470_s28 + $0x308] ss:$16 sps:$4 sm:$0xff]  }
  0xa3   : > { %2239 = vmatpush1.bf16.msra.mxu1 %v3163_v29  ;;  %2199 = vmatprep.subr.bf16.mxu0 %v3168_v30  ;;  %v3248_v29 = vld [vmem:[%s3470_s28 + $0x408] ss:$16 sps:$4 sm:$0xff]   ;;  %v3253_v30 = vld [vmem:[%s3470_s28 + $0x32c] ss:$16 sps:$4 sm:$0xff]  }
  0xa4   : > { %2240 = vmatprep.subr.bf16.mxu1 %v3171_v31  ;;  %v3256_v31 = vld [vmem:[%s3470_s28 + $0x42c] ss:$16 sps:$4 sm:$0xff]  }
  0xa6   : > { %2200 = vmatpush1.bf16.msra.mxu0 %v3166_v32  ;;  %v3251_v32 = vld [vmem:[%s3470_s28 + $0x328] ss:$16 sps:$4 sm:$0xff]  }
  0xa7   : > { %2241 = vmatpush1.bf16.msra.mxu1 %v3169_v33  ;;  %2201 = vmatprep.subr.bf16.mxu0 %v3174_v48  ;;  %v3254_v33 = vld [vmem:[%s3470_s28 + $0x428] ss:$16 sps:$4 sm:$0xff]   ;;  %v3259_v48 = vld [vmem:[%s3470_s28 + $0x34c] ss:$16 sps:$4 sm:$0xff]  }
  0xa8   : > { %2242 = vmatprep.subr.bf16.mxu1 %v3177_v34  ;;  %v3262_v34 = vld [vmem:[%s3470_s28 + $0x44c] ss:$16 sps:$4 sm:$0xff]  }
  0xaa   : > { %2202 = vmatpush1.bf16.msra.mxu0 %v3172_v35  ;;  %v3257_v35 = vld [vmem:[%s3470_s28 + $0x348] ss:$16 sps:$4 sm:$0xff]  }
  0xab   : > { %2243 = vmatpush1.bf16.msra.mxu1 %v3175_v36  ;;  %2203 = vmatprep.subr.bf16.mxu0 %v3180_v39  ;;  %v3265_v36 = vld [vmem:[%s3470_s28 + $0x36c] ss:$16 sps:$4 sm:$0xff]  }
  0xac   : > { %2244 = vmatprep.subr.bf16.mxu1 %v3183_v40  ;;  %v3268_v39 = vld [vmem:[%s3470_s28 + $0x46c] ss:$16 sps:$4 sm:$0xff]   ;;  %v3263_v40 = vld [vmem:[%s3470_s28 + $0x368] ss:$16 sps:$4 sm:$0xff]  }
  0xae   : > { %2204 = vmatpush1.bf16.msra.mxu0 %v3178_v41  ;;  %v3266_v41 = vld [vmem:[%s3470_s28 + $0x468] ss:$16 sps:$4 sm:$0xff]  }
  0xaf   : > { %2245 = vmatpush1.bf16.msra.mxu1 %v3181_v42  ;;  %2205 = vmatprep.subr.bf16.mxu0 %v3186_v43  ;;  %v3274_v42 = vld [vmem:[%s3470_s28 + $0x48c] ss:$16 sps:$4 sm:$0xff]   ;;  %v3269_v43 = vld [vmem:[%s3470_s28 + $0x388] ss:$16 sps:$4 sm:$0xff]  }
  0xb0   : > { %2246 = vmatprep.subr.bf16.mxu1 %v3189_v44  ;;  %v3272_v44 = vld [vmem:[%s3470_s28 + $0x488] ss:$16 sps:$4 sm:$0xff]  }
  0xb2   : > { %2206 = vmatpush1.bf16.msra.mxu0 %v3184_v45  ;;  %v3277_v45 = vld [vmem:[%s3470_s28 + $0x3ac] ss:$16 sps:$4 sm:$0xff]  }
  0xb3   : > { %2247 = vmatpush1.bf16.msra.mxu1 %v3187_v46  ;;  %2207 = vmatprep.subr.bf16.mxu0 %v3192_v47  ;;  %v3280_v46 = vld [vmem:[%s3470_s28 + $0x4ac] ss:$16 sps:$4 sm:$0xff]   ;;  %v3275_v47 = vld [vmem:[%s3470_s28 + $0x3a8] ss:$16 sps:$4 sm:$0xff]  }
  0xb4   : > { %2248 = vmatprep.subr.bf16.mxu1 %v3195_v49  ;;  %v3278_v49 = vld [vmem:[%s3470_s28 + $0x4a8] ss:$16 sps:$4 sm:$0xff]  }
  0xb6   : > { %2208 = vmatpush1.bf16.msra.mxu0 %v3190_v50  ;;  %v3283_v50 = vld [vmem:[%s3470_s28 + $0x3cc] ss:$16 sps:$4 sm:$0xff]  }
  0xb7   : > { %2249 = vmatpush1.bf16.msra.mxu1 %v3193_v51  ;;  %2275 = vmatprep.subr.bf16.mxu0 %v3202_v54  ;;  %v3286_v51 = vld [vmem:[%s3470_s28 + $0x4cc] ss:$16 sps:$4 sm:$0xff]   ;;  %v3284_v54 = vld [vmem:[%s3470_s28 + $0x4c8] ss:$16 sps:$4 sm:$0xff]  }
  0xb8   : > { %2250 = vmatprep.subr.bf16.mxu1 %v3199_v53  ;;  %v3281_v53 = vld [vmem:[%s3470_s28 + $0x3c8] ss:$16 sps:$4 sm:$0xff]  }
  0xb9   : > { %2226 = vmatmul.mubr.bf16.vlgmr.msra.gmra.mrb[8].mxu0 %v3678_v55 }
  0xba   : > { %2276 = vmatpush1.bf16.msra.mxu0 %v3200_v57  ;;  %2307 = vmatprep.mubr.bf16.mxu0 %v3525_v52  ;;  %v3223_v52 = vld [vmem:[%s3470_s28 + $0x18c] ss:$16 sps:$4 sm:$0xff]  }
  0xbb   : > { %2251 = vmatpush1.bf16.msra.mxu1 %v3197_v56  ;;  %2277 = vmatprep.subr.bf16.mxu0 %v3208_v59  ;;  %v3289_v56 = vld [vmem:[%s3470_s28 + $0x3ec] ss:$16 sps:$4 sm:$0xff]   ;;  %v3290_v59 = vld [vmem:[%s3470_s28 + $0x4e8] ss:$16 sps:$4 sm:$0xff]  }
  0xbc   : > { %2252 = vmatprep.subr.bf16.mxu1 %v3205_v58  ;;  %v3292_v57 = vld [vmem:[%s3470_s28 + $0x4ec] ss:$16 sps:$4 sm:$0xff]   ;;  %v3287_v58 = vld [vmem:[%s3470_s28 + $0x3e8] ss:$16 sps:$4 sm:$0xff]  }
  0xbe   : > { %2278 = vmatpush1.bf16.msra.mxu0 %v3206_v61  ;;  %v3298_v61 = vld [vmem:[%s3470_s28 + $0x60c] ss:$16 sps:$4 sm:$0xff]  }
  0xbf   : > { %2253 = vmatpush1.bf16.msra.mxu1 %v3203_v60  ;;  %2279 = vmatprep.subr.bf16.mxu0 %v3214_v63  ;;  %v3295_v60 = vld [vmem:[%s3470_s28 + $0x50c] ss:$16 sps:$4 sm:$0xff]   ;;  %v3296_v63 = vld [vmem:[%s3470_s28 + $0x608] ss:$16 sps:$4 sm:$0xff]  }
  0xc0   : > { %2254 = vmatprep.subr.bf16.mxu1 %v3211_v62  ;;  %v3293_v62 = vld [vmem:[%s3470_s28 + $0x508] ss:$16 sps:$4 sm:$0xff]  }
  0xc2   : > { %2280 = vmatpush1.bf16.msra.mxu0 %v3212_v1  ;;  %v3304_v1 = vld [vmem:[%s3470_s28 + $0x62c] ss:$16 sps:$4 sm:$0xff]  }
  0xc3   : > { %2255 = vmatpush1.bf16.msra.mxu1 %v3209_v0  ;;  %2281 = vmatprep.subr.bf16.mxu0 %v3220_v3  ;;  %v3301_v0 = vld [vmem:[%s3470_s28 + $0x52c] ss:$16 sps:$4 sm:$0xff]   ;;  %v3302_v3 = vld [vmem:[%s3470_s28 + $0x628] ss:$16 sps:$4 sm:$0xff]  }
  0xc4   : > { %2256 = vmatprep.subr.bf16.mxu1 %v3217_v2  ;;  %v3299_v2 = vld [vmem:[%s3470_s28 + $0x528] ss:$16 sps:$4 sm:$0xff]  }
  0xc6   : > { %2282 = vmatpush1.bf16.msra.mxu0 %v3218_v5  ;;  %v3310_v5 = vld [vmem:[%s3470_s28 + $0x64c] ss:$16 sps:$4 sm:$0xff]  }
  0xc7   : > { %2257 = vmatpush1.bf16.msra.mxu1 %v3215_v4  ;;  %2283 = vmatprep.subr.bf16.mxu0 %v3226_v6  ;;  %v3307_v4 = vld [vmem:[%s3470_s28 + $0x54c] ss:$16 sps:$4 sm:$0xff]  }
  0xc8   : > { %2258 = vmatprep.subr.bf16.mxu1 %v3223_v52  ;;  %v3305_v52 = vld [vmem:[%s3470_s28 + $0x548] ss:$16 sps:$4 sm:$0xff]   ;;  %v3313_v6 = vld [vmem:[%s3470_s28 + $0x56c] ss:$16 sps:$4 sm:$0xff]  }
  0xca   : > { %2284 = vmatpush1.bf16.msra.mxu0 %v3224_v10  ;;  %v3311_v10 = vld [vmem:[%s3470_s28 + $0x568] ss:$16 sps:$4 sm:$0xff]  }
  0xcb   : > { %2259 = vmatpush1.bf16.msra.mxu1 %v3221_v9  ;;  %2285 = vmatprep.subr.bf16.mxu0 %v3232_v12  ;;  %v3316_v9 = vld [vmem:[%s3470_s28 + $0x66c] ss:$16 sps:$4 sm:$0xff]  }
  0xcc   : > { %2260 = vmatprep.subr.bf16.mxu1 %v3229_v11  ;;  %v3314_v11 = vld [vmem:[%s3470_s28 + $0x668] ss:$16 sps:$4 sm:$0xff]   ;;  %v3322_v12 = vld [vmem:[%s3470_s28 + $0x68c] ss:$16 sps:$4 sm:$0xff]  }
  0xce   : > { %2286 = vmatpush1.bf16.msra.mxu0 %v3230_v14  ;;  %v3320_v14 = vld [vmem:[%s3470_s28 + $0x688] ss:$16 sps:$4 sm:$0xff]  }
  0xcf   : > { %2261 = vmatpush1.bf16.msra.mxu1 %v3227_v13  ;;  %2287 = vmatprep.subr.bf16.mxu0 %v3238_v16  ;;  %v3317_v13 = vld [vmem:[%s3470_s28 + $0x588] ss:$16 sps:$4 sm:$0xff]   ;;  %v3328_v16 = vld [vmem:[%s3470_s28 + $0x6ac] ss:$16 sps:$4 sm:$0xff]  }
  0xd0   : > { %2262 = vmatprep.subr.bf16.mxu1 %v3235_v15  ;;  %v3325_v15 = vld [vmem:[%s3470_s28 + $0x5ac] ss:$16 sps:$4 sm:$0xff]  }
  0xd2   : > { %2288 = vmatpush1.bf16.msra.mxu0 %v3236_v20  ;;  %v3326_v20 = vld [vmem:[%s3470_s28 + $0x6a8] ss:$16 sps:$4 sm:$0xff]  }
  0xd3   : > { %2263 = vmatpush1.bf16.msra.mxu1 %v3233_v19  ;;  %2289 = vmatprep.subr.bf16.mxu0 %v3244_v22  ;;  %v3323_v19 = vld [vmem:[%s3470_s28 + $0x5a8] ss:$16 sps:$4 sm:$0xff]   ;;  %v3334_v22 = vld [vmem:[%s3470_s28 + $0x6cc] ss:$16 sps:$4 sm:$0xff]  }
  0xd4   : > { %2264 = vmatprep.subr.bf16.mxu1 %v3241_v21  ;;  %v3331_v21 = vld [vmem:[%s3470_s28 + $0x5cc] ss:$16 sps:$4 sm:$0xff]  }
  0xd6   : > { %2290 = vmatpush1.bf16.msra.mxu0 %v3242_v24  ;;  %v3332_v24 = vld [vmem:[%s3470_s28 + $0x6c8] ss:$16 sps:$4 sm:$0xff]  }
  0xd7   : > { %2265 = vmatpush1.bf16.msra.mxu1 %v3239_v23  ;;  %2291 = vmatprep.subr.bf16.mxu0 %v3247_v25  ;;  %v3329_v23 = vld [vmem:[%s3470_s28 + $0x5c8] ss:$16 sps:$4 sm:$0xff]   ;;  %v3337_v25 = vld [vmem:[%s3470_s28 + $0x5ec] ss:$16 sps:$4 sm:$0xff]  }
  0xd8   : > { %2316 = vmatprep.subr.bf16.mxu1 %v3250_v26  ;;  %v3340_v26 = vld [vmem:[%s3470_s28 + $0x6ec] ss:$16 sps:$4 sm:$0xff]  }
  0xda   : > { %2267 = vmatmul.mubr.bf16.vlgmr.msra.gmra.mrb[8].mxu1 %v3547_v7  ;;  %2292 = vmatpush1.bf16.msra.mxu0 %v3245_v28  ;;  %v3260_v7 = vld [vmem:[%s3470_s28 + $0x448] ss:$16 sps:$4 sm:$0xff]  }
  0xdb   : > { %2317 = vmatpush1.bf16.msra.mxu1 %v3248_v29  ;;  %2293 = vmatprep.subr.bf16.mxu0 %v3253_v30  ;;  %v3335_v28 = vld [vmem:[%s3470_s28 + $0x5e8] ss:$16 sps:$4 sm:$0xff]   ;;  %v3343_v30 = vld [vmem:[%s3470_s28 + $0x70c] ss:$16 sps:$4 sm:$0xff]  }
  0xdc   : > { %2318 = vmatprep.subr.bf16.mxu1 %v3256_v31  ;;  %2348 = vmatprep.mubr.bf16.mxu1 %v3587_v37  ;;  %v3271_v37 = vld [vmem:[%s3470_s28 + $0x38c] ss:$16 sps:$4 sm:$0xff]   ;;  %v3338_v29 = vld [vmem:[%s3470_s28 + $0x6e8] ss:$16 sps:$4 sm:$0xff]  }
  0xdd   : > { %v3346_v31 = vld [vmem:[%s3470_s28 + $0x80c] ss:$16 sps:$4 sm:$0xff]  }
  0xde   : > { %2294 = vmatpush1.bf16.msra.mxu0 %v3251_v32  ;;  %v3341_v32 = vld [vmem:[%s3470_s28 + $0x708] ss:$16 sps:$4 sm:$0xff]  }
  0xdf   : > { %2319 = vmatpush1.bf16.msra.mxu1 %v3254_v33  ;;  %2295 = vmatprep.subr.bf16.mxu0 %v3259_v48  ;;  %v3344_v33 = vld [vmem:[%s3470_s28 + $0x808] ss:$16 sps:$4 sm:$0xff]   ;;  %v3349_v48 = vld [vmem:[%s3470_s28 + $0x72c] ss:$16 sps:$4 sm:$0xff]  }
  0xe0   : > { %2320 = vmatprep.subr.bf16.mxu1 %v3262_v34  ;;  %v3352_v34 = vld [vmem:[%s3470_s28 + $0x82c] ss:$16 sps:$4 sm:$0xff]  }
  0xe2   : > { %2296 = vmatpush1.bf16.msra.mxu0 %v3257_v35  ;;  %v3347_v35 = vld [vmem:[%s3470_s28 + $0x728] ss:$16 sps:$4 sm:$0xff]  }
  0xe3   : > { %2321 = vmatpush1.bf16.msra.mxu1 %v3260_v7  ;;  %2297 = vmatprep.subr.bf16.mxu0 %v3265_v36  ;;  %v3350_v7 = vld [vmem:[%s3470_s28 + $0x828] ss:$16 sps:$4 sm:$0xff]   ;;  %v3355_v36 = vld [vmem:[%s3470_s28 + $0x74c] ss:$16 sps:$4 sm:$0xff]  }
  0xe4   : > { %2322 = vmatprep.subr.bf16.mxu1 %v3268_v39  ;;  %v3358_v39 = vld [vmem:[%s3470_s28 + $0x84c] ss:$16 sps:$4 sm:$0xff]  }
  0xe6   : > { %2298 = vmatpush1.bf16.msra.mxu0 %v3263_v40  ;;  %v3353_v40 = vld [vmem:[%s3470_s28 + $0x748] ss:$16 sps:$4 sm:$0xff]  }
  0xe7   : > { %2323 = vmatpush1.bf16.msra.mxu1 %v3266_v41  ;;  %2299 = vmatprep.subr.bf16.mxu0 %v3271_v37  ;;  %v3361_v41 = vld [vmem:[%s3470_s28 + $0x76c] ss:$16 sps:$4 sm:$0xff]  }
  0xe8   : > { %2324 = vmatprep.subr.bf16.mxu1 %v3274_v42  ;;  %v3364_v37 = vld [vmem:[%s3470_s28 + $0x86c] ss:$16 sps:$4 sm:$0xff]   ;;  %v3359_v42 = vld [vmem:[%s3470_s28 + $0x768] ss:$16 sps:$4 sm:$0xff]  }
  0xea   : > { %2300 = vmatpush1.bf16.msra.mxu0 %v3269_v43  ;;  %v3362_v43 = vld [vmem:[%s3470_s28 + $0x868] ss:$16 sps:$4 sm:$0xff]  }
  0xeb   : > { %2325 = vmatpush1.bf16.msra.mxu1 %v3272_v44  ;;  %2301 = vmatprep.subr.bf16.mxu0 %v3277_v45  ;;  %v3370_v44 = vld [vmem:[%s3470_s28 + $0x88c] ss:$16 sps:$4 sm:$0xff]   ;;  %v3365_v45 = vld [vmem:[%s3470_s28 + $0x788] ss:$16 sps:$4 sm:$0xff]  }
  0xec   : > { %2326 = vmatprep.subr.bf16.mxu1 %v3280_v46  ;;  %v3368_v46 = vld [vmem:[%s3470_s28 + $0x888] ss:$16 sps:$4 sm:$0xff]  }
  0xee   : > { %2302 = vmatpush1.bf16.msra.mxu0 %v3275_v47  ;;  %v3373_v47 = vld [vmem:[%s3470_s28 + $0x7ac] ss:$16 sps:$4 sm:$0xff]  }
  0xef   : > { %2327 = vmatpush1.bf16.msra.mxu1 %v3278_v49  ;;  %2303 = vmatprep.subr.bf16.mxu0 %v3283_v50  ;;  %v3376_v49 = vld [vmem:[%s3470_s28 + $0x8ac] ss:$16 sps:$4 sm:$0xff]   ;;  %v3371_v50 = vld [vmem:[%s3470_s28 + $0x7a8] ss:$16 sps:$4 sm:$0xff]  }
  0xf0   : > { %2328 = vmatprep.subr.bf16.mxu1 %v3286_v51  ;;  %v3374_v51 = vld [vmem:[%s3470_s28 + $0x8a8] ss:$16 sps:$4 sm:$0xff]  }
  0xf2   : > { %2304 = vmatpush1.bf16.msra.mxu0 %v3281_v53  ;;  %v3379_v53 = vld [vmem:[%s3470_s28 + $0x7cc] ss:$16 sps:$4 sm:$0xff]  }
  0xf3   : > { %2329 = vmatpush1.bf16.msra.mxu1 %v3284_v54  ;;  %2305 = vmatprep.subr.bf16.mxu0 %v3289_v56  ;;  %v3382_v54 = vld [vmem:[%s3470_s28 + $0x8cc] ss:$16 sps:$4 sm:$0xff]  }
  0xf4   : > { %2330 = vmatprep.subr.bf16.mxu1 %v3292_v57 }
  0xf6   : > { %2306 = vmatpush1.bf16.msra.mxu0 %v3287_v58 }
  0xf7   : > { %2331 = vmatpush1.bf16.msra.mxu1 %v3290_v59  ;;  %2357 = vmatprep.subr.bf16.mxu0 %v3298_v61 }
  0xf8   : > { %2332 = vmatprep.subr.bf16.mxu1 %v3295_v60 }
  0xf9   : > { %2308 = vmatmul.mubr.bf16.vlgmr.msra.gmra.mrb[12].mxu0 %v3549_v8  ;;  %v3308_v8 = vld [vmem:[%s3470_s28 + $0x648] ss:$16 sps:$4 sm:$0xff]  }
  0xfa   : > { %2358 = vmatpush1.bf16.msra.mxu0 %v3296_v63  ;;  %2389 = vmatprep.mubr.bf16.mxu0 %v3591_v38  ;;  %v3319_v38 = vld [vmem:[%s3470_s28 + $0x58c] ss:$16 sps:$4 sm:$0xff]  }
  0xfb   : > { %2333 = vmatpush1.bf16.msra.mxu1 %v3293_v62  ;;  %2359 = vmatprep.subr.bf16.mxu0 %v3304_v1  ;;  %v3380_v1 = vld [vmem:[%s3470_s28 + $0x8c8] ss:$16 sps:$4 sm:$0xff]  }
  0xfc   : > { %2334 = vmatprep.subr.bf16.mxu1 %v3301_v0  ;;  %v3377_v0 = vld [vmem:[%s3470_s28 + $0x7c8] ss:$16 sps:$4 sm:$0xff]  }
  0xfe   : > { %2360 = vmatpush1.bf16.msra.mxu0 %v3302_v3 }
  0xff   : > { %2335 = vmatpush1.bf16.msra.mxu1 %v3299_v2  ;;  %2361 = vmatprep.subr.bf16.mxu0 %v3310_v5  ;;  %v3388_v5 = vld [vmem:[%s3470_s28 + $0x8ec] ss:$16 sps:$4 sm:$0xff]  }
 0x100   : > { %2336 = vmatprep.subr.bf16.mxu1 %v3307_v4  ;;  %v3385_v4 = vld [vmem:[%s3470_s28 + $0x7ec] ss:$16 sps:$4 sm:$0xff]  }
 0x102   : > { %2362 = vmatpush1.bf16.msra.mxu0 %v3308_v8  ;;  %v3386_v8 = vld [vmem:[%s3470_s28 + $0x8e8] ss:$16 sps:$4 sm:$0xff]  }
 0x103   : > { %2337 = vmatpush1.bf16.msra.mxu1 %v3305_v52  ;;  %2363 = vmatprep.subr.bf16.mxu0 %v3316_v9  ;;  %v3383_v52 = vld [vmem:[%s3470_s28 + $0x7e8] ss:$16 sps:$4 sm:$0xff]  }
 0x104   : > { %2338 = vmatprep.subr.bf16.mxu1 %v3313_v6 }
 0x106   : > { %2364 = vmatpush1.bf16.msra.mxu0 %v3314_v11 }
 0x107   : > { %2339 = vmatpush1.bf16.msra.mxu1 %v3311_v10  ;;  %2365 = vmatprep.subr.bf16.mxu0 %v3322_v12 }
 0x108   : > { %2340 = vmatprep.subr.bf16.mxu1 %v3319_v38 }
 0x10a   : > { %2366 = vmatpush1.bf16.msra.mxu0 %v3320_v14 }
 0x10b   : > { %2341 = vmatpush1.bf16.msra.mxu1 %v3317_v13  ;;  %2367 = vmatprep.subr.bf16.mxu0 %v3328_v16 }
 0x10c   : > { %2342 = vmatprep.subr.bf16.mxu1 %v3325_v15 }
 0x10e   : > { %2368 = vmatpush1.bf16.msra.mxu0 %v3326_v20 }
 0x10f   : > { %2343 = vmatpush1.bf16.msra.mxu1 %v3323_v19  ;;  %2369 = vmatprep.subr.bf16.mxu0 %v3334_v22 }
 0x110   : > { %2344 = vmatprep.subr.bf16.mxu1 %v3331_v21  ;;  %v260_v21 = vld [vmem:[#allocation2] sm:$0xff] }
 0x112   : > { %2370 = vmatpush1.bf16.msra.mxu0 %v3332_v24  ;;  %v261_v24 = vld [vmem:[#allocation2 + $0x8] sm:$0xff] }
 0x113   : > { %2345 = vmatpush1.bf16.msra.mxu1 %v3329_v23  ;;  %2371 = vmatprep.subr.bf16.mxu0 %v3340_v26 }
 0x114   : > { %2346 = vmatprep.subr.bf16.mxu1 %v3337_v25 }
 0x116   : > { %2372 = vmatpush1.bf16.msra.mxu0 %v3338_v29 }
 0x117   : > { %2347 = vmatpush1.bf16.msra.mxu1 %v3335_v28  ;;  %2373 = vmatprep.subr.bf16.mxu0 %v3343_v30 }
 0x118   : > { %2398 = vmatprep.subr.bf16.mxu1 %v3346_v31 }
 0x11a   : > { %2349 = vmatmul.mubr.bf16.vlgmr.msra.gmra.mrb[12].mxu1 %v3635_v17  ;;  %2374 = vmatpush1.bf16.msra.mxu0 %v3341_v32  ;;  %v3356_v17 = vld [vmem:[%s3470_s28 + $0x848] ss:$16 sps:$4 sm:$0xff]  }
 0x11b   : > { %2399 = vmatpush1.bf16.msra.mxu1 %v3344_v33  ;;  %2375 = vmatprep.subr.bf16.mxu0 %v3349_v48 }
 0x11c   : > { %2400 = vmatprep.subr.bf16.mxu1 %v3352_v34  ;;  %2430 = vmatprep.mubr.bf16.mxu1 %v3414_v27  ;;  %v3367_v27 = vld [vmem:[%s3470_s28 + $0x78c] ss:$16 sps:$4 sm:$0xff]  }
 0x11e   : > { %2376 = vmatpush1.bf16.msra.mxu0 %v3347_v35 }
 0x11f   : > { %2401 = vmatpush1.bf16.msra.mxu1 %v3350_v7  ;;  %2377 = vmatprep.subr.bf16.mxu0 %v3355_v36 }
 0x120   : > { %2402 = vmatprep.subr.bf16.mxu1 %v3358_v39 }
 0x122   : > { %2378 = vmatpush1.bf16.msra.mxu0 %v3353_v40 }
 0x123   : > { %2403 = vmatpush1.bf16.msra.mxu1 %v3356_v17  ;;  %2379 = vmatprep.subr.bf16.mxu0 %v3361_v41 }
 0x124   : > { %2404 = vmatprep.subr.bf16.mxu1 %v3364_v37 }
 0x126   : > { %2380 = vmatpush1.bf16.msra.mxu0 %v3359_v42 }
 0x127   : > { %2405 = vmatpush1.bf16.msra.mxu1 %v3362_v43  ;;  %2381 = vmatprep.subr.bf16.mxu0 %v3367_v27 }
 0x128   : > { %2406 = vmatprep.subr.bf16.mxu1 %v3370_v44 }
 0x12a   : > { %2382 = vmatpush1.bf16.msra.mxu0 %v3365_v45 }
 0x12b   : > { %2407 = vmatpush1.bf16.msra.mxu1 %v3368_v46  ;;  %2383 = vmatprep.subr.bf16.mxu0 %v3373_v47 }
 0x12c   : > { %2408 = vmatprep.subr.bf16.mxu1 %v3376_v49  ;;  %v2063_v56 = vpop.f32.mrb[0].mxu0  ;;  %v262_v49 = vld [vmem:[#allocation2 + $0x10] sm:$0xff] }
 0x12d   : > { %v2104_v57 = vpop.f32.mrb[0].mxu1  ;;  %v2065_v59 = vpop.f32.mrb[1].mxu0 }
 0x12e   : > { %v2105_v58 = vadd.f32 %v2104_v57, %v2063_v56  ;;  %v2106_v60 = vpop.f32.mrb[1].mxu1  ;;  %v2067_v62 = vpop.f32.mrb[2].mxu0  ;;  %2384 = vmatpush1.bf16.msra.mxu0 %v3371_v50  ;;  %v263_v56 = vld [vmem:[#allocation2 + $0x18] sm:$0xff] }
 0x12f   : > { %v2107_v61 = vadd.f32 %v2106_v60, %v2065_v59  ;;  %v2108_v63 = vpop.f32.mrb[2].mxu1  ;;  %2409 = vmatpush1.bf16.msra.mxu1 %v3374_v51  ;;  %v2068_v2 = vpop.f32.mrb[3].mxu0  ;;  %2385 = vmatprep.subr.bf16.mxu0 %v3379_v53  ;;  %v2457_v62 = vlaneseq (!%p2913_p7) }
 0x130   : > { %v2109_v3 = vpop.f32.mrb[3].mxu1  ;;  %2410 = vmatprep.subr.bf16.mxu1 %v3382_v54 }
 0x131   : > { %v2458_v63 = vshrl.u32 (!%p2913_p7), %v2457_v62, 7 }
 0x132   : > { %2386 = vmatpush1.bf16.msra.mxu0 %v3377_v0  ;;  %v2455_v0 = vld [vmem:[%s3840_s2] sm:$0xf] (!%p2913_p7) }
 0x133   : > { %2411 = vmatpush1.bf16.msra.mxu1 %v3380_v1  ;;  %2387 = vmatprep.subr.bf16.mxu0 %v3385_v4  ;;  %v2481_v1 = vld [vmem:[%s3841_s3] sm:$0xf] (!%p2913_p7)  ;;  %v2459_v2 = vsub.s32 (!%p2913_p7), 0, %v2458_v63  ;;  %v2463_v3 = vsub.s32 (!%p2913_p7), 1, %v2458_v63  ;;  %v2467_v4 = vsub.s32 (!%p2913_p7), 2, %v2458_v63 }
 0x134   : > { %2412 = vmatprep.subr.bf16.mxu1 %v3388_v5  ;;  %v2471_v5 = vsub.s32 (!%p2913_p7), 3, %v2458_v63 }
 0x136   : > { %2388 = vmatpush1.bf16.msra.mxu0 %v3383_v52 }
 0x137   : > { %2413 = vmatpush1.bf16.msra.mxu1 %v3386_v8 }
 0x139   : > { %2390 = vmatmul.mubr.bf16.vlgmr.msra.gmra.mrb[16].mxu0 %v3639_v18 }
 0x13a   : > { %2431 = vmatmul.mubr.bf16.vlgmr.msra.gmra.mrb[16].mxu1 %v3678_v55 }
 0x16c   : > { %v2145_v6 = vpop.f32.mrb[4].mxu0 }
 0x16d   : > { %v2186_v9 = vpop.f32.mrb[4].mxu1  ;;  %v2146_v10 = vadd.f32 %v2145_v6, %v2105_v58  ;;  %v2147_v11 = vpop.f32.mrb[5].mxu0  ;;  %v2460_v6 = vrot.slane (!%p2913_p7), %v2455_v0, %v2459_v2 }
 0x16e   : > { %v2188_v38 = vpop.f32.mrb[5].mxu1  ;;  %v2148_v12 = vadd.f32 %v2147_v11, %v2107_v61  ;;  %v2149_v13 = vpop.f32.mrb[6].mxu0  ;;  %v2490_v11 = vrot.slane (!%p2913_p7), %v2481_v1, %v2463_v3 }
 0x16f   : > { %v2190_v14 = vpop.f32.mrb[6].mxu1  ;;  %v2187_v15 = vadd.f32 %v2186_v9, %v2146_v10  ;;  %v2150_v16 = vpop.f32.mrb[7].mxu0  ;;  %v2464_v9 = vrot.slane (!%p2913_p7), %v2455_v0, %v2463_v3  ;;  %v2486_v10 = vrot.slane (!%p2913_p7), %v2481_v1, %v2459_v2  ;;  %v2468_v13 = vrot.slane (!%p2913_p7), %v2455_v0, %v2467_v4 }
 0x170   : > { %v2191_v19 = vpop.f32.mrb[7].mxu1  ;;  %v2189_v20 = vadd.f32 %v2188_v38, %v2148_v12  ;;  %v2472_v14 = vrot.slane (!%p2913_p7), %v2455_v0, %v2471_v5  ;;  %v2498_v16 = vrot.slane (!%p2913_p7), %v2481_v1, %v2471_v5 }
 0x18c   : > { %v2227_v22 = vpop.f32.mrb[8].mxu0 }
 0x18d   : > { %v2228_v23 = vadd.f32 %v2227_v22, %v2187_v15  ;;  %v2229_v25 = vpop.f32.mrb[9].mxu0  ;;  %v2494_v15 = vrot.slane (!%p2913_p7), %v2481_v1, %v2467_v4 }
 0x18e   : > { %v2230_v18 = vadd.f32 %v2229_v25, %v2189_v20  ;;  %v2231_v26 = vpop.f32.mrb[10].mxu0 }
 0x18f   : > { %v2439_v55 = vadd.f32 %v2228_v23, %v260_v21  ;;  %v2232_v28 = vpop.f32.mrb[11].mxu0 }
 0x190   : > { %v2440_v29 = vadd.f32 %v2230_v18, %v261_v24 }
 0x191   : > { %2443 = vst [vmem:[#allocation2] sm:$0xff] %v2439_v55 }
 0x192   : > { %2444 = vst [vmem:[#allocation2 + $0x8] sm:$0xff] %v2440_v29 }
 0x198   : > { %v2451_v52 = vld [vmem:[#allocation2] sm:$0xff] (!%p2913_p7) }
 0x199   : > { %v2452_v8 = vld [vmem:[#allocation2 + $0x8] sm:$0xff] (!%p2913_p7)  ;;  %v2477_v19 = vmul.f32 (!%p2913_p7), %v2460_v6, %v2451_v52 }
 0x19a   : > { %v2478_v20 = vmul.f32 (!%p2913_p7), %v2464_v9, %v2452_v8 }
 0x19b   : > { %v2503_v23 = vadd.f32 (!%p2913_p7), %v2486_v10, %v2477_v19 }
 0x19c   : > { %v2504_v24 = vadd.f32 (!%p2913_p7), %v2490_v11, %v2478_v20 }
 0x19d   : > { %v2507_v26 = vmax.f32 (!%p2913_p7), %v2503_v23, 0.0 }
 0x19e   : > { %v2508_v55 = vmax.f32 (!%p2913_p7), %v2504_v24, 0.0 }
 0x1ad   : > { %v2268_v30 = vpop.f32.mrb[8].mxu1 }
 0x1ae   : > { %v2270_v31 = vpop.f32.mrb[9].mxu1 }
 0x1af   : > { %v2272_v32 = vpop.f32.mrb[10].mxu1 }
 0x1b0   : > { %v2273_v33 = vpop.f32.mrb[11].mxu1 }
 0x1cc   : > { %v2309_v48 = vpop.f32.mrb[12].mxu0 }
 0x1cd   : > { %v2310_v34 = vadd.f32 %v2309_v48, %v2268_v30  ;;  %v2311_v35 = vpop.f32.mrb[13].mxu0  ;;  %v2920_v30 = vpack.c.bf16 (!%p2913_p7), %v2508_v55, %v2507_v26 }
 0x1ce   : > { %v2312_v7 = vadd.f32 %v2311_v35, %v2270_v31  ;;  %v2313_v36 = vpop.f32.mrb[14].mxu0 }
 0x1cf   : > { %v2314_v39 = vpop.f32.mrb[15].mxu0  ;;  %2527 = vst [vmem:[%s3842_s4] sm:$0xff] (!%p2913_p7), %v2920_v30 }
 0x1ed   : > { %v2350_v40 = vpop.f32.mrb[12].mxu1 }
 0x1ee   : > { %v2351_v17 = vadd.f32 %v2350_v40, %v2310_v34  ;;  %v2352_v41 = vpop.f32.mrb[13].mxu1 }
 0x1ef   : > { %v2353_v37 = vadd.f32 %v2352_v41, %v2312_v7  ;;  %v2354_v42 = vpop.f32.mrb[14].mxu1 }
 0x1f0   : > { %v2355_v43 = vpop.f32.mrb[15].mxu1 }
 0x20c   : > { %v2391_v27 = vpop.f32.mrb[16].mxu0 }
 0x20d   : > { %v2432_v44 = vpop.f32.mrb[16].mxu1  ;;  %v2392_v45 = vadd.f32 %v2391_v27, %v2351_v17  ;;  %v2393_v46 = vpop.f32.mrb[17].mxu0 }
 0x20e   : > { %v2434_v47 = vpop.f32.mrb[17].mxu1  ;;  %v2394_v50 = vadd.f32 %v2393_v46, %v2353_v37  ;;  %v2395_v51 = vpop.f32.mrb[18].mxu0  ;;  %2450 = sbr.rel (%p2913_p7) target bundleno = 549 (0x225), region = 44 }
 0x20f   : > { %v2436_v53 = vpop.f32.mrb[18].mxu1  ;;  %v2433_v54 = vadd.f32 %v2432_v44, %v2392_v45  ;;  %v2396_v57 = vpop.f32.mrb[19].mxu0 }
 0x210   : > { %v2437_v58 = vpop.f32.mrb[19].mxu1  ;;  %v2435_v59 = vadd.f32 %v2434_v47, %v2394_v50 }
 0x211   : > { %v2441_v60 = vadd.f32 %v2433_v54, %v262_v49 }
 0x212   : > { %v2442_v61 = vadd.f32 %v2435_v59, %v263_v56 }
 0x213   : > { %2445 = vst [vmem:[#allocation2 + $0x10] sm:$0xff] %v2441_v60 }
 0x214   : > { %2446 = vst [vmem:[#allocation2 + $0x18] sm:$0xff] %v2442_v61 }
 0x21a   : > { %v2453_v38 = vld [vmem:[#allocation2 + $0x10] sm:$0xff] }
 0x21b   : > { %v2454_v12 = vld [vmem:[#allocation2 + $0x18] sm:$0xff]  ;;  %v2479_v21 = vmul.f32 %v2468_v13, %v2453_v38 }
 0x21c   : > { %v2480_v22 = vmul.f32 %v2472_v14, %v2454_v12 }
 0x21d   : > { %v2505_v25 = vadd.f32 %v2494_v15, %v2479_v21 }
 0x21e   : > { %v2506_v18 = vadd.f32 %v2498_v16, %v2480_v22 }
 0x21f   : > { %v2509_v28 = vmax.f32 %v2505_v25, 0.0 }
 0x220   : > { %v2510_v29 = vmax.f32 %v2506_v18, 0.0 }
 0x222   : > { %v2921_v31 = vpack.c.bf16 %v2510_v29, %v2509_v28 }
 0x224   : > { %2528 = vst [vmem:[%s3842_s4 + $0x8] sm:$0xff] %v2921_v31 }
 0x225 PF: > { %s14_s17 = sadd.s32 1, %s3411_s17   ;;  %s3843_s15 = smov %s3407_s16 }
 0x226   : > { %p11_p8 = scmp.ge.s32.totalorder %s14_s17, 4   ;;  %s3844_s16 = smov %s3846_s18 }
 0x228   :  { %13 = sbr.rel (!%p11_p8) target bundleno = 2 (0x2), region = 77 }

// kernel: _lambda_.26
= control target key start
LH: loop header
LB: loop body
LE: loop exit
PB: predicated region body
PF: predicated region fallthrough
CT: control target
= control target key end

     0   :  { %s992_s1 = inlined_call_operand.vmem [shape: bf16[256,512], index: 1, kind: input, shape index: {}]   ;;  %s993_s0 = inlined_call_operand.vmem [shape: bf16[8,256], index: 0, kind: input, shape index: {}]   ;;  %s994_s2 = inlined_call_operand.vmem [shape: f32[1,512], index: 2, kind: input, shape index: {}]   ;;  %s995_s3 = inlined_call_operand.vmem [shape: f32[1,512], index: 3, kind: input, shape index: {}]   ;;  %s996_s4 = inlined_call_operand.vmem [shape: bf16[8,512], index: 4, kind: output, shape index: {}]  }
   0x1   :  { %v662_v0 = vld [vmem:[%s992_s1 + $0x4] ss:$16 sps:$4 sm:$0xff]   ;;  %v664_v1 = vld [vmem:[%s992_s1 + $0xc] ss:$16 sps:$4 sm:$0xff]   ;;  %v666_v2 = vld [vmem:[%s992_s1] ss:$16 sps:$4 sm:$0xff]  }
   0x2   :  { %421 = vmatprep.subr.bf16.mxu0 %v662_v0  ;;  %v667_v3 = vld [vmem:[%s992_s1 + $0x8] ss:$16 sps:$4 sm:$0xff]   ;;  %462 = vmatprep.subr.bf16.mxu1 %v664_v1  ;;  %v668_v4 = vld [vmem:[%s992_s1 + $0x24] ss:$16 sps:$4 sm:$0xff]   ;;  %v670_v5 = vld [vmem:[%s992_s1 + $0x2c] ss:$16 sps:$4 sm:$0xff]  }
   0x3   :  { %422 = vmatpush1.bf16.msra.mxu0 %v666_v2  ;;  %463 = vmatpush1.bf16.msra.mxu1 %v667_v3  ;;  %v672_v6 = vld [vmem:[%s992_s1 + $0x20] ss:$16 sps:$4 sm:$0xff]   ;;  %v673_v7 = vld [vmem:[%s992_s1 + $0x28] ss:$16 sps:$4 sm:$0xff]   ;;  %v674_v8 = vld [vmem:[%s992_s1 + $0x44] ss:$16 sps:$4 sm:$0xff]   ;;  %v520_v3 = vlaneseq }
   0x4   :  { %423 = vmatprep.subr.bf16.mxu0 %v668_v4  ;;  %464 = vmatprep.subr.bf16.mxu1 %v670_v5  ;;  %v676_v9 = vld [vmem:[%s992_s1 + $0x4c] ss:$16 sps:$4 sm:$0xff]   ;;  %v678_v10 = vld [vmem:[%s992_s1 + $0x40] ss:$16 sps:$4 sm:$0xff]   ;;  %v679_v11 = vld [vmem:[%s992_s1 + $0x48] ss:$16 sps:$4 sm:$0xff]  }
   0x5   :  { %v680_v12 = vld [vmem:[%s992_s1 + $0x64] ss:$16 sps:$4 sm:$0xff]   ;;  %v682_v13 = vld [vmem:[%s992_s1 + $0x6c] ss:$16 sps:$4 sm:$0xff]   ;;  %v684_v14 = vld [vmem:[%s992_s1 + $0x60] ss:$16 sps:$4 sm:$0xff]  }
   0x6   :  { %v685_v15 = vld [vmem:[%s992_s1 + $0x68] ss:$16 sps:$4 sm:$0xff]   ;;  %v686_v16 = vld [vmem:[%s992_s1 + $0x84] ss:$16 sps:$4 sm:$0xff]   ;;  %v688_v17 = vld [vmem:[%s992_s1 + $0x8c] ss:$16 sps:$4 sm:$0xff]  }
   0x7   :  { %424 = vmatpush1.bf16.msra.mxu0 %v672_v6  ;;  %465 = vmatpush1.bf16.msra.mxu1 %v673_v7  ;;  %v690_v18 = vld [vmem:[%s992_s1 + $0x80] ss:$16 sps:$4 sm:$0xff]   ;;  %v691_v19 = vld [vmem:[%s992_s1 + $0x88] ss:$16 sps:$4 sm:$0xff]   ;;  %v692_v20 = vld [vmem:[%s992_s1 + $0xa4] ss:$16 sps:$4 sm:$0xff]  }
   0x8   :  { %425 = vmatprep.subr.bf16.mxu0 %v674_v8  ;;  %466 = vmatprep.subr.bf16.mxu1 %v676_v9  ;;  %v694_v21 = vld [vmem:[%s992_s1 + $0xac] ss:$16 sps:$4 sm:$0xff]   ;;  %v696_v22 = vld [vmem:[%s992_s1 + $0xa0] ss:$16 sps:$4 sm:$0xff]   ;;  %v697_v23 = vld [vmem:[%s992_s1 + $0xa8] ss:$16 sps:$4 sm:$0xff]  }
   0x9   :  { %v698_v24 = vld [vmem:[%s992_s1 + $0xc4] ss:$16 sps:$4 sm:$0xff]   ;;  %v700_v25 = vld [vmem:[%s992_s1 + $0xcc] ss:$16 sps:$4 sm:$0xff]   ;;  %v702_v26 = vld [vmem:[%s992_s1 + $0xc0] ss:$16 sps:$4 sm:$0xff]  }
   0xa   :  { %v703_v27 = vld [vmem:[%s992_s1 + $0xc8] ss:$16 sps:$4 sm:$0xff]   ;;  %v704_v28 = vld [vmem:[%s992_s1 + $0xe4] ss:$16 sps:$4 sm:$0xff]   ;;  %v706_v29 = vld [vmem:[%s992_s1 + $0xec] ss:$16 sps:$4 sm:$0xff]  }
   0xb   :  { %426 = vmatpush1.bf16.msra.mxu0 %v678_v10  ;;  %467 = vmatpush1.bf16.msra.mxu1 %v679_v11  ;;  %v708_v30 = vld [vmem:[%s992_s1 + $0xe0] ss:$16 sps:$4 sm:$0xff]   ;;  %v709_v31 = vld [vmem:[%s992_s1 + $0xe8] ss:$16 sps:$4 sm:$0xff]   ;;  %v710_v32 = vld [vmem:[%s992_s1 + $0x104] ss:$16 sps:$4 sm:$0xff]  }
   0xc   :  { %427 = vmatprep.subr.bf16.mxu0 %v680_v12  ;;  %468 = vmatprep.subr.bf16.mxu1 %v682_v13  ;;  %v712_v33 = vld [vmem:[%s992_s1 + $0x10c] ss:$16 sps:$4 sm:$0xff]   ;;  %v714_v34 = vld [vmem:[%s992_s1 + $0x100] ss:$16 sps:$4 sm:$0xff]   ;;  %v715_v35 = vld [vmem:[%s992_s1 + $0x108] ss:$16 sps:$4 sm:$0xff]  }
   0xd   :  { %v716_v36 = vld [vmem:[%s992_s1 + $0x124] ss:$16 sps:$4 sm:$0xff]   ;;  %v718_v37 = vld [vmem:[%s992_s1 + $0x12c] ss:$16 sps:$4 sm:$0xff]   ;;  %v720_v38 = vld [vmem:[%s992_s1 + $0x120] ss:$16 sps:$4 sm:$0xff]  }
   0xe   :  { %v721_v39 = vld [vmem:[%s992_s1 + $0x128] ss:$16 sps:$4 sm:$0xff]   ;;  %v722_v40 = vld [vmem:[%s992_s1 + $0x144] ss:$16 sps:$4 sm:$0xff]   ;;  %v724_v41 = vld [vmem:[%s992_s1 + $0x14c] ss:$16 sps:$4 sm:$0xff]  }
   0xf   :  { %428 = vmatpush1.bf16.msra.mxu0 %v684_v14  ;;  %469 = vmatpush1.bf16.msra.mxu1 %v685_v15  ;;  %v726_v42 = vld [vmem:[%s992_s1 + $0x140] ss:$16 sps:$4 sm:$0xff]   ;;  %v727_v43 = vld [vmem:[%s992_s1 + $0x148] ss:$16 sps:$4 sm:$0xff]   ;;  %v728_v44 = vld [vmem:[%s992_s1 + $0x164] ss:$16 sps:$4 sm:$0xff]  }
  0x10   :  { %429 = vmatprep.subr.bf16.mxu0 %v686_v16  ;;  %470 = vmatprep.subr.bf16.mxu1 %v688_v17  ;;  %v730_v45 = vld [vmem:[%s992_s1 + $0x16c] ss:$16 sps:$4 sm:$0xff]   ;;  %v29_v46 = vld [vmem:[%s993_s0] sm:$0xff]  ;;  %v733_v49 = vld [vmem:[%s992_s1 + $0x168] ss:$16 sps:$4 sm:$0xff]   ;;  %v521_v4 = vshrl.u32 %v520_v3, 7 }
  0x11   :  { %v593_v47 = vcombine.high %v29_v46, %v29_v46  ;;  %v732_v48 = vld [vmem:[%s992_s1 + $0x160] ss:$16 sps:$4 sm:$0xff]   ;;  %v734_v50 = vld [vmem:[%s992_s1 + $0x184] ss:$16 sps:$4 sm:$0xff]   ;;  %v736_v51 = vld [vmem:[%s992_s1 + $0x18c] ss:$16 sps:$4 sm:$0xff]   ;;  %v592_v2 = vcombine.low %v29_v46, %v29_v46 }
  0x12   :  { %v738_v52 = vld [vmem:[%s992_s1 + $0x180] ss:$16 sps:$4 sm:$0xff]   ;;  %v739_v53 = vld [vmem:[%s992_s1 + $0x188] ss:$16 sps:$4 sm:$0xff]   ;;  %v740_v54 = vld [vmem:[%s992_s1 + $0x1a4] ss:$16 sps:$4 sm:$0xff]  }
  0x13   :  { %430 = vmatpush1.bf16.msra.mxu0 %v690_v18  ;;  %471 = vmatpush1.bf16.msra.mxu1 %v691_v19  ;;  %v742_v55 = vld [vmem:[%s992_s1 + $0x1ac] ss:$16 sps:$4 sm:$0xff]   ;;  %v744_v56 = vld [vmem:[%s992_s1 + $0x1a0] ss:$16 sps:$4 sm:$0xff]   ;;  %v745_v57 = vld [vmem:[%s992_s1 + $0x1a8] ss:$16 sps:$4 sm:$0xff]  }
  0x14   :  { %431 = vmatprep.subr.bf16.mxu0 %v692_v20  ;;  %472 = vmatprep.subr.bf16.mxu1 %v694_v21  ;;  %v746_v58 = vld [vmem:[%s992_s1 + $0x1c4] ss:$16 sps:$4 sm:$0xff]   ;;  %v748_v59 = vld [vmem:[%s992_s1 + $0x1cc] ss:$16 sps:$4 sm:$0xff]   ;;  %v750_v60 = vld [vmem:[%s992_s1 + $0x1c0] ss:$16 sps:$4 sm:$0xff]  }
  0x15   :  { %453 = vmatprep.mubr.bf16.mxu0 %v593_v47  ;;  %494 = vmatprep.mubr.bf16.mxu1 %v593_v47  ;;  %v751_v61 = vld [vmem:[%s992_s1 + $0x1c8] ss:$16 sps:$4 sm:$0xff]   ;;  %v752_v62 = vld [vmem:[%s992_s1 + $0x1e4] ss:$16 sps:$4 sm:$0xff]   ;;  %v754_v63 = vld [vmem:[%s992_s1 + $0x1ec] ss:$16 sps:$4 sm:$0xff]  }
  0x16   :  { %v756_v0 = vld [vmem:[%s992_s1 + $0x1e0] ss:$16 sps:$4 sm:$0xff]   ;;  %v757_v1 = vld [vmem:[%s992_s1 + $0x1e8] ss:$16 sps:$4 sm:$0xff]   ;;  %v522_v5 = vsub.s32 0, %v521_v4  ;;  %v530_v6 = vsub.s32 2, %v521_v4 }
  0x17   :  { %432 = vmatpush1.bf16.msra.mxu0 %v696_v22  ;;  %473 = vmatpush1.bf16.msra.mxu1 %v697_v23  ;;  %v518_v7 = vld [vmem:[%s994_s2] sm:$0xf]  ;;  %v526_v8 = vsub.s32 1, %v521_v4  ;;  %v534_v9 = vsub.s32 3, %v521_v4 }
  0x18   :  { %433 = vmatprep.subr.bf16.mxu0 %v698_v24  ;;  %474 = vmatprep.subr.bf16.mxu1 %v700_v25  ;;  %v544_v10 = vld [vmem:[%s995_s3] sm:$0xf]  ;;  %v523_v11 = vrot.slane %v518_v7, %v522_v5  ;;  %v531_v12 = vrot.slane %v518_v7, %v530_v6 }
  0x19   :  { %v527_v13 = vrot.slane %v518_v7, %v526_v8  ;;  %v535_v14 = vrot.slane %v518_v7, %v534_v9  ;;  %v549_v15 = vrot.slane %v544_v10, %v522_v5  ;;  %v557_v16 = vrot.slane %v544_v10, %v530_v6 }
  0x1a   :  { %v553_v19 = vrot.slane %v544_v10, %v526_v8  ;;  %v561_v20 = vrot.slane %v544_v10, %v534_v9 }
  0x1b   :  { %434 = vmatpush1.bf16.msra.mxu0 %v702_v26  ;;  %475 = vmatpush1.bf16.msra.mxu1 %v703_v27 }
  0x1c   :  { %435 = vmatprep.subr.bf16.mxu0 %v704_v28  ;;  %476 = vmatprep.subr.bf16.mxu1 %v706_v29 }
  0x1f   :  { %436 = vmatpush1.bf16.msra.mxu0 %v708_v30  ;;  %477 = vmatpush1.bf16.msra.mxu1 %v709_v31 }
  0x20   :  { %437 = vmatprep.subr.bf16.mxu0 %v710_v32  ;;  %478 = vmatprep.subr.bf16.mxu1 %v712_v33 }
  0x23   :  { %438 = vmatpush1.bf16.msra.mxu0 %v714_v34  ;;  %479 = vmatpush1.bf16.msra.mxu1 %v715_v35 }
  0x24   :  { %439 = vmatprep.subr.bf16.mxu0 %v716_v36  ;;  %480 = vmatprep.subr.bf16.mxu1 %v718_v37 }
  0x27   :  { %440 = vmatpush1.bf16.msra.mxu0 %v720_v38  ;;  %481 = vmatpush1.bf16.msra.mxu1 %v721_v39 }
  0x28   :  { %441 = vmatprep.subr.bf16.mxu0 %v722_v40  ;;  %482 = vmatprep.subr.bf16.mxu1 %v724_v41 }
  0x2b   :  { %442 = vmatpush1.bf16.msra.mxu0 %v726_v42  ;;  %483 = vmatpush1.bf16.msra.mxu1 %v727_v43 }
  0x2c   :  { %443 = vmatprep.subr.bf16.mxu0 %v728_v44  ;;  %484 = vmatprep.subr.bf16.mxu1 %v730_v45 }
  0x2f   :  { %444 = vmatpush1.bf16.msra.mxu0 %v732_v48  ;;  %485 = vmatpush1.bf16.msra.mxu1 %v733_v49 }
  0x30   :  { %445 = vmatprep.subr.bf16.mxu0 %v734_v50  ;;  %486 = vmatprep.subr.bf16.mxu1 %v736_v51 }
  0x33   :  { %446 = vmatpush1.bf16.msra.mxu0 %v738_v52  ;;  %487 = vmatpush1.bf16.msra.mxu1 %v739_v53 }
  0x34   :  { %447 = vmatprep.subr.bf16.mxu0 %v740_v54  ;;  %488 = vmatprep.subr.bf16.mxu1 %v742_v55 }
  0x37   :  { %448 = vmatpush1.bf16.msra.mxu0 %v744_v56  ;;  %489 = vmatpush1.bf16.msra.mxu1 %v745_v57 }
  0x38   :  { %449 = vmatprep.subr.bf16.mxu0 %v746_v58  ;;  %490 = vmatprep.subr.bf16.mxu1 %v748_v59 }
  0x3b   :  { %450 = vmatpush1.bf16.msra.mxu0 %v750_v60  ;;  %491 = vmatpush1.bf16.msra.mxu1 %v751_v61 }
  0x3c   :  { %451 = vmatprep.subr.bf16.mxu0 %v752_v62  ;;  %492 = vmatprep.subr.bf16.mxu1 %v754_v63 }
  0x3f   :  { %452 = vmatpush1.bf16.msra.mxu0 %v756_v0  ;;  %493 = vmatpush1.bf16.msra.mxu1 %v757_v1 }
  0x42   :  { %454 = vmatmul.mubr.bf16.vlgmr.msra.gmra.mrb[0].mxu0 %v592_v2  ;;  %495 = vmatmul.mubr.bf16.vlgmr.msra.gmra.mrb[0].mxu1 %v592_v2 }
 0x115   :  { %v455_v17 = vpop.f32.mrb[0].mxu0  ;;  %v496_v18 = vpop.f32.mrb[0].mxu1 }
 0x116   :  { %v540_v21 = vmul.f32 %v523_v11, %v455_v17  ;;  %v542_v22 = vmul.f32 %v531_v12, %v496_v18  ;;  %v457_v23 = vpop.f32.mrb[1].mxu0  ;;  %v498_v24 = vpop.f32.mrb[1].mxu1 }
 0x117   :  { %v541_v25 = vmul.f32 %v527_v13, %v457_v23  ;;  %v543_v26 = vmul.f32 %v535_v14, %v498_v24  ;;  %v459_v27 = vpop.f32.mrb[2].mxu0  ;;  %v500_v28 = vpop.f32.mrb[2].mxu1 }
 0x118   :  { %v566_v29 = vadd.f32 %v549_v15, %v540_v21  ;;  %v568_v30 = vadd.f32 %v557_v16, %v542_v22  ;;  %v460_v31 = vpop.f32.mrb[3].mxu0  ;;  %v501_v32 = vpop.f32.mrb[3].mxu1 }
 0x119   :  { %v567_v33 = vadd.f32 %v553_v19, %v541_v25  ;;  %v569_v34 = vadd.f32 %v561_v20, %v543_v26 }
 0x11b   :  { %v660_v35 = vpack.c.bf16 %v567_v33, %v566_v29  ;;  %v661_v36 = vpack.c.bf16 %v569_v34, %v568_v30 }
 0x11d   :  { %586 = vst [vmem:[%s996_s4] sm:$0xff] %v660_v35  ;;  %587 = vst [vmem:[%s996_s4 + $0x8] sm:$0xff] %v661_v36 }

// kernel: _lambda_.28
= control target key start
LH: loop header
LB: loop body
LE: loop exit
PB: predicated region body
PF: predicated region fallthrough
CT: control target
= control target key end

     0   :  { %vm27_vm0 = vcmask 1041409   ;;  %vm29_vm1 = vcmask 1043459   ;;  %vm31_vm2 = vcmask 1045509   ;;  %vm33_vm3 = vcmask 1047559   ;;  %s67_s0 = inlined_call_operand.vmem [shape: bf16[2,1,512], index: 0, kind: input, shape index: {}]   ;;  %s68_s1 = inlined_call_operand.vmem [shape: f32[2,512], index: 1, kind: output, shape index: {}]  }
   0x1   :  { %v48_v0 = vld [vmem:[%s67_s0] sm:$0xff]  }
   0x2   :  { %v49_v1 = vunpack.c.l.bf16 %v48_v0  ;;  %v50_v2 = vunpack.c.h.bf16 %v48_v0 }
   0x4   :  { %v26_v3 = vrot.slane %v50_v2, 7 }
   0x6   :  { %v28_v4 = vsel %vm27_vm0, %v26_v3, %v49_v1 }
   0x7   :  { %v30_v5 = vsel %vm29_vm1, %v26_v3, %v28_v4 }
   0x8   :  { %v32_v6 = vsel %vm31_vm2, %v26_v3, %v30_v5 }
   0x9   :  { %v34_v7 = vsel %vm33_vm3, %v26_v3, %v32_v6 }
   0xa   :  { %42 = vst [vmem:[%s68_s1] sm:$0xff] %v34_v7 }

// kernel: _lambda_.29
= control target key start
LH: loop header
LB: loop body
LE: loop exit
PB: predicated region body
PF: predicated region fallthrough
CT: control target
= control target key end

     0   :  { %vm22_vm0 = vcmask 80896   ;;  %v524_v38 = vmov 0.0   ;;  %s664_s1 = inlined_call_operand.vmem [shape: bf16[512,10], index: 1, kind: input, shape index: {}]   ;;  %s665_s0 = inlined_call_operand.vmem [shape: bf16[8,512], index: 0, kind: input, shape index: {}]   ;;  %s666_s2 = inlined_call_operand.vmem [shape: f32[1,10], index: 2, kind: input, shape index: {}]   ;;  %s667_s3 = inlined_call_operand.vmem [shape: f32[1,10], index: 3, kind: input, shape index: {}]   ;;  %s668_s4 = inlined_call_operand.vmem [shape: f32[8,10], index: 4, kind: output, shape index: {}]  }
   0x1   :  { %v488_v0 = vld [vmem:[%s664_s1 + $0x40] sm:$0xff]   ;;  %v492_v4 = vld [vmem:[%s664_s1 + $0x48] sm:$0xff]   ;;  %v496_v8 = vld [vmem:[%s664_s1 + $0x50] sm:$0xff]   ;;  %23 = vst.msk [vmem:[#allocation2] sm:$0xff] %vm22_vm0, %v524_v38 }
   0x2   :  { %v489_v1 = vld [vmem:[%s664_s1 + $0xc0] sm:$0xff]   ;;  %443 = vmatprep.subr.bf16.mxu0 %v488_v0  ;;  %v493_v5 = vld [vmem:[%s664_s1 + $0xc8] sm:$0xff]   ;;  %v497_v9 = vld [vmem:[%s664_s1 + $0xd0] sm:$0xff]  }
   0x3   :  { %v490_v2 = vld [vmem:[%s664_s1] sm:$0xff]   ;;  %465 = vmatprep.subr.bf16.mxu1 %v489_v1  ;;  %v494_v6 = vld [vmem:[%s664_s1 + $0x8] sm:$0xff]   ;;  %v498_v10 = vld [vmem:[%s664_s1 + $0x10] sm:$0xff]  }
   0x4   :  { %v491_v3 = vld [vmem:[%s664_s1 + $0x80] sm:$0xff]   ;;  %444 = vmatpush3.bf16.msra.mxu0 %v490_v2  ;;  %v495_v7 = vld [vmem:[%s664_s1 + $0x88] sm:$0xff]   ;;  %v499_v11 = vld [vmem:[%s664_s1 + $0x90] sm:$0xff]  }
   0x5   :  { %466 = vmatpush3.bf16.msra.mxu1 %v491_v3  ;;  %445 = vmatprep.subr.bf16.mxu0 %v492_v4  ;;  %v500_v12 = vld [vmem:[%s664_s1 + $0x58] sm:$0xff]   ;;  %v504_v16 = vld [vmem:[%s664_s1 + $0x60] sm:$0xff]   ;;  %v508_v20 = vld [vmem:[%s664_s1 + $0x68] sm:$0xff]  }
   0x6   :  { %467 = vmatprep.subr.bf16.mxu1 %v493_v5  ;;  %v501_v13 = vld [vmem:[%s664_s1 + $0xd8] sm:$0xff]   ;;  %v505_v17 = vld [vmem:[%s664_s1 + $0xe0] sm:$0xff]   ;;  %v509_v21 = vld [vmem:[%s664_s1 + $0xe8] sm:$0xff]  }
   0x7   :  { %v502_v14 = vld [vmem:[%s664_s1 + $0x18] sm:$0xff]   ;;  %v506_v18 = vld [vmem:[%s664_s1 + $0x20] sm:$0xff]   ;;  %v510_v22 = vld [vmem:[%s664_s1 + $0x28] sm:$0xff]  }
   0x8   :  { %446 = vmatpush3.bf16.msra.mxu0 %v494_v6  ;;  %v503_v15 = vld [vmem:[%s664_s1 + $0x98] sm:$0xff]   ;;  %v507_v19 = vld [vmem:[%s664_s1 + $0xa0] sm:$0xff]   ;;  %v511_v23 = vld [vmem:[%s664_s1 + $0xa8] sm:$0xff]  }
   0x9   :  { %468 = vmatpush3.bf16.msra.mxu1 %v495_v7  ;;  %447 = vmatprep.subr.bf16.mxu0 %v496_v8  ;;  %v512_v24 = vld [vmem:[%s664_s1 + $0x70] sm:$0xff]   ;;  %v516_v28 = vld [vmem:[%s664_s1 + $0x78] sm:$0xff]   ;;  %v25_v32 = vld [vmem:[%s665_s0] sm:$0xff] }
   0xa   :  { %469 = vmatprep.subr.bf16.mxu1 %v497_v9  ;;  %v513_v25 = vld [vmem:[%s664_s1 + $0xf0] sm:$0xff]   ;;  %v517_v29 = vld [vmem:[%s664_s1 + $0xf8] sm:$0xff]   ;;  %v26_v33 = vld [vmem:[%s665_s0 + $0x8] sm:$0xff]  ;;  %v405_v34 = vcombine.low %v25_v32, %v25_v32  ;;  %v406_v35 = vcombine.high %v25_v32, %v25_v32 }
   0xb   :  { %v514_v26 = vld [vmem:[%s664_s1 + $0x30] sm:$0xff]   ;;  %v518_v30 = vld [vmem:[%s664_s1 + $0x38] sm:$0xff]   ;;  %v407_v36 = vcombine.low %v26_v33, %v26_v33  ;;  %v408_v37 = vcombine.high %v26_v33, %v26_v33  ;;  %v24_v47 = vld [vmem:[#allocation2] sm:$0xff] }
   0xc   :  { %448 = vmatpush3.bf16.msra.mxu0 %v498_v10  ;;  %v515_v27 = vld [vmem:[%s664_s1 + $0xb0] sm:$0xff]   ;;  %v519_v31 = vld [vmem:[%s664_s1 + $0xb8] sm:$0xff]   ;;  %329 = vmatprep.mubr.bf16.mxu0 %v406_v35  ;;  %v441_v52 = vld [vmem:[%s666_s2] ss:$0 sm:$0xff] }
   0xd   :  { %470 = vmatpush3.bf16.msra.mxu1 %v499_v11  ;;  %449 = vmatprep.subr.bf16.mxu0 %v500_v12  ;;  %v442_v54 = vld [vmem:[%s667_s3] ss:$0 sm:$0xff] }
   0xe   :  { %471 = vmatprep.subr.bf16.mxu1 %v501_v13  ;;  %369 = vmatprep.mubr.bf16.mxu1 %v408_v37 }
  0x10   :  { %450 = vmatpush3.bf16.msra.mxu0 %v502_v14 }
  0x11   :  { %472 = vmatpush3.bf16.msra.mxu1 %v503_v15  ;;  %451 = vmatprep.subr.bf16.mxu0 %v504_v16 }
  0x12   :  { %473 = vmatprep.subr.bf16.mxu1 %v505_v17 }
  0x14   :  { %452 = vmatpush3.bf16.msra.mxu0 %v506_v18 }
  0x15   :  { %474 = vmatpush3.bf16.msra.mxu1 %v507_v19  ;;  %453 = vmatprep.subr.bf16.mxu0 %v508_v20 }
  0x16   :  { %475 = vmatprep.subr.bf16.mxu1 %v509_v21 }
  0x18   :  { %454 = vmatpush3.bf16.msra.mxu0 %v510_v22 }
  0x19   :  { %476 = vmatpush3.bf16.msra.mxu1 %v511_v23  ;;  %455 = vmatprep.subr.bf16.mxu0 %v512_v24 }
  0x1a   :  { %477 = vmatprep.subr.bf16.mxu1 %v513_v25 }
  0x1c   :  { %456 = vmatpush3.bf16.msra.mxu0 %v514_v26 }
  0x1d   :  { %478 = vmatpush3.bf16.msra.mxu1 %v515_v27  ;;  %457 = vmatprep.subr.bf16.mxu0 %v516_v28 }
  0x1e   :  { %479 = vmatprep.subr.bf16.mxu1 %v517_v29 }
  0x20   :  { %458 = vmatpush3.bf16.msra.mxu0 %v518_v30 }
  0x21   :  { %480 = vmatpush3.bf16.msra.mxu1 %v519_v31 }
  0x23   :  { %330 = vmatmul.mubr.bf16.vlgmr.msra.gmra.mrb[0].mxu0 %v405_v34 }
  0x24   :  { %370 = vmatmul.mubr.bf16.vlgmr.msra.gmra.mrb[0].mxu1 %v407_v36 }
  0xf6   :  { %v459_v39 = vpop.f32.mrb[0].mxu0 }
  0xf7   :  { %v481_v40 = vpop.f32.mrb[0].mxu1  ;;  %v460_v41 = vpop.f32.mrb[1].mxu0 }
  0xf8   :  { %v482_v42 = vpop.f32.mrb[1].mxu1  ;;  %v461_v43 = vadd.f32 %v460_v41, %v459_v39  ;;  %v462_v45 = vpop.f32.mrb[2].mxu0 }
  0xf9   :  { %v483_v44 = vadd.f32 %v482_v42, %v481_v40  ;;  %v484_v46 = vpop.f32.mrb[2].mxu1  ;;  %v463_v48 = vpop.f32.mrb[3].mxu0 }
  0xfa   :  { %v485_v49 = vpop.f32.mrb[3].mxu1 }
  0xfb   :  { %v372_v50 = vadd.f32 %v483_v44, %v461_v43 }
  0xfd   :  { %v377_v51 = vadd.f32 %v372_v50, %v24_v47 }
  0xff   :  { %379 = vst.msk [vmem:[#allocation2] sm:$0xff] %vm22_vm0, %v377_v51 }
 0x106   :  { %v383_v53 = vld [vmem:[#allocation2] sm:$0xff] }
 0x107   :  { %v391_v55 = vmul.f32 %v441_v52, %v383_v53 }
 0x109   :  { %v399_v56 = vadd.f32 %v442_v54, %v391_v55 }
 0x10b   :  { %400 = vst.msk [vmem:[%s668_s4] sm:$0xff] %vm22_vm0, %v399_v56 }

// kernel: _lambda_.27
= control target key start
LH: loop header
LB: loop body
LE: loop exit
PB: predicated region body
PF: predicated region fallthrough
CT: control target
= control target key end

     0   :  { %s4430_s18 = smov 0   ;;  %s4432_s19 = smov 0   ;;  %s4965_s0 = inlined_call_operand.vmem [shape: bf16[8,4608], index: 0, kind: input, shape index: {}]   ;;  %s4966_s1 = inlined_call_operand.vmem [shape: bf16[4608,512], index: 1, kind: input, shape index: {}]   ;;  %s4967_s2 = inlined_call_operand.vmem [shape: f32[1,512], index: 2, kind: input, shape index: {}]   ;;  %s4968_s3 = inlined_call_operand.vmem [shape: f32[1,512], index: 3, kind: input, shape index: {}]   ;;  %s4969_s4 = inlined_call_operand.vmem [shape: bf16[8,512], index: 4, kind: input, shape index: {}]   ;;  %s4970_s5 = inlined_call_operand.vmem [shape: bf16[8,512], index: 5, kind: output, shape index: {}]  }
   0x1   :  { %s4434_s20 = smov 0  }
   0x2 LB: > { %s24_s21 = sadd.s32 1, %s4393_s19  ;;  %p3352_p0 = scmp.ge.s32.totalorder %s4397_s20, 1  ;;  %s4397_s20 = sphi %s4434_s20, %s15_s20   ;;  %s4393_s19 = sphi %s4432_s19, %s4972_s19   ;;  %s4389_s18 = sphi %s4430_s18, %s4971_s18  }
   0x3   : > { %p25_p1 = scmp.ge.s32.totalorder %s24_s21, 3  ;;  %p228_p2 = scmp.lt.s32.totalorder %s4397_s20, 4 }
   0x5   : > { %s4974_s21 = smov (%p25_p1, %s24_s21), 0  ;;  %p229_p3 = pnand %p3352_p0, %p228_p2 }
   0x6   : > { %s271_s22 = smul.u32 (!%p229_p3), 12, %s4389_s18  ;;  %p3356_p6 = scmp.ne.s32.totalorder (!%p229_p3), %s4389_s18, 0 }
   0x7   : > { %232 = sbr.rel (%p229_p3) target bundleno = 647 (0x287), region = 40 }
   0x8   : > { %s281_s23 = smul.u32 (!%p229_p3), 192, %s4389_s18  ;;  %p274_p4 = scmp.lt.s32.totalorder (!%p229_p3), %s271_s22, 35 }
   0xa   : > { %p282_p5 = scmp.lt.s32.totalorder (!%p229_p3), %s281_s23, 575 }
   0xe   : > { %s4976_s22 = smov (!%p274_p4, %s271_s22), 35  ;;  %s4978_s23 = smov (!%p282_p5, %s281_s23), 575 }
   0xf   : > { %s3353_s24 = sshll.u32 %s4976_s22, 2  ;;  %s3759_s28 = sshll.u32 %s4978_s23, 4  ;;  %v4399_v0 = vmov (!%p3356_p6), 0.0  }
  0x10   : > { %s4455_s27 = scalar_lea.vmem %s4965_s0, %s3353_s24  ;;  %s4460_s6 = scalar_lea.vmem %s4966_s1, %s3759_s28  ;;  %302 = vst [vmem:[#allocation2] sm:$0xff] (!%p3356_p6), %v4399_v0  ;;  %303 = vst [vmem:[#allocation2 + $0x8] sm:$0xff] (!%p3356_p6), %v4399_v0 }
  0x11   : > { %301 = sbr.rel (%p3356_p6) target bundleno = 24 (0x18), region = 44  ;;  %304 = vst [vmem:[#allocation2 + $0x10] sm:$0xff] (!%p3356_p6), %v4399_v0  ;;  %305 = vst [vmem:[#allocation2 + $0x18] sm:$0xff] (!%p3356_p6), %v4399_v0 }
  0x18 PF: > { %v3787_v1 = vld [vmem:[%s4460_s6 + $0x4] ss:$16 sps:$4 sm:$0xff]   ;;  %v3791_v3 = vld [vmem:[%s4460_s6] ss:$16 sps:$4 sm:$0xff]   ;;  %v311_v49 = vld [vmem:[%s4455_s27 + $0x8] sm:$0xff]  ;;  %p3753_p7 = scmp.ne.s32.totalorder %s4389_s18, 2 }
  0x19   : > { %v3789_v2 = vld [vmem:[%s4460_s6 + $0x204] ss:$16 sps:$4 sm:$0xff]   ;;  %2662 = vmatprep.subr.bf16.mxu0 %v3787_v1  ;;  %v3792_v4 = vld [vmem:[%s4460_s6 + $0x200] ss:$16 sps:$4 sm:$0xff]   ;;  %v4515_v52 = vcombine.high %v311_v49, %v311_v49 }
  0x1a   : > { %2703 = vmatprep.subr.bf16.mxu1 %v3789_v2  ;;  %v3793_v5 = vld [vmem:[%s4460_s6 + $0x24] ss:$16 sps:$4 sm:$0xff]   ;;  %2663 = vmatpush1.bf16.msra.mxu0 %v3791_v3  ;;  %v3797_v7 = vld [vmem:[%s4460_s6 + $0x20] ss:$16 sps:$4 sm:$0xff]  }
  0x1b   : > { %2704 = vmatpush1.bf16.msra.mxu1 %v3792_v4  ;;  %v3795_v6 = vld [vmem:[%s4460_s6 + $0x224] ss:$16 sps:$4 sm:$0xff]   ;;  %2664 = vmatprep.subr.bf16.mxu0 %v3793_v5  ;;  %v3798_v8 = vld [vmem:[%s4460_s6 + $0x220] ss:$16 sps:$4 sm:$0xff]  }
  0x1c   : > { %2705 = vmatprep.subr.bf16.mxu1 %v3795_v6  ;;  %v3799_v9 = vld [vmem:[%s4460_s6 + $0x44] ss:$16 sps:$4 sm:$0xff]   ;;  %v3803_v11 = vld [vmem:[%s4460_s6 + $0x40] ss:$16 sps:$4 sm:$0xff]   ;;  %2735 = vmatprep.mubr.bf16.mxu1 %v4515_v52 }
  0x1d   : > { %v3801_v10 = vld [vmem:[%s4460_s6 + $0x244] ss:$16 sps:$4 sm:$0xff]   ;;  %v3804_v12 = vld [vmem:[%s4460_s6 + $0x240] ss:$16 sps:$4 sm:$0xff]  }
  0x1e   : > { %2665 = vmatpush1.bf16.msra.mxu0 %v3797_v7  ;;  %v3805_v13 = vld [vmem:[%s4460_s6 + $0x64] ss:$16 sps:$4 sm:$0xff]   ;;  %v3809_v15 = vld [vmem:[%s4460_s6 + $0x60] ss:$16 sps:$4 sm:$0xff]  }
  0x1f   : > { %2706 = vmatpush1.bf16.msra.mxu1 %v3798_v8  ;;  %2666 = vmatprep.subr.bf16.mxu0 %v3799_v9  ;;  %v3807_v14 = vld [vmem:[%s4460_s6 + $0x264] ss:$16 sps:$4 sm:$0xff]   ;;  %v3810_v16 = vld [vmem:[%s4460_s6 + $0x260] ss:$16 sps:$4 sm:$0xff]   ;;  %v4539_v8 = vcombine.low %v311_v49, %v311_v49 }
  0x20   : > { %2707 = vmatprep.subr.bf16.mxu1 %v3801_v10  ;;  %v3811_v17 = vld [vmem:[%s4460_s6 + $0x84] ss:$16 sps:$4 sm:$0xff]   ;;  %v3815_v19 = vld [vmem:[%s4460_s6 + $0x80] ss:$16 sps:$4 sm:$0xff]  }
  0x21   : > { %v3813_v18 = vld [vmem:[%s4460_s6 + $0x284] ss:$16 sps:$4 sm:$0xff]   ;;  %v3816_v20 = vld [vmem:[%s4460_s6 + $0x280] ss:$16 sps:$4 sm:$0xff]  }
  0x22   : > { %2667 = vmatpush1.bf16.msra.mxu0 %v3803_v11  ;;  %v3817_v21 = vld [vmem:[%s4460_s6 + $0xa4] ss:$16 sps:$4 sm:$0xff]   ;;  %v3821_v23 = vld [vmem:[%s4460_s6 + $0xa0] ss:$16 sps:$4 sm:$0xff]  }
  0x23   : > { %2708 = vmatpush1.bf16.msra.mxu1 %v3804_v12  ;;  %2668 = vmatprep.subr.bf16.mxu0 %v3805_v13  ;;  %v3819_v22 = vld [vmem:[%s4460_s6 + $0x2a4] ss:$16 sps:$4 sm:$0xff]   ;;  %v3822_v24 = vld [vmem:[%s4460_s6 + $0x2a0] ss:$16 sps:$4 sm:$0xff]  }
  0x24   : > { %2709 = vmatprep.subr.bf16.mxu1 %v3807_v14  ;;  %v3823_v25 = vld [vmem:[%s4460_s6 + $0xc4] ss:$16 sps:$4 sm:$0xff]   ;;  %v3827_v27 = vld [vmem:[%s4460_s6 + $0xc0] ss:$16 sps:$4 sm:$0xff]  }
  0x25   : > { %v3825_v26 = vld [vmem:[%s4460_s6 + $0x2c4] ss:$16 sps:$4 sm:$0xff]   ;;  %v3828_v28 = vld [vmem:[%s4460_s6 + $0x2c0] ss:$16 sps:$4 sm:$0xff]  }
  0x26   : > { %2669 = vmatpush1.bf16.msra.mxu0 %v3809_v15  ;;  %v3829_v29 = vld [vmem:[%s4460_s6 + $0xe4] ss:$16 sps:$4 sm:$0xff]   ;;  %v3833_v31 = vld [vmem:[%s4460_s6 + $0xe0] ss:$16 sps:$4 sm:$0xff]  }
  0x27   : > { %2710 = vmatpush1.bf16.msra.mxu1 %v3810_v16  ;;  %2670 = vmatprep.subr.bf16.mxu0 %v3811_v17  ;;  %v3831_v30 = vld [vmem:[%s4460_s6 + $0x2e4] ss:$16 sps:$4 sm:$0xff]   ;;  %v3834_v32 = vld [vmem:[%s4460_s6 + $0x2e0] ss:$16 sps:$4 sm:$0xff]  }
  0x28   : > { %2711 = vmatprep.subr.bf16.mxu1 %v3813_v18  ;;  %v3835_v33 = vld [vmem:[%s4460_s6 + $0x104] ss:$16 sps:$4 sm:$0xff]   ;;  %v3839_v35 = vld [vmem:[%s4460_s6 + $0x100] ss:$16 sps:$4 sm:$0xff]  }
  0x29   : > { %v3837_v34 = vld [vmem:[%s4460_s6 + $0x304] ss:$16 sps:$4 sm:$0xff]   ;;  %v3840_v36 = vld [vmem:[%s4460_s6 + $0x300] ss:$16 sps:$4 sm:$0xff]  }
  0x2a   : > { %2671 = vmatpush1.bf16.msra.mxu0 %v3815_v19  ;;  %v3841_v37 = vld [vmem:[%s4460_s6 + $0x124] ss:$16 sps:$4 sm:$0xff]   ;;  %v3845_v39 = vld [vmem:[%s4460_s6 + $0x120] ss:$16 sps:$4 sm:$0xff]  }
  0x2b   : > { %2712 = vmatpush1.bf16.msra.mxu1 %v3816_v20  ;;  %2672 = vmatprep.subr.bf16.mxu0 %v3817_v21  ;;  %v3843_v38 = vld [vmem:[%s4460_s6 + $0x324] ss:$16 sps:$4 sm:$0xff]   ;;  %v3846_v40 = vld [vmem:[%s4460_s6 + $0x320] ss:$16 sps:$4 sm:$0xff]  }
  0x2c   : > { %2713 = vmatprep.subr.bf16.mxu1 %v3819_v22  ;;  %v3847_v41 = vld [vmem:[%s4460_s6 + $0x144] ss:$16 sps:$4 sm:$0xff]   ;;  %v3851_v43 = vld [vmem:[%s4460_s6 + $0x140] ss:$16 sps:$4 sm:$0xff]  }
  0x2d   : > { %v3849_v42 = vld [vmem:[%s4460_s6 + $0x344] ss:$16 sps:$4 sm:$0xff]   ;;  %v3852_v44 = vld [vmem:[%s4460_s6 + $0x340] ss:$16 sps:$4 sm:$0xff]  }
  0x2e   : > { %2673 = vmatpush1.bf16.msra.mxu0 %v3821_v23  ;;  %v3853_v45 = vld [vmem:[%s4460_s6 + $0x164] ss:$16 sps:$4 sm:$0xff]   ;;  %v3857_v50 = vld [vmem:[%s4460_s6 + $0x160] ss:$16 sps:$4 sm:$0xff]  }
  0x2f   : > { %2714 = vmatpush1.bf16.msra.mxu1 %v3822_v24  ;;  %2674 = vmatprep.subr.bf16.mxu0 %v3823_v25  ;;  %v3855_v46 = vld [vmem:[%s4460_s6 + $0x364] ss:$16 sps:$4 sm:$0xff]   ;;  %v3858_v51 = vld [vmem:[%s4460_s6 + $0x360] ss:$16 sps:$4 sm:$0xff]  }
  0x30   : > { %2715 = vmatprep.subr.bf16.mxu1 %v3825_v26  ;;  %v310_v47 = vld [vmem:[%s4455_s27] sm:$0xff] }
  0x31   : > { %v4510_v48 = vcombine.high %v310_v47, %v310_v47  ;;  %v3859_v53 = vld [vmem:[%s4460_s6 + $0x184] ss:$16 sps:$4 sm:$0xff]   ;;  %v3863_v55 = vld [vmem:[%s4460_s6 + $0x180] ss:$16 sps:$4 sm:$0xff]   ;;  %v4537_v7 = vcombine.low %v310_v47, %v310_v47 }
  0x32   : > { %2675 = vmatpush1.bf16.msra.mxu0 %v3827_v27  ;;  %v3861_v54 = vld [vmem:[%s4460_s6 + $0x384] ss:$16 sps:$4 sm:$0xff]   ;;  %v3864_v56 = vld [vmem:[%s4460_s6 + $0x380] ss:$16 sps:$4 sm:$0xff]  }
  0x33   : > { %2716 = vmatpush1.bf16.msra.mxu1 %v3828_v28  ;;  %2676 = vmatprep.subr.bf16.mxu0 %v3829_v29  ;;  %v3865_v57 = vld [vmem:[%s4460_s6 + $0x1a4] ss:$16 sps:$4 sm:$0xff]   ;;  %v3869_v59 = vld [vmem:[%s4460_s6 + $0x1a0] ss:$16 sps:$4 sm:$0xff]  }
  0x34   : > { %2717 = vmatprep.subr.bf16.mxu1 %v3831_v30  ;;  %2694 = vmatprep.mubr.bf16.mxu0 %v4510_v48  ;;  %v3867_v58 = vld [vmem:[%s4460_s6 + $0x3a4] ss:$16 sps:$4 sm:$0xff]   ;;  %v3870_v60 = vld [vmem:[%s4460_s6 + $0x3a0] ss:$16 sps:$4 sm:$0xff]  }
  0x35   : > { %v3871_v61 = vld [vmem:[%s4460_s6 + $0x1c4] ss:$16 sps:$4 sm:$0xff]   ;;  %v3875_v63 = vld [vmem:[%s4460_s6 + $0x1c0] ss:$16 sps:$4 sm:$0xff]  }
  0x36   : > { %2677 = vmatpush1.bf16.msra.mxu0 %v3833_v31  ;;  %v3873_v62 = vld [vmem:[%s4460_s6 + $0x3c4] ss:$16 sps:$4 sm:$0xff]   ;;  %v3876_v0 = vld [vmem:[%s4460_s6 + $0x3c0] ss:$16 sps:$4 sm:$0xff]  }
  0x37   : > { %2718 = vmatpush1.bf16.msra.mxu1 %v3834_v32  ;;  %2678 = vmatprep.subr.bf16.mxu0 %v3835_v33  ;;  %v3877_v1 = vld [vmem:[%s4460_s6 + $0x1e4] ss:$16 sps:$4 sm:$0xff]   ;;  %v3881_v3 = vld [vmem:[%s4460_s6 + $0x1e0] ss:$16 sps:$4 sm:$0xff]  }
  0x38   : > { %2719 = vmatprep.subr.bf16.mxu1 %v3837_v34  ;;  %v3879_v2 = vld [vmem:[%s4460_s6 + $0x3e4] ss:$16 sps:$4 sm:$0xff]   ;;  %v3882_v4 = vld [vmem:[%s4460_s6 + $0x3e0] ss:$16 sps:$4 sm:$0xff]   ;;  %v4571_v34 = vld [vmem:[%s4455_s27 + $0x18] sm:$0xff] }
  0x39   : > { %v3889_v5 = vld [vmem:[%s4460_s6 + $0x404] ss:$16 sps:$4 sm:$0xff]   ;;  %v3887_v9 = vld [vmem:[%s4460_s6 + $0x400] ss:$16 sps:$4 sm:$0xff]  }
  0x3a   : > { %2679 = vmatpush1.bf16.msra.mxu0 %v3839_v35  ;;  %v3892_v6 = vld [vmem:[%s4460_s6 + $0x604] ss:$16 sps:$4 sm:$0xff]   ;;  %v3890_v10 = vld [vmem:[%s4460_s6 + $0x600] ss:$16 sps:$4 sm:$0xff]  }
  0x3b   : > { %2720 = vmatpush1.bf16.msra.mxu1 %v3840_v36  ;;  %2680 = vmatprep.subr.bf16.mxu0 %v3841_v37  ;;  %v3895_v11 = vld [vmem:[%s4460_s6 + $0x424] ss:$16 sps:$4 sm:$0xff]   ;;  %v3893_v13 = vld [vmem:[%s4460_s6 + $0x420] ss:$16 sps:$4 sm:$0xff]  }
  0x3c   : > { %2721 = vmatprep.subr.bf16.mxu1 %v3843_v38  ;;  %v3898_v12 = vld [vmem:[%s4460_s6 + $0x624] ss:$16 sps:$4 sm:$0xff]   ;;  %v3896_v14 = vld [vmem:[%s4460_s6 + $0x620] ss:$16 sps:$4 sm:$0xff]   ;;  %v4581_v38 = vcombine.high %v4571_v34, %v4571_v34 }
  0x3d   : > { %v3901_v15 = vld [vmem:[%s4460_s6 + $0x444] ss:$16 sps:$4 sm:$0xff]   ;;  %v3899_v17 = vld [vmem:[%s4460_s6 + $0x440] ss:$16 sps:$4 sm:$0xff]  }
  0x3e   : > { %2681 = vmatpush1.bf16.msra.mxu0 %v3845_v39  ;;  %v3904_v16 = vld [vmem:[%s4460_s6 + $0x644] ss:$16 sps:$4 sm:$0xff]   ;;  %v3902_v18 = vld [vmem:[%s4460_s6 + $0x640] ss:$16 sps:$4 sm:$0xff]  }
  0x3f   : > { %2722 = vmatpush1.bf16.msra.mxu1 %v3846_v40  ;;  %2682 = vmatprep.subr.bf16.mxu0 %v3847_v41  ;;  %v3907_v19 = vld [vmem:[%s4460_s6 + $0x464] ss:$16 sps:$4 sm:$0xff]   ;;  %v3905_v21 = vld [vmem:[%s4460_s6 + $0x460] ss:$16 sps:$4 sm:$0xff]  }
  0x40   : > { %2723 = vmatprep.subr.bf16.mxu1 %v3849_v42  ;;  %v3910_v20 = vld [vmem:[%s4460_s6 + $0x664] ss:$16 sps:$4 sm:$0xff]   ;;  %v3908_v22 = vld [vmem:[%s4460_s6 + $0x660] ss:$16 sps:$4 sm:$0xff]  }
  0x41   : > { %v3913_v23 = vld [vmem:[%s4460_s6 + $0x484] ss:$16 sps:$4 sm:$0xff]   ;;  %v3911_v25 = vld [vmem:[%s4460_s6 + $0x480] ss:$16 sps:$4 sm:$0xff]  }
  0x42   : > { %2683 = vmatpush1.bf16.msra.mxu0 %v3851_v43  ;;  %v3916_v24 = vld [vmem:[%s4460_s6 + $0x684] ss:$16 sps:$4 sm:$0xff]   ;;  %v3914_v26 = vld [vmem:[%s4460_s6 + $0x680] ss:$16 sps:$4 sm:$0xff]  }
  0x43   : > { %2724 = vmatpush1.bf16.msra.mxu1 %v3852_v44  ;;  %2684 = vmatprep.subr.bf16.mxu0 %v3853_v45  ;;  %v3919_v27 = vld [vmem:[%s4460_s6 + $0x4a4] ss:$16 sps:$4 sm:$0xff]   ;;  %v3917_v29 = vld [vmem:[%s4460_s6 + $0x4a0] ss:$16 sps:$4 sm:$0xff]  }
  0x44   : > { %2725 = vmatprep.subr.bf16.mxu1 %v3855_v46  ;;  %v3922_v28 = vld [vmem:[%s4460_s6 + $0x6a4] ss:$16 sps:$4 sm:$0xff]   ;;  %v3920_v30 = vld [vmem:[%s4460_s6 + $0x6a0] ss:$16 sps:$4 sm:$0xff]  }
  0x45   : > { %v3925_v31 = vld [vmem:[%s4460_s6 + $0x4c4] ss:$16 sps:$4 sm:$0xff]   ;;  %v3923_v35 = vld [vmem:[%s4460_s6 + $0x4c0] ss:$16 sps:$4 sm:$0xff]  }
  0x46   : > { %2685 = vmatpush1.bf16.msra.mxu0 %v3857_v50  ;;  %v3928_v32 = vld [vmem:[%s4460_s6 + $0x6c4] ss:$16 sps:$4 sm:$0xff]   ;;  %v3926_v36 = vld [vmem:[%s4460_s6 + $0x6c0] ss:$16 sps:$4 sm:$0xff]  }
  0x47   : > { %2726 = vmatpush1.bf16.msra.mxu1 %v3858_v51  ;;  %2686 = vmatprep.subr.bf16.mxu0 %v3859_v53  ;;  %v4568_v33 = vld [vmem:[%s4455_s27 + $0x10] sm:$0xff] }
  0x48   : > { %2727 = vmatprep.subr.bf16.mxu1 %v3861_v54  ;;  %v4577_v37 = vcombine.high %v4568_v33, %v4568_v33  ;;  %v3931_v39 = vld [vmem:[%s4460_s6 + $0x4e4] ss:$16 sps:$4 sm:$0xff]   ;;  %v3929_v41 = vld [vmem:[%s4460_s6 + $0x4e0] ss:$16 sps:$4 sm:$0xff]  }
  0x49   : > { %v3934_v40 = vld [vmem:[%s4460_s6 + $0x6e4] ss:$16 sps:$4 sm:$0xff]   ;;  %v3932_v42 = vld [vmem:[%s4460_s6 + $0x6e0] ss:$16 sps:$4 sm:$0xff]  }
  0x4a   : > { %2687 = vmatpush1.bf16.msra.mxu0 %v3863_v55  ;;  %v3937_v43 = vld [vmem:[%s4460_s6 + $0x504] ss:$16 sps:$4 sm:$0xff]   ;;  %v3935_v45 = vld [vmem:[%s4460_s6 + $0x500] ss:$16 sps:$4 sm:$0xff]  }
  0x4b   : > { %2728 = vmatpush1.bf16.msra.mxu1 %v3864_v56  ;;  %2688 = vmatprep.subr.bf16.mxu0 %v3865_v57  ;;  %v3940_v44 = vld [vmem:[%s4460_s6 + $0x704] ss:$16 sps:$4 sm:$0xff]   ;;  %v3938_v46 = vld [vmem:[%s4460_s6 + $0x700] ss:$16 sps:$4 sm:$0xff]  }
  0x4c   : > { %2729 = vmatprep.subr.bf16.mxu1 %v3867_v58  ;;  %v3943_v47 = vld [vmem:[%s4460_s6 + $0x524] ss:$16 sps:$4 sm:$0xff]   ;;  %v3941_v50 = vld [vmem:[%s4460_s6 + $0x520] ss:$16 sps:$4 sm:$0xff]  }
  0x4d   : > { %v3946_v49 = vld [vmem:[%s4460_s6 + $0x724] ss:$16 sps:$4 sm:$0xff]   ;;  %v3944_v51 = vld [vmem:[%s4460_s6 + $0x720] ss:$16 sps:$4 sm:$0xff]  }
  0x4e   : > { %2689 = vmatpush1.bf16.msra.mxu0 %v3869_v59  ;;  %v3949_v53 = vld [vmem:[%s4460_s6 + $0x544] ss:$16 sps:$4 sm:$0xff]   ;;  %v3947_v55 = vld [vmem:[%s4460_s6 + $0x540] ss:$16 sps:$4 sm:$0xff]  }
  0x4f   : > { %2730 = vmatpush1.bf16.msra.mxu1 %v3870_v60  ;;  %2690 = vmatprep.subr.bf16.mxu0 %v3871_v61  ;;  %v3952_v54 = vld [vmem:[%s4460_s6 + $0x744] ss:$16 sps:$4 sm:$0xff]   ;;  %v3950_v56 = vld [vmem:[%s4460_s6 + $0x740] ss:$16 sps:$4 sm:$0xff]  }
  0x50   : > { %2731 = vmatprep.subr.bf16.mxu1 %v3873_v62  ;;  %v3955_v57 = vld [vmem:[%s4460_s6 + $0x564] ss:$16 sps:$4 sm:$0xff]   ;;  %v3953_v59 = vld [vmem:[%s4460_s6 + $0x560] ss:$16 sps:$4 sm:$0xff]  }
  0x51   : > { %v3958_v58 = vld [vmem:[%s4460_s6 + $0x764] ss:$16 sps:$4 sm:$0xff]   ;;  %v3956_v60 = vld [vmem:[%s4460_s6 + $0x760] ss:$16 sps:$4 sm:$0xff]  }
  0x52   : > { %2691 = vmatpush1.bf16.msra.mxu0 %v3875_v63  ;;  %v3961_v61 = vld [vmem:[%s4460_s6 + $0x584] ss:$16 sps:$4 sm:$0xff]   ;;  %v3959_v63 = vld [vmem:[%s4460_s6 + $0x580] ss:$16 sps:$4 sm:$0xff]  }
  0x53   : > { %2732 = vmatpush1.bf16.msra.mxu1 %v3876_v0  ;;  %2692 = vmatprep.subr.bf16.mxu0 %v3877_v1  ;;  %v3964_v62 = vld [vmem:[%s4460_s6 + $0x784] ss:$16 sps:$4 sm:$0xff]   ;;  %v3962_v0 = vld [vmem:[%s4460_s6 + $0x780] ss:$16 sps:$4 sm:$0xff]  }
  0x54   : > { %2733 = vmatprep.subr.bf16.mxu1 %v3879_v2  ;;  %v3967_v1 = vld [vmem:[%s4460_s6 + $0x5a4] ss:$16 sps:$4 sm:$0xff]  }
  0x55   : > { %v3970_v2 = vld [vmem:[%s4460_s6 + $0x7a4] ss:$16 sps:$4 sm:$0xff]  }
  0x56   : > { %2693 = vmatpush1.bf16.msra.mxu0 %v3881_v3  ;;  %v3965_v3 = vld [vmem:[%s4460_s6 + $0x5a0] ss:$16 sps:$4 sm:$0xff]  }
  0x57   : > { %2734 = vmatpush1.bf16.msra.mxu1 %v3882_v4  ;;  %2744 = vmatprep.subr.bf16.mxu0 %v3889_v5  ;;  %v3968_v4 = vld [vmem:[%s4460_s6 + $0x7a0] ss:$16 sps:$4 sm:$0xff]   ;;  %v3973_v5 = vld [vmem:[%s4460_s6 + $0x5c4] ss:$16 sps:$4 sm:$0xff]  }
  0x58   : > { %2785 = vmatprep.subr.bf16.mxu1 %v3892_v6  ;;  %v3976_v6 = vld [vmem:[%s4460_s6 + $0x7c4] ss:$16 sps:$4 sm:$0xff]  }
  0x59   : > { %2695 = vmatmul.mubr.bf16.vlgmr.msra.gmra.mrb[0].mxu0 %v4537_v7 }
  0x5a   : > { %2736 = vmatmul.mubr.bf16.vlgmr.msra.gmra.mrb[0].mxu1 %v4539_v8  ;;  %2745 = vmatpush1.bf16.msra.mxu0 %v3887_v9  ;;  %v3971_v9 = vld [vmem:[%s4460_s6 + $0x5c0] ss:$16 sps:$4 sm:$0xff]  }
  0x5b   : > { %2786 = vmatpush1.bf16.msra.mxu1 %v3890_v10  ;;  %2746 = vmatprep.subr.bf16.mxu0 %v3895_v11  ;;  %v3974_v10 = vld [vmem:[%s4460_s6 + $0x7c0] ss:$16 sps:$4 sm:$0xff]   ;;  %v3979_v11 = vld [vmem:[%s4460_s6 + $0x5e4] ss:$16 sps:$4 sm:$0xff]  }
  0x5c   : > { %2787 = vmatprep.subr.bf16.mxu1 %v3898_v12  ;;  %2776 = vmatprep.mubr.bf16.mxu0 %v4577_v37  ;;  %v3982_v12 = vld [vmem:[%s4460_s6 + $0x7e4] ss:$16 sps:$4 sm:$0xff]  }
  0x5d   : > { %2817 = vmatprep.mubr.bf16.mxu1 %v4581_v38 }
  0x5e   : > { %2747 = vmatpush1.bf16.msra.mxu0 %v3893_v13  ;;  %v3977_v13 = vld [vmem:[%s4460_s6 + $0x5e0] ss:$16 sps:$4 sm:$0xff]  }
  0x5f   : > { %2788 = vmatpush1.bf16.msra.mxu1 %v3896_v14  ;;  %2748 = vmatprep.subr.bf16.mxu0 %v3901_v15  ;;  %v3980_v14 = vld [vmem:[%s4460_s6 + $0x7e0] ss:$16 sps:$4 sm:$0xff]   ;;  %v3989_v15 = vld [vmem:[%s4460_s6 + $0x804] ss:$16 sps:$4 sm:$0xff]  }
  0x60   : > { %2789 = vmatprep.subr.bf16.mxu1 %v3904_v16  ;;  %v3992_v16 = vld [vmem:[%s4460_s6 + $0xa04] ss:$16 sps:$4 sm:$0xff]  }
  0x62   : > { %2749 = vmatpush1.bf16.msra.mxu0 %v3899_v17  ;;  %v4625_v17 = vcombine.low %v4568_v33, %v4568_v33  ;;  %v4007_v33 = vld [vmem:[%s4460_s6 + $0x864] ss:$16 sps:$4 sm:$0xff]  }
  0x63   : > { %2790 = vmatpush1.bf16.msra.mxu1 %v3902_v18  ;;  %2750 = vmatprep.subr.bf16.mxu0 %v3907_v19  ;;  %v4629_v18 = vcombine.low %v4571_v34, %v4571_v34  ;;  %v3987_v19 = vld [vmem:[%s4460_s6 + $0x800] ss:$16 sps:$4 sm:$0xff]   ;;  %v4010_v34 = vld [vmem:[%s4460_s6 + $0xa64] ss:$16 sps:$4 sm:$0xff]  }
  0x64   : > { %2791 = vmatprep.subr.bf16.mxu1 %v3910_v20  ;;  %v3990_v20 = vld [vmem:[%s4460_s6 + $0xa00] ss:$16 sps:$4 sm:$0xff]  }
  0x66   : > { %2751 = vmatpush1.bf16.msra.mxu0 %v3905_v21  ;;  %v3995_v21 = vld [vmem:[%s4460_s6 + $0x824] ss:$16 sps:$4 sm:$0xff]  }
  0x67   : > { %2792 = vmatpush1.bf16.msra.mxu1 %v3908_v22  ;;  %2752 = vmatprep.subr.bf16.mxu0 %v3913_v23  ;;  %v3998_v22 = vld [vmem:[%s4460_s6 + $0xa24] ss:$16 sps:$4 sm:$0xff]  }
  0x68   : > { %2793 = vmatprep.subr.bf16.mxu1 %v3916_v24  ;;  %v4636_v23 = vld [vmem:[%s4455_s27 + $0x20] sm:$0xff]  ;;  %v4639_v24 = vld [vmem:[%s4455_s27 + $0x28] sm:$0xff] }
  0x6a   : > { %2753 = vmatpush1.bf16.msra.mxu0 %v3911_v25  ;;  %v4643_v25 = vcombine.high %v4636_v23, %v4636_v23 }
  0x6b   : > { %2794 = vmatpush1.bf16.msra.mxu1 %v3914_v26  ;;  %2754 = vmatprep.subr.bf16.mxu0 %v3919_v27  ;;  %v4647_v26 = vcombine.high %v4639_v24, %v4639_v24  ;;  %v3993_v27 = vld [vmem:[%s4460_s6 + $0x820] ss:$16 sps:$4 sm:$0xff]  }
  0x6c   : > { %2795 = vmatprep.subr.bf16.mxu1 %v3922_v28  ;;  %v3996_v28 = vld [vmem:[%s4460_s6 + $0xa20] ss:$16 sps:$4 sm:$0xff]  }
  0x6e   : > { %2755 = vmatpush1.bf16.msra.mxu0 %v3917_v29  ;;  %v4001_v29 = vld [vmem:[%s4460_s6 + $0x844] ss:$16 sps:$4 sm:$0xff]  }
  0x6f   : > { %2796 = vmatpush1.bf16.msra.mxu1 %v3920_v30  ;;  %2756 = vmatprep.subr.bf16.mxu0 %v3925_v31  ;;  %v4004_v30 = vld [vmem:[%s4460_s6 + $0xa44] ss:$16 sps:$4 sm:$0xff]   ;;  %v3999_v31 = vld [vmem:[%s4460_s6 + $0x840] ss:$16 sps:$4 sm:$0xff]  }
  0x70   : > { %2797 = vmatprep.subr.bf16.mxu1 %v3928_v32  ;;  %v4002_v32 = vld [vmem:[%s4460_s6 + $0xa40] ss:$16 sps:$4 sm:$0xff]  }
  0x72   : > { %2757 = vmatpush1.bf16.msra.mxu0 %v3923_v35  ;;  %v4005_v35 = vld [vmem:[%s4460_s6 + $0x860] ss:$16 sps:$4 sm:$0xff]  }
  0x73   : > { %2798 = vmatpush1.bf16.msra.mxu1 %v3926_v36  ;;  %2758 = vmatprep.subr.bf16.mxu0 %v3931_v39  ;;  %v4008_v36 = vld [vmem:[%s4460_s6 + $0xa60] ss:$16 sps:$4 sm:$0xff]   ;;  %v4013_v39 = vld [vmem:[%s4460_s6 + $0x884] ss:$16 sps:$4 sm:$0xff]  }
  0x74   : > { %2799 = vmatprep.subr.bf16.mxu1 %v3934_v40  ;;  %v4016_v40 = vld [vmem:[%s4460_s6 + $0xa84] ss:$16 sps:$4 sm:$0xff]  }
  0x76   : > { %2759 = vmatpush1.bf16.msra.mxu0 %v3929_v41  ;;  %v4011_v41 = vld [vmem:[%s4460_s6 + $0x880] ss:$16 sps:$4 sm:$0xff]  }
  0x77   : > { %2800 = vmatpush1.bf16.msra.mxu1 %v3932_v42  ;;  %2760 = vmatprep.subr.bf16.mxu0 %v3937_v43  ;;  %v4014_v42 = vld [vmem:[%s4460_s6 + $0xa80] ss:$16 sps:$4 sm:$0xff]   ;;  %v4019_v43 = vld [vmem:[%s4460_s6 + $0x8a4] ss:$16 sps:$4 sm:$0xff]  }
  0x78   : > { %2801 = vmatprep.subr.bf16.mxu1 %v3940_v44  ;;  %v4022_v44 = vld [vmem:[%s4460_s6 + $0xaa4] ss:$16 sps:$4 sm:$0xff]  }
  0x7a   : > { %2761 = vmatpush1.bf16.msra.mxu0 %v3935_v45  ;;  %v4017_v45 = vld [vmem:[%s4460_s6 + $0x8a0] ss:$16 sps:$4 sm:$0xff]  }
  0x7b   : > { %2802 = vmatpush1.bf16.msra.mxu1 %v3938_v46  ;;  %2762 = vmatprep.subr.bf16.mxu0 %v3943_v47  ;;  %v4020_v46 = vld [vmem:[%s4460_s6 + $0xaa0] ss:$16 sps:$4 sm:$0xff]   ;;  %v4025_v47 = vld [vmem:[%s4460_s6 + $0x8c4] ss:$16 sps:$4 sm:$0xff]  }
  0x7c   : > { %2803 = vmatprep.subr.bf16.mxu1 %v3946_v49  ;;  %v4028_v49 = vld [vmem:[%s4460_s6 + $0xac4] ss:$16 sps:$4 sm:$0xff]  }
  0x7e   : > { %2763 = vmatpush1.bf16.msra.mxu0 %v3941_v50  ;;  %v4023_v50 = vld [vmem:[%s4460_s6 + $0x8c0] ss:$16 sps:$4 sm:$0xff]  }
  0x7f   : > { %2804 = vmatpush1.bf16.msra.mxu1 %v3944_v51  ;;  %2764 = vmatprep.subr.bf16.mxu0 %v3949_v53  ;;  %v4026_v51 = vld [vmem:[%s4460_s6 + $0xac0] ss:$16 sps:$4 sm:$0xff]   ;;  %v4031_v53 = vld [vmem:[%s4460_s6 + $0x8e4] ss:$16 sps:$4 sm:$0xff]  }
  0x80   : > { %2805 = vmatprep.subr.bf16.mxu1 %v3952_v54  ;;  %v4034_v54 = vld [vmem:[%s4460_s6 + $0xae4] ss:$16 sps:$4 sm:$0xff]  }
  0x82   : > { %2765 = vmatpush1.bf16.msra.mxu0 %v3947_v55  ;;  %v4029_v55 = vld [vmem:[%s4460_s6 + $0x8e0] ss:$16 sps:$4 sm:$0xff]  }
  0x83   : > { %2806 = vmatpush1.bf16.msra.mxu1 %v3950_v56  ;;  %2766 = vmatprep.subr.bf16.mxu0 %v3955_v57  ;;  %v4032_v56 = vld [vmem:[%s4460_s6 + $0xae0] ss:$16 sps:$4 sm:$0xff]   ;;  %v4037_v57 = vld [vmem:[%s4460_s6 + $0x904] ss:$16 sps:$4 sm:$0xff]  }
  0x84   : > { %2807 = vmatprep.subr.bf16.mxu1 %v3958_v58  ;;  %v4040_v58 = vld [vmem:[%s4460_s6 + $0xb04] ss:$16 sps:$4 sm:$0xff]  }
  0x86   : > { %2767 = vmatpush1.bf16.msra.mxu0 %v3953_v59  ;;  %v4035_v59 = vld [vmem:[%s4460_s6 + $0x900] ss:$16 sps:$4 sm:$0xff]  }
  0x87   : > { %2808 = vmatpush1.bf16.msra.mxu1 %v3956_v60  ;;  %2768 = vmatprep.subr.bf16.mxu0 %v3961_v61  ;;  %v4038_v60 = vld [vmem:[%s4460_s6 + $0xb00] ss:$16 sps:$4 sm:$0xff]   ;;  %v4043_v61 = vld [vmem:[%s4460_s6 + $0x924] ss:$16 sps:$4 sm:$0xff]  }
  0x88   : > { %2809 = vmatprep.subr.bf16.mxu1 %v3964_v62  ;;  %v4046_v62 = vld [vmem:[%s4460_s6 + $0xb24] ss:$16 sps:$4 sm:$0xff]  }
  0x8a   : > { %2769 = vmatpush1.bf16.msra.mxu0 %v3959_v63  ;;  %v4041_v63 = vld [vmem:[%s4460_s6 + $0x920] ss:$16 sps:$4 sm:$0xff]  }
  0x8b   : > { %2810 = vmatpush1.bf16.msra.mxu1 %v3962_v0  ;;  %2770 = vmatprep.subr.bf16.mxu0 %v3967_v1  ;;  %v4044_v0 = vld [vmem:[%s4460_s6 + $0xb20] ss:$16 sps:$4 sm:$0xff]   ;;  %v4049_v1 = vld [vmem:[%s4460_s6 + $0x944] ss:$16 sps:$4 sm:$0xff]  }
  0x8c   : > { %2811 = vmatprep.subr.bf16.mxu1 %v3970_v2  ;;  %v4052_v2 = vld [vmem:[%s4460_s6 + $0xb44] ss:$16 sps:$4 sm:$0xff]  }
  0x8e   : > { %2771 = vmatpush1.bf16.msra.mxu0 %v3965_v3  ;;  %v4047_v3 = vld [vmem:[%s4460_s6 + $0x940] ss:$16 sps:$4 sm:$0xff]  }
  0x8f   : > { %2812 = vmatpush1.bf16.msra.mxu1 %v3968_v4  ;;  %2772 = vmatprep.subr.bf16.mxu0 %v3973_v5  ;;  %v4050_v4 = vld [vmem:[%s4460_s6 + $0xb40] ss:$16 sps:$4 sm:$0xff]   ;;  %v4055_v5 = vld [vmem:[%s4460_s6 + $0x964] ss:$16 sps:$4 sm:$0xff]  }
  0x90   : > { %2813 = vmatprep.subr.bf16.mxu1 %v3976_v6  ;;  %v4058_v6 = vld [vmem:[%s4460_s6 + $0xb64] ss:$16 sps:$4 sm:$0xff]  }
  0x92   : > { %2773 = vmatpush1.bf16.msra.mxu0 %v3971_v9  ;;  %v4053_v9 = vld [vmem:[%s4460_s6 + $0x960] ss:$16 sps:$4 sm:$0xff]  }
  0x93   : > { %2814 = vmatpush1.bf16.msra.mxu1 %v3974_v10  ;;  %2774 = vmatprep.subr.bf16.mxu0 %v3979_v11  ;;  %v4056_v10 = vld [vmem:[%s4460_s6 + $0xb60] ss:$16 sps:$4 sm:$0xff]   ;;  %v4061_v11 = vld [vmem:[%s4460_s6 + $0x984] ss:$16 sps:$4 sm:$0xff]  }
  0x94   : > { %2815 = vmatprep.subr.bf16.mxu1 %v3982_v12  ;;  %v4064_v12 = vld [vmem:[%s4460_s6 + $0xb84] ss:$16 sps:$4 sm:$0xff]  }
  0x96   : > { %2775 = vmatpush1.bf16.msra.mxu0 %v3977_v13  ;;  %v4059_v13 = vld [vmem:[%s4460_s6 + $0x980] ss:$16 sps:$4 sm:$0xff]  }
  0x97   : > { %2816 = vmatpush1.bf16.msra.mxu1 %v3980_v14  ;;  %2826 = vmatprep.subr.bf16.mxu0 %v3989_v15  ;;  %v4062_v14 = vld [vmem:[%s4460_s6 + $0xb80] ss:$16 sps:$4 sm:$0xff]   ;;  %v4067_v15 = vld [vmem:[%s4460_s6 + $0x9a4] ss:$16 sps:$4 sm:$0xff]  }
  0x98   : > { %2867 = vmatprep.subr.bf16.mxu1 %v3992_v16  ;;  %v4070_v16 = vld [vmem:[%s4460_s6 + $0xba4] ss:$16 sps:$4 sm:$0xff]  }
  0x99   : > { %2777 = vmatmul.mubr.bf16.vlgmr.msra.gmra.mrb[4].mxu0 %v4625_v17 }
  0x9a   : > { %2818 = vmatmul.mubr.bf16.vlgmr.msra.gmra.mrb[4].mxu1 %v4629_v18  ;;  %2827 = vmatpush1.bf16.msra.mxu0 %v3987_v19  ;;  %v4065_v19 = vld [vmem:[%s4460_s6 + $0x9a0] ss:$16 sps:$4 sm:$0xff]  }
  0x9b   : > { %2868 = vmatpush1.bf16.msra.mxu1 %v3990_v20  ;;  %2828 = vmatprep.subr.bf16.mxu0 %v3995_v21  ;;  %v4068_v20 = vld [vmem:[%s4460_s6 + $0xba0] ss:$16 sps:$4 sm:$0xff]   ;;  %v4073_v21 = vld [vmem:[%s4460_s6 + $0x9c4] ss:$16 sps:$4 sm:$0xff]  }
  0x9c   : > { %2869 = vmatprep.subr.bf16.mxu1 %v3998_v22  ;;  %2858 = vmatprep.mubr.bf16.mxu0 %v4643_v25  ;;  %v4076_v22 = vld [vmem:[%s4460_s6 + $0xbc4] ss:$16 sps:$4 sm:$0xff]  }
  0x9d   : > { %2899 = vmatprep.mubr.bf16.mxu1 %v4647_v26 }
  0x9e   : > { %2829 = vmatpush1.bf16.msra.mxu0 %v3993_v27  ;;  %v4071_v27 = vld [vmem:[%s4460_s6 + $0x9c0] ss:$16 sps:$4 sm:$0xff]  }
  0x9f   : > { %2870 = vmatpush1.bf16.msra.mxu1 %v3996_v28  ;;  %2830 = vmatprep.subr.bf16.mxu0 %v4001_v29  ;;  %v4074_v28 = vld [vmem:[%s4460_s6 + $0xbc0] ss:$16 sps:$4 sm:$0xff]   ;;  %v4079_v29 = vld [vmem:[%s4460_s6 + $0x9e4] ss:$16 sps:$4 sm:$0xff]  }
  0xa0   : > { %2871 = vmatprep.subr.bf16.mxu1 %v4004_v30  ;;  %v4082_v30 = vld [vmem:[%s4460_s6 + $0xbe4] ss:$16 sps:$4 sm:$0xff]  }
  0xa2   : > { %2831 = vmatpush1.bf16.msra.mxu0 %v3999_v31  ;;  %v4077_v31 = vld [vmem:[%s4460_s6 + $0x9e0] ss:$16 sps:$4 sm:$0xff]  }
  0xa3   : > { %2872 = vmatpush1.bf16.msra.mxu1 %v4002_v32  ;;  %2832 = vmatprep.subr.bf16.mxu0 %v4007_v33  ;;  %v4080_v32 = vld [vmem:[%s4460_s6 + $0xbe0] ss:$16 sps:$4 sm:$0xff]   ;;  %v4089_v33 = vld [vmem:[%s4460_s6 + $0xc] ss:$16 sps:$4 sm:$0xff]  }
  0xa4   : > { %2873 = vmatprep.subr.bf16.mxu1 %v4010_v34  ;;  %v4092_v34 = vld [vmem:[%s4460_s6 + $0x20c] ss:$16 sps:$4 sm:$0xff]  }
  0xa6   : > { %2833 = vmatpush1.bf16.msra.mxu0 %v4005_v35  ;;  %v4715_v35 = vcombine.low %v4636_v23, %v4636_v23  ;;  %v4093_v23 = vld [vmem:[%s4460_s6 + $0x28] ss:$16 sps:$4 sm:$0xff]  }
  0xa7   : > { %2874 = vmatpush1.bf16.msra.mxu1 %v4008_v36  ;;  %2834 = vmatprep.subr.bf16.mxu0 %v4013_v39  ;;  %v4719_v36 = vcombine.low %v4639_v24, %v4639_v24  ;;  %v4087_v39 = vld [vmem:[%s4460_s6 + $0x8] ss:$16 sps:$4 sm:$0xff]  }
  0xa8   : > { %2875 = vmatprep.subr.bf16.mxu1 %v4016_v40  ;;  %v4090_v40 = vld [vmem:[%s4460_s6 + $0x208] ss:$16 sps:$4 sm:$0xff]  }
  0xa9   : > { %v4096_v24 = vld [vmem:[%s4460_s6 + $0x228] ss:$16 sps:$4 sm:$0xff]  }
  0xaa   : > { %2835 = vmatpush1.bf16.msra.mxu0 %v4011_v41  ;;  %v4095_v41 = vld [vmem:[%s4460_s6 + $0x2c] ss:$16 sps:$4 sm:$0xff]  }
  0xab   : > { %2876 = vmatpush1.bf16.msra.mxu1 %v4014_v42  ;;  %2836 = vmatprep.subr.bf16.mxu0 %v4019_v43  ;;  %v4098_v42 = vld [vmem:[%s4460_s6 + $0x22c] ss:$16 sps:$4 sm:$0xff]  }
  0xac   : > { %2877 = vmatprep.subr.bf16.mxu1 %v4022_v44  ;;  %v4101_v43 = vld [vmem:[%s4460_s6 + $0x4c] ss:$16 sps:$4 sm:$0xff]  }
  0xad   : > { %v4104_v44 = vld [vmem:[%s4460_s6 + $0x24c] ss:$16 sps:$4 sm:$0xff]  }
  0xae   : > { %2837 = vmatpush1.bf16.msra.mxu0 %v4017_v45  ;;  %v4099_v45 = vld [vmem:[%s4460_s6 + $0x48] ss:$16 sps:$4 sm:$0xff]  }
  0xaf   : > { %2878 = vmatpush1.bf16.msra.mxu1 %v4020_v46  ;;  %2838 = vmatprep.subr.bf16.mxu0 %v4025_v47  ;;  %v4102_v46 = vld [vmem:[%s4460_s6 + $0x248] ss:$16 sps:$4 sm:$0xff]   ;;  %v4107_v47 = vld [vmem:[%s4460_s6 + $0x6c] ss:$16 sps:$4 sm:$0xff]  }
  0xb0   : > { %2879 = vmatprep.subr.bf16.mxu1 %v4028_v49  ;;  %v4110_v49 = vld [vmem:[%s4460_s6 + $0x26c] ss:$16 sps:$4 sm:$0xff]  }
  0xb2   : > { %2839 = vmatpush1.bf16.msra.mxu0 %v4023_v50  ;;  %v4105_v50 = vld [vmem:[%s4460_s6 + $0x68] ss:$16 sps:$4 sm:$0xff]  }
  0xb3   : > { %2880 = vmatpush1.bf16.msra.mxu1 %v4026_v51  ;;  %2840 = vmatprep.subr.bf16.mxu0 %v4031_v53  ;;  %v4116_v51 = vld [vmem:[%s4460_s6 + $0x28c] ss:$16 sps:$4 sm:$0xff]   ;;  %v4111_v53 = vld [vmem:[%s4460_s6 + $0x88] ss:$16 sps:$4 sm:$0xff]  }
  0xb4   : > { %2881 = vmatprep.subr.bf16.mxu1 %v4034_v54  ;;  %v4114_v54 = vld [vmem:[%s4460_s6 + $0x288] ss:$16 sps:$4 sm:$0xff]  }
  0xb6   : > { %2841 = vmatpush1.bf16.msra.mxu0 %v4029_v55  ;;  %v4119_v55 = vld [vmem:[%s4460_s6 + $0xac] ss:$16 sps:$4 sm:$0xff]  }
  0xb7   : > { %2882 = vmatpush1.bf16.msra.mxu1 %v4032_v56  ;;  %2842 = vmatprep.subr.bf16.mxu0 %v4037_v57  ;;  %v4122_v56 = vld [vmem:[%s4460_s6 + $0x2ac] ss:$16 sps:$4 sm:$0xff]   ;;  %v4117_v57 = vld [vmem:[%s4460_s6 + $0xa8] ss:$16 sps:$4 sm:$0xff]  }
  0xb8   : > { %2883 = vmatprep.subr.bf16.mxu1 %v4040_v58  ;;  %v4120_v58 = vld [vmem:[%s4460_s6 + $0x2a8] ss:$16 sps:$4 sm:$0xff]  }
  0xba   : > { %2843 = vmatpush1.bf16.msra.mxu0 %v4035_v59  ;;  %v4125_v59 = vld [vmem:[%s4460_s6 + $0xcc] ss:$16 sps:$4 sm:$0xff]  }
  0xbb   : > { %2884 = vmatpush1.bf16.msra.mxu1 %v4038_v60  ;;  %2844 = vmatprep.subr.bf16.mxu0 %v4043_v61  ;;  %v4128_v60 = vld [vmem:[%s4460_s6 + $0x2cc] ss:$16 sps:$4 sm:$0xff]   ;;  %v4123_v61 = vld [vmem:[%s4460_s6 + $0xc8] ss:$16 sps:$4 sm:$0xff]  }
  0xbc   : > { %2885 = vmatprep.subr.bf16.mxu1 %v4046_v62  ;;  %v4126_v62 = vld [vmem:[%s4460_s6 + $0x2c8] ss:$16 sps:$4 sm:$0xff]  }
  0xbe   : > { %2845 = vmatpush1.bf16.msra.mxu0 %v4041_v63  ;;  %v4131_v63 = vld [vmem:[%s4460_s6 + $0xec] ss:$16 sps:$4 sm:$0xff]  }
  0xbf   : > { %2886 = vmatpush1.bf16.msra.mxu1 %v4044_v0  ;;  %2846 = vmatprep.subr.bf16.mxu0 %v4049_v1  ;;  %v4134_v0 = vld [vmem:[%s4460_s6 + $0x2ec] ss:$16 sps:$4 sm:$0xff]   ;;  %v4129_v1 = vld [vmem:[%s4460_s6 + $0xe8] ss:$16 sps:$4 sm:$0xff]  }
  0xc0   : > { %2887 = vmatprep.subr.bf16.mxu1 %v4052_v2  ;;  %v4132_v2 = vld [vmem:[%s4460_s6 + $0x2e8] ss:$16 sps:$4 sm:$0xff]  }
  0xc2   : > { %2847 = vmatpush1.bf16.msra.mxu0 %v4047_v3  ;;  %v4137_v3 = vld [vmem:[%s4460_s6 + $0x10c] ss:$16 sps:$4 sm:$0xff]  }
  0xc3   : > { %2888 = vmatpush1.bf16.msra.mxu1 %v4050_v4  ;;  %2848 = vmatprep.subr.bf16.mxu0 %v4055_v5  ;;  %v4140_v4 = vld [vmem:[%s4460_s6 + $0x30c] ss:$16 sps:$4 sm:$0xff]   ;;  %v4135_v5 = vld [vmem:[%s4460_s6 + $0x108] ss:$16 sps:$4 sm:$0xff]  }
  0xc4   : > { %2889 = vmatprep.subr.bf16.mxu1 %v4058_v6  ;;  %v4138_v6 = vld [vmem:[%s4460_s6 + $0x308] ss:$16 sps:$4 sm:$0xff]  }
  0xc6   : > { %2849 = vmatpush1.bf16.msra.mxu0 %v4053_v9  ;;  %v4143_v9 = vld [vmem:[%s4460_s6 + $0x12c] ss:$16 sps:$4 sm:$0xff]  }
  0xc7   : > { %2890 = vmatpush1.bf16.msra.mxu1 %v4056_v10  ;;  %2850 = vmatprep.subr.bf16.mxu0 %v4061_v11  ;;  %v4146_v10 = vld [vmem:[%s4460_s6 + $0x32c] ss:$16 sps:$4 sm:$0xff]   ;;  %v4141_v11 = vld [vmem:[%s4460_s6 + $0x128] ss:$16 sps:$4 sm:$0xff]  }
  0xc8   : > { %2891 = vmatprep.subr.bf16.mxu1 %v4064_v12  ;;  %v4144_v12 = vld [vmem:[%s4460_s6 + $0x328] ss:$16 sps:$4 sm:$0xff]  }
  0xca   : > { %2851 = vmatpush1.bf16.msra.mxu0 %v4059_v13  ;;  %v4149_v13 = vld [vmem:[%s4460_s6 + $0x14c] ss:$16 sps:$4 sm:$0xff]  }
  0xcb   : > { %2892 = vmatpush1.bf16.msra.mxu1 %v4062_v14  ;;  %2852 = vmatprep.subr.bf16.mxu0 %v4067_v15  ;;  %v4152_v14 = vld [vmem:[%s4460_s6 + $0x34c] ss:$16 sps:$4 sm:$0xff]   ;;  %v4147_v15 = vld [vmem:[%s4460_s6 + $0x148] ss:$16 sps:$4 sm:$0xff]  }
  0xcc   : > { %2893 = vmatprep.subr.bf16.mxu1 %v4070_v16  ;;  %v4150_v16 = vld [vmem:[%s4460_s6 + $0x348] ss:$16 sps:$4 sm:$0xff]  }
  0xce   : > { %2853 = vmatpush1.bf16.msra.mxu0 %v4065_v19  ;;  %v4155_v19 = vld [vmem:[%s4460_s6 + $0x16c] ss:$16 sps:$4 sm:$0xff]  }
  0xcf   : > { %2894 = vmatpush1.bf16.msra.mxu1 %v4068_v20  ;;  %2854 = vmatprep.subr.bf16.mxu0 %v4073_v21  ;;  %v4158_v20 = vld [vmem:[%s4460_s6 + $0x36c] ss:$16 sps:$4 sm:$0xff]   ;;  %v4153_v21 = vld [vmem:[%s4460_s6 + $0x168] ss:$16 sps:$4 sm:$0xff]  }
  0xd0   : > { %2895 = vmatprep.subr.bf16.mxu1 %v4076_v22  ;;  %v4156_v22 = vld [vmem:[%s4460_s6 + $0x368] ss:$16 sps:$4 sm:$0xff]  }
  0xd2   : > { %2855 = vmatpush1.bf16.msra.mxu0 %v4071_v27  ;;  %v4161_v27 = vld [vmem:[%s4460_s6 + $0x18c] ss:$16 sps:$4 sm:$0xff]  }
  0xd3   : > { %2896 = vmatpush1.bf16.msra.mxu1 %v4074_v28  ;;  %2856 = vmatprep.subr.bf16.mxu0 %v4079_v29  ;;  %v4164_v28 = vld [vmem:[%s4460_s6 + $0x38c] ss:$16 sps:$4 sm:$0xff]   ;;  %v4159_v29 = vld [vmem:[%s4460_s6 + $0x188] ss:$16 sps:$4 sm:$0xff]  }
  0xd4   : > { %2897 = vmatprep.subr.bf16.mxu1 %v4082_v30  ;;  %v4162_v30 = vld [vmem:[%s4460_s6 + $0x388] ss:$16 sps:$4 sm:$0xff]  }
  0xd6   : > { %2857 = vmatpush1.bf16.msra.mxu0 %v4077_v31  ;;  %v4167_v31 = vld [vmem:[%s4460_s6 + $0x1ac] ss:$16 sps:$4 sm:$0xff]  }
  0xd7   : > { %2898 = vmatpush1.bf16.msra.mxu1 %v4080_v32  ;;  %2908 = vmatprep.subr.bf16.mxu0 %v4089_v33  ;;  %v4170_v32 = vld [vmem:[%s4460_s6 + $0x3ac] ss:$16 sps:$4 sm:$0xff]   ;;  %v4165_v33 = vld [vmem:[%s4460_s6 + $0x1a8] ss:$16 sps:$4 sm:$0xff]  }
  0xd8   : > { %2949 = vmatprep.subr.bf16.mxu1 %v4092_v34  ;;  %v4168_v34 = vld [vmem:[%s4460_s6 + $0x3a8] ss:$16 sps:$4 sm:$0xff]  }
  0xd9   : > { %2859 = vmatmul.mubr.bf16.vlgmr.msra.gmra.mrb[8].mxu0 %v4715_v35 }
  0xda   : > { %2900 = vmatmul.mubr.bf16.vlgmr.msra.gmra.mrb[8].mxu1 %v4719_v36  ;;  %2909 = vmatpush1.bf16.msra.mxu0 %v4087_v39  ;;  %v4173_v39 = vld [vmem:[%s4460_s6 + $0x1cc] ss:$16 sps:$4 sm:$0xff]  }
  0xdb   : > { %2950 = vmatpush1.bf16.msra.mxu1 %v4090_v40  ;;  %2910 = vmatprep.subr.bf16.mxu0 %v4095_v41  ;;  %v4176_v40 = vld [vmem:[%s4460_s6 + $0x3cc] ss:$16 sps:$4 sm:$0xff]   ;;  %v4171_v41 = vld [vmem:[%s4460_s6 + $0x1c8] ss:$16 sps:$4 sm:$0xff]  }
  0xdc   : > { %2951 = vmatprep.subr.bf16.mxu1 %v4098_v42  ;;  %2940 = vmatprep.mubr.bf16.mxu0 %v4510_v48  ;;  %v4108_v48 = vld [vmem:[%s4460_s6 + $0x268] ss:$16 sps:$4 sm:$0xff]  }
  0xdd   : > { %2981 = vmatprep.mubr.bf16.mxu1 %v4515_v52  ;;  %v4113_v52 = vld [vmem:[%s4460_s6 + $0x8c] ss:$16 sps:$4 sm:$0xff]   ;;  %v4174_v42 = vld [vmem:[%s4460_s6 + $0x3c8] ss:$16 sps:$4 sm:$0xff]  }
  0xde   : > { %2911 = vmatpush1.bf16.msra.mxu0 %v4093_v23  ;;  %v4179_v23 = vld [vmem:[%s4460_s6 + $0x1ec] ss:$16 sps:$4 sm:$0xff]  }
  0xdf   : > { %2952 = vmatpush1.bf16.msra.mxu1 %v4096_v24  ;;  %2912 = vmatprep.subr.bf16.mxu0 %v4101_v43  ;;  %v4182_v24 = vld [vmem:[%s4460_s6 + $0x3ec] ss:$16 sps:$4 sm:$0xff]   ;;  %v4177_v43 = vld [vmem:[%s4460_s6 + $0x1e8] ss:$16 sps:$4 sm:$0xff]  }
  0xe0   : > { %2953 = vmatprep.subr.bf16.mxu1 %v4104_v44  ;;  %v4180_v44 = vld [vmem:[%s4460_s6 + $0x3e8] ss:$16 sps:$4 sm:$0xff]  }
  0xe2   : > { %2913 = vmatpush1.bf16.msra.mxu0 %v4099_v45  ;;  %v4185_v45 = vld [vmem:[%s4460_s6 + $0x40c] ss:$16 sps:$4 sm:$0xff]  }
  0xe3   : > { %2954 = vmatpush1.bf16.msra.mxu1 %v4102_v46  ;;  %2914 = vmatprep.subr.bf16.mxu0 %v4107_v47  ;;  %v4188_v46 = vld [vmem:[%s4460_s6 + $0x60c] ss:$16 sps:$4 sm:$0xff]   ;;  %v4183_v47 = vld [vmem:[%s4460_s6 + $0x408] ss:$16 sps:$4 sm:$0xff]  }
  0xe4   : > { %2955 = vmatprep.subr.bf16.mxu1 %v4110_v49  ;;  %v4186_v49 = vld [vmem:[%s4460_s6 + $0x608] ss:$16 sps:$4 sm:$0xff]  }
  0xe6   : > { %2915 = vmatpush1.bf16.msra.mxu0 %v4105_v50  ;;  %v4191_v50 = vld [vmem:[%s4460_s6 + $0x42c] ss:$16 sps:$4 sm:$0xff]  }
  0xe7   : > { %2956 = vmatpush1.bf16.msra.mxu1 %v4108_v48  ;;  %2916 = vmatprep.subr.bf16.mxu0 %v4113_v52  ;;  %v4194_v48 = vld [vmem:[%s4460_s6 + $0x62c] ss:$16 sps:$4 sm:$0xff]   ;;  %v4189_v52 = vld [vmem:[%s4460_s6 + $0x428] ss:$16 sps:$4 sm:$0xff]  }
  0xe8   : > { %2957 = vmatprep.subr.bf16.mxu1 %v4116_v51  ;;  %v4192_v51 = vld [vmem:[%s4460_s6 + $0x628] ss:$16 sps:$4 sm:$0xff]  }
  0xea   : > { %2917 = vmatpush1.bf16.msra.mxu0 %v4111_v53  ;;  %v4197_v53 = vld [vmem:[%s4460_s6 + $0x44c] ss:$16 sps:$4 sm:$0xff]  }
  0xeb   : > { %2958 = vmatpush1.bf16.msra.mxu1 %v4114_v54  ;;  %2918 = vmatprep.subr.bf16.mxu0 %v4119_v55  ;;  %v4200_v54 = vld [vmem:[%s4460_s6 + $0x64c] ss:$16 sps:$4 sm:$0xff]  }
  0xec   : > { %2959 = vmatprep.subr.bf16.mxu1 %v4122_v56  ;;  %v4203_v55 = vld [vmem:[%s4460_s6 + $0x46c] ss:$16 sps:$4 sm:$0xff]  }
  0xed   : > { %v4206_v56 = vld [vmem:[%s4460_s6 + $0x66c] ss:$16 sps:$4 sm:$0xff]  }
  0xee   : > { %2919 = vmatpush1.bf16.msra.mxu0 %v4117_v57  ;;  %v4201_v57 = vld [vmem:[%s4460_s6 + $0x468] ss:$16 sps:$4 sm:$0xff]  }
  0xef   : > { %2960 = vmatpush1.bf16.msra.mxu1 %v4120_v58  ;;  %2920 = vmatprep.subr.bf16.mxu0 %v4125_v59  ;;  %v4212_v58 = vld [vmem:[%s4460_s6 + $0x68c] ss:$16 sps:$4 sm:$0xff]   ;;  %v4207_v59 = vld [vmem:[%s4460_s6 + $0x488] ss:$16 sps:$4 sm:$0xff]  }
  0xf0   : > { %2961 = vmatprep.subr.bf16.mxu1 %v4128_v60  ;;  %v4210_v60 = vld [vmem:[%s4460_s6 + $0x688] ss:$16 sps:$4 sm:$0xff]  }
  0xf2   : > { %2921 = vmatpush1.bf16.msra.mxu0 %v4123_v61  ;;  %v4215_v61 = vld [vmem:[%s4460_s6 + $0x4ac] ss:$16 sps:$4 sm:$0xff]  }
  0xf3   : > { %2962 = vmatpush1.bf16.msra.mxu1 %v4126_v62  ;;  %2922 = vmatprep.subr.bf16.mxu0 %v4131_v63  ;;  %v4218_v62 = vld [vmem:[%s4460_s6 + $0x6ac] ss:$16 sps:$4 sm:$0xff]   ;;  %v4213_v63 = vld [vmem:[%s4460_s6 + $0x4a8] ss:$16 sps:$4 sm:$0xff]  }
  0xf4   : > { %2963 = vmatprep.subr.bf16.mxu1 %v4134_v0  ;;  %v4216_v0 = vld [vmem:[%s4460_s6 + $0x6a8] ss:$16 sps:$4 sm:$0xff]  }
  0xf6   : > { %2923 = vmatpush1.bf16.msra.mxu0 %v4129_v1  ;;  %v4221_v1 = vld [vmem:[%s4460_s6 + $0x4cc] ss:$16 sps:$4 sm:$0xff]  }
  0xf7   : > { %2964 = vmatpush1.bf16.msra.mxu1 %v4132_v2  ;;  %2924 = vmatprep.subr.bf16.mxu0 %v4137_v3  ;;  %v4224_v2 = vld [vmem:[%s4460_s6 + $0x6cc] ss:$16 sps:$4 sm:$0xff]  }
  0xf8   : > { %2965 = vmatprep.subr.bf16.mxu1 %v4140_v4 }
  0xfa   : > { %2925 = vmatpush1.bf16.msra.mxu0 %v4135_v5 }
  0xfb   : > { %2966 = vmatpush1.bf16.msra.mxu1 %v4138_v6  ;;  %2926 = vmatprep.subr.bf16.mxu0 %v4143_v9 }
  0xfc   : > { %2967 = vmatprep.subr.bf16.mxu1 %v4146_v10 }
  0xfe   : > { %2927 = vmatpush1.bf16.msra.mxu0 %v4141_v11 }
  0xff   : > { %2968 = vmatpush1.bf16.msra.mxu1 %v4144_v12  ;;  %2928 = vmatprep.subr.bf16.mxu0 %v4149_v13  ;;  %v4219_v13 = vld [vmem:[%s4460_s6 + $0x4c8] ss:$16 sps:$4 sm:$0xff]  }
 0x100   : > { %2969 = vmatprep.subr.bf16.mxu1 %v4152_v14  ;;  %v4222_v14 = vld [vmem:[%s4460_s6 + $0x6c8] ss:$16 sps:$4 sm:$0xff]  }
 0x102   : > { %2929 = vmatpush1.bf16.msra.mxu0 %v4147_v15 }
 0x103   : > { %2970 = vmatpush1.bf16.msra.mxu1 %v4150_v16  ;;  %2930 = vmatprep.subr.bf16.mxu0 %v4155_v19  ;;  %v4227_v19 = vld [vmem:[%s4460_s6 + $0x4ec] ss:$16 sps:$4 sm:$0xff]  }
 0x104   : > { %2971 = vmatprep.subr.bf16.mxu1 %v4158_v20  ;;  %v4230_v20 = vld [vmem:[%s4460_s6 + $0x6ec] ss:$16 sps:$4 sm:$0xff]  }
 0x106   : > { %2931 = vmatpush1.bf16.msra.mxu0 %v4153_v21  ;;  %v4225_v21 = vld [vmem:[%s4460_s6 + $0x4e8] ss:$16 sps:$4 sm:$0xff]  }
 0x107   : > { %2972 = vmatpush1.bf16.msra.mxu1 %v4156_v22  ;;  %2932 = vmatprep.subr.bf16.mxu0 %v4161_v27  ;;  %v4228_v22 = vld [vmem:[%s4460_s6 + $0x6e8] ss:$16 sps:$4 sm:$0xff]   ;;  %v4233_v27 = vld [vmem:[%s4460_s6 + $0x50c] ss:$16 sps:$4 sm:$0xff]  }
 0x108   : > { %2973 = vmatprep.subr.bf16.mxu1 %v4164_v28  ;;  %v4236_v28 = vld [vmem:[%s4460_s6 + $0x70c] ss:$16 sps:$4 sm:$0xff]  }
 0x10a   : > { %2933 = vmatpush1.bf16.msra.mxu0 %v4159_v29  ;;  %v4231_v29 = vld [vmem:[%s4460_s6 + $0x508] ss:$16 sps:$4 sm:$0xff]  }
 0x10b   : > { %2974 = vmatpush1.bf16.msra.mxu1 %v4162_v30  ;;  %2934 = vmatprep.subr.bf16.mxu0 %v4167_v31  ;;  %v4234_v30 = vld [vmem:[%s4460_s6 + $0x708] ss:$16 sps:$4 sm:$0xff]   ;;  %v4239_v31 = vld [vmem:[%s4460_s6 + $0x52c] ss:$16 sps:$4 sm:$0xff]  }
 0x10c   : > { %2975 = vmatprep.subr.bf16.mxu1 %v4170_v32  ;;  %v4242_v32 = vld [vmem:[%s4460_s6 + $0x72c] ss:$16 sps:$4 sm:$0xff]  }
 0x10e   : > { %2935 = vmatpush1.bf16.msra.mxu0 %v4165_v33  ;;  %v4237_v33 = vld [vmem:[%s4460_s6 + $0x528] ss:$16 sps:$4 sm:$0xff]  }
 0x10f   : > { %2976 = vmatpush1.bf16.msra.mxu1 %v4168_v34  ;;  %2936 = vmatprep.subr.bf16.mxu0 %v4173_v39  ;;  %v4240_v34 = vld [vmem:[%s4460_s6 + $0x728] ss:$16 sps:$4 sm:$0xff]   ;;  %v4245_v39 = vld [vmem:[%s4460_s6 + $0x54c] ss:$16 sps:$4 sm:$0xff]  }
 0x110   : > { %2977 = vmatprep.subr.bf16.mxu1 %v4176_v40  ;;  %v4248_v40 = vld [vmem:[%s4460_s6 + $0x74c] ss:$16 sps:$4 sm:$0xff]  }
 0x112   : > { %2937 = vmatpush1.bf16.msra.mxu0 %v4171_v41  ;;  %v4243_v41 = vld [vmem:[%s4460_s6 + $0x548] ss:$16 sps:$4 sm:$0xff]  }
 0x113   : > { %2978 = vmatpush1.bf16.msra.mxu1 %v4174_v42  ;;  %2938 = vmatprep.subr.bf16.mxu0 %v4179_v23  ;;  %v4246_v42 = vld [vmem:[%s4460_s6 + $0x748] ss:$16 sps:$4 sm:$0xff]   ;;  %v4251_v23 = vld [vmem:[%s4460_s6 + $0x56c] ss:$16 sps:$4 sm:$0xff]  }
 0x114   : > { %2979 = vmatprep.subr.bf16.mxu1 %v4182_v24  ;;  %v4254_v24 = vld [vmem:[%s4460_s6 + $0x76c] ss:$16 sps:$4 sm:$0xff]  }
 0x116   : > { %2939 = vmatpush1.bf16.msra.mxu0 %v4177_v43  ;;  %v4249_v43 = vld [vmem:[%s4460_s6 + $0x568] ss:$16 sps:$4 sm:$0xff]  }
 0x117   : > { %2980 = vmatpush1.bf16.msra.mxu1 %v4180_v44  ;;  %2990 = vmatprep.subr.bf16.mxu0 %v4185_v45  ;;  %v4252_v44 = vld [vmem:[%s4460_s6 + $0x768] ss:$16 sps:$4 sm:$0xff]   ;;  %v4257_v45 = vld [vmem:[%s4460_s6 + $0x58c] ss:$16 sps:$4 sm:$0xff]  }
 0x118   : > { %3031 = vmatprep.subr.bf16.mxu1 %v4188_v46  ;;  %v4260_v46 = vld [vmem:[%s4460_s6 + $0x78c] ss:$16 sps:$4 sm:$0xff]  }
 0x119   : > { %2941 = vmatmul.mubr.bf16.vlgmr.msra.gmra.mrb[12].mxu0 %v4537_v7  ;;  %v4195_v7 = vld [vmem:[%s4460_s6 + $0x448] ss:$16 sps:$4 sm:$0xff]  }
 0x11a   : > { %2982 = vmatmul.mubr.bf16.vlgmr.msra.gmra.mrb[12].mxu1 %v4539_v8  ;;  %2991 = vmatpush1.bf16.msra.mxu0 %v4183_v47  ;;  %v4198_v8 = vld [vmem:[%s4460_s6 + $0x648] ss:$16 sps:$4 sm:$0xff]  }
 0x11b   : > { %3032 = vmatpush1.bf16.msra.mxu1 %v4186_v49  ;;  %2992 = vmatprep.subr.bf16.mxu0 %v4191_v50  ;;  %v4255_v47 = vld [vmem:[%s4460_s6 + $0x588] ss:$16 sps:$4 sm:$0xff]   ;;  %v4263_v50 = vld [vmem:[%s4460_s6 + $0x5ac] ss:$16 sps:$4 sm:$0xff]  }
 0x11c   : > { %3033 = vmatprep.subr.bf16.mxu1 %v4194_v48  ;;  %3022 = vmatprep.mubr.bf16.mxu0 %v4577_v37  ;;  %v4204_v37 = vld [vmem:[%s4460_s6 + $0x668] ss:$16 sps:$4 sm:$0xff]   ;;  %v4266_v48 = vld [vmem:[%s4460_s6 + $0x7ac] ss:$16 sps:$4 sm:$0xff]  }
 0x11d   : > { %3063 = vmatprep.mubr.bf16.mxu1 %v4581_v38  ;;  %v4209_v38 = vld [vmem:[%s4460_s6 + $0x48c] ss:$16 sps:$4 sm:$0xff]   ;;  %v4258_v49 = vld [vmem:[%s4460_s6 + $0x788] ss:$16 sps:$4 sm:$0xff]  }
 0x11e   : > { %2993 = vmatpush1.bf16.msra.mxu0 %v4189_v52  ;;  %v4261_v52 = vld [vmem:[%s4460_s6 + $0x5a8] ss:$16 sps:$4 sm:$0xff]  }
 0x11f   : > { %3034 = vmatpush1.bf16.msra.mxu1 %v4192_v51  ;;  %2994 = vmatprep.subr.bf16.mxu0 %v4197_v53  ;;  %v4264_v51 = vld [vmem:[%s4460_s6 + $0x7a8] ss:$16 sps:$4 sm:$0xff]   ;;  %v4269_v53 = vld [vmem:[%s4460_s6 + $0x5cc] ss:$16 sps:$4 sm:$0xff]  }
 0x120   : > { %3035 = vmatprep.subr.bf16.mxu1 %v4200_v54  ;;  %v4272_v54 = vld [vmem:[%s4460_s6 + $0x7cc] ss:$16 sps:$4 sm:$0xff]  }
 0x122   : > { %2995 = vmatpush1.bf16.msra.mxu0 %v4195_v7  ;;  %v4267_v7 = vld [vmem:[%s4460_s6 + $0x5c8] ss:$16 sps:$4 sm:$0xff]  }
 0x123   : > { %3036 = vmatpush1.bf16.msra.mxu1 %v4198_v8  ;;  %2996 = vmatprep.subr.bf16.mxu0 %v4203_v55  ;;  %v4270_v8 = vld [vmem:[%s4460_s6 + $0x7c8] ss:$16 sps:$4 sm:$0xff]   ;;  %v4275_v55 = vld [vmem:[%s4460_s6 + $0x5ec] ss:$16 sps:$4 sm:$0xff]  }
 0x124   : > { %3037 = vmatprep.subr.bf16.mxu1 %v4206_v56  ;;  %v4278_v56 = vld [vmem:[%s4460_s6 + $0x7ec] ss:$16 sps:$4 sm:$0xff]  }
 0x126   : > { %2997 = vmatpush1.bf16.msra.mxu0 %v4201_v57  ;;  %v4273_v57 = vld [vmem:[%s4460_s6 + $0x5e8] ss:$16 sps:$4 sm:$0xff]  }
 0x127   : > { %3038 = vmatpush1.bf16.msra.mxu1 %v4204_v37  ;;  %2998 = vmatprep.subr.bf16.mxu0 %v4209_v38  ;;  %v4276_v37 = vld [vmem:[%s4460_s6 + $0x7e8] ss:$16 sps:$4 sm:$0xff]   ;;  %v4281_v38 = vld [vmem:[%s4460_s6 + $0x80c] ss:$16 sps:$4 sm:$0xff]  }
 0x128   : > { %3039 = vmatprep.subr.bf16.mxu1 %v4212_v58  ;;  %v4284_v58 = vld [vmem:[%s4460_s6 + $0xa0c] ss:$16 sps:$4 sm:$0xff]  }
 0x12a   : > { %2999 = vmatpush1.bf16.msra.mxu0 %v4207_v59  ;;  %v4279_v59 = vld [vmem:[%s4460_s6 + $0x808] ss:$16 sps:$4 sm:$0xff]  }
 0x12b   : > { %3040 = vmatpush1.bf16.msra.mxu1 %v4210_v60  ;;  %3000 = vmatprep.subr.bf16.mxu0 %v4215_v61  ;;  %v4282_v60 = vld [vmem:[%s4460_s6 + $0xa08] ss:$16 sps:$4 sm:$0xff]   ;;  %v4287_v61 = vld [vmem:[%s4460_s6 + $0x82c] ss:$16 sps:$4 sm:$0xff]  }
 0x12c   : > { %3041 = vmatprep.subr.bf16.mxu1 %v4218_v62  ;;  %v2696_v3 = vpop.f32.mrb[0].mxu0  ;;  %v4290_v62 = vld [vmem:[%s4460_s6 + $0xa2c] ss:$16 sps:$4 sm:$0xff]  }
 0x12d   : > { %v2737_v4 = vpop.f32.mrb[0].mxu1  ;;  %v2698_v6 = vpop.f32.mrb[1].mxu0 }
 0x12e   : > { %v4817_v5 = vadd.f32 %v2737_v4, %v2696_v3  ;;  %v2739_v9 = vpop.f32.mrb[1].mxu1  ;;  %v2700_v11 = vpop.f32.mrb[2].mxu0  ;;  %3001 = vmatpush1.bf16.msra.mxu0 %v4213_v63  ;;  %v4285_v63 = vld [vmem:[%s4460_s6 + $0x828] ss:$16 sps:$4 sm:$0xff]   ;;  %v4299_v3 = vld [vmem:[%s4460_s6 + $0x86c] ss:$16 sps:$4 sm:$0xff]  }
 0x12f   : > { %v4819_v10 = vadd.f32 %v2739_v9, %v2698_v6  ;;  %v2741_v12 = vpop.f32.mrb[2].mxu1  ;;  %3042 = vmatpush1.bf16.msra.mxu1 %v4216_v0  ;;  %v2701_v15 = vpop.f32.mrb[3].mxu0  ;;  %3002 = vmatprep.subr.bf16.mxu0 %v4221_v1  ;;  %v4288_v0 = vld [vmem:[%s4460_s6 + $0xa28] ss:$16 sps:$4 sm:$0xff]   ;;  %v4293_v1 = vld [vmem:[%s4460_s6 + $0x84c] ss:$16 sps:$4 sm:$0xff]  }
 0x130   : > { %v2742_v16 = vpop.f32.mrb[3].mxu1  ;;  %3043 = vmatprep.subr.bf16.mxu1 %v4224_v2  ;;  %v4296_v2 = vld [vmem:[%s4460_s6 + $0xa4c] ss:$16 sps:$4 sm:$0xff]   ;;  %v4297_v6 = vld [vmem:[%s4460_s6 + $0x868] ss:$16 sps:$4 sm:$0xff]  }
 0x131   : > { %v4302_v4 = vld [vmem:[%s4460_s6 + $0xa6c] ss:$16 sps:$4 sm:$0xff]   ;;  %v4303_v11 = vld [vmem:[%s4460_s6 + $0x888] ss:$16 sps:$4 sm:$0xff]  }
 0x132   : > { %3003 = vmatpush1.bf16.msra.mxu0 %v4219_v13  ;;  %v4308_v9 = vld [vmem:[%s4460_s6 + $0xa8c] ss:$16 sps:$4 sm:$0xff]   ;;  %v4306_v12 = vld [vmem:[%s4460_s6 + $0xa88] ss:$16 sps:$4 sm:$0xff]  }
 0x133   : > { %3044 = vmatpush1.bf16.msra.mxu1 %v4222_v14  ;;  %3004 = vmatprep.subr.bf16.mxu0 %v4227_v19  ;;  %v4311_v13 = vld [vmem:[%s4460_s6 + $0x8ac] ss:$16 sps:$4 sm:$0xff]   ;;  %v4309_v15 = vld [vmem:[%s4460_s6 + $0x8a8] ss:$16 sps:$4 sm:$0xff]  }
 0x134   : > { %3045 = vmatprep.subr.bf16.mxu1 %v4230_v20  ;;  %v4314_v14 = vld [vmem:[%s4460_s6 + $0xaac] ss:$16 sps:$4 sm:$0xff]   ;;  %v4312_v16 = vld [vmem:[%s4460_s6 + $0xaa8] ss:$16 sps:$4 sm:$0xff]  }
 0x135   : > { %v4317_v19 = vld [vmem:[%s4460_s6 + $0x8cc] ss:$16 sps:$4 sm:$0xff]  }
 0x136   : > { %3005 = vmatpush1.bf16.msra.mxu0 %v4225_v21  ;;  %v4320_v20 = vld [vmem:[%s4460_s6 + $0xacc] ss:$16 sps:$4 sm:$0xff]  }
 0x137   : > { %3046 = vmatpush1.bf16.msra.mxu1 %v4228_v22  ;;  %3006 = vmatprep.subr.bf16.mxu0 %v4233_v27 }
 0x138   : > { %3047 = vmatprep.subr.bf16.mxu1 %v4236_v28 }
 0x13a   : > { %3007 = vmatpush1.bf16.msra.mxu0 %v4231_v29 }
 0x13b   : > { %3048 = vmatpush1.bf16.msra.mxu1 %v4234_v30  ;;  %3008 = vmatprep.subr.bf16.mxu0 %v4239_v31 }
 0x13c   : > { %3049 = vmatprep.subr.bf16.mxu1 %v4242_v32 }
 0x13e   : > { %3009 = vmatpush1.bf16.msra.mxu0 %v4237_v33  ;;  %v4315_v33 = vld [vmem:[%s4460_s6 + $0x8c8] ss:$16 sps:$4 sm:$0xff]  }
 0x13f   : > { %3050 = vmatpush1.bf16.msra.mxu1 %v4240_v34  ;;  %3010 = vmatprep.subr.bf16.mxu0 %v4245_v39  ;;  %v4318_v34 = vld [vmem:[%s4460_s6 + $0xac8] ss:$16 sps:$4 sm:$0xff]  }
 0x140   : > { %3051 = vmatprep.subr.bf16.mxu1 %v4248_v40 }
 0x142   : > { %3011 = vmatpush1.bf16.msra.mxu0 %v4243_v41 }
 0x143   : > { %3052 = vmatpush1.bf16.msra.mxu1 %v4246_v42  ;;  %3012 = vmatprep.subr.bf16.mxu0 %v4251_v23  ;;  %v4321_v23 = vld [vmem:[%s4460_s6 + $0x8e8] ss:$16 sps:$4 sm:$0xff]  }
 0x144   : > { %3053 = vmatprep.subr.bf16.mxu1 %v4254_v24  ;;  %v4324_v24 = vld [vmem:[%s4460_s6 + $0xae8] ss:$16 sps:$4 sm:$0xff]  }
 0x146   : > { %3013 = vmatpush1.bf16.msra.mxu0 %v4249_v43  ;;  %v4329_v43 = vld [vmem:[%s4460_s6 + $0x90c] ss:$16 sps:$4 sm:$0xff]  }
 0x147   : > { %3054 = vmatpush1.bf16.msra.mxu1 %v4252_v44  ;;  %3014 = vmatprep.subr.bf16.mxu0 %v4257_v45  ;;  %v4332_v44 = vld [vmem:[%s4460_s6 + $0xb0c] ss:$16 sps:$4 sm:$0xff]   ;;  %v4327_v45 = vld [vmem:[%s4460_s6 + $0x908] ss:$16 sps:$4 sm:$0xff]  }
 0x148   : > { %3055 = vmatprep.subr.bf16.mxu1 %v4260_v46  ;;  %v4330_v46 = vld [vmem:[%s4460_s6 + $0xb08] ss:$16 sps:$4 sm:$0xff]  }
 0x14a   : > { %3015 = vmatpush1.bf16.msra.mxu0 %v4255_v47  ;;  %v4335_v47 = vld [vmem:[%s4460_s6 + $0x92c] ss:$16 sps:$4 sm:$0xff]  }
 0x14b   : > { %3056 = vmatpush1.bf16.msra.mxu1 %v4258_v49  ;;  %3016 = vmatprep.subr.bf16.mxu0 %v4263_v50  ;;  %v4338_v49 = vld [vmem:[%s4460_s6 + $0xb2c] ss:$16 sps:$4 sm:$0xff]   ;;  %v4333_v50 = vld [vmem:[%s4460_s6 + $0x928] ss:$16 sps:$4 sm:$0xff]  }
 0x14c   : > { %3057 = vmatprep.subr.bf16.mxu1 %v4266_v48  ;;  %v4336_v48 = vld [vmem:[%s4460_s6 + $0xb28] ss:$16 sps:$4 sm:$0xff]  }
 0x14e   : > { %3017 = vmatpush1.bf16.msra.mxu0 %v4261_v52  ;;  %v4341_v52 = vld [vmem:[%s4460_s6 + $0x94c] ss:$16 sps:$4 sm:$0xff]  }
 0x14f   : > { %3058 = vmatpush1.bf16.msra.mxu1 %v4264_v51  ;;  %3018 = vmatprep.subr.bf16.mxu0 %v4269_v53  ;;  %v4344_v51 = vld [vmem:[%s4460_s6 + $0xb4c] ss:$16 sps:$4 sm:$0xff]   ;;  %v4339_v53 = vld [vmem:[%s4460_s6 + $0x948] ss:$16 sps:$4 sm:$0xff]  }
 0x150   : > { %3059 = vmatprep.subr.bf16.mxu1 %v4272_v54  ;;  %v4342_v54 = vld [vmem:[%s4460_s6 + $0xb48] ss:$16 sps:$4 sm:$0xff]  }
 0x152   : > { %3019 = vmatpush1.bf16.msra.mxu0 %v4267_v7  ;;  %v4347_v7 = vld [vmem:[%s4460_s6 + $0x96c] ss:$16 sps:$4 sm:$0xff]  }
 0x153   : > { %3060 = vmatpush1.bf16.msra.mxu1 %v4270_v8  ;;  %3020 = vmatprep.subr.bf16.mxu0 %v4275_v55  ;;  %v4350_v8 = vld [vmem:[%s4460_s6 + $0xb6c] ss:$16 sps:$4 sm:$0xff]   ;;  %v4345_v55 = vld [vmem:[%s4460_s6 + $0x968] ss:$16 sps:$4 sm:$0xff]  }
 0x154   : > { %3061 = vmatprep.subr.bf16.mxu1 %v4278_v56  ;;  %v4348_v56 = vld [vmem:[%s4460_s6 + $0xb68] ss:$16 sps:$4 sm:$0xff]  }
 0x156   : > { %3021 = vmatpush1.bf16.msra.mxu0 %v4273_v57  ;;  %v4353_v57 = vld [vmem:[%s4460_s6 + $0x98c] ss:$16 sps:$4 sm:$0xff]  }
 0x157   : > { %3062 = vmatpush1.bf16.msra.mxu1 %v4276_v37  ;;  %3072 = vmatprep.subr.bf16.mxu0 %v4281_v38  ;;  %v4356_v37 = vld [vmem:[%s4460_s6 + $0xb8c] ss:$16 sps:$4 sm:$0xff]   ;;  %v4351_v38 = vld [vmem:[%s4460_s6 + $0x988] ss:$16 sps:$4 sm:$0xff]  }
 0x158   : > { %3113 = vmatprep.subr.bf16.mxu1 %v4284_v58  ;;  %v4354_v58 = vld [vmem:[%s4460_s6 + $0xb88] ss:$16 sps:$4 sm:$0xff]  }
 0x159   : > { %3023 = vmatmul.mubr.bf16.vlgmr.msra.gmra.mrb[16].mxu0 %v4625_v17  ;;  %v4291_v17 = vld [vmem:[%s4460_s6 + $0x848] ss:$16 sps:$4 sm:$0xff]  }
 0x15a   : > { %3064 = vmatmul.mubr.bf16.vlgmr.msra.gmra.mrb[16].mxu1 %v4629_v18  ;;  %3073 = vmatpush1.bf16.msra.mxu0 %v4279_v59  ;;  %v4294_v18 = vld [vmem:[%s4460_s6 + $0xa48] ss:$16 sps:$4 sm:$0xff]   ;;  %v4359_v59 = vld [vmem:[%s4460_s6 + $0x9ac] ss:$16 sps:$4 sm:$0xff]  }
 0x15b   : > { %3114 = vmatpush1.bf16.msra.mxu1 %v4282_v60  ;;  %3074 = vmatprep.subr.bf16.mxu0 %v4287_v61  ;;  %v4362_v60 = vld [vmem:[%s4460_s6 + $0xbac] ss:$16 sps:$4 sm:$0xff]   ;;  %v4357_v61 = vld [vmem:[%s4460_s6 + $0x9a8] ss:$16 sps:$4 sm:$0xff]  }
 0x15c   : > { %3115 = vmatprep.subr.bf16.mxu1 %v4290_v62  ;;  %3104 = vmatprep.mubr.bf16.mxu0 %v4643_v25  ;;  %v4300_v25 = vld [vmem:[%s4460_s6 + $0xa68] ss:$16 sps:$4 sm:$0xff]  }
 0x15d   : > { %3145 = vmatprep.mubr.bf16.mxu1 %v4647_v26  ;;  %v4305_v26 = vld [vmem:[%s4460_s6 + $0x88c] ss:$16 sps:$4 sm:$0xff]   ;;  %v4360_v62 = vld [vmem:[%s4460_s6 + $0xba8] ss:$16 sps:$4 sm:$0xff]  }
 0x15e   : > { %3075 = vmatpush1.bf16.msra.mxu0 %v4285_v63  ;;  %v4365_v63 = vld [vmem:[%s4460_s6 + $0x9cc] ss:$16 sps:$4 sm:$0xff]  }
 0x15f   : > { %3116 = vmatpush1.bf16.msra.mxu1 %v4288_v0  ;;  %3076 = vmatprep.subr.bf16.mxu0 %v4293_v1  ;;  %v4368_v0 = vld [vmem:[%s4460_s6 + $0xbcc] ss:$16 sps:$4 sm:$0xff]   ;;  %v4363_v1 = vld [vmem:[%s4460_s6 + $0x9c8] ss:$16 sps:$4 sm:$0xff]  }
 0x160   : > { %3117 = vmatprep.subr.bf16.mxu1 %v4296_v2  ;;  %v4366_v2 = vld [vmem:[%s4460_s6 + $0xbc8] ss:$16 sps:$4 sm:$0xff]  }
 0x162   : > { %3077 = vmatpush1.bf16.msra.mxu0 %v4291_v17  ;;  %v4371_v17 = vld [vmem:[%s4460_s6 + $0x9ec] ss:$16 sps:$4 sm:$0xff]  }
 0x163   : > { %3118 = vmatpush1.bf16.msra.mxu1 %v4294_v18  ;;  %3078 = vmatprep.subr.bf16.mxu0 %v4299_v3  ;;  %v4374_v18 = vld [vmem:[%s4460_s6 + $0xbec] ss:$16 sps:$4 sm:$0xff]   ;;  %v4369_v3 = vld [vmem:[%s4460_s6 + $0x9e8] ss:$16 sps:$4 sm:$0xff]  }
 0x164   : > { %3119 = vmatprep.subr.bf16.mxu1 %v4302_v4  ;;  %v4372_v4 = vld [vmem:[%s4460_s6 + $0xbe8] ss:$16 sps:$4 sm:$0xff]  }
 0x166   : > { %3079 = vmatpush1.bf16.msra.mxu0 %v4297_v6 }
 0x167   : > { %3120 = vmatpush1.bf16.msra.mxu1 %v4300_v25  ;;  %3080 = vmatprep.subr.bf16.mxu0 %v4305_v26 }
 0x168   : > { %3121 = vmatprep.subr.bf16.mxu1 %v4308_v9 }
 0x16a   : > { %3081 = vmatpush1.bf16.msra.mxu0 %v4303_v11 }
 0x16b   : > { %3122 = vmatpush1.bf16.msra.mxu1 %v4306_v12  ;;  %3082 = vmatprep.subr.bf16.mxu0 %v4311_v13  ;;  %v306_v12 = vld [vmem:[#allocation2] sm:$0xff] }
 0x16c   : > { %3123 = vmatprep.subr.bf16.mxu1 %v4314_v14  ;;  %v2778_v21 = vpop.f32.mrb[4].mxu0 }
 0x16d   : > { %v2819_v22 = vpop.f32.mrb[4].mxu1  ;;  %v2779_v27 = vadd.f32 %v2778_v21, %v4817_v5  ;;  %v2780_v28 = vpop.f32.mrb[5].mxu0  ;;  %v4323_v5 = vld [vmem:[%s4460_s6 + $0x8ec] ss:$16 sps:$4 sm:$0xff]  }
 0x16e   : > { %v2821_v29 = vpop.f32.mrb[5].mxu1  ;;  %v2781_v30 = vadd.f32 %v2780_v28, %v4819_v10  ;;  %v2782_v31 = vpop.f32.mrb[6].mxu0  ;;  %3083 = vmatpush1.bf16.msra.mxu0 %v4309_v15  ;;  %v4326_v10 = vld [vmem:[%s4460_s6 + $0xaec] ss:$16 sps:$4 sm:$0xff]  }
 0x16f   : > { %v2823_v32 = vpop.f32.mrb[6].mxu1  ;;  %3124 = vmatpush1.bf16.msra.mxu1 %v4312_v16  ;;  %v4893_v39 = vadd.f32 %v2819_v22, %v2779_v27  ;;  %v2783_v40 = vpop.f32.mrb[7].mxu0  ;;  %3084 = vmatprep.subr.bf16.mxu0 %v4317_v19  ;;  %v307_v19 = vld [vmem:[#allocation2 + $0x8] sm:$0xff] }
 0x170   : > { %v2824_v41 = vpop.f32.mrb[7].mxu1  ;;  %3125 = vmatprep.subr.bf16.mxu1 %v4320_v20  ;;  %v4897_v42 = vadd.f32 %v2821_v29, %v2781_v30 }
 0x172   : > { %3085 = vmatpush1.bf16.msra.mxu0 %v4315_v33 }
 0x173   : > { %3126 = vmatpush1.bf16.msra.mxu1 %v4318_v34  ;;  %3086 = vmatprep.subr.bf16.mxu0 %v4323_v5 }
 0x174   : > { %3127 = vmatprep.subr.bf16.mxu1 %v4326_v10 }
 0x176   : > { %3087 = vmatpush1.bf16.msra.mxu0 %v4321_v23 }
 0x177   : > { %3128 = vmatpush1.bf16.msra.mxu1 %v4324_v24  ;;  %3088 = vmatprep.subr.bf16.mxu0 %v4329_v43 }
 0x178   : > { %3129 = vmatprep.subr.bf16.mxu1 %v4332_v44 }
 0x17a   : > { %3089 = vmatpush1.bf16.msra.mxu0 %v4327_v45 }
 0x17b   : > { %3130 = vmatpush1.bf16.msra.mxu1 %v4330_v46  ;;  %3090 = vmatprep.subr.bf16.mxu0 %v4335_v47 }
 0x17c   : > { %3131 = vmatprep.subr.bf16.mxu1 %v4338_v49 }
 0x17e   : > { %3091 = vmatpush1.bf16.msra.mxu0 %v4333_v50 }
 0x17f   : > { %3132 = vmatpush1.bf16.msra.mxu1 %v4336_v48  ;;  %3092 = vmatprep.subr.bf16.mxu0 %v4341_v52 }
 0x180   : > { %3133 = vmatprep.subr.bf16.mxu1 %v4344_v51 }
 0x182   : > { %3093 = vmatpush1.bf16.msra.mxu0 %v4339_v53 }
 0x183   : > { %3134 = vmatpush1.bf16.msra.mxu1 %v4342_v54  ;;  %3094 = vmatprep.subr.bf16.mxu0 %v4347_v7  ;;  %v308_v54 = vld [vmem:[#allocation2 + $0x10] sm:$0xff] }
 0x184   : > { %3135 = vmatprep.subr.bf16.mxu1 %v4350_v8 }
 0x186   : > { %3095 = vmatpush1.bf16.msra.mxu0 %v4345_v55 }
 0x187   : > { %3136 = vmatpush1.bf16.msra.mxu1 %v4348_v56  ;;  %3096 = vmatprep.subr.bf16.mxu0 %v4353_v57  ;;  %v309_v57 = vld [vmem:[#allocation2 + $0x18] sm:$0xff] }
 0x188   : > { %3137 = vmatprep.subr.bf16.mxu1 %v4356_v37 }
 0x18a   : > { %3097 = vmatpush1.bf16.msra.mxu0 %v4351_v38 }
 0x18b   : > { %3138 = vmatpush1.bf16.msra.mxu1 %v4354_v58  ;;  %3098 = vmatprep.subr.bf16.mxu0 %v4359_v59 }
 0x18c   : > { %3139 = vmatprep.subr.bf16.mxu1 %v4362_v60 }
 0x18e   : > { %3099 = vmatpush1.bf16.msra.mxu0 %v4357_v61  ;;  %v3172_v61 = vlaneseq (!%p3753_p7) }
 0x18f   : > { %3140 = vmatpush1.bf16.msra.mxu1 %v4360_v62  ;;  %3100 = vmatprep.subr.bf16.mxu0 %v4365_v63  ;;  %v3170_v63 = vld [vmem:[%s4967_s2] sm:$0xf] (!%p3753_p7) }
 0x190   : > { %3141 = vmatprep.subr.bf16.mxu1 %v4368_v0  ;;  %v3173_v62 = vshrl.u32 (!%p3753_p7), %v3172_v61, 7  ;;  %v3196_v0 = vld [vmem:[%s4968_s3] sm:$0xf] (!%p3753_p7) }
 0x192   : > { %3101 = vmatpush1.bf16.msra.mxu0 %v4363_v1  ;;  %v3174_v1 = vsub.s32 (!%p3753_p7), 0, %v3173_v62 }
 0x193   : > { %3142 = vmatpush1.bf16.msra.mxu1 %v4366_v2  ;;  %3102 = vmatprep.subr.bf16.mxu0 %v4371_v17  ;;  %v3178_v2 = vsub.s32 (!%p3753_p7), 1, %v3173_v62  ;;  %v3182_v17 = vsub.s32 (!%p3753_p7), 2, %v3173_v62 }
 0x194   : > { %3143 = vmatprep.subr.bf16.mxu1 %v4374_v18  ;;  %v3186_v18 = vsub.s32 (!%p3753_p7), 3, %v3173_v62 }
 0x196   : > { %3103 = vmatpush1.bf16.msra.mxu0 %v4369_v3 }
 0x197   : > { %3144 = vmatpush1.bf16.msra.mxu1 %v4372_v4 }
 0x199   : > { %3105 = vmatmul.mubr.bf16.vlgmr.msra.gmra.mrb[20].mxu0 %v4715_v35 }
 0x19a   : > { %3146 = vmatmul.mubr.bf16.vlgmr.msra.gmra.mrb[20].mxu1 %v4719_v36 }
 0x1ac   : > { %v2860_v6 = vpop.f32.mrb[8].mxu0 }
 0x1ad   : > { %v2901_v25 = vpop.f32.mrb[8].mxu1  ;;  %v2861_v26 = vadd.f32 %v2860_v6, %v4893_v39  ;;  %v2862_v9 = vpop.f32.mrb[9].mxu0  ;;  %v3222_v6 = vld [vmem:[%s4969_s4] sm:$0xff] (!%p3753_p7) }
 0x1ae   : > { %v2903_v11 = vpop.f32.mrb[9].mxu1  ;;  %v2863_v13 = vadd.f32 %v2862_v9, %v4897_v42  ;;  %v2864_v14 = vpop.f32.mrb[10].mxu0  ;;  %v3201_v9 = vrot.slane (!%p3753_p7), %v3196_v0, %v3174_v1 }
 0x1af   : > { %v2905_v15 = vpop.f32.mrb[10].mxu1  ;;  %v2902_v16 = vadd.f32 %v2901_v25, %v2861_v26  ;;  %v2865_v20 = vpop.f32.mrb[11].mxu0  ;;  %v3175_v25 = vrot.slane (!%p3753_p7), %v3170_v63, %v3174_v1  ;;  %v3179_v26 = vrot.slane (!%p3753_p7), %v3170_v63, %v3178_v2  ;;  %v3223_v14 = vld [vmem:[%s4969_s4 + $0x8] sm:$0xff] (!%p3753_p7) }
 0x1b0   : > { %v2906_v21 = vpop.f32.mrb[11].mxu1  ;;  %v2904_v22 = vadd.f32 %v2903_v11, %v2863_v13  ;;  %v3205_v11 = vrot.slane (!%p3753_p7), %v3196_v0, %v3178_v2  ;;  %v3183_v15 = vrot.slane (!%p3753_p7), %v3170_v63, %v3182_v17  ;;  %v3213_v20 = vrot.slane (!%p3753_p7), %v3196_v0, %v3186_v18 }
 0x1b1   : > { %v3154_v27 = vadd.f32 %v2902_v16, %v306_v12  ;;  %v3187_v16 = vrot.slane (!%p3753_p7), %v3170_v63, %v3186_v18 }
 0x1b2   : > { %v3155_v35 = vadd.f32 %v2904_v22, %v307_v19  ;;  %v3209_v19 = vrot.slane (!%p3753_p7), %v3196_v0, %v3182_v17 }
 0x1b3   : > { %3158 = vst [vmem:[#allocation2] sm:$0xff] %v3154_v27  ;;  %v3224_v27 = vunpack.c.l.bf16 (!%p3753_p7), %v3222_v6 }
 0x1b4   : > { %3159 = vst [vmem:[#allocation2 + $0x8] sm:$0xff] %v3155_v35  ;;  %v3225_v35 = vunpack.c.h.bf16 (!%p3753_p7), %v3222_v6 }
 0x1ba   : > { %v3166_v3 = vld [vmem:[#allocation2] sm:$0xff] (!%p3753_p7) }
 0x1bb   : > { %v3167_v4 = vld [vmem:[#allocation2 + $0x8] sm:$0xff] (!%p3753_p7)  ;;  %v3192_v21 = vmul.f32 (!%p3753_p7), %v3175_v25, %v3166_v3 }
 0x1bc   : > { %v3193_v22 = vmul.f32 (!%p3753_p7), %v3179_v26, %v3167_v4 }
 0x1ec   : > { %v2942_v36 = vpop.f32.mrb[12].mxu0 }
 0x1ed   : > { %v2983_v28 = vpop.f32.mrb[12].mxu1  ;;  %v2944_v30 = vpop.f32.mrb[13].mxu0 }
 0x1ee   : > { %v2984_v29 = vadd.f32 %v2983_v28, %v2942_v36  ;;  %v2985_v31 = vpop.f32.mrb[13].mxu1  ;;  %v2946_v33 = vpop.f32.mrb[14].mxu0 }
 0x1ef   : > { %v2986_v32 = vadd.f32 %v2985_v31, %v2944_v30  ;;  %v2987_v34 = vpop.f32.mrb[14].mxu1  ;;  %v2947_v39 = vpop.f32.mrb[15].mxu0  ;;  %v3227_v30 = vunpack.c.h.bf16 (!%p3753_p7), %v3223_v14  ;;  %v3218_v31 = vadd.f32 (!%p3753_p7), %v3201_v9, %v3192_v21 }
 0x1f0   : > { %v2988_v40 = vpop.f32.mrb[15].mxu1 }
 0x1f1   : > { %v3228_v39 = vadd.f32 (!%p3753_p7), %v3224_v27, %v3218_v31 }
 0x22c   : > { %v3024_v41 = vpop.f32.mrb[16].mxu0 }
 0x22d   : > { %v3065_v5 = vpop.f32.mrb[16].mxu1  ;;  %v3025_v10 = vadd.f32 %v3024_v41, %v2984_v29  ;;  %v3026_v42 = vpop.f32.mrb[17].mxu0  ;;  %v3226_v29 = vunpack.c.l.bf16 (!%p3753_p7), %v3223_v14 }
 0x22e   : > { %v3067_v23 = vpop.f32.mrb[17].mxu1  ;;  %v3027_v24 = vadd.f32 %v3026_v42, %v2986_v32  ;;  %v3028_v43 = vpop.f32.mrb[18].mxu0  ;;  %v3219_v32 = vadd.f32 (!%p3753_p7), %v3205_v11, %v3193_v22 }
 0x22f   : > { %v3069_v44 = vpop.f32.mrb[18].mxu1  ;;  %v3066_v45 = vadd.f32 %v3065_v5, %v3025_v10  ;;  %v3029_v46 = vpop.f32.mrb[19].mxu0  ;;  %v3232_v10 = vmax.f32 (!%p3753_p7), %v3228_v39, 0.0 }
 0x230   : > { %v3070_v47 = vpop.f32.mrb[19].mxu1  ;;  %v3068_v49 = vadd.f32 %v3067_v23, %v3027_v24  ;;  %v3229_v40 = vadd.f32 (!%p3753_p7), %v3225_v35, %v3219_v32 }
 0x232   : > { %v3233_v42 = vmax.f32 (!%p3753_p7), %v3229_v40, 0.0 }
 0x234   : > { %v3760_v43 = vpack.c.bf16 (!%p3753_p7), %v3233_v42, %v3232_v10 }
 0x236   : > { %3252 = vst [vmem:[%s4970_s5] sm:$0xff] (!%p3753_p7), %v3760_v43 }
 0x26c   : > { %v3106_v50 = vpop.f32.mrb[20].mxu0 }
 0x26d   : > { %v3147_v48 = vpop.f32.mrb[20].mxu1  ;;  %v3107_v52 = vadd.f32 %v3106_v50, %v3066_v45  ;;  %v3108_v51 = vpop.f32.mrb[21].mxu0 }
 0x26e   : > { %v3149_v53 = vpop.f32.mrb[21].mxu1  ;;  %v3109_v7 = vadd.f32 %v3108_v51, %v3068_v49  ;;  %v3110_v8 = vpop.f32.mrb[22].mxu0  ;;  %3165 = sbr.rel (%p3753_p7) target bundleno = 647 (0x287), region = 48 }
 0x26f   : > { %v3151_v55 = vpop.f32.mrb[22].mxu1  ;;  %v3148_v56 = vadd.f32 %v3147_v48, %v3107_v52  ;;  %v3111_v37 = vpop.f32.mrb[23].mxu0 }
 0x270   : > { %v3152_v38 = vpop.f32.mrb[23].mxu1  ;;  %v3150_v58 = vadd.f32 %v3149_v53, %v3109_v7 }
 0x271   : > { %v3156_v59 = vadd.f32 %v3148_v56, %v308_v54 }
 0x272   : > { %v3157_v60 = vadd.f32 %v3150_v58, %v309_v57 }
 0x273   : > { %3160 = vst [vmem:[#allocation2 + $0x10] sm:$0xff] %v3156_v59 }
 0x274   : > { %3161 = vst [vmem:[#allocation2 + $0x18] sm:$0xff] %v3157_v60 }
 0x27a   : > { %v3168_v12 = vld [vmem:[#allocation2 + $0x10] sm:$0xff] }
 0x27b   : > { %v3169_v13 = vld [vmem:[#allocation2 + $0x18] sm:$0xff]  ;;  %v3194_v36 = vmul.f32 %v3183_v15, %v3168_v12 }
 0x27c   : > { %v3195_v28 = vmul.f32 %v3187_v16, %v3169_v13 }
 0x27d   : > { %v3220_v33 = vadd.f32 %v3209_v19, %v3194_v36 }
 0x27e   : > { %v3221_v34 = vadd.f32 %v3213_v20, %v3195_v28 }
 0x27f   : > { %v3230_v41 = vadd.f32 %v3226_v29, %v3220_v33 }
 0x280   : > { %v3231_v5 = vadd.f32 %v3227_v30, %v3221_v34 }
 0x281   : > { %v3234_v23 = vmax.f32 %v3230_v41, 0.0 }
 0x282   : > { %v3235_v24 = vmax.f32 %v3231_v5, 0.0 }
 0x284   : > { %v3761_v44 = vpack.c.bf16 %v3235_v24, %v3234_v23 }
 0x286   : > { %3253 = vst [vmem:[%s4970_s5 + $0x8] sm:$0xff] %v3761_v44 }
 0x287 PF: > { %s15_s20 = sadd.s32 1, %s4397_s20   ;;  %s4971_s18 = smov %s4393_s19 }
 0x288   : > { %p12_p8 = scmp.ge.s32.totalorder %s15_s20, 5   ;;  %s4972_s19 = smov %s4974_s21 }
 0x28a   :  { %14 = sbr.rel (!%p12_p8) target bundleno = 2 (0x2), region = 84 }

</bundles_post_ra>
